<compile_context>
chip_gen: v7x
topology: tpu7x:2x2x1
jax: 0.10.0
libtpu: 0.0.40
codegen_flags: <defaults>
</compile_context>

<pallas_src>
import math

import jax
import jax.numpy as jnp
import numpy as np
from jax.experimental import pallas as pl
from jax.experimental.pallas import tpu as pltpu

EMB = 40                    # emb_size
HEADS = 10                  # num_heads
HEAD_DIM = EMB // HEADS     # 4  (from the hard-coded tril(..., 61, 4) mask)
SEQ = 61                    # sequence length implied by the hard-coded mask
SEQ_PAD = 64                # query rows padded to a sublane multiple
BATCH = 2
MAX_SEQ = 128               # max_sequence_length in __init__ (PE buffer)

QKV_PAD = 128               # fused q|k|v projection width (3*40=120 -> 128)
OUT_PAD = 128               # output projection width (40 -> 128, lane-dense stores)
INV_SCALE = 1.0 / (EMB ** 0.5)
SP_SHIFT = SEQ_PAD.bit_length() - 1     # 6  (row // 64  == row >> 6)
HD_SHIFT = HEAD_DIM.bit_length() - 1    # 2  (col // 4   == col >> 2)


def mha_kernel(x_ref, pe_ref, wqkv_ref, bqkv_ref, wp_ref, bp_ref, o_ref):
    B, SP, E = x_ref.shape                      # (2, 64, 40)

    # ---- fused Q|K|V projection, batched across the folded batch ----------
    xp = (x_ref[...] + pe_ref[...]).reshape(B * SP, E)                 # (128, 40)
    qkv = jnp.dot(xp, wqkv_ref[...],
                  preferred_element_type=jnp.float32) + bqkv_ref[...]  # (128, 128)

    # ---- masks generated in-kernel (no HBM inputs, no per-head loads) -----
    # hmask3[h, i, c] = 1 iff column c belongs to head h  (c // 4 == h)
    r_big = jax.lax.broadcasted_iota(jnp.int32, (HEADS * SP, E), 0)
    c_big = jax.lax.broadcasted_iota(jnp.int32, (HEADS * SP, E), 1)
    big_hmask = (jnp.right_shift(r_big, SP_SHIFT) ==
                 jnp.right_shift(c_big, HD_SHIFT)).astype(jnp.float32)  # (640, 40)
    hmask3 = big_hmask.reshape(HEADS, SP, E)                            # (10, 64, 40)
    # kmask[j, c] = tril(ones(61, 4))[j, c % 4]  — key/value mask from forward()
    r_k = jax.lax.broadcasted_iota(jnp.int32, (SEQ, E), 0)
    c_k = jax.lax.broadcasted_iota(jnp.int32, (SEQ, E), 1)
    kmask = (jnp.bitwise_and(c_k, HEAD_DIM - 1) <= r_k).astype(jnp.float32)  # (61, 40)

    outs = []
    for b in range(B):                           # static batch loop (B = 2)
        blk = qkv[b * SP:(b + 1) * SP]           # (64, 128), sublane-aligned slice
        q = blk[:, 0:EMB] * INV_SCALE            # 1/sqrt(E) hoisted onto q
        k = blk[0:SEQ, EMB:2 * EMB] * kmask      # (61, 40) keys, tril-masked
        v = blk[0:SEQ, 2 * EMB:3 * EMB] * kmask  # (61, 40) values, tril-masked

        # Stack ALL heads along M: big_q[h*64+i, c] = q[i, c] * (c//4 == h).
        # (per-head mask on k not needed: big_q zeroes non-head columns)
        big_q = (hmask3 * q[None]).reshape(HEADS * SP, E)               # (640, 40)

        # ONE energy matmul + ONE softmax + ONE PV matmul for all 10 heads.
        energy = jax.lax.dot_general(
            big_q, k, (((1,), (1,)), ((), ())),
            preferred_element_type=jnp.float32)                         # (640, 61)
        m = jnp.max(energy, axis=-1, keepdims=True)
        e = jnp.exp(energy - m)
        s = jnp.sum(e, axis=-1, keepdims=True)
        r = pl.reciprocal(s, approx=True)                               # EUP slot
        r = r * (2.0 - s * r)                                           # Newton step
        att = e * r                                                     # (640, 61)
        # att_drop: identity (eval mode / dropout disabled)
        out_big = jnp.dot(att, v, preferred_element_type=jnp.float32)   # (640, 40)

        # 'b h n d -> b n (h d)': per-head column select + sum (disjoint masks).
        out_cat = jnp.sum(out_big.reshape(HEADS, SP, E) * hmask3, axis=0)  # (64, 40)
        outs.append(out_cat)

    # ---- output projection, batched across the folded batch ---------------
    out_all = jnp.concatenate(outs, axis=0)                             # (128, 40)
    out = jnp.dot(out_all, wp_ref[...],
                  preferred_element_type=jnp.float32) + bp_ref[...]     # (128, 128)
    o_ref[...] = out.reshape(B, SP, OUT_PAD).astype(o_ref.dtype)


def multi_head_attention(x, pe, wq, bq, wk, bk, wv, bv, wp, bp):
    B, N, E = x.shape
    assert N == SEQ and E == EMB

    # Host-side prep (tiny XLA ops): fuse + lane-pad weights, pad seq to 64 rows.
    wqkv = jnp.zeros((E, QKV_PAD), x.dtype)
    wqkv = wqkv.at[:, 0:E].set(wq).at[:, E:2 * E].set(wk).at[:, 2 * E:3 * E].set(wv)
    bqkv = jnp.zeros((1, QKV_PAD), x.dtype)
    bqkv = bqkv.at[:, 0:E].set(bq).at[:, E:2 * E].set(bk).at[:, 2 * E:3 * E].set(bv)
    wp_pad = jnp.zeros((E, OUT_PAD), x.dtype).at[:, :E].set(wp)
    bp_pad = jnp.zeros((1, OUT_PAD), x.dtype).at[:, :E].set(bp)

    x_pad = jnp.zeros((B, SEQ_PAD, E), x.dtype).at[:, :N, :].set(x)
    pe_pad = jnp.zeros((1, SEQ_PAD, E), x.dtype).at[:, :N, :].set(pe)

    full2 = lambda i: (0, 0)
    full3 = lambda i: (0, 0, 0)
    out_padded = pl.pallas_call(
        mha_kernel,
        out_shape=jax.ShapeDtypeStruct((B, SEQ_PAD, OUT_PAD), x.dtype),
        grid=(1,),                                   # batch folded into one step
        in_specs=[
            pl.BlockSpec((B, SEQ_PAD, E), full3),    # x (row-padded)
            pl.BlockSpec((1, SEQ_PAD, E), full3),    # pe (sliced to N, row-padded)
            pl.BlockSpec((E, QKV_PAD), full2),       # fused Wq|Wk|Wv (lane-padded)
            pl.BlockSpec((1, QKV_PAD), full2),       # fused bq|bk|bv (lane-padded)
            pl.BlockSpec((E, OUT_PAD), full2),       # Wproj (lane-padded)
            pl.BlockSpec((1, OUT_PAD), full2),       # bproj (lane-padded)
        ],
        out_specs=pl.BlockSpec((B, SEQ_PAD, OUT_PAD), full3),
        compiler_params=pltpu.CompilerParams(
            dimension_semantics=("arbitrary",)),
    )(x_pad, pe_pad, wqkv, bqkv, wp_pad, bp_pad)
    return out_padded[:, :N, :E]                     # strip row + lane padding


def reference(x, pe, tril, wq, bq, wk, bk, wv, bv, wp, bp):
    """Pure-JAX re-implementation of the PyTorch forward (dropout = identity)."""
    B, N, E = x.shape
    xp = x + pe
    q = xp @ wq + bq
    k = xp @ wk + bk
    v = xp @ wv + bv

    def split_heads(t):
        return t.reshape(B, N, HEADS, HEAD_DIM).transpose(0, 2, 1, 3)   # b h n d

    q, k, v = split_heads(q), split_heads(k), split_heads(v)
    k = k * tril[None, None]
    v = v * tril[None, None]
    energy = jnp.einsum('bhqd,bhkd->bhqk', q, k)
    att = jax.nn.softmax(energy / (EMB ** 0.5), axis=-1)
    out = jnp.einsum('bhal,bhlv->bhav', att, v)
    out = out.transpose(0, 2, 1, 3).reshape(B, N, E)
    return out @ wp + bp


if __name__ == "__main__":
    key = jax.random.PRNGKey(0)
    ks = jax.random.split(key, 9)

    x = jax.random.normal(ks[0], (BATCH, SEQ, EMB), jnp.float32)

    def init_w(k):
        return jax.random.normal(k, (EMB, EMB), jnp.float32) / math.sqrt(EMB)

    def init_b(k):
        return jax.random.normal(k, (1, EMB), jnp.float32) * 0.01

    wq, wk, wv, wp = init_w(ks[1]), init_w(ks[2]), init_w(ks[3]), init_w(ks[4])
    bq, bk, bv, bp = init_b(ks[5]), init_b(ks[6]), init_b(ks[7]), init_b(ks[8])

    # Sinusoidal positional encoding buffer (same construction as __init__).
    position = jnp.arange(MAX_SEQ, dtype=jnp.float32)[:, None]
    div_term = jnp.exp(jnp.arange(0, EMB, 2, dtype=jnp.float32)
                       * (-math.log(10000.0) / EMB))
    ang = position * div_term                                  # (MAX_SEQ, EMB//2)
    pe_full = jnp.zeros((MAX_SEQ, EMB), jnp.float32)
    pe_full = pe_full.at[:, 0::2].set(jnp.sin(ang))
    pe_full = pe_full.at[:, 1::2].set(jnp.cos(ang))
    pe = pe_full[None, :SEQ, :]                                # pe[:, :x.size(1), :]

    # Hard-coded mask from forward(): torch.tril(torch.ones((b, 10, 61, 4)))
    # (identical for every b and h) — only needed host-side for the reference.
    tril = jnp.tril(jnp.ones((SEQ, HEAD_DIM), jnp.float32))    # (61, 4)

    out = multi_head_attention(x, pe, wq, bq, wk, bk, wv, bv, wp, bp)
    out = jax.block_until_ready(out)

    ref = reference(x, pe, tril, wq, bq, wk, bk, wv, bv, wp, bp)
    if not np.allclose(np.asarray(out), np.asarray(ref), atol=1e-4, rtol=1e-4):
        raise AssertionError("Pallas kernel does not match JAX reference")

    print("KERNEL_OK")
</pallas_src>

<mosaic_0001>
module attributes {stable_mosaic.version = 11 : i64} {
  func.func @mha_kernel(%arg0: i32, %arg1: memref<2x64x40xf32, #tpu.memory_space<vmem>>, %arg2: memref<1x64x40xf32, #tpu.memory_space<vmem>>, %arg3: memref<40x128xf32, #tpu.memory_space<vmem>>, %arg4: memref<1x128xf32, #tpu.memory_space<vmem>>, %arg5: memref<40x128xf32, #tpu.memory_space<vmem>>, %arg6: memref<1x128xf32, #tpu.memory_space<vmem>>, %arg7: memref<2x64x128xf32, #tpu.memory_space<vmem>>) attributes {dimension_semantics = [#tpu.dimension_semantics<arbitrary>], iteration_bounds = array<i64: 1>, scalar_prefetch = 0 : i64, scratch_operands = 0 : i64, tpu.core_type = #tpu.core_type<tc>, window_params = [{pipeline_mode = #tpu.pipeline_mode<synchronous>, transform_indices = @transform_0, window_bounds = array<i64: 2, 64, 40>}, {pipeline_mode = #tpu.pipeline_mode<synchronous>, transform_indices = @transform_1, window_bounds = array<i64: 1, 64, 40>}, {pipeline_mode = #tpu.pipeline_mode<synchronous>, transform_indices = @transform_2, window_bounds = array<i64: 40, 128>}, {pipeline_mode = #tpu.pipeline_mode<synchronous>, transform_indices = @transform_3, window_bounds = array<i64: 1, 128>}, {pipeline_mode = #tpu.pipeline_mode<synchronous>, transform_indices = @transform_4, window_bounds = array<i64: 40, 128>}, {pipeline_mode = #tpu.pipeline_mode<synchronous>, transform_indices = @transform_5, window_bounds = array<i64: 1, 128>}, {pipeline_mode = #tpu.pipeline_mode<synchronous>, transform_indices = @transform_6, window_bounds = array<i64: 2, 64, 128>}]} {
    %c0 = arith.constant 0 : index
    %c0_0 = arith.constant 0 : index
    %c0_1 = arith.constant 0 : index
    %0 = vector.load %arg1[%c0, %c0_0, %c0_1] : memref<2x64x40xf32, #tpu.memory_space<vmem>>, vector<2x64x40xf32>
    %c0_2 = arith.constant 0 : index
    %c0_3 = arith.constant 0 : index
    %c0_4 = arith.constant 0 : index
    %1 = vector.load %arg2[%c0_2, %c0_3, %c0_4] : memref<1x64x40xf32, #tpu.memory_space<vmem>>, vector<1x64x40xf32>
    %2 = vector.broadcast %1 : vector<1x64x40xf32> to vector<2x64x40xf32>
    %3 = arith.addf %0, %2 : vector<2x64x40xf32>
    %4 = vector.shape_cast %3 : vector<2x64x40xf32> to vector<128x40xf32>
    %c0_5 = arith.constant 0 : index
    %c0_6 = arith.constant 0 : index
    %5 = vector.load %arg3[%c0_5, %c0_6] : memref<40x128xf32, #tpu.memory_space<vmem>>, vector<40x128xf32>
    %cst = arith.constant dense<0.000000e+00> : vector<128x128xf32>
    %6 = tpu.matmul %4, %5, %cst {dimension_numbers = #tpu.dot_dimension_numbers<[1], [0], [0], [1], [0, 0, 1, 1], [], []>} : vector<128x40xf32>, vector<40x128xf32>, vector<128x128xf32> -> vector<128x128xf32>
    %c0_7 = arith.constant 0 : index
    %c0_8 = arith.constant 0 : index
    %7 = vector.load %arg4[%c0_7, %c0_8] : memref<1x128xf32, #tpu.memory_space<vmem>>, vector<1x128xf32>
    %8 = vector.broadcast %7 : vector<1x128xf32> to vector<128x128xf32>
    %9 = arith.addf %6, %8 : vector<128x128xf32>
    %10 = tpu.iota {dimensions = array<i32: 0>} : vector<640x40xi32>
    %11 = tpu.iota {dimensions = array<i32: 1>} : vector<640x40xi32>
    %c6_i32 = arith.constant 6 : i32
    %12 = vector.broadcast %c6_i32 : i32 to vector<640x40xi32>
    %13 = arith.shrsi %10, %12 : vector<640x40xi32>
    %c2_i32 = arith.constant 2 : i32
    %14 = vector.broadcast %c2_i32 : i32 to vector<640x40xi32>
    %15 = arith.shrsi %11, %14 : vector<640x40xi32>
    %16 = arith.cmpi eq, %13, %15 : vector<640x40xi32>
    %17 = arith.extui %16 : vector<640x40xi1> to vector<640x40xi32>
    %18 = arith.sitofp %17 : vector<640x40xi32> to vector<640x40xf32>
    %19 = vector.shape_cast %18 : vector<640x40xf32> to vector<10x64x40xf32>
    %20 = tpu.iota {dimensions = array<i32: 0>} : vector<61x40xi32>
    %21 = tpu.iota {dimensions = array<i32: 1>} : vector<61x40xi32>
    %c3_i32 = arith.constant 3 : i32
    %22 = vector.broadcast %c3_i32 : i32 to vector<61x40xi32>
    %23 = arith.andi %21, %22 : vector<61x40xi32>
    %24 = arith.cmpi sle, %23, %20 : vector<61x40xi32>
    %25 = arith.extui %24 : vector<61x40xi1> to vector<61x40xi32>
    %26 = arith.sitofp %25 : vector<61x40xi32> to vector<61x40xf32>
    %27 = vector.extract_strided_slice %9 {offsets = [0, 0], sizes = [64, 128], strides = [1, 1]} : vector<128x128xf32> to vector<64x128xf32>
    %28 = vector.extract_strided_slice %27 {offsets = [0, 0], sizes = [64, 40], strides = [1, 1]} : vector<64x128xf32> to vector<64x40xf32>
    %cst_9 = arith.constant 0.158113882 : f32
    %29 = vector.broadcast %cst_9 : f32 to vector<64x40xf32>
    %30 = arith.mulf %28, %29 : vector<64x40xf32>
    %31 = vector.extract_strided_slice %27 {offsets = [0, 40], sizes = [61, 40], strides = [1, 1]} : vector<64x128xf32> to vector<61x40xf32>
    %32 = arith.mulf %31, %26 : vector<61x40xf32>
    %33 = vector.extract_strided_slice %27 {offsets = [0, 80], sizes = [61, 40], strides = [1, 1]} : vector<64x128xf32> to vector<61x40xf32>
    %34 = arith.mulf %33, %26 : vector<61x40xf32>
    %35 = vector.shape_cast %30 : vector<64x40xf32> to vector<1x64x40xf32>
    %36 = vector.broadcast %35 : vector<1x64x40xf32> to vector<10x64x40xf32>
    %37 = arith.mulf %19, %36 : vector<10x64x40xf32>
    %38 = vector.shape_cast %37 : vector<10x64x40xf32> to vector<640x40xf32>
    %cst_10 = arith.constant dense<0.000000e+00> : vector<640x61xf32>
    %39 = tpu.matmul %38, %32, %cst_10 {dimension_numbers = #tpu.dot_dimension_numbers<[1], [1], [0], [0], [0, 0, 1, 0], [], []>} : vector<640x40xf32>, vector<61x40xf32>, vector<640x61xf32> -> vector<640x61xf32>
    %cst_11 = arith.constant dense<0xFF800000> : vector<640xf32>
    %40 = vector.multi_reduction <maximumf>, %39, %cst_11 [1] : vector<640x61xf32> to vector<640xf32>
    %41 = vector.shape_cast %40 : vector<640xf32> to vector<640x1xf32>
    %42 = vector.broadcast %41 : vector<640x1xf32> to vector<640x61xf32>
    %43 = arith.subf %39, %42 : vector<640x61xf32>
    %44 = math.exp %43 : vector<640x61xf32>
    %cst_12 = arith.constant dense<0.000000e+00> : vector<640xf32>
    %45 = vector.multi_reduction <add>, %44, %cst_12 [1] : vector<640x61xf32> to vector<640xf32>
    %46 = vector.shape_cast %45 : vector<640xf32> to vector<640x1xf32>
    %47 = tpu.reciprocal %46 {approx = true} : vector<640x1xf32> -> vector<640x1xf32>
    %48 = arith.mulf %46, %47 : vector<640x1xf32>
    %cst_13 = arith.constant 2.000000e+00 : f32
    %49 = vector.broadcast %cst_13 : f32 to vector<640x1xf32>
    %50 = arith.subf %49, %48 : vector<640x1xf32>
    %51 = arith.mulf %47, %50 : vector<640x1xf32>
    %52 = vector.broadcast %51 : vector<640x1xf32> to vector<640x61xf32>
    %53 = arith.mulf %44, %52 : vector<640x61xf32>
    %cst_14 = arith.constant dense<0.000000e+00> : vector<640x40xf32>
    %54 = tpu.matmul %53, %34, %cst_14 {dimension_numbers = #tpu.dot_dimension_numbers<[1], [0], [0], [1], [0, 0, 1, 1], [], []>} : vector<640x61xf32>, vector<61x40xf32>, vector<640x40xf32> -> vector<640x40xf32>
    %55 = vector.shape_cast %54 : vector<640x40xf32> to vector<10x64x40xf32>
    %56 = arith.mulf %55, %19 : vector<10x64x40xf32>
    %cst_15 = arith.constant dense<0.000000e+00> : vector<64x40xf32>
    %57 = vector.multi_reduction <add>, %56, %cst_15 [0] : vector<10x64x40xf32> to vector<64x40xf32>
    %58 = vector.extract_strided_slice %9 {offsets = [64, 0], sizes = [64, 128], strides = [1, 1]} : vector<128x128xf32> to vector<64x128xf32>
    %59 = vector.extract_strided_slice %58 {offsets = [0, 0], sizes = [64, 40], strides = [1, 1]} : vector<64x128xf32> to vector<64x40xf32>
    %cst_16 = arith.constant 0.158113882 : f32
    %60 = vector.broadcast %cst_16 : f32 to vector<64x40xf32>
    %61 = arith.mulf %59, %60 : vector<64x40xf32>
    %62 = vector.extract_strided_slice %58 {offsets = [0, 40], sizes = [61, 40], strides = [1, 1]} : vector<64x128xf32> to vector<61x40xf32>
    %63 = arith.mulf %62, %26 : vector<61x40xf32>
    %64 = vector.extract_strided_slice %58 {offsets = [0, 80], sizes = [61, 40], strides = [1, 1]} : vector<64x128xf32> to vector<61x40xf32>
    %65 = arith.mulf %64, %26 : vector<61x40xf32>
    %66 = vector.shape_cast %61 : vector<64x40xf32> to vector<1x64x40xf32>
    %67 = vector.broadcast %66 : vector<1x64x40xf32> to vector<10x64x40xf32>
    %68 = arith.mulf %19, %67 : vector<10x64x40xf32>
    %69 = vector.shape_cast %68 : vector<10x64x40xf32> to vector<640x40xf32>
    %cst_17 = arith.constant dense<0.000000e+00> : vector<640x61xf32>
    %70 = tpu.matmul %69, %63, %cst_17 {dimension_numbers = #tpu.dot_dimension_numbers<[1], [1], [0], [0], [0, 0, 1, 0], [], []>} : vector<640x40xf32>, vector<61x40xf32>, vector<640x61xf32> -> vector<640x61xf32>
    %cst_18 = arith.constant dense<0xFF800000> : vector<640xf32>
    %71 = vector.multi_reduction <maximumf>, %70, %cst_18 [1] : vector<640x61xf32> to vector<640xf32>
    %72 = vector.shape_cast %71 : vector<640xf32> to vector<640x1xf32>
    %73 = vector.broadcast %72 : vector<640x1xf32> to vector<640x61xf32>
    %74 = arith.subf %70, %73 : vector<640x61xf32>
    %75 = math.exp %74 : vector<640x61xf32>
    %cst_19 = arith.constant dense<0.000000e+00> : vector<640xf32>
    %76 = vector.multi_reduction <add>, %75, %cst_19 [1] : vector<640x61xf32> to vector<640xf32>
    %77 = vector.shape_cast %76 : vector<640xf32> to vector<640x1xf32>
    %78 = tpu.reciprocal %77 {approx = true} : vector<640x1xf32> -> vector<640x1xf32>
    %79 = arith.mulf %77, %78 : vector<640x1xf32>
    %cst_20 = arith.constant 2.000000e+00 : f32
    %80 = vector.broadcast %cst_20 : f32 to vector<640x1xf32>
    %81 = arith.subf %80, %79 : vector<640x1xf32>
    %82 = arith.mulf %78, %81 : vector<640x1xf32>
    %83 = vector.broadcast %82 : vector<640x1xf32> to vector<640x61xf32>
    %84 = arith.mulf %75, %83 : vector<640x61xf32>
    %cst_21 = arith.constant dense<0.000000e+00> : vector<640x40xf32>
    %85 = tpu.matmul %84, %65, %cst_21 {dimension_numbers = #tpu.dot_dimension_numbers<[1], [0], [0], [1], [0, 0, 1, 1], [], []>} : vector<640x61xf32>, vector<61x40xf32>, vector<640x40xf32> -> vector<640x40xf32>
    %86 = vector.shape_cast %85 : vector<640x40xf32> to vector<10x64x40xf32>
    %87 = arith.mulf %86, %19 : vector<10x64x40xf32>
    %cst_22 = arith.constant dense<0.000000e+00> : vector<64x40xf32>
    %88 = vector.multi_reduction <add>, %87, %cst_22 [0] : vector<10x64x40xf32> to vector<64x40xf32>
    %89 = tpu.concatenate %57, %88 in 0 : vector<64x40xf32>, vector<64x40xf32> -> vector<128x40xf32>
    %c0_23 = arith.constant 0 : index
    %c0_24 = arith.constant 0 : index
    %90 = vector.load %arg5[%c0_23, %c0_24] : memref<40x128xf32, #tpu.memory_space<vmem>>, vector<40x128xf32>
    %cst_25 = arith.constant dense<0.000000e+00> : vector<128x128xf32>
    %91 = tpu.matmul %89, %90, %cst_25 {dimension_numbers = #tpu.dot_dimension_numbers<[1], [0], [0], [1], [0, 0, 1, 1], [], []>} : vector<128x40xf32>, vector<40x128xf32>, vector<128x128xf32> -> vector<128x128xf32>
    %c0_26 = arith.constant 0 : index
    %c0_27 = arith.constant 0 : index
    %92 = vector.load %arg6[%c0_26, %c0_27] : memref<1x128xf32, #tpu.memory_space<vmem>>, vector<1x128xf32>
    %93 = vector.broadcast %92 : vector<1x128xf32> to vector<128x128xf32>
    %94 = arith.addf %91, %93 : vector<128x128xf32>
    %95 = vector.shape_cast %94 : vector<128x128xf32> to vector<2x64x128xf32>
    %c0_28 = arith.constant 0 : index
    %c0_29 = arith.constant 0 : index
    %c0_30 = arith.constant 0 : index
    %96 = vector.load %arg7[%c0_28, %c0_29, %c0_30] : memref<2x64x128xf32, #tpu.memory_space<vmem>>, vector<2x64x128xf32>
    tpu.vector_store %arg7[%c0_28, %c0_29, %c0_30], %95 {strides = array<i32>} : memref<2x64x128xf32, #tpu.memory_space<vmem>>, vector<2x64x128xf32>,
    return
  }
  func.func @transform_0(%arg0: i32) -> (i32, i32, i32) {
    %c0_i32 = arith.constant 0 : i32
    %c0_i32_0 = arith.constant 0 : i32
    %c0_i32_1 = arith.constant 0 : i32
    %c0_i32_2 = arith.constant 0 : i32
    return %c0_i32, %c0_i32_0, %c0_i32_1 : i32, i32, i32
  }
  func.func @transform_1(%arg0: i32) -> (i32, i32, i32) {
    %c0_i32 = arith.constant 0 : i32
    %c0_i32_0 = arith.constant 0 : i32
    %c0_i32_1 = arith.constant 0 : i32
    %c0_i32_2 = arith.constant 0 : i32
    return %c0_i32, %c0_i32_0, %c0_i32_1 : i32, i32, i32
  }
  func.func @transform_2(%arg0: i32) -> (i32, i32) {
    %c0_i32 = arith.constant 0 : i32
    %c0_i32_0 = arith.constant 0 : i32
    %c0_i32_1 = arith.constant 0 : i32
    return %c0_i32, %c0_i32_0 : i32, i32
  }
  func.func @transform_3(%arg0: i32) -> (i32, i32) {
    %c0_i32 = arith.constant 0 : i32
    %c0_i32_0 = arith.constant 0 : i32
    %c0_i32_1 = arith.constant 0 : i32
    return %c0_i32, %c0_i32_0 : i32, i32
  }
  func.func @transform_4(%arg0: i32) -> (i32, i32) {
    %c0_i32 = arith.constant 0 : i32
    %c0_i32_0 = arith.constant 0 : i32
    %c0_i32_1 = arith.constant 0 : i32
    return %c0_i32, %c0_i32_0 : i32, i32
  }
  func.func @transform_5(%arg0: i32) -> (i32, i32) {
    %c0_i32 = arith.constant 0 : i32
    %c0_i32_0 = arith.constant 0 : i32
    %c0_i32_1 = arith.constant 0 : i32
    return %c0_i32, %c0_i32_0 : i32, i32
  }
  func.func @transform_6(%arg0: i32) -> (i32, i32, i32) {
    %c0_i32 = arith.constant 0 : i32
    %c0_i32_0 = arith.constant 0 : i32
    %c0_i32_1 = arith.constant 0 : i32
    %c0_i32_2 = arith.constant 0 : i32
    return %c0_i32, %c0_i32_0, %c0_i32_1 : i32, i32, i32
  }
}

</mosaic_0001>

<bundles_post_ra>
// kernel: tpu_custom_call.1
= control target key start
LH: loop header
LB: loop body
LE: loop exit
PB: predicated region body
PF: predicated region fallthrough
CT: control target
= control target key end

     0   :  { %v270_v3 = vlaneseq  ;;  %vm76_vm0 = vcmask 326656   ;;  %v9231_v16 = vmov 1.0|1.0   ;;  %s9232_s15 = smov 40   ;;  %v14145_v19 = vmov 0.0   ;;  %s14106_s0 = inlined_call_operand.vmem [shape: f32[2,64,40], index: 0, kind: input, shape index: {}]   ;;  %s14107_s1 = inlined_call_operand.vmem [shape: f32[1,64,40], index: 1, kind: input, shape index: {}]   ;;  %s14108_s2 = inlined_call_operand.vmem [shape: f32[40,128], index: 2, kind: input, shape index: {}]   ;;  %s14109_s3 = inlined_call_operand.vmem [shape: f32[1,128], index: 3, kind: input, shape index: {}]   ;;  %s14110_s4 = inlined_call_operand.vmem [shape: f32[40,128], index: 4, kind: input, shape index: {}]   ;;  %s14111_s5 = inlined_call_operand.vmem [shape: f32[1,128], index: 5, kind: input, shape index: {}]   ;;  %s14112_s6 = inlined_call_operand.hbm [shape: f32[2,64,128], index: 6, kind: output, shape index: {}]  }
   0x1   :  { %v64_v0 = vld [vmem:[%s14108_s2] sm:$0xff]  ;;  %v65_v1 = vld [vmem:[%s14108_s2 + $0x8] sm:$0xff]  ;;  %v66_v2 = vld [vmem:[%s14108_s2 + $0x10] sm:$0xff]  ;;  %8458 = vrot.lane.b32.xlu1 %v9231_v16, %s9232_s15  ;;  %v9234_v22 = vmov 1.0  }
   0x2   :  { %v8331_v4 = vpack.c.bf16 %v65_v1, %v64_v0  ;;  %v67_v5 = vld [vmem:[%s14108_s2 + $0x18] sm:$0xff]  ;;  %v24_v6 = vld [vmem:[%s14106_s0] sm:$0xff]  ;;  %v9295_v9 = vshrl.u32 %v270_v3, 7  ;;  %v9297_v10 = vand.u32 127, %v270_v3  ;;  %v25_v14 = vld [vmem:[%s14106_s0 + $0x8] sm:$0xff] }
   0x3   :  { %v8335_v7 = vpack.c.bf16 %v67_v5, %v66_v2  ;;  %v40_v8 = vld [vmem:[%s14107_s1] sm:$0xff]  ;;  %v41_v15 = vld [vmem:[%s14107_s1 + $0x8] sm:$0xff]  ;;  %v26_v17 = vld [vmem:[%s14106_s0 + $0x10] sm:$0xff] }
   0x4   :  { %8332 = vmatprep.subr.bf16.mxu0 %v8331_v4  ;;  %v48_v11 = vadd.f32 %v40_v8, %v24_v6  ;;  %v674_v12 = vand.u32 3, %v9297_v10  ;;  %v68_v13 = vld [vmem:[%s14108_s2 + $0x20] sm:$0xff]  ;;  %v42_v18 = vld [vmem:[%s14107_s1 + $0x10] sm:$0xff]  ;;  %v49_v21 = vadd.f32 %v41_v15, %v25_v14 }
   0x5   :  { %8334 = vmatpush3.bf16.msra.mxu0 %v8331_v4 }
   0x6   :  { %8336 = vmatprep.subr.bf16.mxu0 %v8335_v7  ;;  %7729 = vmatprep.mubr.msk.f32.mxu0 %vm76_vm0, %v48_v11  ;;  %vm675_vm1 = vcmp.le.s32.totalorder %v674_v12, %v9295_v9 }
   0x7   :  { %v6969_v20 = vsel %vm675_vm1, 1.0, %v14145_v19 }
   0x8   :  { %v9319_v23 = vpack.i.bf16 %v9234_v22, %v6969_v20 }
   0x9   :  { %8338 = vmatpush3.bf16.msra.mxu0 %v8335_v7 }
   0xa   :  { %7727 = vmatprep.subr.mxu0 %v68_v13 }
   0xb   :  { %11 = vsyncpa [#allocation3], 0  ;;  %v50_v24 = vadd.f32 %v42_v18, %v26_v17  ;;  %v27_v25 = vld [vmem:[%s14106_s0 + $0x18] sm:$0xff]  ;;  %8463 = vrot.lane.b32.xlu1 %v9231_v16, %s9232_s15  ;;  %v28_v27 = vld [vmem:[%s14106_s0 + $0x20] sm:$0xff]  ;;  %8448 = vrot.lane.b32.xlu0 %v9319_v23, %s9232_s15  ;;  %v9394_v56 = vshra.s32 %v9297_v10, 2  ;;  %v353_v58 = vshra.s32 %v9295_v9, 6 }
   0xc   :  { %v43_v26 = vld [vmem:[%s14107_s1 + $0x18] sm:$0xff]  ;;  %v44_v28 = vld [vmem:[%s14107_s1 + $0x20] sm:$0xff]  ;;  %v29_v31 = vld [vmem:[%s14106_s0 + $0x28] sm:$0xff]  ;;  %s9237_s7 = smov 48  }
   0xd   :  { %7728 = vmatpush3.msra.mxu0 %v68_v13  ;;  %v51_v29 = vadd.f32 %v43_v26, %v27_v25  ;;  %v52_v30 = vadd.f32 %v44_v28, %v28_v27  ;;  %v45_v32 = vld [vmem:[%s14107_s1 + $0x28] sm:$0xff]  ;;  %v30_v33 = vld [vmem:[%s14106_s0 + $0x30] sm:$0xff]  ;;  %v31_v37 = vld [vmem:[%s14106_s0 + $0x38] sm:$0xff]  ;;  %vm434_vm2 = vcmp.eq.s32.totalorder %v353_v58, %v9394_v56 }
   0xe   :  { %7730 = vmatmul.mubr.msk.f32.vlgmr.msra.gmra.mrb[0].mxu0 %vm76_vm0, %v49_v21  ;;  %v46_v34 = vld [vmem:[%s14107_s1 + $0x30] sm:$0xff]  ;;  %v53_v35 = vadd.f32 %v45_v32, %v29_v31  ;;  %v47_v38 = vld [vmem:[%s14107_s1 + $0x38] sm:$0xff]  ;;  %v32_v39 = vld [vmem:[%s14106_s0 + $0x40] sm:$0xff]  ;;  %v9413_v6 = vsel %vm434_vm2, 1.0, %v14145_v19 }
   0xf   :  { %7732 = vmatprep.mubr.msk.f32.mxu0 %vm76_vm0, %v50_v24  ;;  %8453 = vrot.lane.b32.xlu0 %v9231_v16, %s9232_s15  ;;  %v54_v36 = vadd.f32 %v46_v34, %v30_v33  ;;  %v55_v40 = vadd.f32 %v47_v38, %v31_v37  ;;  %v56_v41 = vadd.f32 %v40_v8, %v32_v39  ;;  %v33_v42 = vld [vmem:[%s14106_s0 + $0x48] sm:$0xff]  ;;  %v34_v43 = vld [vmem:[%s14106_s0 + $0x50] sm:$0xff]  ;;  %v35_v46 = vld [vmem:[%s14106_s0 + $0x58] sm:$0xff] }
  0x10   :  { %v57_v44 = vadd.f32 %v41_v15, %v33_v42  ;;  %v58_v45 = vadd.f32 %v42_v18, %v34_v43  ;;  %v36_v47 = vld [vmem:[%s14106_s0 + $0x60] sm:$0xff]  ;;  %v59_v48 = vadd.f32 %v43_v26, %v35_v46  ;;  %v37_v50 = vld [vmem:[%s14106_s0 + $0x68] sm:$0xff]  ;;  %v38_v51 = vld [vmem:[%s14106_s0 + $0x70] sm:$0xff]  ;;  %14627 = vst [vmem:[#allocation5_spill] sm:$0xff] %v9413_v6 }
  0x11   :  { %v60_v49 = vadd.f32 %v44_v28, %v36_v47  ;;  %v61_v52 = vadd.f32 %v45_v32, %v37_v50  ;;  %v62_v53 = vadd.f32 %v46_v34, %v38_v51  ;;  %v39_v54 = vld [vmem:[%s14106_s0 + $0x78] sm:$0xff]  ;;  %v9400_v59 = vld [vmem:[%s14109_s3] ss:$0 sm:$0xff]  ;;  %s9235_s0 = smov 88   ;;  %s9236_s3 = smov 80   ;;  %vm9514_vm3 = vmpackc.low %vm76_vm0, %vm76_vm0 }
  0x12   :  { %7733 = vmatmul.mubr.msk.f32.gmra.mrb[2].mxu0 %vm76_vm0, %v51_v29  ;;  %v63_v55 = vadd.f32 %v47_v38, %v39_v54 }
  0x13   :  { %7735 = vmatprep.mubr.msk.f32.mxu0 %vm76_vm0, %v52_v30 }
  0x16   :  { %7736 = vmatmul.mubr.msk.f32.gmra.mrb[4].mxu0 %vm76_vm0, %v53_v35 }
  0x17   :  { %7738 = vmatprep.mubr.msk.f32.mxu0 %vm76_vm0, %v54_v36 }
  0x1a   :  { %7739 = vmatmul.mubr.msk.f32.gmra.mrb[6].mxu0 %vm76_vm0, %v55_v40 }
  0x1b   :  { %7741 = vmatprep.mubr.msk.f32.mxu0 %vm76_vm0, %v56_v41 }
  0x1e   :  { %7742 = vmatmul.mubr.msk.f32.gmra.mrb[8].mxu0 %vm76_vm0, %v57_v44 }
  0x1f   :  { %7744 = vmatprep.mubr.msk.f32.mxu0 %vm76_vm0, %v58_v45 }
  0x22   :  { %7745 = vmatmul.mubr.msk.f32.gmra.mrb[10].mxu0 %vm76_vm0, %v59_v48 }
  0x23   :  { %7747 = vmatprep.mubr.msk.f32.mxu0 %vm76_vm0, %v60_v49 }
  0x26   :  { %7748 = vmatmul.mubr.msk.f32.gmra.mrb[12].mxu0 %vm76_vm0, %v61_v52 }
  0x27   :  { %7750 = vmatprep.mubr.msk.f32.mxu0 %vm76_vm0, %v62_v53 }
  0x2a   :  { %7751 = vmatmul.mubr.msk.f32.gmra.mrb[14].mxu0 %vm76_vm0, %v63_v55 }
  0x73   :  { %v9409_v3 = vpop.permute.xlu1 %8458 }
  0x74   :  { %v8461_v20 = vunpack.i.h.bf16 %v9409_v3  ;;  %v8460_v22 = vunpack.i.l.bf16 %v9409_v3 }
  0x7d   :  { %v8449_v57 = vpop.permute.xlu0 %8448  ;;  %v8464_v25 = vpop.permute.xlu1 %8463 }
  0x7e   :  { %v8451_v60 = vunpack.i.h.bf16 %v8449_v57  ;;  %v8450_v61 = vunpack.i.l.bf16 %v8449_v57  ;;  %v8466_v31 = vunpack.i.h.bf16 %v8464_v25  ;;  %v8465_v33 = vunpack.i.l.bf16 %v8464_v25 }
  0x81   :  { %v8454_v63 = vpop.permute.xlu0 %8453 }
  0x82   :  { %v8456_v5 = vunpack.i.h.bf16 %v8454_v63  ;;  %v8455_v10 = vunpack.i.l.bf16 %v8454_v63 }
  0xe1   :  { %v7731_v62 = vpop.f32.mrb[0].mxu0 }
  0xe2   :  { %v9404_v0 = vadd.f32 %v7731_v62, %v9400_v59  ;;  %v191_v1 = vpop.f32.mrb[1].mxu0 }
  0xe3   :  { %v9407_v2 = vadd.f32 %v9400_v59, %v191_v1 }
  0xe4   :  { %v740_v4 = vmul.f32 %v8451_v60, %v9404_v0 }
  0xe5   :  { %v9416_v7 = vmul.f32 0.15811388, %v9407_v2  ;;  %v739_v8 = vmul.f32 %v8450_v61, %v9407_v2  ;;  %v7734_v11 = vpop.f32.mrb[2].mxu0 }
  0xe6   :  { %v9420_v12 = vadd.f32 %v7734_v11, %v9400_v59  ;;  %v201_v13 = vpop.f32.mrb[3].mxu0 }
  0xe7   :  { %v9423_v14 = vadd.f32 %v9400_v59, %v201_v13  ;;  %v8467_v15 = vpack.i.bf16 %v740_v4, %v739_v8  ;;  %v779_v17 = vmul.f32 %v9413_v6, %v9416_v7 }
  0xe8   :  { %v742_v18 = vmul.f32 %v8456_v5, %v9420_v12 }
  0xe9   :  { %v741_v21 = vmul.f32 %v8455_v10, %v9423_v14  ;;  %v7737_v24 = vpop.f32.mrb[4].mxu0  ;;  %8468 = vrot.lane.b32.xlu0 %v8467_v15, %s9235_s0  ;;  %7769 = vmatprep.mubr.msk.f32.mxu1 %vm76_vm0, %v779_v17 }
  0xea   :  { %v9434_v26 = vadd.f32 %v7737_v24, %v9400_v59  ;;  %v211_v27 = vpop.f32.mrb[5].mxu0 }
  0xeb   :  { %v9437_v28 = vadd.f32 %v9400_v59, %v211_v27  ;;  %v8472_v29 = vpack.i.bf16 %v742_v18, %v741_v21 }
  0xec   :  { %v744_v30 = vmul.f32 %v8461_v20, %v9434_v26 }
  0xed   :  { %v743_v32 = vmul.f32 %v8460_v22, %v9437_v28  ;;  %v7740_v34 = vpop.f32.mrb[6].mxu0  ;;  %8473 = vrot.lane.b32.xlu1 %v8472_v29, %s9235_s0 }
  0xee   :  { %v9443_v35 = vadd.f32 %v7740_v34, %v9400_v59  ;;  %v221_v36 = vpop.f32.mrb[7].mxu0 }
  0xef   :  { %v9446_v37 = vadd.f32 %v9400_v59, %v221_v36  ;;  %v8477_v38 = vpack.i.bf16 %v744_v30, %v743_v32 }
  0xf0   :  { %v746_v39 = vmul.f32 %v8466_v31, %v9443_v35 }
  0xf1   :  { %v745_v40 = vmul.f32 %v8465_v33, %v9446_v37  ;;  %v7743_v41 = vpop.f32.mrb[8].mxu0  ;;  %8478 = vrot.lane.b32.xlu0 %v8477_v38, %s9235_s0 }
  0xf2   :  { %v9452_v42 = vadd.f32 %v7743_v41, %v9400_v59  ;;  %v231_v43 = vpop.f32.mrb[9].mxu0 }
  0xf3   :  { %v9455_v44 = vadd.f32 %v9400_v59, %v231_v43  ;;  %v8482_v45 = vpack.i.bf16 %v746_v39, %v745_v40 }
  0xf4   :  { %v9458_v46 = vmul.f32 %v8451_v60, %v9452_v42 }
  0xf5   :  { %v9461_v47 = vmul.f32 %v8450_v61, %v9455_v44  ;;  %v7746_v48 = vpop.f32.mrb[10].mxu0  ;;  %8483 = vrot.lane.b32.xlu1 %v8482_v45, %s9235_s0  ;;  %8493 = vrot.lane.b32.xlu0 %v9231_v16, %s9236_s3 }
  0xf6   :  { %v9466_v49 = vadd.f32 %v7746_v48, %v9400_v59  ;;  %v241_v50 = vpop.f32.mrb[11].mxu0 }
  0xf7   :  { %v9469_v51 = vadd.f32 %v9400_v59, %v241_v50  ;;  %v8527_v52 = vpack.i.bf16 %v9458_v46, %v9461_v47  ;;  %v279_v46 = vadd.s32 64, %v9295_v9  ;;  %v9578_v47 = vmul.f32 0.15811388, %v9420_v12 }
  0xf8   :  { %v9474_v53 = vmul.f32 %v8456_v5, %v9466_v49 }
  0xf9   :  { %v9477_v54 = vmul.f32 %v8455_v10, %v9469_v51  ;;  %v7749_v55 = vpop.f32.mrb[12].mxu0  ;;  %8488 = vrot.lane.b32.xlu1 %v9319_v23, %s9236_s3 }
  0xfa   :  { %v9481_v57 = vadd.f32 %v7749_v55, %v9400_v59  ;;  %v251_v58 = vpop.f32.mrb[13].mxu0 }
  0xfb   :  { %v9484_v60 = vadd.f32 %v9400_v59, %v251_v58  ;;  %v8537_v61 = vpack.i.bf16 %v9474_v53, %v9477_v54  ;;  %v280_v54 = vadd.s32 72, %v9295_v9 }
  0xfc   :  { %v9489_v62 = vmul.f32 %v8461_v20, %v9481_v57 }
  0xfd   :  { %v9492_v63 = vmul.f32 %v8460_v22, %v9484_v60  ;;  %v7752_v1 = vpop.f32.mrb[14].mxu0  ;;  %8498 = vrot.lane.b32.xlu1 %v9231_v16, %s9236_s3 }
  0xfe   :  { %v9496_v23 = vadd.f32 %v7752_v1, %v9400_v59  ;;  %v261_v3 = vpop.f32.mrb[15].mxu0  ;;  %v272_v1 = vadd.s32 8, %v9295_v9 }
  0xff   :  { %v9499_v4 = vadd.f32 %v9400_v59, %v261_v3  ;;  %v8547_v5 = vpack.i.bf16 %v9489_v62, %v9492_v63  ;;  %v362_v62 = vshra.s32 %v280_v54, 6  ;;  %v282_v63 = vadd.s32 88, %v9295_v9 }
 0x100   :  { %v9504_v8 = vmul.f32 %v8466_v31, %v9496_v23  ;;  %v350_v59 = vadd.s32 632, %v9295_v9 }
 0x101   :  { %v9507_v10 = vmul.f32 %v8465_v33, %v9499_v4  ;;  %8503 = vrot.lane.b32.xlu1 %v9231_v16, %s9236_s3  ;;  %vm443_vm12 = vcmp.eq.s32.totalorder %v362_v62, %v9394_v56 }
 0x103   :  { %v8557_v11 = vpack.i.bf16 %v9504_v8, %v9507_v10  ;;  %v284_v8 = vadd.s32 104, %v9295_v9 }
 0x15b   :  { %v8469_v13 = vpop.permute.xlu0 %8468 }
 0x15c   :  { %v8471_v15 = vunpack.i.h.bf16 %v8469_v13  ;;  %v8470_v17 = vunpack.i.l.bf16 %v8469_v13 }
 0x15e   :  { %v8339_v18 = vpack.c.bf16 %v8471_v15, %v8470_v17  ;;  %v273_v17 = vadd.s32 16, %v9295_v9 }
 0x15f   :  { %v8474_v20 = vpop.permute.xlu1 %8473 }
 0x160   :  { %v8476_v21 = vunpack.i.h.bf16 %v8474_v20  ;;  %v8475_v22 = vunpack.i.l.bf16 %v8474_v20  ;;  %8341 = vmatprep.subr.msk.bf16.mxu1 %vm9514_vm3, %v8339_v18 }
 0x161   :  { %8344 = vmatpush3.bf16.xpose.msk.msra.mxu1 %vm9514_vm3, %v8339_v18 }
 0x162   :  { %v8345_v16 = vpack.c.bf16 %v8476_v21, %v8475_v22  ;;  %v354_v21 = vshra.s32 %v272_v1, 6  ;;  %v274_v22 = vadd.s32 24, %v9295_v9  ;;  %v278_v1 = vadd.s32 56, %v9295_v9 }
 0x163   :  { %v8479_v24 = vpop.permute.xlu0 %8478 }
 0x164   :  { %v8481_v25 = vunpack.i.h.bf16 %v8479_v24  ;;  %v8480_v27 = vunpack.i.l.bf16 %v8479_v24  ;;  %8347 = vmatprep.subr.msk.bf16.mxu1 %vm9514_vm3, %v8345_v16  ;;  %vm435_vm4 = vcmp.eq.s32.totalorder %v354_v21, %v9394_v56  ;;  %v360_v53 = vshra.s32 %v278_v1, 6 }
 0x165   :  { %v281_v21 = vadd.s32 80, %v9295_v9 }
 0x166   :  { %v8351_v29 = vpack.c.bf16 %v8481_v25, %v8480_v27  ;;  %v355_v27 = vshra.s32 %v273_v17, 6  ;;  %vm441_vm10 = vcmp.eq.s32.totalorder %v360_v53, %v9394_v56  ;;  %v289_v53 = vadd.s32 144, %v9295_v9 }
 0x167   :  { %v8484_v30 = vpop.permute.xlu1 %8483  ;;  %v8494_v31 = vpop.permute.xlu0 %8493 }
 0x168   :  { %v8496_v32 = vunpack.i.h.bf16 %v8494_v31  ;;  %v8495_v33 = vunpack.i.l.bf16 %v8494_v31  ;;  %v8486_v38 = vunpack.i.h.bf16 %v8484_v30  ;;  %v8485_v39 = vunpack.i.l.bf16 %v8484_v30 }
 0x169   :  { %8350 = vmatpush3.bf16.xpose.msk.msra.mxu1 %vm9514_vm3, %v8345_v16  ;;  %vm436_vm5 = vcmp.eq.s32.totalorder %v355_v27, %v9394_v56 }
 0x16a   :  { %v774_v34 = vmul.f32 %v8496_v32, %v9420_v12  ;;  %v773_v36 = vmul.f32 %v8495_v33, %v9423_v14  ;;  %8353 = vmatprep.subr.msk.bf16.mxu1 %vm9514_vm3, %v8351_v29  ;;  %v8357_v55 = vpack.c.bf16 %v8486_v38, %v8485_v39  ;;  %v356_v38 = vshra.s32 %v274_v22, 6 }
 0x16b   :  { %v8489_v40 = vpop.permute.xlu1 %8488  ;;  %v9614_v22 = vmul.f32 0.15811388, %v9434_v26 }
 0x16c   :  { %v8491_v41 = vunpack.i.h.bf16 %v8489_v40  ;;  %v8490_v43 = vunpack.i.l.bf16 %v8489_v40  ;;  %v8512_v45 = vpack.i.bf16 %v774_v34, %v773_v36  ;;  %v276_v40 = vadd.s32 40, %v9295_v9 }
 0x16d   :  { %vm437_vm6 = vcmp.eq.s32.totalorder %v356_v38, %v9394_v56 }
 0x16e   :  { %v772_v48 = vmul.f32 %v8491_v41, %v9404_v0  ;;  %v771_v50 = vmul.f32 %v8490_v43, %v9407_v2  ;;  %8513 = vrot.lane.b32.xlu1 %v8512_v45, %s9237_s7  ;;  %v3713_v30 = vmul.f32 %v8491_v41, %v9452_v42  ;;  %v3712_v31 = vmul.f32 %v8490_v43, %v9455_v44 }
 0x16f   :  { %v8499_v58 = vpop.permute.xlu1 %8498  ;;  %v9552_v45 = vmul.f32 0.15811388, %v9404_v0  ;;  %v277_v43 = vadd.s32 48, %v9295_v9  ;;  %v9591_v12 = vsel %vm437_vm6, 1.0, %v14145_v19 }
 0x170   :  { %v8501_v3 = vunpack.i.h.bf16 %v8499_v58  ;;  %v8500_v13 = vunpack.i.l.bf16 %v8499_v58  ;;  %v8507_v15 = vpack.i.bf16 %v772_v48, %v771_v50  ;;  %v3715_v48 = vmul.f32 %v8496_v32, %v9466_v49  ;;  %14632 = vst [vmem:[#allocation8_spill] sm:$0xff] %v9591_v12 }
 0x171   :  { %8356 = vmatpush3.bf16.xpose.msk.msra.mxu1 %vm9514_vm3, %v8351_v29  ;;  %v275_v29 = vadd.s32 32, %v9295_v9  ;;  %v3714_v50 = vmul.f32 %v8495_v33, %v9469_v51  ;;  %v8532_v0 = vpack.i.bf16 %v3713_v30, %v3712_v31  ;;  %v9566_v58 = vsel %vm435_vm4, 1.0, %v14145_v19 }
 0x172   :  { %v776_v18 = vmul.f32 %v8501_v3, %v9434_v26  ;;  %v775_v20 = vmul.f32 %v8500_v13, %v9437_v28  ;;  %8508 = vrot.lane.b32.xlu0 %v8507_v15, %s9237_s7  ;;  %8359 = vmatprep.subr.msk.bf16.mxu1 %vm9514_vm3, %v8357_v55  ;;  %14630 = vst [vmem:[#allocation6_spill] sm:$0xff] %v9566_v58  ;;  %v9573_v32 = vsel %vm436_vm5, 1.0, %v14145_v19  ;;  %v358_v33 = vshra.s32 %v276_v40, 6 }
 0x173   :  { %v8504_v2 = vpop.permute.xlu1 %8503  ;;  %v357_v41 = vshra.s32 %v275_v29, 6  ;;  %14631 = vst [vmem:[#allocation7_spill] sm:$0xff] %v9573_v32  ;;  %v3717_v15 = vmul.f32 %v8501_v3, %v9481_v57  ;;  %v3716_v17 = vmul.f32 %v8500_v13, %v9484_v60  ;;  %v9624_v30 = vmul.f32 0.15811388, %v9446_v37 }
 0x174   :  { %v8506_v16 = vunpack.i.h.bf16 %v8504_v2  ;;  %v8505_v24 = vunpack.i.l.bf16 %v8504_v2  ;;  %v8517_v25 = vpack.i.bf16 %v776_v18, %v775_v20  ;;  %v8542_v18 = vpack.i.bf16 %v3715_v48, %v3714_v50 }
 0x175   :  { %vm438_vm7 = vcmp.eq.s32.totalorder %v357_v41, %v9394_v56  ;;  %v9594_v20 = vmul.f32 0.15811388, %v9437_v28  ;;  %vm9603_vm8 = vcmp.eq.s32.totalorder %v358_v33, %v9394_v56  ;;  %v782_v28 = vmul.f32 %v9591_v12, %v9578_v47 }
 0x176   :  { %v778_v34 = vmul.f32 %v8506_v16, %v9443_v35  ;;  %v777_v36 = vmul.f32 %v8505_v24, %v9446_v37  ;;  %8518 = vrot.lane.b32.xlu0 %v8517_v25, %s9237_s7  ;;  %v9600_v3 = vsel %vm438_vm7, 1.0, %v14145_v19  ;;  %v3719_v25 = vmul.f32 %v8506_v16, %v9496_v23 }
 0x177   :  { %14633 = vst [vmem:[#allocation9_spill] sm:$0xff] %v9600_v3  ;;  %v3718_v27 = vmul.f32 %v8505_v24, %v9499_v4  ;;  %v8552_v29 = vpack.i.bf16 %v3717_v15, %v3716_v17  ;;  %v783_v31 = vmul.f32 %v9600_v3, %v9594_v20  ;;  %v9631_v26 = vsel %vm9603_vm8, 1.0, %v14145_v19 }
 0x178   :  { %v8522_v39 = vpack.i.bf16 %v778_v34, %v777_v36  ;;  %14636 = vst [vmem:[#allocation10_spill] sm:$0xff] %v9631_v26  ;;  %v363_v37 = vshra.s32 %v281_v21, 6  ;;  %v9643_v24 = vmul.f32 0.15811388, %v9443_v35  ;;  %v784_v34 = vmul.f32 %v9631_v26, %v9614_v22 }
 0x179   :  { %8362 = vmatpush3.bf16.xpose.msk.msra.mxu1 %vm9514_vm3, %v8357_v55  ;;  %v9569_v55 = vmul.f32 0.15811388, %v9423_v14  ;;  %v359_v14 = vshra.s32 %v277_v43, 6  ;;  %v8562_v36 = vpack.i.bf16 %v3719_v25, %v3718_v27  ;;  %v364_v40 = vshra.s32 %v282_v63, 6 }
 0x17a   :  { %8528 = vrot.lane.b32.xlu0 %v8527_v52, %s9235_s0  ;;  %8523 = vrot.lane.b32.xlu1 %v8522_v39, %s9237_s7  ;;  %v780_v52 = vmul.f32 %v9566_v58, %v9552_v45  ;;  %v9655_v39 = vsel %vm441_vm10, 1.0, %v14145_v19  ;;  %vm444_vm13 = vcmp.eq.s32.totalorder %v363_v37, %v9394_v56  ;;  %v9672_v48 = vsel %vm443_vm12, 1.0, %v14145_v19 }
 0x17b   :  { %v781_v2 = vmul.f32 %v9573_v32, %v9569_v55  ;;  %vm440_vm9 = vcmp.eq.s32.totalorder %v359_v14, %v9394_v56  ;;  %14638 = vst [vmem:[#allocation12_spill] sm:$0xff] %v9655_v39  ;;  %v786_v41 = vmul.f32 %v9655_v39, %v9643_v24  ;;  %14640 = vst [vmem:[#allocation14_spill] sm:$0xff] %v9672_v48  ;;  %v9676_v50 = vsel %vm444_vm13, 1.0, %v14145_v19 }
 0x17c   :  { %v9635_v16 = vsel %vm440_vm9, 1.0, %v14145_v19  ;;  %14641 = vst [vmem:[#allocation15_spill] sm:$0xff] %v9676_v50  ;;  %vm445_vm14 = vcmp.eq.s32.totalorder %v364_v40, %v9394_v56  ;;  %v286_v33 = vadd.s32 120, %v9295_v9  ;;  %v789_v14 = vmul.f32 %v9676_v50, %v9569_v55 }
 0x17d   :  { %14637 = vst [vmem:[#allocation11_spill] sm:$0xff] %v9635_v16  ;;  %v785_v38 = vmul.f32 %v9635_v16, %v9624_v30  ;;  %v9688_v15 = vsel %vm445_vm14, 1.0, %v14145_v19  ;;  %v290_v27 = vadd.s32 152, %v9295_v9  ;;  %v293_v40 = vadd.s32 176, %v9295_v9 }
 0x17e   :  { %8533 = vrot.lane.b32.xlu0 %v8532_v0, %s9237_s7  ;;  %8538 = vrot.lane.b32.xlu1 %v8537_v61, %s9235_s0  ;;  %v361_v61 = vshra.s32 %v279_v46, 6  ;;  %v366_v0 = vshra.s32 %v284_v8, 6  ;;  %v287_v46 = vadd.s32 128, %v9295_v9  ;;  %14642 = vst [vmem:[#allocation16_spill] sm:$0xff] %v9688_v15  ;;  %v790_v54 = vmul.f32 %v9688_v15, %v9578_v47 }
 0x180   :  { %7770 = vmatmul.mubr.msk.f32.vlgmr.msra.gmra.mrb[0].mxu1 %vm76_vm0, %v780_v52  ;;  %vm442_vm11 = vcmp.eq.s32.totalorder %v361_v61, %v9394_v56  ;;  %v788_v52 = vmul.f32 %v9672_v48, %v9552_v45  ;;  %vm447_vm1 = vcmp.eq.s32.totalorder %v366_v0, %v9394_v56  ;;  %v369_v13 = vshra.s32 %v287_v46, 6 }
 0x181   :  { %7772 = vmatprep.mubr.msk.f32.mxu1 %vm76_vm0, %v781_v2  ;;  %v9659_v35 = vsel %vm442_vm11, 1.0, %v14145_v19  ;;  %v288_v2 = vadd.s32 136, %v9295_v9  ;;  %v9704_v61 = vsel %vm447_vm1, 1.0, %v14145_v19  ;;  %v294_v0 = vadd.s32 184, %v9295_v9 }
 0x182   :  { %8548 = vrot.lane.b32.xlu0 %v8547_v5, %s9235_s0  ;;  %8543 = vrot.lane.b32.xlu1 %v8542_v18, %s9237_s7  ;;  %v283_v5 = vadd.s32 96, %v9295_v9  ;;  %14639 = vst [vmem:[#allocation13_spill] sm:$0xff] %v9659_v35  ;;  %v787_v43 = vmul.f32 %v9659_v35, %v9416_v7  ;;  %v368_v18 = vshra.s32 %v286_v33, 6  ;;  %14644 = vst [vmem:[#allocation18_spill] sm:$0xff] %v9704_v61  ;;  %v375_v33 = vshra.s32 %v293_v40, 6 }
 0x183   :  { %v370_v25 = vshra.s32 %v288_v2, 6  ;;  %vm450_vm5 = vcmp.eq.s32.totalorder %v369_v13, %v9394_v56  ;;  %v792_v62 = vmul.f32 %v9704_v61, %v9614_v22  ;;  %v376_v2 = vshra.s32 %v294_v0, 6 }
 0x184   :  { %7773 = vmatmul.mubr.msk.f32.gmra.mrb[2].mxu1 %vm76_vm0, %v782_v28  ;;  %v365_v10 = vshra.s32 %v283_v5, 6  ;;  %vm449_vm4 = vcmp.eq.s32.totalorder %v368_v18, %v9394_v56  ;;  %v9724_v5 = vsel %vm450_vm5, 1.0, %v14145_v19  ;;  %v296_v13 = vadd.s32 200, %v9295_v9 }
 0x185   :  { %7775 = vmatprep.mubr.msk.f32.mxu1 %vm76_vm0, %v783_v31  ;;  %v291_v31 = vadd.s32 160, %v9295_v9  ;;  %v9720_v37 = vsel %vm449_vm4, 1.0, %v14145_v19  ;;  %14647 = vst [vmem:[#allocation21_spill] sm:$0xff] %v9724_v5  ;;  %vm451_vm6 = vcmp.eq.s32.totalorder %v370_v25, %v9394_v56  ;;  %vm456_vm11 = vcmp.eq.s32.totalorder %v375_v33, %v9394_v56 }
 0x186   :  { %8553 = vrot.lane.b32.xlu0 %v8552_v29, %s9237_s7  ;;  %8558 = vrot.lane.b32.xlu1 %v8557_v11, %s9235_s0  ;;  %v285_v11 = vadd.s32 112, %v9295_v9  ;;  %vm446_vm15 = vcmp.eq.s32.totalorder %v365_v10, %v9394_v56  ;;  %v371_v29 = vshra.s32 %v289_v53, 6  ;;  %14646 = vst [vmem:[#allocation20_spill] sm:$0xff] %v9720_v37  ;;  %v794_v8 = vmul.f32 %v9720_v37, %v9643_v24 }
 0x187   :  { %v9692_v17 = vsel %vm446_vm15, 1.0, %v14145_v19  ;;  %v795_v10 = vmul.f32 %v9724_v5, %v9416_v7  ;;  %vm457_vm12 = vcmp.eq.s32.totalorder %v376_v2, %v9394_v56  ;;  %v301_v33 = vadd.s32 240, %v9295_v9 }
 0x188   :  { %7776 = vmatmul.mubr.msk.f32.gmra.mrb[4].mxu1 %vm76_vm0, %v784_v34  ;;  %v367_v1 = vshra.s32 %v285_v11, 6  ;;  %14643 = vst [vmem:[#allocation17_spill] sm:$0xff] %v9692_v17  ;;  %v791_v28 = vmul.f32 %v9692_v17, %v9594_v20  ;;  %v372_v34 = vshra.s32 %v290_v27, 6  ;;  %vm452_vm7 = vcmp.eq.s32.totalorder %v371_v29, %v9394_v56 }
 0x189   :  { %7778 = vmatprep.mubr.msk.f32.mxu1 %vm76_vm0, %v785_v38  ;;  %v373_v38 = vshra.s32 %v291_v31, 6  ;;  %v9736_v11 = vsel %vm451_vm6, 1.0, %v14145_v19  ;;  %v9772_v29 = vsel %vm456_vm11, 1.0, %v14145_v19  ;;  %v378_v31 = vshra.s32 %v296_v13, 6 }
 0x18a   :  { %8563 = vrot.lane.b32.xlu1 %v8562_v36, %s9237_s7  ;;  %vm448_vm2 = vcmp.eq.s32.totalorder %v367_v1, %v9394_v56  ;;  %v292_v36 = vadd.s32 168, %v9295_v9  ;;  %14648 = vst [vmem:[#allocation22_spill] sm:$0xff] %v9736_v11  ;;  %vm453_vm8 = vcmp.eq.s32.totalorder %v372_v34, %v9394_v56  ;;  %v295_v1 = vadd.s32 192, %v9295_v9  ;;  %14653 = vst [vmem:[#allocation27_spill] sm:$0xff] %v9772_v29 }
 0x18b   :  { %v9708_v21 = vsel %vm448_vm2, 1.0, %v14145_v19  ;;  %vm454_vm9 = vcmp.eq.s32.totalorder %v373_v38, %v9394_v56  ;;  %v796_v46 = vmul.f32 %v9736_v11, %v9552_v45  ;;  %v299_v34 = vadd.s32 224, %v9295_v9 }
 0x18c   :  { %7779 = vmatmul.mubr.msk.f32.gmra.mrb[6].mxu1 %vm76_vm0, %v786_v41  ;;  %14645 = vst [vmem:[#allocation19_spill] sm:$0xff] %v9708_v21  ;;  %v793_v63 = vmul.f32 %v9708_v21, %v9624_v30  ;;  %v9740_v41 = vsel %vm452_vm7, 1.0, %v14145_v19  ;;  %v9756_v18 = vsel %vm454_vm9, 1.0, %v14145_v19  ;;  %v377_v53 = vshra.s32 %v295_v1, 6 }
 0x18d   :  { %7781 = vmatprep.mubr.msk.f32.mxu1 %vm76_vm0, %v787_v43  ;;  %14649 = vst [vmem:[#allocation23_spill] sm:$0xff] %v9740_v41  ;;  %v374_v43 = vshra.s32 %v292_v36, 6  ;;  %14651 = vst [vmem:[#allocation25_spill] sm:$0xff] %v9756_v18  ;;  %v799_v25 = vmul.f32 %v9756_v18, %v9594_v20  ;;  %v801_v38 = vmul.f32 %v9772_v29, %v9624_v30  ;;  %v9784_v40 = vsel %vm457_vm12, 1.0, %v14145_v19 }
 0x18e   :  { %vm458_vm13 = vcmp.eq.s32.totalorder %v377_v53, %v9394_v56  ;;  %14654 = vst [vmem:[#allocation28_spill] sm:$0xff] %v9784_v40  ;;  %vm459_vm14 = vcmp.eq.s32.totalorder %v378_v31, %v9394_v56  ;;  %v381_v0 = vshra.s32 %v299_v34, 6  ;;  %v802_v1 = vmul.f32 %v9784_v40, %v9643_v24 }
 0x18f   :  { %vm455_vm10 = vcmp.eq.s32.totalorder %v374_v43, %v9394_v56  ;;  %v300_v43 = vadd.s32 232, %v9295_v9  ;;  %v302_v53 = vadd.s32 248, %v9295_v9 }
 0x190   :  { %7782 = vmatmul.mubr.msk.f32.gmra.mrb[8].mxu1 %vm76_vm0, %v788_v52  ;;  %v797_v52 = vmul.f32 %v9740_v41, %v9569_v55  ;;  %v9768_v27 = vsel %vm455_vm10, 1.0, %v14145_v19  ;;  %vm462_vm2 = vcmp.eq.s32.totalorder %v381_v0, %v9394_v56 }
 0x191   :  { %7784 = vmatprep.mubr.msk.f32.mxu1 %vm76_vm0, %v789_v14  ;;  %v9752_v14 = vsel %vm453_vm8, 1.0, %v14145_v19  ;;  %14652 = vst [vmem:[#allocation26_spill] sm:$0xff] %v9768_v27  ;;  %v800_v36 = vmul.f32 %v9768_v27, %v9614_v22  ;;  %v382_v13 = vshra.s32 %v300_v43, 6  ;;  %v384_v34 = vshra.s32 %v302_v53, 6 }
 0x192   :  { %14650 = vst [vmem:[#allocation24_spill] sm:$0xff] %v9752_v14 }
 0x193   :  { %vm463_vm4 = vcmp.eq.s32.totalorder %v382_v13, %v9394_v56  ;;  %vm465_vm6 = vcmp.eq.s32.totalorder %v384_v34, %v9394_v56  ;;  %v306_v13 = vadd.s32 280, %v9295_v9 }
 0x194   :  { %7785 = vmatmul.mubr.msk.f32.gmra.mrb[10].mxu1 %vm76_vm0, %v790_v54  ;;  %v297_v54 = vadd.s32 208, %v9295_v9 }
 0x195   :  { %7787 = vmatprep.mubr.msk.f32.mxu1 %vm76_vm0, %v791_v28  ;;  %v798_v28 = vmul.f32 %v9752_v14, %v9578_v47 }
 0x198   :  { %7788 = vmatmul.mubr.msk.f32.gmra.mrb[12].mxu1 %vm76_vm0, %v792_v62  ;;  %v298_v62 = vadd.s32 216, %v9295_v9 }
 0x199   :  { %7790 = vmatprep.mubr.msk.f32.mxu1 %vm76_vm0, %v793_v63  ;;  %v379_v63 = vshra.s32 %v297_v54, 6  ;;  %v383_v54 = vshra.s32 %v301_v33, 6  ;;  %v9832_v33 = vsel %vm463_vm4, 1.0, %v14145_v19 }
 0x19a   :  { %14660 = vst [vmem:[#allocation34_spill] sm:$0xff] %v9832_v33 }
 0x19b   :  { %vm460_vm15 = vcmp.eq.s32.totalorder %v379_v63, %v9394_v56  ;;  %v9820_v63 = vsel %vm462_vm2, 1.0, %v14145_v19  ;;  %vm464_vm5 = vcmp.eq.s32.totalorder %v383_v54, %v9394_v56  ;;  %v307_v54 = vadd.s32 288, %v9295_v9 }
 0x19c   :  { %7791 = vmatmul.mubr.msk.f32.gmra.mrb[14].mxu1 %vm76_vm0, %v794_v8  ;;  %v9788_v8 = vsel %vm458_vm13, 1.0, %v14145_v19  ;;  %v9804_v2 = vsel %vm460_vm15, 1.0, %v14145_v19  ;;  %14659 = vst [vmem:[#allocation33_spill] sm:$0xff] %v9820_v63  ;;  %v807_v0 = vmul.f32 %v9820_v63, %v9594_v20 }
 0x19d   :  { %7793 = vmatprep.mubr.msk.f32.mxu1 %vm76_vm0, %v795_v10  ;;  %14655 = vst [vmem:[#allocation29_spill] sm:$0xff] %v9788_v8  ;;  %v380_v10 = vshra.s32 %v298_v62, 6  ;;  %14657 = vst [vmem:[#allocation31_spill] sm:$0xff] %v9804_v2  ;;  %v805_v31 = vmul.f32 %v9804_v2, %v9569_v55 }
 0x19f   :  { %vm461_vm1 = vcmp.eq.s32.totalorder %v380_v10, %v9394_v56  ;;  %v305_v10 = vadd.s32 272, %v9295_v9 }
 0x1a0   :  { %7794 = vmatmul.mubr.msk.f32.gmra.mrb[16].mxu1 %vm76_vm0, %v796_v46  ;;  %v803_v46 = vmul.f32 %v9788_v8, %v9416_v7  ;;  %v9816_v62 = vsel %vm461_vm1, 1.0, %v14145_v19  ;;  %v333_v8 = vadd.s32 496, %v9295_v9 }
 0x1a1   :  { %7796 = vmatprep.mubr.msk.f32.mxu1 %vm76_vm0, %v797_v52  ;;  %v9800_v52 = vsel %vm459_vm14, 1.0, %v14145_v19  ;;  %14658 = vst [vmem:[#allocation32_spill] sm:$0xff] %v9816_v62  ;;  %v806_v43 = vmul.f32 %v9816_v62, %v9578_v47  ;;  %v387_v53 = vshra.s32 %v305_v10, 6  ;;  %v389_v10 = vshra.s32 %v307_v54, 6 }
 0x1a2   :  { %14656 = vst [vmem:[#allocation30_spill] sm:$0xff] %v9800_v52 }
 0x1a3   :  { %vm468_vm9 = vcmp.eq.s32.totalorder %v387_v53, %v9394_v56  ;;  %v310_v53 = vadd.s32 312, %v9295_v9  ;;  %vm470_vm11 = vcmp.eq.s32.totalorder %v389_v10, %v9394_v56  ;;  %v312_v10 = vadd.s32 328, %v9295_v9 }
 0x1a4   :  { %7797 = vmatmul.mubr.msk.f32.gmra.mrb[18].mxu1 %vm76_vm0, %v798_v28  ;;  %v303_v28 = vadd.s32 256, %v9295_v9 }
 0x1a5   :  { %7799 = vmatprep.mubr.msk.f32.mxu1 %vm76_vm0, %v799_v25  ;;  %v804_v25 = vmul.f32 %v9800_v52, %v9552_v45  ;;  %v332_v52 = vadd.s32 488, %v9295_v9 }
 0x1a8   :  { %7800 = vmatmul.mubr.msk.f32.gmra.mrb[20].mxu1 %vm76_vm0, %v800_v36  ;;  %v304_v36 = vadd.s32 264, %v9295_v9 }
 0x1a9   :  { %7802 = vmatprep.mubr.msk.f32.mxu1 %vm76_vm0, %v801_v38  ;;  %v385_v38 = vshra.s32 %v303_v28, 6  ;;  %v808_v28 = vmul.f32 %v9832_v33, %v9614_v22  ;;  %v328_v33 = vadd.s32 456, %v9295_v9 }
 0x1ab   :  { %vm466_vm7 = vcmp.eq.s32.totalorder %v385_v38, %v9394_v56  ;;  %v308_v38 = vadd.s32 296, %v9295_v9 }
 0x1ac   :  { %7803 = vmatmul.mubr.msk.f32.gmra.mrb[22].mxu1 %vm76_vm0, %v802_v1  ;;  %v9836_v1 = vsel %vm464_vm5, 1.0, %v14145_v19  ;;  %v9852_v34 = vsel %vm466_vm7, 1.0, %v14145_v19 }
 0x1ad   :  { %7805 = vmatprep.mubr.msk.f32.mxu1 %vm76_vm0, %v803_v46  ;;  %14661 = vst [vmem:[#allocation35_spill] sm:$0xff] %v9836_v1  ;;  %v386_v46 = vshra.s32 %v304_v36, 6  ;;  %14663 = vst [vmem:[#allocation37_spill] sm:$0xff] %v9852_v34  ;;  %v388_v36 = vshra.s32 %v306_v13, 6  ;;  %v390_v13 = vshra.s32 %v308_v38, 6  ;;  %v392_v38 = vshra.s32 %v310_v53, 6 }
 0x1ae   :  { %v394_v53 = vshra.s32 %v312_v10, 6 }
 0x1af   :  { %vm467_vm8 = vcmp.eq.s32.totalorder %v386_v46, %v9394_v56  ;;  %v9868_v46 = vsel %vm468_vm9, 1.0, %v14145_v19  ;;  %vm469_vm10 = vcmp.eq.s32.totalorder %v388_v36, %v9394_v56  ;;  %v9884_v36 = vsel %vm470_vm11, 1.0, %v14145_v19 }
 0x1b0   :  { %7806 = vmatmul.mubr.msk.f32.gmra.mrb[24].mxu1 %vm76_vm0, %v804_v25  ;;  %v809_v25 = vmul.f32 %v9836_v1, %v9624_v30  ;;  %v9864_v1 = vsel %vm467_vm8, 1.0, %v14145_v19  ;;  %14665 = vst [vmem:[#allocation39_spill] sm:$0xff] %v9868_v46  ;;  %14667 = vst [vmem:[#allocation41_spill] sm:$0xff] %v9884_v36  ;;  %vm471_vm12 = vcmp.eq.s32.totalorder %v390_v13, %v9394_v56 }
 0x1b1   :  { %7808 = vmatprep.mubr.msk.f32.mxu1 %vm76_vm0, %v805_v31  ;;  %v9848_v31 = vsel %vm465_vm6, 1.0, %v14145_v19  ;;  %14664 = vst [vmem:[#allocation38_spill] sm:$0xff] %v9864_v1  ;;  %vm473_vm14 = vcmp.eq.s32.totalorder %v392_v38, %v9394_v56  ;;  %vm475_vm1 = vcmp.eq.s32.totalorder %v394_v53, %v9394_v56 }
 0x1b2   :  { %14662 = vst [vmem:[#allocation36_spill] sm:$0xff] %v9848_v31 }
 0x1b4   :  { %7809 = vmatmul.mubr.msk.f32.gmra.mrb[26].mxu1 %vm76_vm0, %v806_v43  ;;  %v309_v43 = vadd.s32 304, %v9295_v9 }
 0x1b5   :  { %7811 = vmatprep.mubr.msk.f32.mxu1 %vm76_vm0, %v807_v0  ;;  %v810_v0 = vmul.f32 %v9848_v31, %v9643_v24  ;;  %v9880_v31 = vsel %vm469_vm10, 1.0, %v14145_v19 }
 0x1b6   :  { %v391_v54 = vshra.s32 %v309_v43, 6  ;;  %14666 = vst [vmem:[#allocation40_spill] sm:$0xff] %v9880_v31 }
 0x1b8   :  { %7812 = vmatmul.mubr.msk.f32.gmra.mrb[28].mxu1 %vm76_vm0, %v808_v28  ;;  %v811_v28 = vmul.f32 %v9852_v34, %v9416_v7  ;;  %v812_v34 = vmul.f32 %v9864_v1, %v9552_v45  ;;  %vm472_vm13 = vcmp.eq.s32.totalorder %v391_v54, %v9394_v56  ;;  %v9896_v1 = vsel %vm471_vm12, 1.0, %v14145_v19 }
 0x1b9   :  { %7814 = vmatprep.mubr.msk.f32.mxu1 %vm76_vm0, %v809_v25  ;;  %v311_v25 = vadd.s32 320, %v9295_v9  ;;  %14668 = vst [vmem:[#allocation42_spill] sm:$0xff] %v9896_v1  ;;  %v9900_v13 = vsel %vm472_vm13, 1.0, %v14145_v19  ;;  %v314_v54 = vadd.s32 344, %v9295_v9 }
 0x1ba   :  { %14669 = vst [vmem:[#allocation43_spill] sm:$0xff] %v9900_v13 }
 0x1bb   :  { %v393_v43 = vshra.s32 %v311_v25, 6  ;;  %v396_v10 = vshra.s32 %v314_v54, 6 }
 0x1bc   :  { %7815 = vmatmul.mubr.msk.f32.gmra.mrb[30].mxu1 %vm76_vm0, %v810_v0  ;;  %v813_v0 = vmul.f32 %v9868_v46, %v9569_v55  ;;  %v814_v46 = vmul.f32 %v9880_v31, %v9578_v47  ;;  %v9912_v31 = vsel %vm473_vm14, 1.0, %v14145_v19 }
 0x1bd   :  { %7817 = vmatprep.mubr.msk.f32.mxu1 %vm76_vm0, %v811_v28  ;;  %v313_v28 = vadd.s32 336, %v9295_v9  ;;  %vm474_vm15 = vcmp.eq.s32.totalorder %v393_v43, %v9394_v56  ;;  %14670 = vst [vmem:[#allocation44_spill] sm:$0xff] %v9912_v31  ;;  %v316_v43 = vadd.s32 360, %v9295_v9  ;;  %vm477_vm4 = vcmp.eq.s32.totalorder %v396_v10, %v9394_v56 }
 0x1be   :  { %v9916_v38 = vsel %vm474_vm15, 1.0, %v14145_v19 }
 0x1bf   :  { %v395_v25 = vshra.s32 %v313_v28, 6  ;;  %14671 = vst [vmem:[#allocation45_spill] sm:$0xff] %v9916_v38  ;;  %v398_v54 = vshra.s32 %v316_v43, 6 }
 0x1c0   :  { %7818 = vmatmul.mubr.msk.f32.gmra.mrb[32].mxu1 %vm76_vm0, %v812_v34  ;;  %v815_v34 = vmul.f32 %v9884_v36, %v9594_v20  ;;  %v816_v36 = vmul.f32 %v9896_v1, %v9614_v22  ;;  %v9928_v1 = vsel %vm475_vm1, 1.0, %v14145_v19 }
 0x1c1   :  { %7820 = vmatprep.mubr.msk.f32.mxu1 %vm76_vm0, %v813_v0  ;;  %v315_v0 = vadd.s32 352, %v9295_v9  ;;  %vm476_vm2 = vcmp.eq.s32.totalorder %v395_v25, %v9394_v56  ;;  %14672 = vst [vmem:[#allocation46_spill] sm:$0xff] %v9928_v1  ;;  %v318_v25 = vadd.s32 376, %v9295_v9  ;;  %vm479_vm6 = vcmp.eq.s32.totalorder %v398_v54, %v9394_v56 }
 0x1c2   :  { %v9932_v53 = vsel %vm476_vm2, 1.0, %v14145_v19 }
 0x1c3   :  { %v397_v28 = vshra.s32 %v315_v0, 6  ;;  %14673 = vst [vmem:[#allocation47_spill] sm:$0xff] %v9932_v53  ;;  %v400_v43 = vshra.s32 %v318_v25, 6 }
 0x1c4   :  { %7821 = vmatmul.mubr.msk.f32.gmra.mrb[34].mxu1 %vm76_vm0, %v814_v46  ;;  %v817_v46 = vmul.f32 %v9900_v13, %v9624_v30  ;;  %v818_v13 = vmul.f32 %v9912_v31, %v9643_v24  ;;  %v9944_v31 = vsel %vm477_vm4, 1.0, %v14145_v19 }
 0x1c5   :  { %7823 = vmatprep.mubr.msk.f32.mxu1 %vm76_vm0, %v815_v34  ;;  %v317_v34 = vadd.s32 368, %v9295_v9  ;;  %vm478_vm5 = vcmp.eq.s32.totalorder %v397_v28, %v9394_v56  ;;  %14674 = vst [vmem:[#allocation48_spill] sm:$0xff] %v9944_v31  ;;  %v320_v28 = vadd.s32 392, %v9295_v9  ;;  %vm481_vm8 = vcmp.eq.s32.totalorder %v400_v43, %v9394_v56 }
 0x1c6   :  { %v9948_v10 = vsel %vm478_vm5, 1.0, %v14145_v19 }
 0x1c7   :  { %v399_v0 = vshra.s32 %v317_v34, 6  ;;  %14675 = vst [vmem:[#allocation49_spill] sm:$0xff] %v9948_v10  ;;  %v402_v25 = vshra.s32 %v320_v28, 6 }
 0x1c8   :  { %7824 = vmatmul.mubr.msk.f32.gmra.mrb[36].mxu1 %vm76_vm0, %v816_v36  ;;  %v819_v36 = vmul.f32 %v9916_v38, %v9416_v7  ;;  %v820_v38 = vmul.f32 %v9928_v1, %v9552_v45  ;;  %v9960_v1 = vsel %vm479_vm6, 1.0, %v14145_v19 }
 0x1c9   :  { %7826 = vmatprep.mubr.msk.f32.mxu1 %vm76_vm0, %v817_v46  ;;  %v319_v46 = vadd.s32 384, %v9295_v9  ;;  %vm480_vm7 = vcmp.eq.s32.totalorder %v399_v0, %v9394_v56  ;;  %14676 = vst [vmem:[#allocation50_spill] sm:$0xff] %v9960_v1  ;;  %v322_v0 = vadd.s32 408, %v9295_v9  ;;  %vm483_vm10 = vcmp.eq.s32.totalorder %v402_v25, %v9394_v56 }
 0x1ca   :  { %v9964_v54 = vsel %vm480_vm7, 1.0, %v14145_v19  ;;  %vm2996_vm7 = vcmask 1044480  }
 0x1cb   :  { %v401_v34 = vshra.s32 %v319_v46, 6  ;;  %14677 = vst [vmem:[#allocation51_spill] sm:$0xff] %v9964_v54  ;;  %v404_v28 = vshra.s32 %v322_v0, 6 }
 0x1cc   :  { %7827 = vmatmul.mubr.msk.f32.gmra.mrb[38].mxu1 %vm76_vm0, %v818_v13  ;;  %v821_v13 = vmul.f32 %v9932_v53, %v9569_v55  ;;  %v822_v53 = vmul.f32 %v9944_v31, %v9578_v47  ;;  %v9976_v31 = vsel %vm481_vm8, 1.0, %v14145_v19 }
 0x1cd   :  { %7829 = vmatprep.mubr.msk.f32.mxu1 %vm76_vm0, %v819_v36  ;;  %v321_v36 = vadd.s32 400, %v9295_v9  ;;  %vm482_vm9 = vcmp.eq.s32.totalorder %v401_v34, %v9394_v56  ;;  %14678 = vst [vmem:[#allocation52_spill] sm:$0xff] %v9976_v31  ;;  %v324_v34 = vadd.s32 424, %v9295_v9  ;;  %vm485_vm12 = vcmp.eq.s32.totalorder %v404_v28, %v9394_v56 }
 0x1ce   :  { %v9980_v43 = vsel %vm482_vm9, 1.0, %v14145_v19  ;;  %vm9238_vm9 = vmmov 1  }
 0x1cf   :  { %v403_v46 = vshra.s32 %v321_v36, 6  ;;  %14679 = vst [vmem:[#allocation53_spill] sm:$0xff] %v9980_v43  ;;  %v827_v19 = vmul.f32 %v9980_v43, %v9416_v7 }
 0x1d0   :  { %7830 = vmatmul.mubr.msk.f32.gmra.mrb[40].mxu1 %vm76_vm0, %v820_v38  ;;  %v823_v38 = vmul.f32 %v9948_v10, %v9594_v20  ;;  %v824_v10 = vmul.f32 %v9960_v1, %v9614_v22  ;;  %v14680_v1 = vmov 0.0  }
 0x1d1   :  { %7832 = vmatprep.mubr.msk.f32.mxu1 %vm76_vm0, %v821_v13  ;;  %v323_v13 = vadd.s32 416, %v9295_v9  ;;  %vm484_vm11 = vcmp.eq.s32.totalorder %v403_v46, %v9394_v56  ;;  %v9993_v25 = vsel %vm483_vm10, 1.0, %v14680_v1  ;;  %v406_v46 = vshra.s32 %v324_v34, 6  ;;  %vm10106_vm10 = vmpackc.low %vm2996_vm7, %vm9238_vm9 }
 0x1d2   :  { %14681 = vst [vmem:[#allocation54_spill] sm:$0xff] %v9993_v25  ;;  %v9997_v0 = vsel %vm484_vm11, 1.0, %v14680_v1  ;;  %v828_v43 = vmul.f32 %v9993_v25, %v9552_v45  ;;  %v10010_v28 = vsel %vm485_vm12, 1.0, %v14680_v1 }
 0x1d3   :  { %v405_v36 = vshra.s32 %v323_v13, 6  ;;  %14682 = vst [vmem:[#allocation55_spill] sm:$0xff] %v9997_v0  ;;  %v327_v13 = vadd.s32 448, %v9295_v9  ;;  %v829_v63 = vmul.f32 %v9997_v0, %v9569_v55  ;;  %14683 = vst [vmem:[#allocation56_spill] sm:$0xff] %v10010_v28  ;;  %vm487_vm14 = vcmp.eq.s32.totalorder %v406_v46, %v9394_v56 }
 0x1d4   :  { %7833 = vmatmul.mubr.msk.f32.gmra.mrb[42].mxu1 %vm76_vm0, %v822_v53  ;;  %v825_v53 = vmul.f32 %v9964_v54, %v9624_v30  ;;  %v326_v54 = vadd.s32 440, %v9295_v9  ;;  %v10025_v25 = vsel %vm487_vm14, 1.0, %v14680_v1  ;;  %v330_v46 = vadd.s32 472, %v9295_v9 }
 0x1d5   :  { %7835 = vmatprep.mubr.msk.f32.mxu1 %vm76_vm0, %v823_v38  ;;  %v325_v38 = vadd.s32 432, %v9295_v9  ;;  %vm486_vm13 = vcmp.eq.s32.totalorder %v405_v36, %v9394_v56  ;;  %v830_v36 = vmul.f32 %v10010_v28, %v9578_v47  ;;  %14685 = vst [vmem:[#allocation58_spill] sm:$0xff] %v10025_v25 }
 0x1d8   :  { %7836 = vmatmul.mubr.msk.f32.gmra.mrb[44].mxu1 %vm76_vm0, %v824_v10  ;;  %v826_v10 = vmul.f32 %v9976_v31, %v9643_v24  ;;  %v408_v31 = vshra.s32 %v326_v54, 6  ;;  %v409_v54 = vshra.s32 %v327_v13, 6 }
 0x1d9   :  { %7838 = vmatprep.mubr.msk.f32.mxu1 %vm76_vm0, %v825_v53  ;;  %v407_v53 = vshra.s32 %v325_v38, 6  ;;  %v410_v38 = vshra.s32 %v328_v33, 6  ;;  %v335_v33 = vadd.s32 512, %v9295_v9 }
 0x1da   :  { %vm489_vm1 = vcmp.eq.s32.totalorder %v408_v31, %v9394_v56  ;;  %vm10036_vm2 = vcmp.eq.s32.totalorder %v409_v54, %v9394_v56 }
 0x1db   :  { %vm488_vm15 = vcmp.eq.s32.totalorder %v407_v53, %v9394_v56  ;;  %v10033_v31 = vsel %vm489_vm1, 1.0, %v14680_v1  ;;  %v331_v53 = vadd.s32 480, %v9295_v9  ;;  %vm10045_vm4 = vcmp.eq.s32.totalorder %v410_v38, %v9394_v56 }
 0x1dc   :  { %7839 = vmatmul.mubr.msk.f32.gmra.mrb[46].mxu1 %vm76_vm0, %v826_v10  ;;  %v329_v10 = vadd.s32 464, %v9295_v9  ;;  %14687 = vst [vmem:[#allocation60_spill] sm:$0xff] %v10033_v31  ;;  %v10062_v38 = vsel %vm10036_vm2, 1.0, %v14680_v1 }
 0x1dd   :  { %7841 = vmatprep.mubr.msk.f32.mxu1 %vm76_vm0, %v827_v19  ;;  %v10014_v19 = vsel %vm486_vm13, 1.0, %v14680_v1  ;;  %14694 = vst [vmem:[#allocation61_spill] sm:$0xff] %v10062_v38 }
 0x1de   :  { %14684 = vst [vmem:[#allocation57_spill] sm:$0xff] %v10014_v19  ;;  %v411_v0 = vshra.s32 %v329_v10, 6 }
 0x1e0   :  { %7842 = vmatmul.mubr.msk.f32.gmra.mrb[48].mxu1 %vm76_vm0, %v828_v43  ;;  %v8514_v34 = vpop.permute.xlu1 %8513  ;;  %v831_v43 = vmul.f32 %v10014_v19, %v9594_v20  ;;  %vm10050_vm5 = vcmp.eq.s32.totalorder %v411_v0, %v9394_v56  ;;  %v413_v0 = vshra.s32 %v331_v53, 6  ;;  %v414_v53 = vshra.s32 %v332_v52, 6 }
 0x1e1   :  { %7844 = vmatprep.mubr.msk.f32.mxu1 %vm76_vm0, %v829_v63  ;;  %v10030_v63 = vsel %vm488_vm15, 1.0, %v14680_v1  ;;  %v8516_v10 = vunpack.i.h.bf16 %v8514_v34  ;;  %v8515_v19 = vunpack.i.l.bf16 %v8514_v34 }
 0x1e2   :  { %14686 = vst [vmem:[#allocation59_spill] sm:$0xff] %v10030_v63  ;;  %v833_v34 = vmul.f32 %v10030_v63, %v9624_v30  ;;  %vm10088_vm8 = vcmp.eq.s32.totalorder %v413_v0, %v9394_v56  ;;  %vm10116_vm11 = vcmp.eq.s32.totalorder %v414_v53, %v9394_v56 }
 0x1e3   :  { %v8367_v27 = vpack.c.bf16 %v8516_v10, %v8515_v19  ;;  %v835_v19 = vmul.f32 %v10062_v38, %v9416_v7  ;;  %v415_v10 = vshra.s32 %v333_v8, 6 }
 0x1e4   :  { %v8509_v13 = vpop.permute.xlu0 %8508  ;;  %7845 = vmatmul.mubr.msk.f32.gmra.mrb[50].mxu1 %vm76_vm0, %v830_v36  ;;  %v832_v36 = vmul.f32 %v10025_v25, %v9614_v22 }
 0x1e5   :  { %v8511_v28 = vunpack.i.h.bf16 %v8509_v13  ;;  %v8510_v62 = vunpack.i.l.bf16 %v8509_v13  ;;  %7847 = vmatprep.mubr.msk.f32.mxu1 %vm76_vm0, %v831_v43  ;;  %v412_v43 = vshra.s32 %v330_v46, 6  ;;  %v10075_v46 = vsel %vm10050_vm5, 1.0, %v14680_v1 }
 0x1e6   :  { %14696 = vst [vmem:[#allocation63_spill] sm:$0xff] %v10075_v46  ;;  %v837_v0 = vmul.f32 %v10075_v46, %v9569_v55  ;;  %vm10121_vm12 = vcmp.eq.s32.totalorder %v415_v10, %v9394_v56 }
 0x1e7   :  { %v8363_v13 = vpack.c.bf16 %v8511_v28, %v8510_v62  ;;  %v10068_v62 = vsel %vm10045_vm4, 1.0, %v14680_v1  ;;  %v834_v28 = vmul.f32 %v10033_v31, %v9643_v24  ;;  %vm10082_vm6 = vcmp.eq.s32.totalorder %v412_v43, %v9394_v56 }
 0x1e8   :  { %v8519_v25 = vpop.permute.xlu0 %8518  ;;  %7848 = vmatmul.mubr.msk.f32.gmra.mrb[52].mxu1 %vm76_vm0, %v832_v36  ;;  %14695 = vst [vmem:[#allocation62_spill] sm:$0xff] %v10068_v62  ;;  %v836_v8 = vmul.f32 %v10068_v62, %v9552_v45 }
 0x1e9   :  { %v8521_v40 = vunpack.i.h.bf16 %v8519_v25  ;;  %v8520_v29 = vunpack.i.l.bf16 %v8519_v25  ;;  %7850 = vmatprep.mubr.msk.f32.mxu1 %vm76_vm0, %v833_v34  ;;  %8364 = vmatprep.subr.bf16.mxu0 %v8363_v13  ;;  %v334_v25 = vadd.s32 504, %v9295_v9 }
 0x1ea   :  { %8366 = vmatpush3.bf16.msra.mxu0 %v8363_v13 }
 0x1eb   :  { %8368 = vmatprep.subr.bf16.mxu0 %v8367_v27  ;;  %v8371_v54 = vpack.c.bf16 %v8521_v40, %v8520_v29  ;;  %v416_v52 = vshra.s32 %v334_v25, 6  ;;  %v337_v29 = vadd.s32 528, %v9295_v9  ;;  %v14702_v25 = vmov 0 }
 0x1ec   :  { %v8529_v36 = vpop.permute.xlu0 %8528  ;;  %v8524_v34 = vpop.permute.xlu1 %8523  ;;  %7851 = vmatmul.mubr.msk.f32.gmra.mrb[54].mxu1 %vm76_vm0, %v834_v28  ;;  %v336_v28 = vadd.s32 520, %v9295_v9  ;;  %v14703_v25 = vsel %vm10106_vm10, 4294967295, %v14702_v25 }
 0x1ed   :  { %v8531_v31 = vunpack.i.h.bf16 %v8529_v36  ;;  %v8530_v38 = vunpack.i.l.bf16 %v8529_v36  ;;  %v8526_v63 = vunpack.i.h.bf16 %v8524_v34  ;;  %v8525_v43 = vunpack.i.l.bf16 %v8524_v34  ;;  %7853 = vmatprep.mubr.msk.f32.mxu1 %vm76_vm0, %v835_v19  ;;  %14704 = vst [vmem:[#allocation65_spill] sm:$0xff] %v14703_v25 }
 0x1ee   :  { %8370 = vmatpush3.bf16.msra.mxu0 %v8367_v27  ;;  %v10102_v36 = vsel %vm10082_vm6, 1.0, %v14680_v1  ;;  %v417_v19 = vshra.s32 %v335_v33, 6  ;;  %v418_v10 = vshra.s32 %v336_v28, 6  ;;  %v10149_v28 = vsel %vm10121_vm12, 1.0, %v14680_v1 }
 0x1ef   :  { %v8381_v40 = vpack.c.bf16 %v8531_v31, %v8530_v38  ;;  %8372 = vmatprep.subr.bf16.mxu0 %v8371_v54  ;;  %14701 = vst [vmem:[#allocation64_spill] sm:$0xff] %v10102_v36  ;;  %v8375_v27 = vpack.c.bf16 %v8526_v63, %v8525_v43  ;;  %v10113_v31 = vsel %vm10088_vm8, 1.0, %v14680_v1  ;;  %v838_v53 = vmul.f32 %v10102_v36, %v9578_v47 }
 0x1f0   :  { %v8534_v34 = vpop.permute.xlu0 %8533  ;;  %v8539_v18 = vpop.permute.xlu1 %8538  ;;  %7854 = vmatmul.mubr.msk.f32.gmra.mrb[56].mxu1 %vm76_vm0, %v836_v8  ;;  %14705 = vst [vmem:[#allocation66_spill] sm:$0xff] %v10113_v31  ;;  %14713 = vst [vmem:[#allocation70_spill] sm:$0xff] %v10149_v28  ;;  %vm497_vm13 = vcmp.eq.s32.totalorder %v416_v52, %v9394_v56  ;;  %vm498_vm14 = vcmp.eq.s32.totalorder %v417_v19, %v9394_v56  ;;  %v841_v19 = vmul.f32 %v10149_v28, %v9624_v30 }
 0x1f1   :  { %v8536_v33 = vunpack.i.h.bf16 %v8534_v34  ;;  %v8535_v2 = vunpack.i.l.bf16 %v8534_v34  ;;  %v8541_v43 = vunpack.i.h.bf16 %v8539_v18  ;;  %v8540_v8 = vunpack.i.l.bf16 %v8539_v18  ;;  %7856 = vmatprep.mubr.msk.f32.mxu1 %vm76_vm0, %v837_v0  ;;  %8383 = vmatprep.subr.msk.bf16.mxu1 %vm9514_vm3, %v8381_v40 }
 0x1f2   :  { %8374 = vmatpush3.bf16.msra.mxu0 %v8371_v54  ;;  %8386 = vmatpush3.bf16.xpose.msk.msra.mxu1 %vm9514_vm3, %v8381_v40  ;;  %v839_v18 = vmul.f32 %v10113_v31, %v9594_v20  ;;  %v10141_v54 = vsel %vm10116_vm11, 1.0, %v14680_v1  ;;  %v10166_v63 = vsel %vm497_vm13, 1.0, %v14680_v1  ;;  %vm499_vm15 = vcmp.eq.s32.totalorder %v418_v10, %v9394_v56 }
 0x1f3   :  { %v8387_v13 = vpack.c.bf16 %v8541_v43, %v8540_v8  ;;  %8377 = vmatprep.subr.msk.bf16.mxu0 %vm10106_vm10, %v8375_v27  ;;  %v10136_v34 = vpack.c.bf16 %v8536_v33, %v8535_v2  ;;  %14711 = vst [vmem:[#allocation68_spill] sm:$0xff] %v10141_v54  ;;  %v338_v33 = vadd.s32 536, %v9295_v9  ;;  %v419_v43 = vshra.s32 %v337_v29, 6  ;;  %14714 = vst [vmem:[#allocation71_spill] sm:$0xff] %v10166_v63 }
 0x1f4   :  { %v8549_v0 = vpop.permute.xlu0 %8548  ;;  %v10143_v40 = vpop.permute.xlu1 %8543  ;;  %7857 = vmatmul.mubr.msk.f32.gmra.mrb[58].mxu1 %vm76_vm0, %v838_v53  ;;  %v339_v8 = vadd.s32 544, %v9295_v9  ;;  %v840_v52 = vmul.f32 %v10141_v54, %v9614_v22  ;;  %v10170_v29 = vsel %vm498_vm14, 1.0, %v14680_v1  ;;  %v341_v25 = vadd.s32 560, %v9295_v9 }
 0x1f5   :  { %14710 = vst [vmem:[#allocation67_spill] sm:$0xff] %v10136_v34  ;;  %14712 = vst [vmem:[#allocation69_spill] sm:$0xff] %v10143_v40  ;;  %v8551_v2 = vunpack.i.h.bf16 %v8549_v0  ;;  %v8550_v38 = vunpack.i.l.bf16 %v8549_v0  ;;  %7859 = vmatprep.mubr.msk.f32.mxu1 %vm76_vm0, %v839_v18  ;;  %8389 = vmatprep.subr.msk.bf16.mxu1 %vm9514_vm3, %v8387_v13  ;;  %v420_v53 = vshra.s32 %v338_v33, 6  ;;  %vm500_vm1 = vcmp.eq.s32.totalorder %v419_v43, %v9394_v56 }
 0x1f6   :  { %8380 = vmatpush3.bf16.msk.msra.mxu0 %vm10106_vm10, %v8375_v27  ;;  %14715 = vst [vmem:[#allocation72_spill] sm:$0xff] %v10170_v29  ;;  %v340_v27 = vadd.s32 552, %v9295_v9  ;;  %v421_v0 = vshra.s32 %v339_v8, 6  ;;  %v843_v10 = vmul.f32 %v10170_v29, %v9416_v7  ;;  %v10186_v33 = vsel %vm499_vm15, 1.0, %v14680_v1 }
 0x1f7   :  { %8406 = vmatprep.subr.bf16.mxu0 %v10136_v34  ;;  %v8393_v18 = vpack.c.bf16 %v8551_v2, %v8550_v38  ;;  %14716 = vst [vmem:[#allocation73_spill] sm:$0xff] %v10186_v33  ;;  %v342_v2 = vadd.s32 568, %v9295_v9  ;;  %v10191_v38 = vsel %vm500_vm1, 1.0, %v14680_v1  ;;  %vm501_vm2 = vcmp.eq.s32.totalorder %v420_v53, %v9394_v56 }
 0x1f8   :  { %7860 = vmatmul.mubr.msk.f32.gmra.mrb[60].mxu1 %vm76_vm0, %v840_v52  ;;  %v8559_v34 = vpop.permute.xlu1 %8558  ;;  %v842_v52 = vmul.f32 %v10166_v63, %v9643_v24  ;;  %14717 = vst [vmem:[#allocation74_spill] sm:$0xff] %v10191_v38  ;;  %v343_v43 = vadd.s32 576, %v9295_v9  ;;  %vm502_vm4 = vcmp.eq.s32.totalorder %v421_v0, %v9394_v56  ;;  %v423_v40 = vshra.s32 %v341_v25, 6 }
 0x1f9   :  { %7862 = vmatprep.mubr.msk.f32.mxu1 %vm76_vm0, %v841_v19  ;;  %v8561_v8 = vunpack.i.h.bf16 %v8559_v34  ;;  %v8560_v19 = vunpack.i.l.bf16 %v8559_v34  ;;  %v844_v29 = vmul.f32 %v10186_v33, %v9552_v45  ;;  %v10202_v63 = vsel %vm501_vm2, 1.0, %v14680_v1 }
 0x1fa   :  { %8392 = vmatpush3.bf16.xpose.msk.msra.mxu1 %vm9514_vm3, %v8387_v13  ;;  %v422_v13 = vshra.s32 %v340_v27, 6  ;;  %14718 = vst [vmem:[#allocation75_spill] sm:$0xff] %v10202_v63  ;;  %v10206_v53 = vsel %vm502_vm4, 1.0, %v14680_v1  ;;  %v424_v34 = vshra.s32 %v342_v2, 6  ;;  %v344_v27 = vadd.s32 584, %v9295_v9 }
 0x1fb   :  { %8395 = vmatprep.subr.msk.bf16.mxu1 %vm9514_vm3, %v8393_v18  ;;  %14719 = vst [vmem:[#allocation76_spill] sm:$0xff] %v10206_v53  ;;  %v8399_v25 = vpack.c.bf16 %v8561_v8, %v8560_v19  ;;  %vm504_vm6 = vcmp.eq.s32.totalorder %v423_v40, %v9394_v56  ;;  %v425_v0 = vshra.s32 %v343_v43, 6  ;;  %v847_v2 = vmul.f32 %v10206_v53, %v9594_v20 }
 0x1fc   :  { %7863 = vmatmul.mubr.msk.f32.gmra.mrb[62].mxu1 %vm76_vm0, %v842_v52  ;;  %v845_v52 = vmul.f32 %v10191_v38, %v9569_v55  ;;  %vm503_vm5 = vcmp.eq.s32.totalorder %v422_v13, %v9394_v56  ;;  %v10226_v40 = vsel %vm504_vm6, 1.0, %v14680_v1  ;;  %vm505_vm7 = vcmp.eq.s32.totalorder %v424_v34, %v9394_v56 }
 0x1fd   :  { %7865 = vmatprep.mubr.msk.f32.mxu1 %vm76_vm0, %v843_v10  ;;  %v345_v10 = vadd.s32 592, %v9295_v9  ;;  %v10222_v13 = vsel %vm503_vm5, 1.0, %v14680_v1  ;;  %14721 = vst [vmem:[#allocation78_spill] sm:$0xff] %v10226_v40  ;;  %v346_v43 = vadd.s32 600, %v9295_v9  ;;  %vm506_vm8 = vcmp.eq.s32.totalorder %v425_v0, %v9394_v56 }
 0x1fe   :  { %14720 = vst [vmem:[#allocation77_spill] sm:$0xff] %v10222_v13  ;;  %v347_v19 = vadd.s32 608, %v9295_v9  ;;  %v10238_v53 = vsel %vm505_vm7, 1.0, %v14680_v1  ;;  %v10242_v34 = vsel %vm506_vm8, 1.0, %v14680_v1  ;;  %v348_v0 = vadd.s32 616, %v9295_v9 }
 0x1ff   :  { %v427_v8 = vshra.s32 %v345_v10, 6  ;;  %14722 = vst [vmem:[#allocation79_spill] sm:$0xff] %v10238_v53  ;;  %14723 = vst [vmem:[#allocation80_spill] sm:$0xff] %v10242_v34  ;;  %vm1604_vm1 = vcmask 498688  }
 0x200   :  { %7866 = vmatmul.mubr.msk.f32.gmra.mrb[64].mxu1 %vm76_vm0, %v844_v29  ;;  %v846_v29 = vmul.f32 %v10202_v63, %v9578_v47  ;;  %v429_v10 = vshra.s32 %v347_v19, 6 }
 0x201   :  { %7868 = vmatprep.mubr.msk.f32.mxu1 %vm76_vm0, %v845_v52  ;;  %v848_v52 = vmul.f32 %v10222_v13, %v9614_v22  ;;  %vm508_vm11 = vcmp.eq.s32.totalorder %v427_v8, %v9394_v56  ;;  %v430_v8 = vshra.s32 %v348_v0, 6 }
 0x202   :  { %8398 = vmatpush3.bf16.xpose.msk.msra.mxu1 %vm9514_vm3, %v8393_v18  ;;  %v426_v18 = vshra.s32 %v344_v27, 6  ;;  %v428_v27 = vshra.s32 %v346_v43, 6  ;;  %v10260_v43 = vsel %vm508_vm11, 1.0, %v14680_v1 }
 0x203   :  { %8401 = vmatprep.subr.msk.bf16.mxu1 %vm9514_vm3, %v8399_v25  ;;  %14725 = vst [vmem:[#allocation82_spill] sm:$0xff] %v10260_v43  ;;  %v853_v19 = vmul.f32 %v10260_v43, %v9569_v55  ;;  %vm511_vm13 = vcmp.eq.s32.totalorder %v430_v8, %v9394_v56  ;;  %v10335_v8 = vmul.f32 0.15811388, %v9499_v4 }
 0x204   :  { %7869 = vmatmul.mubr.msk.f32.gmra.mrb[66].mxu1 %vm76_vm0, %v846_v29  ;;  %v849_v29 = vmul.f32 %v10226_v40, %v9624_v30  ;;  %vm507_vm9 = vcmp.eq.s32.totalorder %v426_v18, %v9394_v56  ;;  %v851_v40 = vmul.f32 %v10242_v34, %v9416_v7  ;;  %vm509_vm12 = vcmp.eq.s32.totalorder %v428_v27, %v9394_v56 }
 0x205   :  { %7871 = vmatprep.mubr.msk.f32.mxu1 %vm76_vm0, %v847_v2  ;;  %v349_v2 = vadd.s32 624, %v9295_v9  ;;  %v10256_v18 = vsel %vm507_vm9, 1.0, %v14680_v1  ;;  %v432_v9 = vshra.s32 %v350_v59, 6  ;;  %v10342_v59 = vmul.f32 0.15811388, %v9496_v23 }
 0x206   :  { %14724 = vst [vmem:[#allocation81_spill] sm:$0xff] %v10256_v18  ;;  %v852_v7 = vmul.f32 %v10256_v18, %v9552_v45 }
 0x207   :  { %vm513_vm15 = vcmp.eq.s32.totalorder %v432_v9, %v9394_v56  ;;  %v3727_v4 = vmul.f32 %v9655_v39, %v10342_v59 }
 0x208   :  { %7872 = vmatmul.mubr.msk.f32.gmra.mrb[68].mxu1 %vm76_vm0, %v848_v52  ;;  %v850_v52 = vmul.f32 %v10238_v53, %v9643_v24 }
 0x209   :  { %7874 = vmatprep.mubr.msk.f32.mxu1 %vm76_vm0, %v849_v29  ;;  %v10271_v29 = vsel %vm509_vm12, 1.0, %v14680_v1 }
 0x20a   :  { %8404 = vmatpush3.bf16.xpose.msk.msra.mxu1 %vm9514_vm3, %v8399_v25  ;;  %vm510_vm3 = vcmp.eq.s32.totalorder %v429_v10, %v9394_v56  ;;  %v431_v25 = vshra.s32 %v349_v2, 6  ;;  %14726 = vst [vmem:[#allocation83_spill] sm:$0xff] %v10271_v29  ;;  %v854_v45 = vmul.f32 %v10271_v29, %v9578_v47  ;;  %v10296_v47 = vmul.f32 0.15811388, %v9455_v44 }
 0x20b   :  { %v10275_v27 = vsel %vm510_vm3, 1.0, %v14680_v1  ;;  %v10301_v2 = vsel %vm513_vm15, 1.0, %v14680_v1 }
 0x20c   :  { %7875 = vmatmul.mubr.msk.f32.gmra.mrb[70].mxu1 %vm76_vm0, %v850_v52  ;;  %14727 = vst [vmem:[#allocation84_spill] sm:$0xff] %v10275_v27  ;;  %vm512_vm14 = vcmp.eq.s32.totalorder %v431_v25, %v9394_v56  ;;  %v855_v55 = vmul.f32 %v10275_v27, %v9594_v20  ;;  %14730 = vst [vmem:[#allocation87_spill] sm:$0xff] %v10301_v2  ;;  %v10306_v56 = vmul.f32 0.15811388, %v9452_v42 }
 0x20d   :  { %7877 = vmatprep.mubr.msk.f32.mxu1 %vm76_vm0, %v851_v40  ;;  %v10285_v40 = vsel %vm511_vm13, 1.0, %v14680_v1  ;;  %v10289_v0 = vsel %vm512_vm14, 1.0, %v14680_v1  ;;  %v858_v52 = vmul.f32 %v10301_v2, %v9643_v24  ;;  %v3720_v44 = vmul.f32 %v9413_v6, %v10296_v47 }
 0x20e   :  { %14728 = vst [vmem:[#allocation85_spill] sm:$0xff] %v10285_v40  ;;  %14729 = vst [vmem:[#allocation86_spill] sm:$0xff] %v10289_v0  ;;  %v856_v10 = vmul.f32 %v10285_v40, %v9614_v22  ;;  %v857_v20 = vmul.f32 %v10289_v0, %v9624_v30  ;;  %v10311_v22 = vmul.f32 0.15811388, %v9469_v51  ;;  %v10318_v30 = vmul.f32 0.15811388, %v9466_v49 }
 0x20f   :  { %v3721_v42 = vmul.f32 %v9566_v58, %v10306_v56  ;;  %v10323_v1 = vmul.f32 0.15811388, %v9484_v60  ;;  %v10330_v24 = vmul.f32 0.15811388, %v9481_v57  ;;  %v3726_v25 = vmul.f32 %v9635_v16, %v10335_v8 }
 0x210   :  { %7878 = vmatmul.mubr.msk.f32.gmra.mrb[72].mxu1 %vm76_vm0, %v852_v7  ;;  %v3722_v51 = vmul.f32 %v9573_v32, %v10311_v22  ;;  %v3723_v49 = vmul.f32 %v9591_v12, %v10318_v30  ;;  %v3728_v7 = vmul.f32 %v9659_v35, %v10296_v47  ;;  %v3729_v23 = vmul.f32 %v9672_v48, %v10306_v56 }
 0x211   :  { %7880 = vmatprep.mubr.msk.f32.mxu1 %vm76_vm0, %v853_v19  ;;  %v3724_v60 = vmul.f32 %v9600_v3, %v10323_v1  ;;  %v3725_v57 = vmul.f32 %v9631_v26, %v10330_v24  ;;  %v3730_v19 = vmul.f32 %v9676_v50, %v10311_v22  ;;  %v3731_v9 = vmul.f32 %v9688_v15, %v10318_v30 }
 0x214   :  { %7881 = vmatmul.mubr.msk.f32.gmra.mrb[74].mxu1 %vm76_vm0, %v854_v45  ;;  %v3732_v45 = vmul.f32 %v9692_v17, %v10323_v1 }
 0x215   :  { %7883 = vmatprep.mubr.msk.f32.mxu1 %vm76_vm0, %v855_v55  ;;  %v3733_v55 = vmul.f32 %v9704_v61, %v10330_v24 }
 0x218   :  { %7884 = vmatmul.mubr.msk.f32.gmra.mrb[76].mxu1 %vm76_vm0, %v856_v10  ;;  %v3734_v10 = vmul.f32 %v9708_v21, %v10335_v8 }
 0x219   :  { %7886 = vmatprep.mubr.msk.f32.mxu1 %vm76_vm0, %v857_v20  ;;  %v3735_v20 = vmul.f32 %v9720_v37, %v10342_v59 }
 0x21c   :  { %7887 = vmatmul.mubr.msk.f32.gmra.mrb[78].mxu1 %vm76_vm0, %v858_v52  ;;  %v3736_v52 = vmul.f32 %v9724_v5, %v10296_v47 }
 0x21d   :  { %8041 = vmatprep.mubr.msk.f32.mxu1 %vm76_vm0, %v3720_v44  ;;  %v3737_v44 = vmul.f32 %v9736_v11, %v10306_v56 }
 0x220   :  { %8042 = vmatmul.mubr.msk.f32.vlgmr.msra.gmra.mrb[80].mxu1 %vm76_vm0, %v3721_v42  ;;  %v3738_v42 = vmul.f32 %v9740_v41, %v10311_v22 }
 0x221   :  { %8044 = vmatprep.mubr.msk.f32.mxu1 %vm76_vm0, %v3722_v51  ;;  %v3739_v51 = vmul.f32 %v9752_v14, %v10318_v30 }
 0x224   :  { %8045 = vmatmul.mubr.msk.f32.gmra.mrb[82].mxu1 %vm76_vm0, %v3723_v49  ;;  %v14731_v49 = vld [vmem:[#allocation25_spill] sm:$0xff] }
 0x225   :  { %8047 = vmatprep.mubr.msk.f32.mxu1 %vm76_vm0, %v3724_v60  ;;  %v3740_v60 = vmul.f32 %v14731_v49, %v10323_v1 }
 0x228   :  { %8048 = vmatmul.mubr.msk.f32.gmra.mrb[84].mxu1 %vm76_vm0, %v3725_v57  ;;  %v14732_v57 = vld [vmem:[#allocation26_spill] sm:$0xff] }
 0x229   :  { %8050 = vmatprep.mubr.msk.f32.mxu1 %vm76_vm0, %v3726_v25  ;;  %v3741_v25 = vmul.f32 %v14732_v57, %v10330_v24 }
 0x22c   :  { %8051 = vmatmul.mubr.msk.f32.gmra.mrb[86].mxu1 %vm76_vm0, %v3727_v4  ;;  %v14733_v4 = vld [vmem:[#allocation27_spill] sm:$0xff] }
 0x22d   :  { %8053 = vmatprep.mubr.msk.f32.mxu1 %vm76_vm0, %v3728_v7  ;;  %v3742_v7 = vmul.f32 %v14733_v4, %v10335_v8 }
 0x230   :  { %8054 = vmatmul.mubr.msk.f32.gmra.mrb[88].mxu1 %vm76_vm0, %v3729_v23  ;;  %v14734_v23 = vld [vmem:[#allocation28_spill] sm:$0xff] }
 0x231   :  { %8056 = vmatprep.mubr.msk.f32.mxu1 %vm76_vm0, %v3730_v19  ;;  %v3743_v19 = vmul.f32 %v14734_v23, %v10342_v59 }
 0x234   :  { %8057 = vmatmul.mubr.msk.f32.gmra.mrb[90].mxu1 %vm76_vm0, %v3731_v9  ;;  %v14735_v9 = vld [vmem:[#allocation29_spill] sm:$0xff] }
 0x235   :  { %8059 = vmatprep.mubr.msk.f32.mxu1 %vm76_vm0, %v3732_v45  ;;  %v3744_v45 = vmul.f32 %v14735_v9, %v10296_v47 }
 0x238   :  { %8060 = vmatmul.mubr.msk.f32.gmra.mrb[92].mxu1 %vm76_vm0, %v3733_v55  ;;  %v14736_v55 = vld [vmem:[#allocation30_spill] sm:$0xff] }
 0x239   :  { %8062 = vmatprep.mubr.msk.f32.mxu1 %vm76_vm0, %v3734_v10  ;;  %v3745_v10 = vmul.f32 %v14736_v55, %v10306_v56 }
 0x23c   :  { %8063 = vmatmul.mubr.msk.f32.gmra.mrb[94].mxu1 %vm76_vm0, %v3735_v20  ;;  %v14737_v20 = vld [vmem:[#allocation31_spill] sm:$0xff] }
 0x23d   :  { %8065 = vmatprep.mubr.msk.f32.mxu1 %vm76_vm0, %v3736_v52  ;;  %v3746_v52 = vmul.f32 %v14737_v20, %v10311_v22 }
 0x240   :  { %8066 = vmatmul.mubr.msk.f32.gmra.mrb[96].mxu1 %vm76_vm0, %v3737_v44  ;;  %v14738_v44 = vld [vmem:[#allocation32_spill] sm:$0xff] }
 0x241   :  { %8068 = vmatprep.mubr.msk.f32.mxu1 %vm76_vm0, %v3738_v42  ;;  %v3747_v42 = vmul.f32 %v14738_v44, %v10318_v30 }
 0x244   :  { %8069 = vmatmul.mubr.msk.f32.gmra.mrb[98].mxu1 %vm76_vm0, %v3739_v51 }
 0x245   :  { %8071 = vmatprep.mubr.msk.f32.mxu1 %vm76_vm0, %v3740_v60  ;;  %v14739_v60 = vld [vmem:[#allocation33_spill] sm:$0xff] }
 0x248   :  { %8072 = vmatmul.mubr.msk.f32.gmra.mrb[100].mxu1 %vm76_vm0, %v3741_v25  ;;  %v3748_v25 = vmul.f32 %v14739_v60, %v10323_v1  ;;  %v14741_v60 = vld [vmem:[#allocation35_spill] sm:$0xff] }
 0x249   :  { %8074 = vmatprep.mubr.msk.f32.mxu1 %vm76_vm0, %v3742_v7  ;;  %v3750_v44 = vmul.f32 %v14741_v60, %v10335_v8 }
 0x24c   :  { %8075 = vmatmul.mubr.msk.f32.gmra.mrb[102].mxu1 %vm76_vm0, %v3743_v19 }
 0x24d   :  { %8077 = vmatprep.mubr.msk.f32.mxu1 %vm76_vm0, %v3744_v45 }
 0x250   :  { %8078 = vmatmul.mubr.msk.f32.gmra.mrb[104].mxu1 %vm76_vm0, %v3745_v10  ;;  %v14740_v10 = vld [vmem:[#allocation34_spill] sm:$0xff] }
 0x251   :  { %8080 = vmatprep.mubr.msk.f32.mxu1 %vm76_vm0, %v3746_v52  ;;  %v3749_v52 = vmul.f32 %v14740_v10, %v10330_v24  ;;  %v14743_v10 = vld [vmem:[#allocation37_spill] sm:$0xff] }
 0x252   :  { %v3752_v55 = vmul.f32 %v14743_v10, %v10296_v47  ;;  %v14745_v10 = vld [vmem:[#allocation39_spill] sm:$0xff] }
 0x253   :  { %v10412_v51 = vpop.f32.mrb[0].mxu1  ;;  %v3754_v23 = vmul.f32 %v14745_v10, %v10311_v22  ;;  %v14747_v10 = vld [vmem:[#allocation41_spill] sm:$0xff] }
 0x254   :  { %v10416_v7 = vpop.f32.mrb[1].mxu1  ;;  %8081 = vmatmul.mubr.msk.f32.gmra.mrb[106].mxu1 %vm76_vm0, %v3747_v42  ;;  %v1608_v19 = vsel %vm1604_vm1, %v10412_v51, -inf  ;;  %v3756_v57 = vmul.f32 %v14747_v10, %v10323_v1  ;;  %v14749_v10 = vld [vmem:[#allocation43_spill] sm:$0xff] }
 0x255   :  { %8083 = vmatprep.mubr.msk.f32.mxu1 %vm76_vm0, %v3748_v25  ;;  %1609 = vmax.xlane.f32.xlu1 %v1608_v19  ;;  %v1605_v45 = vsel %vm1604_vm1, %v10416_v7, -inf  ;;  %v14742_v25 = vld [vmem:[#allocation36_spill] sm:$0xff]  ;;  %v3758_v14 = vmul.f32 %v14749_v10, %v10335_v8  ;;  %v14751_v10 = vld [vmem:[#allocation45_spill] sm:$0xff] }
 0x256   :  { %1606 = vmax.xlane.f32.xlu0 %v1605_v45  ;;  %v3751_v19 = vmul.f32 %v14742_v25, %v10342_v59  ;;  %v3760_v11 = vmul.f32 %v14751_v10, %v10296_v47  ;;  %v14753_v10 = vld [vmem:[#allocation47_spill] sm:$0xff] }
 0x257   :  { %v10426_v20 = vpop.f32.mrb[2].mxu1  ;;  %v3762_v37 = vmul.f32 %v14753_v10, %v10311_v22  ;;  %v14755_v10 = vld [vmem:[#allocation49_spill] sm:$0xff] }
 0x258   :  { %v10430_v9 = vpop.f32.mrb[3].mxu1  ;;  %8084 = vmatmul.mubr.msk.f32.gmra.mrb[108].mxu1 %vm76_vm0, %v3749_v52  ;;  %v1614_v42 = vsel %vm1604_vm1, %v10426_v20, -inf  ;;  %v3764_v61 = vmul.f32 %v14755_v10, %v10323_v1  ;;  %v14758_v10 = vld [vmem:[#allocation51_spill] sm:$0xff] }
 0x259   :  { %8086 = vmatprep.mubr.msk.f32.mxu1 %vm76_vm0, %v3750_v44  ;;  %v1611_v52 = vsel %vm1604_vm1, %v10430_v9, -inf  ;;  %v3766_v39 = vmul.f32 %v14758_v10, %v10335_v8  ;;  %v14762_v10 = vld [vmem:[#allocation53_spill] sm:$0xff] }
 0x25a   :  { %1615 = vmax.xlane.f32.xlu0 %v1614_v42  ;;  %v14744_v42 = vld [vmem:[#allocation38_spill] sm:$0xff]  ;;  %v3768_v15 = vmul.f32 %v14762_v10, %v10296_v47  ;;  %v14765_v10 = vld [vmem:[#allocation55_spill] sm:$0xff] }
 0x25b   :  { %v10438_v45 = vpop.f32.mrb[4].mxu1  ;;  %v3753_v60 = vmul.f32 %v14744_v42, %v10306_v56  ;;  %v3770_v26 = vmul.f32 %v14765_v10, %v10311_v22 }
 0x25c   :  { %v10442_v4 = vpop.f32.mrb[5].mxu1  ;;  %8087 = vmatmul.mubr.msk.f32.gmra.mrb[110].mxu1 %vm76_vm0, %v3751_v19 }
 0x25d   :  { %8089 = vmatprep.mubr.msk.f32.mxu1 %vm76_vm0, %v3752_v55  ;;  %v1617_v44 = vsel %vm1604_vm1, %v10442_v4, -inf  ;;  %v1620_v55 = vsel %vm1604_vm1, %v10438_v45, -inf }
 0x25e   :  { %1612 = vmax.xlane.f32.xlu0 %v1611_v52  ;;  %1618 = vmax.xlane.f32.xlu1 %v1617_v44  ;;  %v14746_v52 = vld [vmem:[#allocation40_spill] sm:$0xff] }
 0x25f   :  { %v10452_v25 = vpop.f32.mrb[6].mxu1  ;;  %v3755_v44 = vmul.f32 %v14746_v52, %v10318_v30 }
 0x260   :  { %v10456_v49 = vpop.f32.mrb[7].mxu1  ;;  %8090 = vmatmul.mubr.msk.f32.gmra.mrb[112].mxu1 %vm76_vm0, %v3753_v60 }
 0x261   :  { %8092 = vmatprep.mubr.msk.f32.mxu1 %vm76_vm0, %v3754_v23  ;;  %v1623_v19 = vsel %vm1604_vm1, %v10456_v49, -inf  ;;  %v1626_v23 = vsel %vm1604_vm1, %v10452_v25, -inf }
 0x262   :  { %1621 = vmax.xlane.f32.xlu0 %v1620_v55  ;;  %1624 = vmax.xlane.f32.xlu1 %v1623_v19  ;;  %v14748_v55 = vld [vmem:[#allocation42_spill] sm:$0xff] }
 0x263   :  { %v10466_v42 = vpop.f32.mrb[8].mxu1  ;;  %v3757_v19 = vmul.f32 %v14748_v55, %v10330_v24 }
 0x264   :  { %v10470_v41 = vpop.f32.mrb[9].mxu1  ;;  %8093 = vmatmul.mubr.msk.f32.gmra.mrb[114].mxu1 %vm76_vm0, %v3755_v44 }
 0x265   :  { %8095 = vmatprep.mubr.msk.f32.mxu1 %vm76_vm0, %v3756_v57  ;;  %v1629_v60 = vsel %vm1604_vm1, %v10470_v41, -inf  ;;  %v1632_v57 = vsel %vm1604_vm1, %v10466_v42, -inf }
 0x266   :  { %1627 = vmax.xlane.f32.xlu0 %v1626_v23  ;;  %1630 = vmax.xlane.f32.xlu1 %v1629_v60  ;;  %v14750_v23 = vld [vmem:[#allocation44_spill] sm:$0xff] }
 0x267   :  { %v10480_v52 = vpop.f32.mrb[10].mxu1  ;;  %v3759_v60 = vmul.f32 %v14750_v23, %v10342_v59 }
 0x268   :  { %v10484_v5 = vpop.f32.mrb[11].mxu1  ;;  %8096 = vmatmul.mubr.msk.f32.gmra.mrb[116].mxu1 %vm76_vm0, %v3757_v19 }
 0x269   :  { %8098 = vmatprep.mubr.msk.f32.mxu1 %vm76_vm0, %v3758_v14  ;;  %v1635_v44 = vsel %vm1604_vm1, %v10484_v5, -inf  ;;  %v1638_v14 = vsel %vm1604_vm1, %v10480_v52, -inf }
 0x26a   :  { %1633 = vmax.xlane.f32.xlu0 %v1632_v57  ;;  %1636 = vmax.xlane.f32.xlu1 %v1635_v44  ;;  %v14752_v57 = vld [vmem:[#allocation46_spill] sm:$0xff] }
 0x26b   :  { %v10494_v55 = vpop.f32.mrb[12].mxu1  ;;  %v3761_v44 = vmul.f32 %v14752_v57, %v10306_v56 }
 0x26c   :  { %v10498_v21 = vpop.f32.mrb[13].mxu1  ;;  %8099 = vmatmul.mubr.msk.f32.gmra.mrb[118].mxu1 %vm76_vm0, %v3759_v60 }
 0x26d   :  { %8101 = vmatprep.mubr.msk.f32.mxu1 %vm76_vm0, %v3760_v11  ;;  %v1641_v19 = vsel %vm1604_vm1, %v10498_v21, -inf  ;;  %v1644_v11 = vsel %vm1604_vm1, %v10494_v55, -inf }
 0x26e   :  { %1639 = vmax.xlane.f32.xlu0 %v1638_v14  ;;  %1642 = vmax.xlane.f32.xlu1 %v1641_v19  ;;  %v14754_v14 = vld [vmem:[#allocation48_spill] sm:$0xff] }
 0x26f   :  { %v10508_v23 = vpop.f32.mrb[14].mxu1  ;;  %v3763_v19 = vmul.f32 %v14754_v14, %v10318_v30 }
 0x270   :  { %v10512_v17 = vpop.f32.mrb[15].mxu1  ;;  %8102 = vmatmul.mubr.msk.f32.gmra.mrb[120].mxu1 %vm76_vm0, %v3761_v44 }
 0x271   :  { %8104 = vmatprep.mubr.msk.f32.mxu1 %vm76_vm0, %v3762_v37  ;;  %v1647_v60 = vsel %vm1604_vm1, %v10512_v17, -inf  ;;  %v1650_v37 = vsel %vm1604_vm1, %v10508_v23, -inf }
 0x272   :  { %1645 = vmax.xlane.f32.xlu0 %v1644_v11  ;;  %1648 = vmax.xlane.f32.xlu1 %v1647_v60  ;;  %v14756_v11 = vld [vmem:[#allocation50_spill] sm:$0xff] }
 0x273   :  { %v10522_v57 = vpop.f32.mrb[16].mxu1  ;;  %v3765_v60 = vmul.f32 %v14756_v11, %v10330_v24 }
 0x274   :  { %v10526_v16 = vpop.f32.mrb[17].mxu1  ;;  %8105 = vmatmul.mubr.msk.f32.gmra.mrb[122].mxu1 %vm76_vm0, %v3763_v19 }
 0x275   :  { %8107 = vmatprep.mubr.msk.f32.mxu1 %vm76_vm0, %v3764_v61  ;;  %v1653_v44 = vsel %vm1604_vm1, %v10526_v16, -inf  ;;  %v1656_v61 = vsel %vm1604_vm1, %v10522_v57, -inf }
 0x276   :  { %1651 = vmax.xlane.f32.xlu0 %v1650_v37  ;;  %1654 = vmax.xlane.f32.xlu1 %v1653_v44  ;;  %v14760_v37 = vld [vmem:[#allocation52_spill] sm:$0xff] }
 0x277   :  { %v10536_v14 = vpop.f32.mrb[18].mxu1  ;;  %v3767_v44 = vmul.f32 %v14760_v37, %v10342_v59 }
 0x278   :  { %14757 = vst [vmem:[#allocation88_spill] sm:$0xff] %v10536_v14  ;;  %v10540_v50 = vpop.f32.mrb[19].mxu1  ;;  %8108 = vmatmul.mubr.msk.f32.gmra.mrb[124].mxu1 %vm76_vm0, %v3765_v60 }
 0x279   :  { %14759 = vst [vmem:[#allocation89_spill] sm:$0xff] %v10540_v50  ;;  %8110 = vmatprep.mubr.msk.f32.mxu1 %vm76_vm0, %v3766_v39  ;;  %v1659_v19 = vsel %vm1604_vm1, %v10540_v50, -inf  ;;  %v1662_v39 = vsel %vm1604_vm1, %v10536_v14, -inf }
 0x27a   :  { %1657 = vmax.xlane.f32.xlu0 %v1656_v61  ;;  %1660 = vmax.xlane.f32.xlu1 %v1659_v19  ;;  %v14764_v61 = vld [vmem:[#allocation54_spill] sm:$0xff] }
 0x27b   :  { %v10550_v11 = vpop.f32.mrb[20].mxu1  ;;  %v3769_v19 = vmul.f32 %v14764_v61, %v10306_v56  ;;  %v14768_v61 = vld [vmem:[#allocation57_spill] sm:$0xff] }
 0x27c   :  { %14761 = vst [vmem:[#allocation90_spill] sm:$0xff] %v10550_v11  ;;  %v10554_v3 = vpop.f32.mrb[21].mxu1  ;;  %8111 = vmatmul.mubr.msk.f32.gmra.mrb[126].mxu1 %vm76_vm0, %v3767_v44  ;;  %v14766_v44 = vld [vmem:[#allocation56_spill] sm:$0xff]  ;;  %v3772_v12 = vmul.f32 %v14768_v61, %v10323_v1  ;;  %v14771_v61 = vld [vmem:[#allocation59_spill] sm:$0xff] }
 0x27d   :  { %14763 = vst [vmem:[#allocation91_spill] sm:$0xff] %v10554_v3  ;;  %8113 = vmatprep.mubr.msk.f32.mxu1 %vm76_vm0, %v3768_v15  ;;  %v1665_v60 = vsel %vm1604_vm1, %v10554_v3, -inf  ;;  %v1668_v15 = vsel %vm1604_vm1, %v10550_v11, -inf  ;;  %v3774_v48 = vmul.f32 %v14771_v61, %v10335_v8 }
 0x27e   :  { %1663 = vmax.xlane.f32.xlu0 %v1662_v39  ;;  %1666 = vmax.xlane.f32.xlu1 %v1665_v60  ;;  %v3771_v39 = vmul.f32 %v14766_v44, %v10318_v30 }
 0x27f   :  { %v10564_v37 = vpop.f32.mrb[22].mxu1 }
 0x280   :  { %v10568_v32 = vpop.f32.mrb[23].mxu1  ;;  %8114 = vmatmul.mubr.msk.f32.gmra.mrb[128].mxu1 %vm76_vm0, %v3769_v19 }
 0x281   :  { %8116 = vmatprep.mubr.msk.f32.mxu1 %vm76_vm0, %v3770_v26  ;;  %v1674_v26 = vsel %vm1604_vm1, %v10564_v37, -inf }
 0x282   :  { %1669 = vmax.xlane.f32.xlu0 %v1668_v15  ;;  %v14770_v15 = vld [vmem:[#allocation58_spill] sm:$0xff] }
 0x283   :  { %v10576_v60 = vpop.f32.mrb[24].mxu1  ;;  %v3773_v10 = vmul.f32 %v14770_v15, %v10330_v24  ;;  %v14774_v15 = vld [vmem:[#allocation61_spill] sm:$0xff] }
 0x284   :  { %14767 = vst [vmem:[#allocation92_spill] sm:$0xff] %v10576_v60  ;;  %v10580_v35 = vpop.f32.mrb[25].mxu1  ;;  %8117 = vmatmul.mubr.msk.f32.gmra.mrb[130].mxu1 %vm76_vm0, %v3771_v39  ;;  %v14772_v39 = vld [vmem:[#allocation60_spill] sm:$0xff]  ;;  %v3776_v58 = vmul.f32 %v14774_v15, %v10296_v47  ;;  %v3778_v15 = vmul.f32 %v10075_v46, %v10311_v22  ;;  %v3782_v46 = vmul.f32 %v10149_v28, %v10335_v8 }
 0x285   :  { %14769 = vst [vmem:[#allocation93_spill] sm:$0xff] %v10580_v35  ;;  %8119 = vmatprep.mubr.msk.f32.mxu1 %vm76_vm0, %v3772_v12  ;;  %v1677_v19 = vsel %vm1604_vm1, %v10580_v35, -inf  ;;  %v1671_v12 = vsel %vm1604_vm1, %v10568_v32, -inf  ;;  %v3786_v28 = vmul.f32 %v10191_v38, %v10311_v22  ;;  %v14786_v38 = vld [vmem:[#allocation76_spill] sm:$0xff] }
 0x286   :  { %1675 = vmax.xlane.f32.xlu0 %v1674_v26  ;;  %1678 = vmax.xlane.f32.xlu1 %v1677_v19  ;;  %v3775_v26 = vmul.f32 %v14772_v39, %v10342_v59 }
 0x287   :  { %v10590_v44 = vpop.f32.mrb[26].mxu1 }
 0x288   :  { %v10594_v6 = vpop.f32.mrb[27].mxu1  ;;  %8120 = vmatmul.mubr.msk.f32.gmra.mrb[132].mxu1 %vm76_vm0, %v3773_v10 }
 0x289   :  { %8122 = vmatprep.mubr.msk.f32.mxu1 %vm76_vm0, %v3774_v48  ;;  %v1680_v48 = vsel %vm1604_vm1, %v10576_v60, -inf }
 0x28a   :  { %1672 = vmax.xlane.f32.xlu0 %v1671_v12  ;;  %v3777_v12 = vmul.f32 %v10068_v62, %v10306_v56 }
 0x28b   :  { %v10602_v19 = vpop.f32.mrb[28].mxu1 }
 0x28c   :  { %14773 = vst [vmem:[#allocation94_spill] sm:$0xff] %v10602_v19  ;;  %v10606_v35 = vpop.f32.mrb[29].mxu1  ;;  %8123 = vmatmul.mubr.msk.f32.gmra.mrb[134].mxu1 %vm76_vm0, %v3775_v26  ;;  %v1692_v10 = vsel %vm1604_vm1, %v10602_v19, -inf  ;;  %v3779_v26 = vmul.f32 %v10102_v36, %v10318_v30 }
 0x28d   :  { %8125 = vmatprep.mubr.msk.f32.mxu1 %vm76_vm0, %v3776_v58  ;;  %1693 = vmax.xlane.f32.xlu1 %v1692_v10  ;;  %v1686_v58 = vsel %vm1604_vm1, %v10590_v44, -inf }
 0x28e   :  { %1681 = vmax.xlane.f32.xlu0 %v1680_v48  ;;  %v3780_v48 = vmul.f32 %v10113_v31, %v10323_v1 }
 0x28f   :  { %v10616_v61 = vpop.f32.mrb[30].mxu1 }
 0x290   :  { %v10620_v39 = vpop.f32.mrb[31].mxu1  ;;  %8126 = vmatmul.mubr.msk.f32.gmra.mrb[136].mxu1 %vm76_vm0, %v3777_v12  ;;  %v3781_v12 = vmul.f32 %v10141_v54, %v10330_v24  ;;  %v14781_v54 = vld [vmem:[#allocation72_spill] sm:$0xff] }
 0x291   :  { %8128 = vmatprep.mubr.msk.f32.mxu1 %vm76_vm0, %v3778_v15  ;;  %v1683_v15 = vsel %vm1604_vm1, %v10594_v6, -inf  ;;  %v3784_v19 = vmul.f32 %v14781_v54, %v10296_v47 }
 0x292   :  { %1687 = vmax.xlane.f32.xlu0 %v1686_v58 }
 0x293   :  { %v10628_v10 = vpop.f32.mrb[32].mxu1 }
 0x294   :  { %14775 = vst [vmem:[#allocation95_spill] sm:$0xff] %v10628_v10  ;;  %v10632_v62 = vpop.f32.mrb[33].mxu1  ;;  %8129 = vmatmul.mubr.msk.f32.gmra.mrb[138].mxu1 %vm76_vm0, %v3779_v26  ;;  %v1689_v26 = vsel %vm1604_vm1, %v10606_v35, -inf }
 0x295   :  { %14776 = vst [vmem:[#allocation96_spill] sm:$0xff] %v10632_v62  ;;  %8131 = vmatprep.mubr.msk.f32.mxu1 %vm76_vm0, %v3780_v48  ;;  %v14779_v48 = vld [vmem:[#allocation71_spill] sm:$0xff] }
 0x296   :  { %1684 = vmax.xlane.f32.xlu0 %v1683_v15  ;;  %v3783_v15 = vmul.f32 %v14779_v48, %v10342_v59 }
 0x297   :  { %v10640_v58 = vpop.f32.mrb[34].mxu1 }
 0x298   :  { %14777 = vst [vmem:[#allocation97_spill] sm:$0xff] %v10640_v58  ;;  %v10644_v36 = vpop.f32.mrb[35].mxu1  ;;  %8132 = vmatmul.mubr.msk.f32.gmra.mrb[140].mxu1 %vm76_vm0, %v3781_v12  ;;  %v3785_v12 = vmul.f32 %v10186_v33, %v10306_v56  ;;  %v3788_v33 = vmul.f32 %v14786_v38, %v10323_v1  ;;  %v14789_v38 = vld [vmem:[#allocation78_spill] sm:$0xff] }
 0x299   :  { %14778 = vst [vmem:[#allocation98_spill] sm:$0xff] %v10644_v36  ;;  %8134 = vmatprep.mubr.msk.f32.mxu1 %vm76_vm0, %v3782_v46  ;;  %v1698_v46 = vsel %vm1604_vm1, %v10616_v61, -inf }
 0x29a   :  { %1690 = vmax.xlane.f32.xlu0 %v1689_v26 }
 0x29b   :  { %v10652_v31 = vpop.f32.mrb[36].mxu1 }
 0x29c   :  { %14780 = vst [vmem:[#allocation99_spill] sm:$0xff] %v10652_v31  ;;  %v10656_v3 = vpop.f32.mrb[37].mxu1  ;;  %8135 = vmatmul.mubr.msk.f32.gmra.mrb[142].mxu1 %vm76_vm0, %v3783_v15 }
 0x29d   :  { %14782 = vst [vmem:[#allocation100_spill] sm:$0xff] %v10656_v3  ;;  %8137 = vmatprep.mubr.msk.f32.mxu1 %vm76_vm0, %v3784_v19  ;;  %v1695_v19 = vsel %vm1604_vm1, %v10620_v39, -inf }
 0x29e   :  { %1699 = vmax.xlane.f32.xlu0 %v1698_v46  ;;  %v3787_v46 = vmul.f32 %v10202_v63, %v10318_v30  ;;  %v3790_v63 = vmul.f32 %v14789_v38, %v10335_v8  ;;  %v3792_v38 = vmul.f32 %v10242_v34, %v10296_v47  ;;  %v3795_v47 = vmul.f32 %v10271_v29, %v10318_v30 }
 0x29f   :  { %v10664_v26 = vpop.f32.mrb[38].mxu1  ;;  %v3798_v30 = vmul.f32 %v10289_v0, %v10335_v8 }
 0x2a0   :  { %14783 = vst [vmem:[#allocation101_spill] sm:$0xff] %v10664_v26  ;;  %v10668_v48 = vpop.f32.mrb[39].mxu1  ;;  %8138 = vmatmul.mubr.msk.f32.gmra.mrb[144].mxu1 %vm76_vm0, %v3785_v12  ;;  %v1722_v15 = vsel %vm1604_vm1, %v10664_v26, -inf  ;;  %v1704_v12 = vsel %vm1604_vm1, %v10628_v10, -inf }
 0x2a1   :  { %14784 = vst [vmem:[#allocation102_spill] sm:$0xff] %v10668_v48  ;;  %8140 = vmatprep.mubr.msk.f32.mxu1 %vm76_vm0, %v3786_v28  ;;  %1723 = vmax.xlane.f32.xlu1 %v1722_v15  ;;  %v3789_v15 = vmul.f32 %v10222_v13, %v10330_v24 }
 0x2a2   :  { %1696 = vmax.xlane.f32.xlu0 %v1695_v19 }
 0x2a3   :  { %v10678_v54 = vpop.f32.mrb[40].mxu1 }
 0x2a4   :  { %14785 = vst [vmem:[#allocation103_spill] sm:$0xff] %v10678_v54  ;;  %v10682_v50 = vpop.f32.mrb[41].mxu1  ;;  %8141 = vmatmul.mubr.msk.f32.gmra.mrb[146].mxu1 %vm76_vm0, %v3787_v46  ;;  %v1728_v28 = vsel %vm1604_vm1, %v10678_v54, -inf  ;;  %v1701_v46 = vsel %vm1604_vm1, %v10632_v62, -inf  ;;  %v14912_v62 = vld [vmem:[#allocation88_spill] sm:$0xff] }
 0x2a5   :  { %14787 = vst [vmem:[#allocation104_spill] sm:$0xff] %v10682_v50  ;;  %8143 = vmatprep.mubr.msk.f32.mxu1 %vm76_vm0, %v3788_v33  ;;  %1729 = vmax.xlane.f32.xlu1 %v1728_v28  ;;  %v3791_v28 = vmul.f32 %v10238_v53, %v10342_v59 }
 0x2a6   :  { %1705 = vmax.xlane.f32.xlu0 %v1704_v12 }
 0x2a7   :  { %v10692_v19 = vpop.f32.mrb[42].mxu1 }
 0x2a8   :  { %14788 = vst [vmem:[#allocation105_spill] sm:$0xff] %v10692_v19  ;;  %v10696_v26 = vpop.f32.mrb[43].mxu1  ;;  %8144 = vmatmul.mubr.msk.f32.gmra.mrb[148].mxu1 %vm76_vm0, %v3789_v15  ;;  %v1734_v33 = vsel %vm1604_vm1, %v10692_v19, -inf  ;;  %v3793_v15 = vmul.f32 %v10256_v18, %v10306_v56  ;;  %v3796_v56 = vmul.f32 %v10275_v27, %v10323_v1  ;;  %v1713_v1 = vsel %vm1604_vm1, %v10656_v3, -inf }
 0x2a9   :  { %14790 = vst [vmem:[#allocation106_spill] sm:$0xff] %v10696_v26  ;;  %8146 = vmatprep.mubr.msk.f32.mxu1 %vm76_vm0, %v3790_v63  ;;  %1735 = vmax.xlane.f32.xlu1 %v1734_v33  ;;  %v1710_v63 = vsel %vm1604_vm1, %v10640_v58, -inf }
 0x2aa   :  { %1702 = vmax.xlane.f32.xlu0 %v1701_v46  ;;  %v3794_v46 = vmul.f32 %v10260_v43, %v10311_v22  ;;  %v1716_v22 = vsel %vm1604_vm1, %v10652_v31, -inf }
 0x2ab   :  { %v10706_v12 = vpop.f32.mrb[44].mxu1 }
 0x2ac   :  { %14791 = vst [vmem:[#allocation107_spill] sm:$0xff] %v10706_v12  ;;  %v10710_v13 = vpop.f32.mrb[45].mxu1  ;;  %8147 = vmatmul.mubr.msk.f32.gmra.mrb[150].mxu1 %vm76_vm0, %v3791_v28 }
 0x2ad   :  { %14792 = vst [vmem:[#allocation108_spill] sm:$0xff] %v10710_v13  ;;  %8149 = vmatprep.mubr.msk.f32.mxu1 %vm76_vm0, %v3792_v38  ;;  %v1707_v38 = vsel %vm1604_vm1, %v10644_v36, -inf }
 0x2ae   :  { %1711 = vmax.xlane.f32.xlu0 %v1710_v63 }
 0x2af   :  { %v10718_v33 = vpop.f32.mrb[46].mxu1 }
 0x2b0   :  { %14793 = vst [vmem:[#allocation109_spill] sm:$0xff] %v10718_v33  ;;  %v10722_v53 = vpop.f32.mrb[47].mxu1  ;;  %8150 = vmatmul.mubr.msk.f32.gmra.mrb[152].mxu1 %vm76_vm0, %v3793_v15  ;;  %v3797_v15 = vmul.f32 %v10285_v40, %v10330_v24 }
 0x2b1   :  { %14794 = vst [vmem:[#allocation110_spill] sm:$0xff] %v10722_v53  ;;  %8152 = vmatprep.mubr.msk.f32.mxu1 %vm76_vm0, %v3794_v46 }
 0x2b2   :  { %1708 = vmax.xlane.f32.xlu0 %v1707_v38 }
 0x2b3   :  { %v10730_v28 = vpop.f32.mrb[48].mxu1 }
 0x2b4   :  { %14795 = vst [vmem:[#allocation111_spill] sm:$0xff] %v10730_v28  ;;  %v10734_v63 = vpop.f32.mrb[49].mxu1  ;;  %8153 = vmatmul.mubr.msk.f32.gmra.mrb[154].mxu1 %vm76_vm0, %v3795_v47  ;;  %v3799_v47 = vmul.f32 %v10301_v2, %v10342_v59  ;;  %v1725_v59 = vsel %vm1604_vm1, %v10682_v50, -inf }
 0x2b5   :  { %14796 = vst [vmem:[#allocation112_spill] sm:$0xff] %v10734_v63  ;;  %8155 = vmatprep.mubr.msk.f32.mxu1 %vm76_vm0, %v3796_v56 }
 0x2b6   :  { %1717 = vmax.xlane.f32.xlu0 %v1716_v22  ;;  %v1719_v22 = vsel %vm1604_vm1, %v10668_v48, -inf }
 0x2b7   :  { %v10742_v46 = vpop.f32.mrb[50].mxu1 }
 0x2b8   :  { %14797 = vst [vmem:[#allocation113_spill] sm:$0xff] %v10742_v46  ;;  %v10746_v38 = vpop.f32.mrb[51].mxu1  ;;  %8156 = vmatmul.mubr.msk.f32.gmra.mrb[156].mxu1 %vm76_vm0, %v3797_v15 }
 0x2b9   :  { %14798 = vst [vmem:[#allocation114_spill] sm:$0xff] %v10746_v38  ;;  %8158 = vmatprep.mubr.msk.f32.mxu1 %vm76_vm0, %v3798_v30 }
 0x2ba   :  { %1714 = vmax.xlane.f32.xlu0 %v1713_v1 }
 0x2bb   :  { %v10754_v56 = vpop.f32.mrb[52].mxu1 }
 0x2bc   :  { %14799 = vst [vmem:[#allocation115_spill] sm:$0xff] %v10754_v56  ;;  %v10756_v24 = vpop.f32.mrb[53].mxu1  ;;  %8159 = vmatmul.mubr.msk.f32.gmra.mrb[158].mxu1 %vm76_vm0, %v3799_v47  ;;  %v1764_v8 = vsel %vm1604_vm1, %v10754_v56, -inf  ;;  %v10819_v56 = vpop.permute.xlu1 %8563 }
 0x2bd   :  { %14800 = vst [vmem:[#allocation116_spill] sm:$0xff] %v10756_v24  ;;  %1765 = vmax.xlane.f32.xlu1 %v1764_v8  ;;  %14817 = vst [vmem:[#allocation133_spill] sm:$0xff] %v10819_v56 }
 0x2be   :  { %1720 = vmax.xlane.f32.xlu0 %v1719_v22  ;;  %v1731_v22 = vsel %vm1604_vm1, %v10696_v26, -inf }
 0x2bf   :  { %v10763_v15 = vpop.f32.mrb[54].mxu1 }
 0x2c0   :  { %14801 = vst [vmem:[#allocation117_spill] sm:$0xff] %v10763_v15  ;;  %v10765_v30 = vpop.f32.mrb[55].mxu1 }
 0x2c1   :  { %14802 = vst [vmem:[#allocation118_spill] sm:$0xff] %v10765_v30  ;;  %v1767_v1 = vsel %vm1604_vm1, %v10765_v30, -inf }
 0x2c2   :  { %1726 = vmax.xlane.f32.xlu0 %v1725_v59  ;;  %1768 = vmax.xlane.f32.xlu1 %v1767_v1  ;;  %v1740_v1 = vsel %vm1604_vm1, %v10706_v12, -inf }
 0x2c3   :  { %v10771_v47 = vpop.f32.mrb[56].mxu1 }
 0x2c4   :  { %14803 = vst [vmem:[#allocation119_spill] sm:$0xff] %v10771_v47  ;;  %v10773_v0 = vpop.f32.mrb[57].mxu1  ;;  %v1776_v8 = vsel %vm1604_vm1, %v10771_v47, -inf }
 0x2c5   :  { %14804 = vst [vmem:[#allocation120_spill] sm:$0xff] %v10773_v0  ;;  %v1773_v54 = vsel %vm1604_vm1, %v10773_v0, -inf }
 0x2c6   :  { %1732 = vmax.xlane.f32.xlu0 %v1731_v22  ;;  %1777 = vmax.xlane.f32.xlu1 %v1776_v8  ;;  %v1737_v22 = vsel %vm1604_vm1, %v10710_v13, -inf }
 0x2c7   :  { %v10779_v2 = vpop.f32.mrb[58].mxu1 }
 0x2c8   :  { %14805 = vst [vmem:[#allocation121_spill] sm:$0xff] %v10779_v2  ;;  %v10781_v27 = vpop.f32.mrb[59].mxu1  ;;  %v1782_v59 = vsel %vm1604_vm1, %v10779_v2, -inf  ;;  %v1743_v2 = vsel %vm1604_vm1, %v10722_v53, -inf  ;;  %v10821_v53 = vpop.permute.xlu0 %8553 }
 0x2c9   :  { %14806 = vst [vmem:[#allocation122_spill] sm:$0xff] %v10781_v27  ;;  %v1779_v8 = vsel %vm1604_vm1, %v10781_v27, -inf  ;;  %14818 = vst [vmem:[#allocation134_spill] sm:$0xff] %v10821_v53  ;;  %v1755_v53 = vsel %vm1604_vm1, %v10746_v38, -inf }
 0x2ca   :  { %1741 = vmax.xlane.f32.xlu0 %v1740_v1  ;;  %1783 = vmax.xlane.f32.xlu1 %v1782_v59  ;;  %v1746_v1 = vsel %vm1604_vm1, %v10718_v33, -inf }
 0x2cb   :  { %v10787_v40 = vpop.f32.mrb[60].mxu1 }
 0x2cc   :  { %14807 = vst [vmem:[#allocation123_spill] sm:$0xff] %v10787_v40  ;;  %v10789_v43 = vpop.f32.mrb[61].mxu1 }
 0x2cd   :  { %14808 = vst [vmem:[#allocation124_spill] sm:$0xff] %v10789_v43 }
 0x2ce   :  { %1738 = vmax.xlane.f32.xlu0 %v1737_v22  ;;  %1780 = vmax.xlane.f32.xlu1 %v1779_v8  ;;  %v1752_v8 = vsel %vm1604_vm1, %v10730_v28, -inf  ;;  %v1758_v28 = vsel %vm1604_vm1, %v10742_v46, -inf }
 0x2cf   :  { %v10795_v29 = vpop.f32.mrb[62].mxu1 }
 0x2d0   :  { %14809 = vst [vmem:[#allocation125_spill] sm:$0xff] %v10795_v29  ;;  %v10797_v34 = vpop.f32.mrb[63].mxu1 }
 0x2d1   :  { %14810 = vst [vmem:[#allocation126_spill] sm:$0xff] %v10797_v34 }
 0x2d2   :  { %1747 = vmax.xlane.f32.xlu0 %v1746_v1  ;;  %v1749_v1 = vsel %vm1604_vm1, %v10734_v63, -inf }
 0x2d3   :  { %v10801_v59 = vpop.f32.mrb[64].mxu1 }
 0x2d4   :  { %14811 = vst [vmem:[#allocation127_spill] sm:$0xff] %v10801_v59  ;;  %v10803_v18 = vpop.f32.mrb[65].mxu1 }
 0x2d5   :  { %14812 = vst [vmem:[#allocation128_spill] sm:$0xff] %v10803_v18 }
 0x2d6   :  { %1744 = vmax.xlane.f32.xlu0 %v1743_v2 }
 0x2d7   :  { %v10807_v47 = vpop.f32.mrb[66].mxu1 }
 0x2d8   :  { %14813 = vst [vmem:[#allocation129_spill] sm:$0xff] %v10807_v47  ;;  %v10809_v22 = vpop.f32.mrb[67].mxu1 }
 0x2d9   :  { %14814 = vst [vmem:[#allocation130_spill] sm:$0xff] %v10809_v22 }
 0x2da   :  { %1753 = vmax.xlane.f32.xlu0 %v1752_v8 }
 0x2db   :  { %v10813_v27 = vpop.f32.mrb[68].mxu1 }
 0x2dc   :  { %14815 = vst [vmem:[#allocation131_spill] sm:$0xff] %v10813_v27  ;;  %v10815_v30 = vpop.f32.mrb[69].mxu1 }
 0x2dd   :  { %14816 = vst [vmem:[#allocation132_spill] sm:$0xff] %v10815_v30 }
 0x2de   :  { %1750 = vmax.xlane.f32.xlu0 %v1749_v1 }
 0x2df   :  { %v10823_v2 = vpop.f32.mrb[70].mxu1 }
 0x2e0   :  { %14819 = vst [vmem:[#allocation135_spill] sm:$0xff] %v10823_v2  ;;  %v10825_v33 = vpop.f32.mrb[71].mxu1 }
 0x2e1   :  { %14820 = vst [vmem:[#allocation136_spill] sm:$0xff] %v10825_v33 }
 0x2e2   :  { %v1610_v8 = vpop.xlane.xlu1 %1609  ;;  %1759 = vmax.xlane.f32.xlu0 %v1758_v28 }
 0x2e3   :  { %v1846_v13 = vsub.f32 %v10412_v51, %v1610_v8  ;;  %v1607_v12 = vpop.xlane.xlu0 %1606  ;;  %v10830_v26 = vpop.f32.mrb[72].mxu1  ;;  %v1761_v51 = vsel %vm1604_vm1, %v10756_v24, -inf }
 0x2e4   :  { %v1845_v63 = vsub.f32 %v10416_v7, %v1607_v12  ;;  %v10833_v56 = vpop.f32.mrb[73].mxu1 }
 0x2e5   :  { %v1927_v1 = vmul.f32 1.442695, %v1846_v13 }
 0x2e6   :  { %v1925_v19 = vmul.f32 1.442695, %v1845_v63  ;;  %1756 = vmax.xlane.f32.xlu0 %v1755_v53  ;;  %v1770_v53 = vsel %vm1604_vm1, %v10763_v15, -inf }
 0x2e7   :  { %8567 = vpow2.f32 %v1927_v1  ;;  %v1616_v50 = vpop.xlane.xlu0 %1615  ;;  %v10837_v46 = vpop.f32.mrb[74].mxu1 }
 0x2e8   :  { %v10839_v28 = vpop.f32.mrb[75].mxu1  ;;  %8569 = vpow2.f32 %v1925_v19  ;;  %v1848_v13 = vsub.f32 %v10426_v20, %v1616_v50 }
 0x2ea   :  { %1762 = vmax.xlane.f32.xlu0 %v1761_v51  ;;  %v1931_v19 = vmul.f32 1.442695, %v1848_v13 }
 0x2eb   :  { %v1613_v7 = vpop.xlane.xlu0 %1612  ;;  %v10843_v12 = vpop.f32.mrb[76].mxu1 }
 0x2ec   :  { %v10846_v8 = vpop.f32.mrb[77].mxu1  ;;  %v1847_v24 = vsub.f32 %v10430_v9, %v1613_v7  ;;  %8571 = vpow2.f32 %v1931_v19  ;;  %v1788_v9 = vsel %vm1604_vm1, %v10787_v40, -inf  ;;  %v1619_v0 = vpop.xlane.xlu1 %1618 }
 0x2ee   :  { %1771 = vmax.xlane.f32.xlu0 %v1770_v53  ;;  %v1929_v13 = vmul.f32 1.442695, %v1847_v24  ;;  %v1785_v24 = vsel %vm1604_vm1, %v10789_v43, -inf }
 0x2ef   :  { %v1622_v63 = vpop.xlane.xlu0 %1621  ;;  %v10850_v1 = vpop.f32.mrb[78].mxu1 }
 0x2f0   :  { %v10855_v51 = vpop.f32.mrb[79].mxu1  ;;  %8573 = vpow2.f32 %v1929_v13  ;;  %v1794_v13 = vsel %vm1604_vm1, %v10795_v29, -inf }
 0x2f1   :  { %v10852_v38 = vpop.eup %8567  ;;  %14822 = vst [vmem:[#allocation138_spill] sm:$0xff] %v10855_v51 }
 0x2f2   :  { %14821 = vst [vmem:[#allocation137_spill] sm:$0xff] %v10852_v38  ;;  %1774 = vmax.xlane.f32.xlu0 %v1773_v54  ;;  %v2088_v50 = vsel %vm1604_vm1, %v10852_v38, 0.0  ;;  %v10861_v20 = vpop.eup %8569 }
 0x2f3   :  { %14823 = vst [vmem:[#allocation139_spill] sm:$0xff] %v10861_v20  ;;  %v10863_v53 = vpop.xlane.xlu0 %1627  ;;  %2089 = vadd.xlane.f32.xlu1 %v2088_v50  ;;  %v10865_v15 = vpop.f32.mrb[80].mxu1  ;;  %v2085_v54 = vsel %vm1604_vm1, %v10861_v20, 0.0  ;;  %v1850_v20 = vsub.f32 %v10438_v45, %v1622_v63  ;;  %v1849_v45 = vsub.f32 %v10442_v4, %v1619_v0  ;;  %v1800_v4 = vsel %vm1604_vm1, %v10801_v59, -inf }
 0x2f4   :  { %14824 = vst [vmem:[#allocation140_spill] sm:$0xff] %v10865_v15  ;;  %v10867_v48 = vpop.f32.mrb[81].mxu1  ;;  %v4548_v19 = vsel %vm1604_vm1, %v10865_v15, -inf }
 0x2f5   :  { %14825 = vst [vmem:[#allocation141_spill] sm:$0xff] %v10867_v48  ;;  %v1935_v63 = vmul.f32 1.442695, %v1850_v20  ;;  %v1933_v51 = vmul.f32 1.442695, %v1849_v45  ;;  %v1797_v45 = vsel %vm1604_vm1, %v10803_v18, -inf }
 0x2f6   :  { %1789 = vmax.xlane.f32.xlu0 %v1788_v9  ;;  %v10894_v43 = vpop.eup %8571  ;;  %v1806_v18 = vsel %vm1604_vm1, %v10807_v47, -inf }
 0x2f7   :  { %v10873_v7 = vpop.xlane.xlu0 %1633  ;;  %2086 = vadd.xlane.f32.xlu1 %v2085_v54  ;;  %v10875_v38 = vpop.f32.mrb[82].mxu1  ;;  %14830 = vst [vmem:[#allocation146_spill] sm:$0xff] %v10894_v43  ;;  %8575 = vpow2.f32 %v1935_v63 }
 0x2f8   :  { %14826 = vst [vmem:[#allocation142_spill] sm:$0xff] %v10875_v38  ;;  %v10877_v50 = vpop.f32.mrb[83].mxu1  ;;  %8577 = vpow2.f32 %v1933_v51  ;;  %v4554_v63 = vsel %vm1604_vm1, %v10875_v38, -inf  ;;  %v1852_v51 = vsub.f32 %v10452_v25, %v10863_v53  ;;  %v1818_v25 = vsel %vm1604_vm1, %v10823_v2, -inf }
 0x2f9   :  { %14827 = vst [vmem:[#allocation143_spill] sm:$0xff] %v10877_v50  ;;  %v4551_v38 = vsel %vm1604_vm1, %v10877_v50, -inf }
 0x2fa   :  { %1786 = vmax.xlane.f32.xlu0 %v1785_v24  ;;  %v4545_v24 = vsel %vm1604_vm1, %v10867_v48, -inf  ;;  %v2094_v48 = vsel %vm1604_vm1, %v10894_v43, 0.0  ;;  %v10909_v29 = vpop.eup %8573  ;;  %v1939_v47 = vmul.f32 1.442695, %v1852_v51  ;;  %v1812_v51 = vsel %vm1604_vm1, %v10813_v27, -inf }
 0x2fb   :  { %v10883_v40 = vpop.xlane.xlu0 %1639  ;;  %4549 = vmax.xlane.f32.xlu1 %v4548_v19  ;;  %v10885_v9 = vpop.f32.mrb[84].mxu1  ;;  %14833 = vst [vmem:[#allocation149_spill] sm:$0xff] %v10909_v29  ;;  %v2091_v20 = vsel %vm1604_vm1, %v10909_v29, 0.0 }
 0x2fc   :  { %14828 = vst [vmem:[#allocation144_spill] sm:$0xff] %v10885_v9  ;;  %v10888_v54 = vpop.f32.mrb[85].mxu1  ;;  %8579 = vpow2.f32 %v1939_v47  ;;  %v1809_v47 = vsel %vm1604_vm1, %v10815_v30, -inf }
 0x2fd   :  { %14829 = vst [vmem:[#allocation145_spill] sm:$0xff] %v10888_v54 }
 0x2fe   :  { %1795 = vmax.xlane.f32.xlu0 %v1794_v13  ;;  %v1791_v13 = vsel %vm1604_vm1, %v10797_v34, -inf }
 0x2ff   :  { %v10896_v15 = vpop.xlane.xlu0 %1645  ;;  %4546 = vmax.xlane.f32.xlu1 %v4545_v24  ;;  %v10900_v3 = vpop.f32.mrb[86].mxu1 }
 0x300   :  { %14831 = vst [vmem:[#allocation147_spill] sm:$0xff] %v10900_v3  ;;  %v10903_v31 = vpop.f32.mrb[87].mxu1 }
 0x301   :  { %14832 = vst [vmem:[#allocation148_spill] sm:$0xff] %v10903_v31  ;;  %v10945_v34 = vpop.eup %8575 }
 0x302   :  { %1792 = vmax.xlane.f32.xlu0 %v1791_v13  ;;  %14841 = vst [vmem:[#allocation157_spill] sm:$0xff] %v10945_v34  ;;  %v2100_v50 = vsel %vm1604_vm1, %v10945_v34, 0.0  ;;  %v10960_v14 = vpop.eup %8577 }
 0x303   :  { %v10911_v24 = vpop.xlane.xlu0 %1651  ;;  %2095 = vadd.xlane.f32.xlu1 %v2094_v48  ;;  %v10913_v19 = vpop.f32.mrb[88].mxu1  ;;  %14845 = vst [vmem:[#allocation161_spill] sm:$0xff] %v10960_v14 }
 0x304   :  { %14834 = vst [vmem:[#allocation150_spill] sm:$0xff] %v10913_v19  ;;  %v10915_v0 = vpop.f32.mrb[89].mxu1 }
 0x305   :  { %14835 = vst [vmem:[#allocation151_spill] sm:$0xff] %v10915_v0 }
 0x306   :  { %1801 = vmax.xlane.f32.xlu0 %v1800_v4 }
 0x307   :  { %v10921_v13 = vpop.xlane.xlu0 %1657  ;;  %2092 = vadd.xlane.f32.xlu1 %v2091_v20  ;;  %v10923_v43 = vpop.f32.mrb[90].mxu1 }
 0x308   :  { %14836 = vst [vmem:[#allocation152_spill] sm:$0xff] %v10923_v43  ;;  %v10925_v48 = vpop.f32.mrb[91].mxu1 }
 0x309   :  { %14837 = vst [vmem:[#allocation153_spill] sm:$0xff] %v10925_v48 }
 0x30a   :  { %1798 = vmax.xlane.f32.xlu0 %v1797_v45  ;;  %v1625_v45 = vpop.xlane.xlu1 %1624 }
 0x30b   :  { %v10931_v59 = vpop.xlane.xlu0 %1663  ;;  %4555 = vmax.xlane.f32.xlu1 %v4554_v63  ;;  %v10935_v29 = vpop.f32.mrb[92].mxu1 }
 0x30c   :  { %14838 = vst [vmem:[#allocation154_spill] sm:$0xff] %v10931_v59  ;;  %14839 = vst [vmem:[#allocation155_spill] sm:$0xff] %v10935_v29  ;;  %v10939_v20 = vpop.f32.mrb[93].mxu1  ;;  %v1851_v59 = vsub.f32 %v10456_v49, %v1625_v45  ;;  %v2097_v45 = vsel %vm1604_vm1, %v10960_v14, 0.0 }
 0x30d   :  { %14840 = vst [vmem:[#allocation156_spill] sm:$0xff] %v10939_v20 }
 0x30e   :  { %1807 = vmax.xlane.f32.xlu0 %v1806_v18  ;;  %v1803_v18 = vsel %vm1604_vm1, %v10809_v22, -inf  ;;  %v1937_v11 = vmul.f32 1.442695, %v1851_v59  ;;  %v1631_v34 = vpop.xlane.xlu1 %1630 }
 0x30f   :  { %v10947_v63 = vpop.xlane.xlu0 %1669  ;;  %4552 = vmax.xlane.f32.xlu1 %v4551_v38  ;;  %v10949_v4 = vpop.f32.mrb[94].mxu1 }
 0x310   :  { %14842 = vst [vmem:[#allocation158_spill] sm:$0xff] %v10947_v63  ;;  %14843 = vst [vmem:[#allocation159_spill] sm:$0xff] %v10949_v4  ;;  %v10953_v53 = vpop.f32.mrb[95].mxu1  ;;  %8581 = vpow2.f32 %v1937_v11  ;;  %v1854_v11 = vsub.f32 %v10466_v42, %v10873_v7  ;;  %v1853_v7 = vsub.f32 %v10470_v41, %v1631_v34 }
 0x311   :  { %14844 = vst [vmem:[#allocation160_spill] sm:$0xff] %v10953_v53 }
 0x312   :  { %1804 = vmax.xlane.f32.xlu0 %v1803_v18  ;;  %v1943_v2 = vmul.f32 1.442695, %v1854_v11  ;;  %v1941_v34 = vmul.f32 1.442695, %v1853_v7  ;;  %v1824_v11 = vsel %vm1604_vm1, %v10830_v26, -inf }
 0x313   :  { %v10962_v38 = vpop.xlane.xlu0 %1675  ;;  %2101 = vadd.xlane.f32.xlu1 %v2100_v50  ;;  %v10966_v63 = vpop.f32.mrb[96].mxu1 }
 0x314   :  { %14846 = vst [vmem:[#allocation162_spill] sm:$0xff] %v10966_v63  ;;  %v10968_v49 = vpop.f32.mrb[97].mxu1  ;;  %8583 = vpow2.f32 %v1943_v2  ;;  %v1821_v2 = vsel %vm1604_vm1, %v10833_v56, -inf }
 0x315   :  { %14847 = vst [vmem:[#allocation163_spill] sm:$0xff] %v10968_v49  ;;  %8585 = vpow2.f32 %v1941_v34  ;;  %v1856_v34 = vsub.f32 %v10480_v52, %v10883_v40 }
 0x316   :  { %1813 = vmax.xlane.f32.xlu0 %v1812_v51  ;;  %v4560_v51 = vsel %vm1604_vm1, %v10885_v9, -inf  ;;  %v4557_v9 = vsel %vm1604_vm1, %v10888_v54, -inf }
 0x317   :  { %v10974_v18 = vpop.xlane.xlu0 %1672  ;;  %2098 = vadd.xlane.f32.xlu1 %v2097_v45  ;;  %v10976_v50 = vpop.f32.mrb[98].mxu1 }
 0x318   :  { %14848 = vst [vmem:[#allocation164_spill] sm:$0xff] %v10976_v50  ;;  %v10980_v59 = vpop.f32.mrb[99].mxu1 }
 0x319   :  { %14849 = vst [vmem:[#allocation165_spill] sm:$0xff] %v10980_v59 }
 0x31a   :  { %1810 = vmax.xlane.f32.xlu0 %v1809_v47  ;;  %v10998_v47 = vpop.xlane.xlu1 %1636 }
 0x31b   :  { %v10986_v14 = vpop.xlane.xlu0 %1681  ;;  %4561 = vmax.xlane.f32.xlu1 %v4560_v51  ;;  %v10988_v45 = vpop.f32.mrb[100].mxu1 }
 0x31c   :  { %14850 = vst [vmem:[#allocation166_spill] sm:$0xff] %v10986_v14  ;;  %14851 = vst [vmem:[#allocation167_spill] sm:$0xff] %v10988_v45  ;;  %v10992_v22 = vpop.f32.mrb[101].mxu1  ;;  %v11002_v51 = vpop.eup %8579 }
 0x31d   :  { %14852 = vst [vmem:[#allocation168_spill] sm:$0xff] %v10992_v22  ;;  %14853 = vst [vmem:[#allocation169_spill] sm:$0xff] %v11002_v51  ;;  %v2106_v54 = vsel %vm1604_vm1, %v11002_v51, 0.0  ;;  %v11017_v60 = vpop.eup %8581 }
 0x31e   :  { %1819 = vmax.xlane.f32.xlu0 %v1818_v25  ;;  %v1815_v25 = vsel %vm1604_vm1, %v10825_v33, -inf  ;;  %14857 = vst [vmem:[#allocation173_spill] sm:$0xff] %v11017_v60  ;;  %v1643_v14 = vpop.xlane.xlu1 %1642 }
 0x31f   :  { %v11004_v30 = vpop.xlane.xlu0 %1687  ;;  %4558 = vmax.xlane.f32.xlu1 %v4557_v9  ;;  %v11006_v27 = vpop.f32.mrb[102].mxu1 }
 0x320   :  { %14854 = vst [vmem:[#allocation170_spill] sm:$0xff] %v11004_v30  ;;  %14855 = vst [vmem:[#allocation171_spill] sm:$0xff] %v11006_v27  ;;  %v11010_v42 = vpop.f32.mrb[103].mxu1 }
 0x321   :  { %14856 = vst [vmem:[#allocation172_spill] sm:$0xff] %v11010_v42 }
 0x322   :  { %1816 = vmax.xlane.f32.xlu0 %v1815_v25  ;;  %v2103_v25 = vsel %vm1604_vm1, %v11017_v60, 0.0  ;;  %v1649_v7 = vpop.xlane.xlu1 %1648 }
 0x323   :  { %v11019_v9 = vpop.xlane.xlu0 %1684  ;;  %2107 = vadd.xlane.f32.xlu1 %v2106_v54  ;;  %v11021_v27 = vpop.f32.mrb[104].mxu1 }
 0x324   :  { %14858 = vst [vmem:[#allocation174_spill] sm:$0xff] %v11021_v27  ;;  %v11025_v41 = vpop.f32.mrb[105].mxu1 }
 0x325   :  { %14859 = vst [vmem:[#allocation175_spill] sm:$0xff] %v11025_v41 }
 0x326   :  { %1825 = vmax.xlane.f32.xlu0 %v1824_v11  ;;  %v4566_v11 = vsel %vm1604_vm1, %v10900_v3, -inf  ;;  %v11057_v3 = vpop.eup %8583 }
 0x327   :  { %v11031_v51 = vpop.xlane.xlu0 %1690  ;;  %2104 = vadd.xlane.f32.xlu1 %v2103_v25  ;;  %v11033_v54 = vpop.f32.mrb[106].mxu1  ;;  %14865 = vst [vmem:[#allocation181_spill] sm:$0xff] %v11057_v3 }
 0x328   :  { %14860 = vst [vmem:[#allocation176_spill] sm:$0xff] %v11033_v54  ;;  %v11037_v30 = vpop.f32.mrb[107].mxu1  ;;  %v1857_v54 = vsub.f32 %v10498_v21, %v1643_v14 }
 0x329   :  { %14861 = vst [vmem:[#allocation177_spill] sm:$0xff] %v11037_v30  ;;  %v1830_v30 = vsel %vm1604_vm1, %v10837_v46, -inf }
 0x32a   :  { %1822 = vmax.xlane.f32.xlu0 %v1821_v2  ;;  %v4563_v2 = vsel %vm1604_vm1, %v10903_v31, -inf  ;;  %v1947_v31 = vmul.f32 1.442695, %v1856_v34  ;;  %v1949_v40 = vmul.f32 1.442695, %v1857_v54  ;;  %v1836_v34 = vsel %vm1604_vm1, %v10843_v12, -inf }
 0x32b   :  { %v11043_v60 = vpop.xlane.xlu0 %1699  ;;  %4567 = vmax.xlane.f32.xlu1 %v4566_v11  ;;  %v11045_v25 = vpop.f32.mrb[108].mxu1 }
 0x32c   :  { %14862 = vst [vmem:[#allocation178_spill] sm:$0xff] %v11043_v60  ;;  %14863 = vst [vmem:[#allocation179_spill] sm:$0xff] %v11045_v25  ;;  %v11049_v33 = vpop.f32.mrb[109].mxu1  ;;  %v1827_v60 = vsel %vm1604_vm1, %v10839_v28, -inf  ;;  %8587 = vpow2.f32 %v1947_v31 }
 0x32d   :  { %14864 = vst [vmem:[#allocation180_spill] sm:$0xff] %v11049_v33  ;;  %v11064_v33 = vpop.xlane.xlu1 %1654  ;;  %8589 = vpow2.f32 %v1949_v40 }
 0x32e   :  { %1831 = vmax.xlane.f32.xlu0 %v1830_v30  ;;  %v1855_v30 = vsub.f32 %v10484_v5, %v10998_v47 }
 0x32f   :  { %v11059_v11 = vpop.xlane.xlu0 %1696  ;;  %4564 = vmax.xlane.f32.xlu1 %v4563_v2  ;;  %v11061_v25 = vpop.f32.mrb[110].mxu1  ;;  %v2112_v2 = vsel %vm1604_vm1, %v11057_v3, 0.0 }
 0x330   :  { %14866 = vst [vmem:[#allocation182_spill] sm:$0xff] %v11061_v25  ;;  %v11068_v52 = vpop.f32.mrb[111].mxu1  ;;  %v11076_v25 = vpop.eup %8585 }
 0x331   :  { %14867 = vst [vmem:[#allocation183_spill] sm:$0xff] %v11068_v52  ;;  %14868 = vst [vmem:[#allocation184_spill] sm:$0xff] %v11076_v25  ;;  %v1860_v52 = vsub.f32 %v10508_v23, %v10911_v24  ;;  %v11090_v3 = vpop.xlane.xlu1 %1660  ;;  %v1859_v24 = vsub.f32 %v10512_v17, %v1649_v7  ;;  %v1862_v7 = vsub.f32 %v10522_v57, %v10921_v13 }
 0x332   :  { %1828 = vmax.xlane.f32.xlu0 %v1827_v60  ;;  %v1945_v60 = vmul.f32 1.442695, %v1855_v30  ;;  %v1861_v13 = vsub.f32 %v10526_v16, %v11064_v33 }
 0x333   :  { %v11078_v21 = vpop.xlane.xlu0 %1705  ;;  %2113 = vadd.xlane.f32.xlu1 %v2112_v2  ;;  %v11080_v14 = vpop.f32.mrb[112].mxu1  ;;  %v2109_v2 = vsel %vm1604_vm1, %v11076_v25, 0.0  ;;  %v1955_v5 = vmul.f32 1.442695, %v1860_v52  ;;  %v1953_v17 = vmul.f32 1.442695, %v1859_v24 }
 0x334   :  { %14869 = vst [vmem:[#allocation185_spill] sm:$0xff] %v11078_v21  ;;  %14870 = vst [vmem:[#allocation186_spill] sm:$0xff] %v11080_v14  ;;  %v11086_v47 = vpop.f32.mrb[113].mxu1  ;;  %8591 = vpow2.f32 %v1945_v60  ;;  %v1959_v24 = vmul.f32 1.442695, %v1862_v7  ;;  %v14883_v14 = vld [vmem:[#allocation138_spill] sm:$0xff] }
 0x335   :  { %14871 = vst [vmem:[#allocation187_spill] sm:$0xff] %v11086_v47  ;;  %v4572_v47 = vsel %vm1604_vm1, %v10913_v19, -inf  ;;  %8593 = vpow2.f32 %v1955_v5  ;;  %v11117_v31 = vpop.xlane.xlu1 %1666  ;;  %v1957_v52 = vmul.f32 1.442695, %v1861_v13 }
 0x336   :  { %1837 = vmax.xlane.f32.xlu0 %v1836_v34  ;;  %v1833_v34 = vsel %vm1604_vm1, %v10846_v8, -inf  ;;  %8595 = vpow2.f32 %v1953_v17 }
 0x337   :  { %v11094_v54 = vpop.xlane.xlu0 %1702  ;;  %2110 = vadd.xlane.f32.xlu1 %v2109_v2  ;;  %v11096_v23 = vpop.f32.mrb[114].mxu1  ;;  %8597 = vpow2.f32 %v1959_v24 }
 0x338   :  { %14872 = vst [vmem:[#allocation188_spill] sm:$0xff] %v11094_v54  ;;  %14873 = vst [vmem:[#allocation189_spill] sm:$0xff] %v11096_v23  ;;  %v11101_v30 = vpop.f32.mrb[115].mxu1 }
 0x339   :  { %14874 = vst [vmem:[#allocation190_spill] sm:$0xff] %v11101_v30  ;;  %v11138_v23 = vpop.xlane.xlu1 %1678 }
 0x33a   :  { %1834 = vmax.xlane.f32.xlu0 %v1833_v34  ;;  %v1842_v34 = vsel %vm1604_vm1, %v10850_v1, -inf }
 0x33b   :  { %v11107_v2 = vpop.xlane.xlu0 %1711  ;;  %4573 = vmax.xlane.f32.xlu1 %v4572_v47  ;;  %v11109_v40 = vpop.f32.mrb[116].mxu1  ;;  %v4569_v47 = vsel %vm1604_vm1, %v10915_v0, -inf  ;;  %v14913_v0 = vld [vmem:[#allocation154_spill] sm:$0xff] }
 0x33c   :  { %14875 = vst [vmem:[#allocation191_spill] sm:$0xff] %v11107_v2  ;;  %14876 = vst [vmem:[#allocation192_spill] sm:$0xff] %v11109_v40  ;;  %v11115_v60 = vpop.f32.mrb[117].mxu1  ;;  %v11123_v40 = vpop.eup %8587 }
 0x33d   :  { %14877 = vst [vmem:[#allocation193_spill] sm:$0xff] %v11115_v60  ;;  %14878 = vst [vmem:[#allocation194_spill] sm:$0xff] %v11123_v40  ;;  %v2118_v16 = vsel %vm1604_vm1, %v11123_v40, 0.0 }
 0x33e   :  { %1843 = vmax.xlane.f32.xlu0 %v1842_v34  ;;  %v14882_v34 = vsub.f32 %v10494_v55, %v10896_v15  ;;  %v14887_v55 = vld [vmem:[#allocation99_spill] sm:$0xff] }
 0x33f   :  { %v11125_v5 = vpop.xlane.xlu0 %1708  ;;  %4570 = vmax.xlane.f32.xlu1 %v4569_v47  ;;  %v11127_v57 = vpop.f32.mrb[118].mxu1  ;;  %v1839_v47 = vsel %vm1604_vm1, %v14883_v14, -inf }
 0x340   :  { %14879 = vst [vmem:[#allocation195_spill] sm:$0xff] %v11125_v5  ;;  %14880 = vst [vmem:[#allocation196_spill] sm:$0xff] %v11127_v57  ;;  %v11133_v60 = vpop.f32.mrb[119].mxu1  ;;  %v1951_v30 = vmul.f32 1.442695, %v14882_v34  ;;  %v11142_v57 = vpop.eup %8589 }
 0x341   :  { %14881 = vst [vmem:[#allocation197_spill] sm:$0xff] %v11133_v60  ;;  %14884 = vst [vmem:[#allocation198_spill] sm:$0xff] %v11142_v57  ;;  %v11146_v33 = vpop.eup %8591  ;;  %v11153_v60 = vpop.xlane.xlu1 %1693 }
 0x342   :  { %1840 = vmax.xlane.f32.xlu0 %v1839_v47  ;;  %14885 = vst [vmem:[#allocation199_spill] sm:$0xff] %v11146_v33  ;;  %8599 = vpow2.f32 %v1951_v30  ;;  %v2121_v47 = vsel %vm1604_vm1, %v11142_v57, 0.0  ;;  %v11157_v5 = vpop.eup %8593 }
 0x343   :  { %v1718_v17 = vpop.xlane.xlu0 %1717  ;;  %2119 = vadd.xlane.f32.xlu1 %v2118_v16  ;;  %v11148_v7 = vpop.f32.mrb[120].mxu1  ;;  %14889 = vst [vmem:[#allocation201_spill] sm:$0xff] %v11157_v5  ;;  %v2115_v16 = vsel %vm1604_vm1, %v11146_v33, 0.0  ;;  %8601 = vpow2.f32 %v1957_v52  ;;  %v14895_v52 = vld [vmem:[#allocation101_spill] sm:$0xff] }
 0x344   :  { %14886 = vst [vmem:[#allocation200_spill] sm:$0xff] %v11148_v7  ;;  %v1882_v15 = vsub.f32 %v14887_v55, %v1718_v17  ;;  %v11151_v34 = vpop.f32.mrb[121].mxu1  ;;  %v14891_v17 = vld [vmem:[#allocation100_spill] sm:$0xff]  ;;  %v2130_v7 = vsel %vm1604_vm1, %v11157_v5, 0.0  ;;  %v11168_v57 = vpop.eup %8595 }
 0x345   :  { %14888 = vst [vmem:[#allocation99_spill] sm:$0xff] %v11151_v34  ;;  %v1724_v34 = vpop.xlane.xlu1 %1723  ;;  %14893 = vst [vmem:[#allocation203_spill] sm:$0xff] %v11168_v57 }
 0x346   :  { %2122 = vadd.xlane.f32.xlu0 %v2121_v47  ;;  %v1999_v24 = vmul.f32 1.442695, %v1882_v15  ;;  %v4578_v47 = vsel %vm1604_vm1, %v10923_v43, -inf  ;;  %v1884_v15 = vsub.f32 %v14895_v52, %v1724_v34  ;;  %v14899_v34 = vld [vmem:[#allocation102_spill] sm:$0xff] }
 0x347   :  { %v1715_v40 = vpop.xlane.xlu0 %1714  ;;  %2116 = vadd.xlane.f32.xlu1 %v2115_v16  ;;  %v11161_v13 = vpop.f32.mrb[122].mxu1 }
 0x348   :  { %14890 = vst [vmem:[#allocation202_spill] sm:$0xff] %v11161_v13  ;;  %v1881_v55 = vsub.f32 %v14891_v17, %v1715_v40  ;;  %v11164_v30 = vpop.f32.mrb[123].mxu1  ;;  %8603 = vpow2.f32 %v1999_v24  ;;  %v11179_v13 = vpop.eup %8597  ;;  %v2003_v36 = vmul.f32 1.442695, %v1884_v15  ;;  %v14903_v15 = vld [vmem:[#allocation103_spill] sm:$0xff] }
 0x349   :  { %14892 = vst [vmem:[#allocation100_spill] sm:$0xff] %v11164_v30  ;;  %v2127_v30 = vsel %vm1604_vm1, %v11168_v57, 0.0  ;;  %14897 = vst [vmem:[#allocation205_spill] sm:$0xff] %v11179_v13  ;;  %v1730_v52 = vpop.xlane.xlu1 %1729  ;;  %v2136_v57 = vsel %vm1604_vm1, %v11179_v13, 0.0 }
 0x34a   :  { %2131 = vadd.xlane.f32.xlu0 %v2130_v7  ;;  %v1997_v40 = vmul.f32 1.442695, %v1881_v55  ;;  %v4575_v7 = vsel %vm1604_vm1, %v10925_v48, -inf }
 0x34b   :  { %v1721_v33 = vpop.xlane.xlu0 %1720  ;;  %4579 = vmax.xlane.f32.xlu1 %v4578_v47  ;;  %v11172_v16 = vpop.f32.mrb[124].mxu1 }
 0x34c   :  { %14894 = vst [vmem:[#allocation204_spill] sm:$0xff] %v11172_v16  ;;  %v11175_v17 = vpop.f32.mrb[125].mxu1  ;;  %v11183_v5 = vpop.eup %8599  ;;  %8605 = vpow2.f32 %v1997_v40  ;;  %v1883_v24 = vsub.f32 %v14899_v34, %v1721_v33  ;;  %v1886_v40 = vsub.f32 %v14903_v15, %v1730_v52 }
 0x34d   :  { %14896 = vst [vmem:[#allocation101_spill] sm:$0xff] %v11175_v17  ;;  %14898 = vst [vmem:[#allocation206_spill] sm:$0xff] %v11183_v5  ;;  %v2124_v48 = vsel %vm1604_vm1, %v11183_v5, 0.0  ;;  %8607 = vpow2.f32 %v2003_v36  ;;  %v14905_v36 = vld [vmem:[#allocation104_spill] sm:$0xff]  ;;  %v1736_v15 = vpop.xlane.xlu1 %1735 }
 0x34e   :  { %2128 = vadd.xlane.f32.xlu0 %v2127_v30  ;;  %v11192_v30 = vpop.eup %8601  ;;  %v2001_v33 = vmul.f32 1.442695, %v1883_v24 }
 0x34f   :  { %v1727_v47 = vpop.xlane.xlu0 %1726  ;;  %4576 = vmax.xlane.f32.xlu1 %v4575_v7  ;;  %v11186_v55 = vpop.f32.mrb[126].mxu1  ;;  %14902 = vst [vmem:[#allocation208_spill] sm:$0xff] %v11192_v30  ;;  %v2133_v43 = vsel %vm1604_vm1, %v11192_v30, 0.0 }
 0x350   :  { %14900 = vst [vmem:[#allocation102_spill] sm:$0xff] %v11186_v55  ;;  %v11188_v2 = vpop.f32.mrb[127].mxu1  ;;  %8609 = vpow2.f32 %v2001_v33  ;;  %v1885_v52 = vsub.f32 %v14905_v36, %v1727_v47  ;;  %v14911_v36 = vld [vmem:[#allocation89_spill] sm:$0xff] }
 0x351   :  { %14901 = vst [vmem:[#allocation207_spill] sm:$0xff] %v11188_v2  ;;  %v1863_v54 = vsub.f32 %v14911_v36, %v11090_v3 }
 0x352   :  { %2137 = vadd.xlane.f32.xlu0 %v2136_v57  ;;  %v11203_v13 = vpop.eup %8603  ;;  %v4584_v57 = vsel %vm1604_vm1, %v10935_v29, -inf  ;;  %v2005_v47 = vmul.f32 1.442695, %v1885_v52 }
 0x353   :  { %v1733_v58 = vpop.xlane.xlu0 %1732  ;;  %2125 = vadd.xlane.f32.xlu1 %v2124_v48  ;;  %v11197_v7 = vpop.f32.mrb[128].mxu1  ;;  %14904 = vst [vmem:[#allocation103_spill] sm:$0xff] %v11203_v13  ;;  %v2007_v48 = vmul.f32 1.442695, %v1886_v40  ;;  %v2196_v30 = vsel %vm1604_vm1, %v11203_v13, 0.0  ;;  %v14909_v40 = vld [vmem:[#allocation105_spill] sm:$0xff]  ;;  %v14914_v13 = vsub.f32 %v14912_v62, %v14913_v0 }
 0x354   :  { %v11199_v34 = vpop.f32.mrb[129].mxu1  ;;  %v1888_v33 = vsub.f32 %v14909_v40, %v1736_v15  ;;  %v14918_v62 = vld [vmem:[#allocation106_spill] sm:$0xff] }
 0x355   :  { %8611 = vpow2.f32 %v2007_v48  ;;  %v1963_v21 = vmul.f32 1.442695, %v14914_v13  ;;  %v4590_v48 = vsel %vm1604_vm1, %v10949_v4, -inf  ;;  %v1887_v0 = vsub.f32 %v14918_v62, %v1733_v58  ;;  %v11251_v58 = vpop.xlane.xlu1 %1765 }
 0x356   :  { %2134 = vadd.xlane.f32.xlu0 %v2133_v43  ;;  %v11214_v14 = vpop.eup %8605  ;;  %v4581_v43 = vsel %vm1604_vm1, %v10939_v20, -inf  ;;  %v2011_v3 = vmul.f32 1.442695, %v1888_v33  ;;  %8613 = vpow2.f32 %v2005_v47 }
 0x357   :  { %v1742_v5 = vpop.xlane.xlu0 %1741  ;;  %4585 = vmax.xlane.f32.xlu1 %v4584_v57  ;;  %v11208_v24 = vpop.f32.mrb[130].mxu1  ;;  %14908 = vst [vmem:[#allocation210_spill] sm:$0xff] %v11214_v14  ;;  %8615 = vpow2.f32 %v1963_v21  ;;  %v2009_v47 = vmul.f32 1.442695, %v1887_v0 }
 0x358   :  { %14906 = vst [vmem:[#allocation104_spill] sm:$0xff] %v11208_v24  ;;  %v11210_v25 = vpop.f32.mrb[131].mxu1  ;;  %v11230_v20 = vpop.eup %8607  ;;  %8617 = vpow2.f32 %v2011_v3 }
 0x359   :  { %14907 = vst [vmem:[#allocation209_spill] sm:$0xff] %v11210_v25  ;;  %14916 = vst [vmem:[#allocation88_spill] sm:$0xff] %v11230_v20  ;;  %v2202_v40 = vsel %vm1604_vm1, %v11230_v20, 0.0 }
 0x35a   :  { %2197 = vadd.xlane.f32.xlu0 %v2196_v30  ;;  %v2193_v30 = vsel %vm1604_vm1, %v11214_v14, 0.0  ;;  %v11243_v36 = vpop.eup %8609 }
 0x35b   :  { %v1739_v29 = vpop.xlane.xlu0 %1738  ;;  %4582 = vmax.xlane.f32.xlu1 %v4581_v43  ;;  %v11219_v57 = vpop.f32.mrb[132].mxu1  ;;  %v1961_v43 = vmul.f32 1.442695, %v1863_v54  ;;  %14920 = vst [vmem:[#allocation211_spill] sm:$0xff] %v11243_v36  ;;  %v14922_v54 = vld [vmem:[#allocation107_spill] sm:$0xff] }
 0x35c   :  { %14910 = vst [vmem:[#allocation105_spill] sm:$0xff] %v11219_v57  ;;  %v11226_v10 = vpop.f32.mrb[133].mxu1  ;;  %v1890_v21 = vsub.f32 %v14922_v54, %v1742_v5  ;;  %v14926_v5 = vld [vmem:[#allocation108_spill] sm:$0xff]  ;;  %v14934_v57 = vld [vmem:[#allocation158_spill] sm:$0xff] }
 0x35d   :  { %14915 = vst [vmem:[#allocation89_spill] sm:$0xff] %v11226_v10  ;;  %8619 = vpow2.f32 %v1961_v43  ;;  %v1889_v54 = vsub.f32 %v14926_v5, %v1739_v29  ;;  %v14932_v5 = vld [vmem:[#allocation91_spill] sm:$0xff] }
 0x35e   :  { %2194 = vadd.xlane.f32.xlu0 %v2193_v30  ;;  %v4587_v30 = vsel %vm1604_vm1, %v10953_v53, -inf  ;;  %8621 = vpow2.f32 %v2009_v47  ;;  %v2015_v0 = vmul.f32 1.442695, %v1890_v21 }
 0x35f   :  { %v11234_v52 = vpop.xlane.xlu0 %1747  ;;  %4591 = vmax.xlane.f32.xlu1 %v4590_v48  ;;  %v11236_v15 = vpop.f32.mrb[134].mxu1  ;;  %v2013_v29 = vmul.f32 1.442695, %v1889_v54 }
 0x360   :  { %14917 = vst [vmem:[#allocation154_spill] sm:$0xff] %v11236_v15  ;;  %v11239_v13 = vpop.f32.mrb[135].mxu1  ;;  %v11258_v20 = vpop.eup %8611  ;;  %8623 = vpow2.f32 %v2015_v0 }
 0x361   :  { %14919 = vst [vmem:[#allocation106_spill] sm:$0xff] %v11239_v13  ;;  %14924 = vst [vmem:[#allocation213_spill] sm:$0xff] %v11258_v20  ;;  %v2208_v43 = vsel %vm1604_vm1, %v11258_v20, 0.0  ;;  %v4593_v13 = vsel %vm1604_vm1, %v10968_v49, -inf  ;;  %v1865_v20 = vsub.f32 %v14932_v5, %v11117_v31  ;;  %8625 = vpow2.f32 %v2013_v29  ;;  %v14942_v29 = vld [vmem:[#allocation109_spill] sm:$0xff] }
 0x362   :  { %2203 = vadd.xlane.f32.xlu0 %v2202_v40  ;;  %v2199_v40 = vsel %vm1604_vm1, %v11243_v36, 0.0  ;;  %v11271_v36 = vpop.eup %8613 }
 0x363   :  { %v11247_v48 = vpop.xlane.xlu0 %1744  ;;  %4588 = vmax.xlane.f32.xlu1 %v4587_v30  ;;  %v11249_v33 = vpop.f32.mrb[136].mxu1  ;;  %v4596_v30 = vsel %vm1604_vm1, %v10966_v63, -inf  ;;  %14928 = vst [vmem:[#allocation215_spill] sm:$0xff] %v11271_v36  ;;  %v2205_v49 = vsel %vm1604_vm1, %v11271_v36, 0.0 }
 0x364   :  { %14921 = vst [vmem:[#allocation212_spill] sm:$0xff] %v11249_v33  ;;  %v11254_v62 = vpop.f32.mrb[137].mxu1 }
 0x365   :  { %14923 = vst [vmem:[#allocation107_spill] sm:$0xff] %v11254_v62  ;;  %v14978_v62 = vld [vmem:[#allocation166_spill] sm:$0xff] }
 0x366   :  { %2200 = vadd.xlane.f32.xlu0 %v2199_v40  ;;  %v11273_v40 = vpop.xlane.xlu1 %1768 }
 0x367   :  { %v11262_v14 = vpop.xlane.xlu0 %1753  ;;  %4597 = vmax.xlane.f32.xlu1 %v4596_v30  ;;  %v11264_v3 = vpop.f32.mrb[138].mxu1 }
 0x368   :  { %14925 = vst [vmem:[#allocation214_spill] sm:$0xff] %v11264_v3  ;;  %v11267_v33 = vpop.f32.mrb[139].mxu1  ;;  %v11277_v30 = vpop.eup %8615 }
 0x369   :  { %14927 = vst [vmem:[#allocation108_spill] sm:$0xff] %v11267_v33  ;;  %14929 = vst [vmem:[#allocation216_spill] sm:$0xff] %v11277_v30  ;;  %v14933_v33 = vld [vmem:[#allocation90_spill] sm:$0xff]  ;;  %v11292_v53 = vpop.eup %8617 }
 0x36a   :  { %2209 = vadd.xlane.f32.xlu0 %v2208_v43  ;;  %v14935_v43 = vsub.f32 %v14933_v33, %v14934_v57  ;;  %14936 = vst [vmem:[#allocation91_spill] sm:$0xff] %v11292_v53  ;;  %v11296_v0 = vpop.eup %8619  ;;  %v11302_v31 = vpop.xlane.xlu1 %1777  ;;  %v1965_v33 = vmul.f32 1.442695, %v1865_v20 }
 0x36b   :  { %v11279_v3 = vpop.xlane.xlu0 %1750  ;;  %4594 = vmax.xlane.f32.xlu1 %v4593_v13  ;;  %v11281_v47 = vpop.f32.mrb[140].mxu1  ;;  %v2142_v13 = vsel %vm1604_vm1, %v11277_v30, 0.0  ;;  %14937 = vst [vmem:[#allocation90_spill] sm:$0xff] %v11296_v0  ;;  %v1892_v30 = vsub.f32 %v14942_v29, %v11234_v52  ;;  %v14946_v29 = vld [vmem:[#allocation110_spill] sm:$0xff] }
 0x36c   :  { %14930 = vst [vmem:[#allocation217_spill] sm:$0xff] %v11281_v47  ;;  %v11283_v21 = vpop.f32.mrb[141].mxu1  ;;  %v1967_v63 = vmul.f32 1.442695, %v14935_v43  ;;  %v11308_v5 = vpop.eup %8621  ;;  %v2139_v43 = vsel %vm1604_vm1, %v11296_v0, 0.0 }
 0x36d   :  { %14931 = vst [vmem:[#allocation218_spill] sm:$0xff] %v11283_v21  ;;  %14940 = vst [vmem:[#allocation220_spill] sm:$0xff] %v11308_v5  ;;  %v2211_v20 = vsel %vm1604_vm1, %v11308_v5, 0.0  ;;  %v2019_v52 = vmul.f32 1.442695, %v1892_v30 }
 0x36e   :  { %2206 = vadd.xlane.f32.xlu0 %v2205_v49  ;;  %8627 = vpow2.f32 %v1967_v63  ;;  %v2214_v49 = vsel %vm1604_vm1, %v11292_v53, 0.0  ;;  %v11322_v63 = vpop.eup %8623  ;;  %v4602_v53 = vsel %vm1604_vm1, %v10976_v50, -inf }
 0x36f   :  { %v11298_v54 = vpop.xlane.xlu0 %1759  ;;  %2143 = vadd.xlane.f32.xlu1 %v2142_v13  ;;  %v11300_v21 = vpop.f32.mrb[142].mxu1  ;;  %8629 = vpow2.f32 %v1965_v33  ;;  %14944 = vst [vmem:[#allocation222_spill] sm:$0xff] %v11322_v63  ;;  %v1891_v33 = vsub.f32 %v14946_v29, %v11247_v48  ;;  %v2220_v5 = vsel %vm1604_vm1, %v11322_v63, 0.0 }
 0x370   :  { %14938 = vst [vmem:[#allocation158_spill] sm:$0xff] %v11300_v21  ;;  %v11304_v57 = vpop.f32.mrb[143].mxu1  ;;  %8631 = vpow2.f32 %v2019_v52  ;;  %v14955_v52 = vsub.f32 %v10568_v32, %v10974_v18  ;;  %v14959_v18 = vld [vmem:[#allocation111_spill] sm:$0xff] }
 0x371   :  { %14939 = vst [vmem:[#allocation219_spill] sm:$0xff] %v11304_v57  ;;  %v2017_v63 = vmul.f32 1.442695, %v1891_v33 }
 0x372   :  { %2215 = vadd.xlane.f32.xlu0 %v2214_v49  ;;  %v11324_v49 = vpop.xlane.xlu1 %1783  ;;  %v1969_v33 = vmul.f32 1.442695, %v14955_v52  ;;  %v14960_v52 = vld [vmem:[#allocation123_spill] sm:$0xff] }
 0x373   :  { %v11312_v36 = vpop.xlane.xlu0 %1756  ;;  %2140 = vadd.xlane.f32.xlu1 %v2139_v43  ;;  %v11314_v13 = vpop.f32.mrb[144].mxu1 }
 0x374   :  { %14941 = vst [vmem:[#allocation221_spill] sm:$0xff] %v11314_v13  ;;  %v11318_v57 = vpop.f32.mrb[145].mxu1  ;;  %v11338_v13 = vpop.eup %8625 }
 0x375   :  { %14943 = vst [vmem:[#allocation109_spill] sm:$0xff] %v11318_v57  ;;  %14948 = vst [vmem:[#allocation224_spill] sm:$0xff] %v11338_v13 }
 0x376   :  { %2212 = vadd.xlane.f32.xlu0 %v2211_v20  ;;  %v4599_v20 = vsel %vm1604_vm1, %v10980_v59, -inf  ;;  %v11351_v29 = vpop.xlane.xlu1 %1780 }
 0x377   :  { %v11328_v43 = vpop.xlane.xlu0 %1762  ;;  %4603 = vmax.xlane.f32.xlu1 %v4602_v53  ;;  %v11330_v0 = vpop.f32.mrb[146].mxu1  ;;  %v14950_v53 = vsub.f32 %v10564_v37, %v10962_v38 }
 0x378   :  { %14945 = vst [vmem:[#allocation223_spill] sm:$0xff] %v11330_v0  ;;  %v11334_v57 = vpop.f32.mrb[147].mxu1  ;;  %v11342_v50 = vpop.eup %8627 }
 0x379   :  { %14947 = vst [vmem:[#allocation110_spill] sm:$0xff] %v11334_v57  ;;  %14949 = vst [vmem:[#allocation225_spill] sm:$0xff] %v11342_v50  ;;  %v1971_v30 = vmul.f32 1.442695, %v14950_v53  ;;  %v2148_v59 = vsel %vm1604_vm1, %v11342_v50, 0.0  ;;  %v11359_v37 = vpop.eup %8629  ;;  %v14956_v53 = vld [vmem:[#allocation120_spill] sm:$0xff] }
 0x37a   :  { %2221 = vadd.xlane.f32.xlu0 %v2220_v5  ;;  %v2217_v5 = vsel %vm1604_vm1, %v11338_v13, 0.0  ;;  %14953 = vst [vmem:[#allocation228_spill] sm:$0xff] %v11359_v37  ;;  %v11388_v50 = vpop.eup %8631  ;;  %v14965_v13 = vld [vmem:[#allocation112_spill] sm:$0xff] }
 0x37b   :  { %v11347_v0 = vpop.xlane.xlu0 %1771  ;;  %4600 = vmax.xlane.f32.xlu1 %v4599_v20  ;;  %v11349_v48 = vpop.f32.mrb[148].mxu1  ;;  %8633 = vpow2.f32 %v1971_v30  ;;  %v4680_v30 = vsel %vm1604_vm1, %v11172_v16, -inf  ;;  %14962 = vst [vmem:[#allocation123_spill] sm:$0xff] %v11388_v50 }
 0x37c   :  { %14951 = vst [vmem:[#allocation226_spill] sm:$0xff] %v11349_v48  ;;  %v11353_v57 = vpop.f32.mrb[149].mxu1  ;;  %8635 = vpow2.f32 %v2017_v63  ;;  %v1894_v63 = vsub.f32 %v14959_v18, %v11262_v14 }
 0x37d   :  { %14952 = vst [vmem:[#allocation227_spill] sm:$0xff] %v11353_v57 }
 0x37e   :  { %2218 = vadd.xlane.f32.xlu0 %v2217_v5  ;;  %v2023_v18 = vmul.f32 1.442695, %v1894_v63  ;;  %v14972_v63 = vld [vmem:[#allocation93_spill] sm:$0xff] }
 0x37f   :  { %v11361_v38 = vpop.xlane.xlu0 %1774  ;;  %2149 = vadd.xlane.f32.xlu1 %v2148_v59  ;;  %v11363_v20 = vpop.f32.mrb[150].mxu1  ;;  %v2145_v59 = vsel %vm1604_vm1, %v11359_v37, 0.0  ;;  %v1869_v37 = vsub.f32 %v14972_v63, %v11138_v23  ;;  %v14989_v23 = vld [vmem:[#allocation69_spill] sm:$0xff] }
 0x380   :  { %14954 = vst [vmem:[#allocation229_spill] sm:$0xff] %v11363_v20  ;;  %v2090_v5 = vpop.xlane.xlu1 %2089  ;;  %v11370_v48 = vpop.f32.mrb[151].mxu1 }
 0x381   :  { %14957 = vst [vmem:[#allocation120_spill] sm:$0xff] %v11370_v48  ;;  %8637 = vrcp.f32 %v2090_v5 }
 0x382   :  { %4681 = vmax.xlane.f32.xlu0 %v4680_v30  ;;  %8639 = vpow2.f32 %v1969_v33  ;;  %v4677_v30 = vsel %vm1604_vm1, %v11175_v17, -inf }
 0x383   :  { %v11376_v20 = vpop.xlane.xlu0 %1789  ;;  %2146 = vadd.xlane.f32.xlu1 %v2145_v59  ;;  %v11378_v32 = vpop.f32.mrb[152].mxu1  ;;  %v4608_v59 = vsel %vm1604_vm1, %v10988_v45, -inf }
 0x384   :  { %14958 = vst [vmem:[#allocation230_spill] sm:$0xff] %v11378_v32  ;;  %v2087_v48 = vpop.xlane.xlu1 %2086  ;;  %v11384_v57 = vpop.f32.mrb[153].mxu1  ;;  %v1893_v32 = vsub.f32 %v14965_v13, %v11279_v3  ;;  %v4605_v3 = vsel %vm1604_vm1, %v10992_v22, -inf  ;;  %v14977_v22 = vld [vmem:[#allocation92_spill] sm:$0xff] }
 0x385   :  { %14961 = vst [vmem:[#allocation111_spill] sm:$0xff] %v11384_v57  ;;  %8641 = vrcp.f32 %v2087_v48 }
 0x386   :  { %4678 = vmax.xlane.f32.xlu0 %v4677_v30  ;;  %v11404_v30 = vpop.eup %8633  ;;  %8643 = vpow2.f32 %v2023_v18  ;;  %v2021_v21 = vmul.f32 1.442695, %v1893_v32 }
 0x387   :  { %v11392_v33 = vpop.xlane.xlu0 %1786  ;;  %4609 = vmax.xlane.f32.xlu1 %v4608_v59  ;;  %v11394_v14 = vpop.f32.mrb[154].mxu1  ;;  %14969 = vst [vmem:[#allocation234_spill] sm:$0xff] %v11404_v30  ;;  %v2226_v59 = vsel %vm1604_vm1, %v11388_v50, 0.0  ;;  %v14974_v50 = vld [vmem:[#allocation125_spill] sm:$0xff] }
 0x388   :  { %14963 = vst [vmem:[#allocation231_spill] sm:$0xff] %v11392_v33  ;;  %14964 = vst [vmem:[#allocation232_spill] sm:$0xff] %v11394_v14  ;;  %v11400_v16 = vpop.xlane.xlu1 %4549  ;;  %v11402_v17 = vpop.f32.mrb[155].mxu1  ;;  %v14979_v33 = vsub.f32 %v14977_v22, %v14978_v62  ;;  %v1973_v22 = vmul.f32 1.442695, %v1869_v37  ;;  %8645 = vpow2.f32 %v2021_v21  ;;  %v14987_v21 = vld [vmem:[#allocation113_spill] sm:$0xff] }
 0x389   :  { %14967 = vst [vmem:[#allocation112_spill] sm:$0xff] %v11400_v16  ;;  %14968 = vst [vmem:[#allocation233_spill] sm:$0xff] %v11402_v17  ;;  %v11410_v14 = vpop.eup %8635 }
 0x38a   :  { %14971 = vst [vmem:[#allocation235_spill] sm:$0xff] %v11410_v14  ;;  %2227 = vadd.xlane.f32.xlu0 %v2226_v59  ;;  %v1975_v57 = vmul.f32 1.442695, %v14979_v33  ;;  %v15018_v33 = vld [vmem:[#allocation132_spill] sm:$0xff] }
 0x38b   :  { %v8638_v13 = vpop.eup %8637  ;;  %v11416_v47 = vpop.xlane.xlu0 %1795  ;;  %4606 = vmax.xlane.f32.xlu1 %v4605_v3  ;;  %v2223_v3 = vsel %vm1604_vm1, %v11410_v14, 0.0 }
 0x38c   :  { %v11418_v17 = vpop.f32.mrb[156].mxu1  ;;  %v2406_v16 = vmul.f32 %v8638_v13, %v2090_v5  ;;  %v11422_v4 = vpop.xlane.xlu1 %4546  ;;  %v2154_v5 = vsel %vm1604_vm1, %v11404_v30, 0.0  ;;  %8647 = vpow2.f32 %v1975_v57 }
 0x38d   :  { %14973 = vst [vmem:[#allocation93_spill] sm:$0xff] %v11418_v17  ;;  %14975 = vst [vmem:[#allocation125_spill] sm:$0xff] %v11422_v4  ;;  %v11424_v59 = vpop.f32.mrb[157].mxu1  ;;  %v11433_v18 = vpop.eup %8639 }
 0x38e   :  { %14976 = vst [vmem:[#allocation236_spill] sm:$0xff] %v11424_v59  ;;  %14981 = vst [vmem:[#allocation92_spill] sm:$0xff] %v11433_v18  ;;  %2224 = vadd.xlane.f32.xlu0 %v2223_v3  ;;  %v2486_v45 = vsub.f32 2.0, %v2406_v16  ;;  %v4686_v3 = vsel %vm1604_vm1, %v11186_v55, -inf  ;;  %v2151_v16 = vsel %vm1604_vm1, %v11433_v18, 0.0  ;;  %v14994_v18 = vld [vmem:[#allocation137_spill] sm:$0xff] }
 0x38f   :  { %v8642_v32 = vpop.eup %8641  ;;  %v11437_v17 = vpop.xlane.xlu0 %1792  ;;  %2155 = vadd.xlane.f32.xlu1 %v2154_v5 }
 0x390   :  { %14982 = vst [vmem:[#allocation166_spill] sm:$0xff] %v11437_v17  ;;  %v11439_v59 = vpop.f32.mrb[158].mxu1  ;;  %v2405_v62 = vmul.f32 %v8642_v32, %v2087_v48  ;;  %v2096_v14 = vpop.xlane.xlu1 %2095  ;;  %v2566_v5 = vmul.f32 %v8638_v13, %v2486_v45  ;;  %v1896_v48 = vsub.f32 %v14987_v21, %v11298_v54  ;;  %v4683_v45 = vsel %vm1604_vm1, %v11188_v2, -inf  ;;  %v14992_v54 = vld [vmem:[#allocation139_spill] sm:$0xff]  ;;  %v14996_v2 = vld [vmem:[#allocation114_spill] sm:$0xff] }
 0x391   :  { %14983 = vst [vmem:[#allocation237_spill] sm:$0xff] %v11439_v59  ;;  %v11443_v4 = vpop.f32.mrb[159].mxu1  ;;  %8649 = vrcp.f32 %v2096_v14  ;;  %v11459_v13 = vpop.eup %8643  ;;  %v1895_v57 = vsub.f32 %v14996_v2, %v11312_v36  ;;  %v4611_v2 = vsel %vm1604_vm1, %v11010_v42, -inf  ;;  %v15005_v42 = vld [vmem:[#allocation170_spill] sm:$0xff] }
 0x392   :  { %14985 = vst [vmem:[#allocation238_spill] sm:$0xff] %v11443_v4  ;;  %v2485_v30 = vsub.f32 2.0, %v2405_v62  ;;  %4687 = vmax.xlane.f32.xlu0 %v4686_v3  ;;  %8651 = vpow2.f32 %v1973_v22  ;;  %v8546_v62 = vunpack.i.h.bf16 %v14989_v23  ;;  %v8545_v3 = vunpack.i.l.bf16 %v14989_v23  ;;  %14990 = vst [vmem:[#allocation113_spill] sm:$0xff] %v11459_v13  ;;  %v14991_v22 = vld [vmem:[#allocation171_spill] sm:$0xff] }
 0x393   :  { %v11449_v37 = vpop.xlane.xlu0 %1801  ;;  %2152 = vadd.xlane.f32.xlu1 %v2151_v16  ;;  %v4614_v16 = vsel %vm1604_vm1, %v14991_v22, -inf  ;;  %v2646_v55 = vmul.f32 %v14994_v18, %v2566_v5  ;;  %v2027_v23 = vmul.f32 1.442695, %v1896_v48  ;;  %v2232_v5 = vsel %vm1604_vm1, %v11459_v13, 0.0  ;;  %v11481_v48 = vpop.eup %8645 }
 0x394   :  { %14986 = vst [vmem:[#allocation239_spill] sm:$0xff] %v11449_v37  ;;  %v2565_v63 = vmul.f32 %v8642_v32, %v2485_v30  ;;  %v2093_v4 = vpop.xlane.xlu1 %2092  ;;  %v14993_v32 = vld [vmem:[#allocation134_spill] sm:$0xff]  ;;  %v8409_v18 = vpack.c.bf16 %v8546_v62, %v8545_v3  ;;  %v2025_v17 = vmul.f32 1.442695, %v1895_v57 }
 0x395   :  { %8653 = vrcp.f32 %v2093_v4  ;;  %v8556_v21 = vunpack.i.h.bf16 %v14993_v32  ;;  %v8555_v59 = vunpack.i.l.bf16 %v14993_v32  ;;  %15000 = vst [vmem:[#allocation134_spill] sm:$0xff] %v11481_v48 }
 0x396   :  { %4684 = vmax.xlane.f32.xlu0 %v4683_v45  ;;  %v2645_v30 = vmul.f32 %v14992_v54, %v2565_v63  ;;  %v11486_v36 = vpop.eup %8647  ;;  %8655 = vpow2.f32 %v2027_v23  ;;  %v15007_v45 = vld [vmem:[#allocation143_spill] sm:$0xff] }
 0x397   :  { %v11467_v37 = vpop.xlane.xlu0 %1798  ;;  %4615 = vmax.xlane.f32.xlu1 %v4614_v16  ;;  %v15001_v16 = vld [vmem:[#allocation67_spill] sm:$0xff]  ;;  %15002 = vst [vmem:[#allocation137_spill] sm:$0xff] %v11486_v36  ;;  %v2160_v57 = vsel %vm1604_vm1, %v11486_v36, 0.0  ;;  %8657 = vpow2.f32 %v2025_v17 }
 0x398   :  { %14995 = vst [vmem:[#allocation69_spill] sm:$0xff] %v11467_v37  ;;  %7905 = vmatprep.mubr.msk.f32.mxu0 %vm1604_vm1, %v2645_v30  ;;  %v11474_v22 = vpop.xlane.xlu1 %4555  ;;  %v15003_v30 = vld [vmem:[#allocation133_spill] sm:$0xff]  ;;  %v15012_v17 = vld [vmem:[#allocation115_spill] sm:$0xff] }
 0x399   :  { %14998 = vst [vmem:[#allocation139_spill] sm:$0xff] %v11474_v22  ;;  %7906 = vmatmul.mubr.msk.f32.vlgmr.msra.gmra.mrb[16].mxu0 %vm1604_vm1, %v2646_v55  ;;  %v8566_v32 = vunpack.i.h.bf16 %v15003_v30  ;;  %v8413_v55 = vpack.c.bf16 %v8556_v21, %v8555_v59  ;;  %v8565_v3 = vunpack.i.l.bf16 %v15003_v30  ;;  %v15006_v22 = vsub.f32 %v10590_v44, %v15005_v42 }
 0x39a   :  { %8408 = vmatpush3.bf16.msra.mxu0 %v15001_v16  ;;  %2233 = vadd.xlane.f32.xlu0 %v2232_v5  ;;  %v15004_v16 = vld [vmem:[#allocation129_spill] sm:$0xff]  ;;  %v2229_v59 = vsel %vm1604_vm1, %v11481_v48, 0.0  ;;  %v15009_v44 = vsub.f32 %v10594_v6, %v11019_v9  ;;  %v4692_v5 = vsel %vm1604_vm1, %v11197_v7, -inf  ;;  %v15019_v9 = vld [vmem:[#allocation94_spill] sm:$0xff] }
 0x39b   :  { %8410 = vmatprep.subr.bf16.mxu0 %v8409_v18  ;;  %v11489_v54 = vpop.xlane.xlu0 %1807  ;;  %4612 = vmax.xlane.f32.xlu1 %v4611_v2  ;;  %v8650_v62 = vpop.eup %8649  ;;  %v1979_v63 = vmul.f32 1.442695, %v15006_v22  ;;  %v15010_v22 = vld [vmem:[#allocation130_spill] sm:$0xff] }
 0x39c   :  { %v11494_v13 = vpop.xlane.xlu1 %4552  ;;  %v2408_v37 = vmul.f32 %v8650_v62, %v2096_v14  ;;  %v11503_v21 = vpop.eup %8651  ;;  %v1977_v42 = vmul.f32 1.442695, %v15009_v44 }
 0x39d   :  { %15008 = vst [vmem:[#allocation114_spill] sm:$0xff] %v11503_v21  ;;  %8659 = vpow2.f32 %v1979_v63  ;;  %v1898_v63 = vsub.f32 %v15012_v17, %v11251_v58  ;;  %v15017_v17 = vld [vmem:[#allocation116_spill] sm:$0xff] }
 0x39e   :  { %8412 = vmatpush3.bf16.msra.mxu0 %v8409_v18  ;;  %2230 = vadd.xlane.f32.xlu0 %v2229_v59  ;;  %v2488_v2 = vsub.f32 2.0, %v2408_v37  ;;  %v8417_v59 = vpack.c.bf16 %v8566_v32, %v8565_v3  ;;  %v15013_v3 = vld [vmem:[#allocation131_spill] sm:$0xff]  ;;  %v1897_v44 = vsub.f32 %v15017_v17, %v11328_v43  ;;  %v4617_v43 = vsel %vm1604_vm1, %v11025_v41, -inf }
 0x39f   :  { %v8654_v23 = vpop.eup %8653  ;;  %8414 = vmatprep.subr.bf16.mxu0 %v8413_v55  ;;  %v11507_v30 = vpop.xlane.xlu0 %1804  ;;  %2161 = vadd.xlane.f32.xlu1 %v2160_v57  ;;  %v2157_v57 = vsel %vm1604_vm1, %v11503_v21, 0.0  ;;  %v15023_v17 = vld [vmem:[#allocation135_spill] sm:$0xff]  ;;  %v15029_v21 = vld [vmem:[#allocation136_spill] sm:$0xff] }
 0x3a0   :  { %v2407_v14 = vmul.f32 %v8654_v23, %v2093_v4  ;;  %v2102_v18 = vpop.xlane.xlu1 %2101  ;;  %v2568_v6 = vmul.f32 %v8650_v62, %v2488_v2  ;;  %v11528_v62 = vpop.eup %8655  ;;  %v4620_v2 = vsel %vm1604_vm1, %v11021_v27, -inf }
 0x3a1   :  { %8661 = vrcp.f32 %v2102_v18  ;;  %15014 = vst [vmem:[#allocation67_spill] sm:$0xff] %v11528_v62 }
 0x3a2   :  { %v2487_v37 = vsub.f32 2.0, %v2407_v14  ;;  %8416 = vmatpush3.bf16.msra.mxu0 %v8413_v55  ;;  %4693 = vmax.xlane.f32.xlu0 %v4692_v5  ;;  %8663 = vpow2.f32 %v1977_v42  ;;  %v4689_v5 = vsel %vm1604_vm1, %v11199_v34, -inf  ;;  %v15015_v42 = vld [vmem:[#allocation149_spill] sm:$0xff]  ;;  %v15016_v14 = vld [vmem:[#allocation146_spill] sm:$0xff] }
 0x3a3   :  { %8419 = vmatprep.subr.msk.bf16.mxu0 %vm10106_vm10, %v8417_v59  ;;  %v11520_v4 = vpop.xlane.xlu0 %1813  ;;  %2158 = vadd.xlane.f32.xlu1 %v2157_v57  ;;  %v2031_v57 = vmul.f32 1.442695, %v1898_v63  ;;  %v11552_v63 = vpop.eup %8657 }
 0x3a4   :  { %v2567_v32 = vmul.f32 %v8654_v23, %v2487_v37  ;;  %v2099_v55 = vpop.xlane.xlu1 %2098  ;;  %v2648_v37 = vmul.f32 %v15016_v14, %v2568_v6  ;;  %v2238_v6 = vsel %vm1604_vm1, %v11528_v62, 0.0  ;;  %15021 = vst [vmem:[#allocation133_spill] sm:$0xff] %v11552_v63  ;;  %v2029_v14 = vmul.f32 1.442695, %v1897_v44 }
 0x3a5   :  { %8665 = vrcp.f32 %v2099_v55  ;;  %v2235_v41 = vsel %vm1604_vm1, %v11552_v63, 0.0 }
 0x3a6   :  { %8422 = vmatpush3.bf16.msk.msra.mxu0 %vm10106_vm10, %v8417_v59  ;;  %4690 = vmax.xlane.f32.xlu0 %v4689_v5  ;;  %v2647_v58 = vmul.f32 %v15015_v42, %v2567_v32  ;;  %v1874_v5 = vsub.f32 %v15019_v9, %v11153_v60  ;;  %v15020_v32 = vld [vmem:[#allocation144_spill] sm:$0xff]  ;;  %8667 = vpow2.f32 %v2031_v57 }
 0x3a7   :  { %v11535_v23 = vpop.xlane.xlu0 %1810  ;;  %4621 = vmax.xlane.f32.xlu1 %v4620_v2  ;;  %v11556_v2 = vpop.eup %8659  ;;  %8669 = vpow2.f32 %v2029_v14 }
 0x3a8   :  { %7908 = vmatprep.mubr.msk.f32.mxu0 %vm1604_vm1, %v2647_v58  ;;  %v11543_v59 = vpop.xlane.xlu1 %4561  ;;  %15022 = vst [vmem:[#allocation129_spill] sm:$0xff] %v11556_v2  ;;  %v1983_v42 = vmul.f32 1.442695, %v1874_v5  ;;  %v2166_v57 = vsel %vm1604_vm1, %v11556_v2, 0.0  ;;  %v4698_v2 = vsel %vm1604_vm1, %v11208_v24, -inf }
 0x3a9   :  { %7909 = vmatmul.mubr.msk.f32.gmra.mrb[18].mxu0 %vm1604_vm1, %v2648_v37 }
 0x3aa   :  { %2239 = vadd.xlane.f32.xlu0 %v2238_v6  ;;  %8671 = vpow2.f32 %v1983_v42 }
 0x3ab   :  { %v11558_v58 = vpop.xlane.xlu0 %1819  ;;  %4618 = vmax.xlane.f32.xlu1 %v4617_v43  ;;  %v8662_v60 = vpop.eup %8661  ;;  %v15027_v43 = vsub.f32 %v10606_v35, %v11031_v51 }
 0x3ac   :  { %v11562_v9 = vpop.xlane.xlu1 %4558  ;;  %v2410_v48 = vmul.f32 %v8662_v60, %v2102_v18  ;;  %v11568_v27 = vpop.eup %8663  ;;  %v15028_v18 = vld [vmem:[#allocation117_spill] sm:$0xff] }
 0x3ad   :  { %15024 = vst [vmem:[#allocation170_spill] sm:$0xff] %v11562_v9  ;;  %15026 = vst [vmem:[#allocation143_spill] sm:$0xff] %v11568_v27  ;;  %v1981_v37 = vmul.f32 1.442695, %v15027_v43  ;;  %v1900_v62 = vsub.f32 %v15028_v18, %v11347_v0  ;;  %v2163_v35 = vsel %vm1604_vm1, %v11568_v27, 0.0  ;;  %v15030_v0 = vld [vmem:[#allocation118_spill] sm:$0xff] }
 0x3ae   :  { %2236 = vadd.xlane.f32.xlu0 %v2235_v41  ;;  %v2490_v36 = vsub.f32 2.0, %v2410_v48  ;;  %v15044_v27 = vld [vmem:[#allocation148_spill] sm:$0xff] }
 0x3af   :  { %v8666_v44 = vpop.eup %8665  ;;  %v11575_v5 = vpop.xlane.xlu0 %1816  ;;  %2167 = vadd.xlane.f32.xlu1 %v2166_v57  ;;  %v2035_v14 = vmul.f32 1.442695, %v1900_v62 }
 0x3b0   :  { %v2409_v63 = vmul.f32 %v8666_v44, %v2099_v55  ;;  %v2108_v9 = vpop.xlane.xlu1 %2107  ;;  %v2570_v51 = vmul.f32 %v8662_v60, %v2490_v36  ;;  %v1899_v55 = vsub.f32 %v15030_v0, %v11273_v40  ;;  %v15032_v36 = vld [vmem:[#allocation176_spill] sm:$0xff]  ;;  %v15034_v40 = vld [vmem:[#allocation157_spill] sm:$0xff] }
 0x3b1   :  { %8673 = vrcp.f32 %v2108_v9  ;;  %v4626_v60 = vsel %vm1604_vm1, %v15032_v36, -inf }
 0x3b2   :  { %v2489_v6 = vsub.f32 2.0, %v2409_v63  ;;  %4699 = vmax.xlane.f32.xlu0 %v4698_v2  ;;  %8675 = vpow2.f32 %v1981_v37  ;;  %v4695_v63 = vsel %vm1604_vm1, %v11210_v25, -inf  ;;  %v11593_v2 = vpop.eup %8667  ;;  %v15033_v37 = vld [vmem:[#allocation161_spill] sm:$0xff]  ;;  %v2650_v62 = vmul.f32 %v15034_v40, %v2570_v51  ;;  %v15040_v40 = vld [vmem:[#allocation119_spill] sm:$0xff] }
 0x3b3   :  { %v11585_v48 = vpop.xlane.xlu0 %1825  ;;  %2164 = vadd.xlane.f32.xlu1 %v2163_v35  ;;  %15031 = vst [vmem:[#allocation130_spill] sm:$0xff] %v11593_v2  ;;  %v15038_v51 = vld [vmem:[#allocation177_spill] sm:$0xff]  ;;  %v1902_v42 = vsub.f32 %v15040_v40, %v11302_v31 }
 0x3b4   :  { %v2569_v57 = vmul.f32 %v8666_v44, %v2489_v6  ;;  %v2105_v43 = vpop.xlane.xlu1 %2104  ;;  %v2033_v6 = vmul.f32 1.442695, %v1899_v55  ;;  %v4623_v55 = vsel %vm1604_vm1, %v15038_v51, -inf }
 0x3b5   :  { %8677 = vrcp.f32 %v2105_v43 }
 0x3b6   :  { %4696 = vmax.xlane.f32.xlu0 %v4695_v63  ;;  %v2649_v18 = vmul.f32 %v15033_v37, %v2569_v57  ;;  %8679 = vpow2.f32 %v2035_v14  ;;  %v15036_v63 = vld [vmem:[#allocation147_spill] sm:$0xff]  ;;  %v2244_v57 = vsel %vm1604_vm1, %v11593_v2, 0.0 }
 0x3b7   :  { %v11598_v35 = vpop.xlane.xlu0 %1822  ;;  %4627 = vmax.xlane.f32.xlu1 %v4626_v60  ;;  %v11611_v60 = vpop.eup %8669  ;;  %8681 = vpow2.f32 %v2033_v6 }
 0x3b8   :  { %7911 = vmatprep.mubr.msk.f32.mxu0 %vm1604_vm1, %v2649_v18  ;;  %v11604_v0 = vpop.xlane.xlu1 %4567  ;;  %15037 = vst [vmem:[#allocation115_spill] sm:$0xff] %v11611_v60  ;;  %v11615_v14 = vpop.eup %8671  ;;  %v2241_v6 = vsel %vm1604_vm1, %v11611_v60, 0.0 }
 0x3b9   :  { %15035 = vst [vmem:[#allocation65_spill] sm:$0xff] %v11604_v0  ;;  %7912 = vmatmul.mubr.msk.f32.gmra.mrb[20].mxu0 %vm1604_vm1, %v2650_v62  ;;  %15039 = vst [vmem:[#allocation131_spill] sm:$0xff] %v11615_v14  ;;  %v2172_v31 = vsel %vm1604_vm1, %v11615_v14, 0.0  ;;  %v15045_v62 = vsub.f32 %v10620_v39, %v11059_v11 }
 0x3ba   :  { %2245 = vadd.xlane.f32.xlu0 %v2244_v57  ;;  %v15042_v57 = vld [vmem:[#allocation178_spill] sm:$0xff] }
 0x3bb   :  { %v11617_v37 = vpop.xlane.xlu0 %1831  ;;  %4624 = vmax.xlane.f32.xlu1 %v4623_v55  ;;  %v8674_v18 = vpop.eup %8673  ;;  %v15043_v2 = vsub.f32 %v10616_v61, %v15042_v57  ;;  %v1985_v25 = vmul.f32 1.442695, %v15045_v62  ;;  %v2039_v61 = vmul.f32 1.442695, %v1902_v42 }
 0x3bc   :  { %v11623_v44 = vpop.xlane.xlu1 %4564  ;;  %v11625_v41 = vpop.eup %8675  ;;  %v2412_v36 = vmul.f32 %v8674_v18, %v2108_v9 }
 0x3bd   :  { %15041 = vst [vmem:[#allocation149_spill] sm:$0xff] %v11625_v41  ;;  %v1987_v51 = vmul.f32 1.442695, %v15043_v2  ;;  %v2169_v39 = vsel %vm1604_vm1, %v11625_v41, 0.0  ;;  %v15060_v2 = vld [vmem:[#allocation185_spill] sm:$0xff]  ;;  %v15065_v41 = vld [vmem:[#allocation188_spill] sm:$0xff] }
 0x3be   :  { %2242 = vadd.xlane.f32.xlu0 %v2241_v6  ;;  %v2492_v24 = vsub.f32 2.0, %v2412_v36  ;;  %v4701_v6 = vsel %vm1604_vm1, %v11226_v10, -inf }
 0x3bf   :  { %v8678_v40 = vpop.eup %8677  ;;  %v11639_v0 = vpop.xlane.xlu0 %1828  ;;  %2173 = vadd.xlane.f32.xlu1 %v2172_v31  ;;  %8683 = vpow2.f32 %v1987_v51 }
 0x3c0   :  { %v2411_v9 = vmul.f32 %v8678_v40, %v2105_v43  ;;  %v2114_v57 = vpop.xlane.xlu1 %2113  ;;  %v11645_v55 = vpop.eup %8679  ;;  %v2572_v11 = vmul.f32 %v8674_v18, %v2492_v24  ;;  %v15047_v43 = vsub.f32 %v14956_v53, %v11361_v38  ;;  %v15050_v18 = vld [vmem:[#allocation173_spill] sm:$0xff] }
 0x3c1   :  { %15046 = vst [vmem:[#allocation146_spill] sm:$0xff] %v11645_v55  ;;  %8685 = vrcp.f32 %v2114_v57  ;;  %v15051_v38 = vld [vmem:[#allocation169_spill] sm:$0xff] }
 0x3c2   :  { %v2491_v60 = vsub.f32 2.0, %v2411_v9  ;;  %4702 = vmax.xlane.f32.xlu0 %v4701_v6  ;;  %8687 = vpow2.f32 %v1985_v25  ;;  %v2037_v36 = vmul.f32 1.442695, %v15047_v43  ;;  %v2250_v9 = vsel %vm1604_vm1, %v11645_v55, 0.0  ;;  %v11658_v6 = vpop.eup %8681  ;;  %v15049_v25 = vld [vmem:[#allocation179_spill] sm:$0xff] }
 0x3c3   :  { %v11649_v42 = vpop.xlane.xlu0 %1837  ;;  %2170 = vadd.xlane.f32.xlu1 %v2169_v39  ;;  %8689 = vpow2.f32 %v2039_v61  ;;  %15048 = vst [vmem:[#allocation116_spill] sm:$0xff] %v11658_v6  ;;  %v4632_v24 = vsel %vm1604_vm1, %v15049_v25, -inf  ;;  %v2652_v53 = vmul.f32 %v15051_v38, %v2572_v11  ;;  %v15054_v11 = vld [vmem:[#allocation180_spill] sm:$0xff]  ;;  %v15056_v38 = vld [vmem:[#allocation122_spill] sm:$0xff] }
 0x3c4   :  { %v2571_v51 = vmul.f32 %v8678_v40, %v2491_v60  ;;  %v2111_v31 = vpop.xlane.xlu1 %2110  ;;  %v15052_v60 = vld [vmem:[#allocation121_spill] sm:$0xff] }
 0x3c5   :  { %8691 = vrcp.f32 %v2111_v31  ;;  %v1904_v40 = vsub.f32 %v15052_v60, %v11324_v49  ;;  %v4629_v49 = vsel %vm1604_vm1, %v15054_v11, -inf  ;;  %v1903_v60 = vsub.f32 %v15056_v38, %v11351_v29 }
 0x3c6   :  { %2251 = vadd.xlane.f32.xlu0 %v2250_v9  ;;  %v2651_v61 = vmul.f32 %v15050_v18, %v2571_v51  ;;  %8693 = vpow2.f32 %v2037_v36  ;;  %v2247_v51 = vsel %vm1604_vm1, %v11658_v6, 0.0 }
 0x3c7   :  { %v11663_v39 = vpop.xlane.xlu0 %1834  ;;  %4633 = vmax.xlane.f32.xlu1 %v4632_v24 }
 0x3c8   :  { %7914 = vmatprep.mubr.msk.f32.mxu0 %vm1604_vm1, %v2651_v61  ;;  %v11671_v9 = vpop.xlane.xlu1 %4573  ;;  %v2043_v61 = vmul.f32 1.442695, %v1904_v40  ;;  %v4710_v40 = vsel %vm1604_vm1, %v11236_v15, -inf }
 0x3c9   :  { %15053 = vst [vmem:[#allocation132_spill] sm:$0xff] %v11671_v9  ;;  %7915 = vmatmul.mubr.msk.f32.gmra.mrb[22].mxu0 %vm1604_vm1, %v2652_v53  ;;  %v11680_v36 = vpop.eup %8683  ;;  %v15064_v53 = vld [vmem:[#allocation96_spill] sm:$0xff] }
 0x3ca   :  { %2248 = vadd.xlane.f32.xlu0 %v2247_v51  ;;  %15055 = vst [vmem:[#allocation94_spill] sm:$0xff] %v11680_v36  ;;  %v15059_v51 = vld [vmem:[#allocation95_spill] sm:$0xff]  ;;  %v2178_v29 = vsel %vm1604_vm1, %v11680_v36, 0.0  ;;  %v15066_v10 = vsub.f32 %v15064_v53, %v15065_v41  ;;  %8695 = vpow2.f32 %v2043_v61 }
 0x3cb   :  { %v11682_v24 = vpop.xlane.xlu0 %1843  ;;  %4630 = vmax.xlane.f32.xlu1 %v4629_v49  ;;  %v8686_v18 = vpop.eup %8685  ;;  %v15061_v55 = vsub.f32 %v15059_v51, %v15060_v2  ;;  %v15067_v49 = vld [vmem:[#allocation138_spill] sm:$0xff] }
 0x3cc   :  { %v11688_v62 = vpop.xlane.xlu1 %4570  ;;  %v11690_v43 = vpop.eup %8687  ;;  %v2414_v11 = vmul.f32 %v8686_v18, %v2114_v57  ;;  %v1989_v9 = vmul.f32 1.442695, %v15066_v10  ;;  %v2041_v57 = vmul.f32 1.442695, %v1903_v60 }
 0x3cd   :  { %15057 = vst [vmem:[#allocation144_spill] sm:$0xff] %v11688_v62  ;;  %15058 = vst [vmem:[#allocation135_spill] sm:$0xff] %v11690_v43  ;;  %v1991_v6 = vmul.f32 1.442695, %v15061_v55  ;;  %v11699_v14 = vpop.eup %8689  ;;  %v2175_v10 = vsel %vm1604_vm1, %v11690_v43, 0.0 }
 0x3ce   :  { %15063 = vst [vmem:[#allocation117_spill] sm:$0xff] %v11699_v14  ;;  %4711 = vmax.xlane.f32.xlu0 %v4710_v40  ;;  %v2494_v2 = vsub.f32 2.0, %v2414_v11  ;;  %v2256_v40 = vsel %vm1604_vm1, %v11699_v14, 0.0  ;;  %v15069_v11 = vsub.f32 %v14960_v52, %v11376_v20  ;;  %v15075_v52 = vld [vmem:[#allocation181_spill] sm:$0xff] }
 0x3cf   :  { %v8692_v38 = vpop.eup %8691  ;;  %2179 = vadd.xlane.f32.xlu1 %v2178_v29  ;;  %v11706_v55 = vpop.xlane.xlu0 %1840  ;;  %8697 = vpow2.f32 %v1991_v6  ;;  %v15070_v29 = vld [vmem:[#allocation182_spill] sm:$0xff] }
 0x3d0   :  { %v2413_v51 = vmul.f32 %v8692_v38, %v2111_v31  ;;  %v2120_v62 = vpop.xlane.xlu1 %2119  ;;  %v11712_v36 = vpop.eup %8693  ;;  %v2574_v41 = vmul.f32 %v8686_v18, %v2494_v2  ;;  %v2047_v6 = vmul.f32 1.442695, %v15069_v11  ;;  %v15072_v2 = vld [vmem:[#allocation124_spill] sm:$0xff] }
 0x3d1   :  { %15068 = vst [vmem:[#allocation136_spill] sm:$0xff] %v11712_v36  ;;  %8699 = vrcp.f32 %v2120_v62  ;;  %v2253_v53 = vsel %vm1604_vm1, %v11712_v36, 0.0 }
 0x3d2   :  { %v2493_v25 = vsub.f32 2.0, %v2413_v51  ;;  %2257 = vadd.xlane.f32.xlu0 %v2256_v40  ;;  %8701 = vpow2.f32 %v1989_v9  ;;  %v4638_v51 = vsel %vm1604_vm1, %v15070_v29, -inf  ;;  %v15071_v9 = vld [vmem:[#allocation184_spill] sm:$0xff]  ;;  %v15073_v40 = vld [vmem:[#allocation231_spill] sm:$0xff] }
 0x3d3   :  { %2176 = vadd.xlane.f32.xlu1 %v2175_v10  ;;  %v2123_v31 = vpop.xlane.xlu0 %2122  ;;  %8703 = vpow2.f32 %v2041_v57  ;;  %v15074_v57 = vsub.f32 %v15072_v2, %v15073_v40 }
 0x3d4   :  { %v2573_v61 = vmul.f32 %v8692_v38, %v2493_v25  ;;  %v2117_v60 = vpop.xlane.xlu1 %2116  ;;  %8705 = vrcp.f32 %v2123_v31  ;;  %v2654_v25 = vmul.f32 %v15075_v52, %v2574_v41  ;;  %v11738_v2 = vpop.eup %8695  ;;  %v15083_v52 = vld [vmem:[#allocation191_spill] sm:$0xff] }
 0x3d5   :  { %8707 = vrcp.f32 %v2117_v60  ;;  %v2045_v10 = vmul.f32 1.442695, %v15074_v57  ;;  %15079 = vst [vmem:[#allocation161_spill] sm:$0xff] %v11738_v2  ;;  %v15082_v57 = vld [vmem:[#allocation97_spill] sm:$0xff] }
 0x3d6   :  { %2254 = vadd.xlane.f32.xlu0 %v2253_v53  ;;  %v2653_v18 = vmul.f32 %v15071_v9, %v2573_v61  ;;  %8709 = vpow2.f32 %v2047_v6  ;;  %v15078_v61 = vld [vmem:[#allocation107_spill] sm:$0xff]  ;;  %v15084_v53 = vsub.f32 %v15082_v57, %v15083_v52  ;;  %v15089_v57 = vld [vmem:[#allocation98_spill] sm:$0xff] }
 0x3d7   :  { %4639 = vmax.xlane.f32.xlu1 %v4638_v51  ;;  %v11727_v20 = vpop.xlane.xlu0 %2131  ;;  %v4713_v9 = vsel %vm1604_vm1, %v15078_v61, -inf  ;;  %v15080_v51 = vld [vmem:[#allocation183_spill] sm:$0xff]  ;;  %8711 = vpow2.f32 %v2045_v10 }
 0x3d8   :  { %7917 = vmatprep.mubr.msk.f32.mxu0 %vm1604_vm1, %v2653_v18  ;;  %v11731_v38 = vpop.xlane.xlu1 %4579  ;;  %v4635_v40 = vsel %vm1604_vm1, %v15080_v51, -inf  ;;  %v1995_v15 = vmul.f32 1.442695, %v15084_v53  ;;  %v2262_v51 = vsel %vm1604_vm1, %v11738_v2, 0.0  ;;  %v15090_v52 = vld [vmem:[#allocation195_spill] sm:$0xff] }
 0x3d9   :  { %15076 = vst [vmem:[#allocation118_spill] sm:$0xff] %v11731_v38  ;;  %7918 = vmatmul.mubr.msk.f32.gmra.mrb[24].mxu0 %vm1604_vm1, %v2654_v25  ;;  %v11742_v41 = vpop.eup %8697  ;;  %v15091_v29 = vsub.f32 %v15089_v57, %v15090_v52 }
 0x3da   :  { %4714 = vmax.xlane.f32.xlu0 %v4713_v9  ;;  %15081 = vst [vmem:[#allocation157_spill] sm:$0xff] %v11742_v41  ;;  %v2184_v53 = vsel %vm1604_vm1, %v11742_v41, 0.0 }
 0x3db   :  { %4636 = vmax.xlane.f32.xlu1 %v4635_v40  ;;  %v2129_v6 = vpop.xlane.xlu0 %2128  ;;  %v8700_v18 = vpop.eup %8699  ;;  %v1993_v43 = vmul.f32 1.442695, %v15091_v29 }
 0x3dc   :  { %8713 = vrcp.f32 %v2129_v6  ;;  %v11747_v25 = vpop.xlane.xlu1 %4576  ;;  %v11749_v14 = vpop.eup %8701  ;;  %v2416_v36 = vmul.f32 %v8700_v18, %v2120_v62 }
 0x3dd   :  { %15085 = vst [vmem:[#allocation147_spill] sm:$0xff] %v11747_v25  ;;  %15086 = vst [vmem:[#allocation119_spill] sm:$0xff] %v11749_v14  ;;  %v11755_v10 = vpop.eup %8703  ;;  %8715 = vrcp.f32 %v11727_v20  ;;  %v2181_v29 = vsel %vm1604_vm1, %v11749_v14, 0.0 }
 0x3de   :  { %15088 = vst [vmem:[#allocation178_spill] sm:$0xff] %v11755_v10  ;;  %2263 = vadd.xlane.f32.xlu0 %v2262_v51  ;;  %v8706_v40 = vpop.eup %8705  ;;  %8717 = vpow2.f32 %v1995_v15  ;;  %v2496_v25 = vsub.f32 2.0, %v2416_v36  ;;  %v2259_v51 = vsel %vm1604_vm1, %v11755_v10, 0.0  ;;  %v15093_v36 = vsub.f32 %v14974_v50, %v11416_v47 }
 0x3df   :  { %2185 = vadd.xlane.f32.xlu1 %v2184_v53  ;;  %v11763_v62 = vpop.xlane.xlu0 %2137  ;;  %v8708_v61 = vpop.eup %8707  ;;  %v2417_v2 = vmul.f32 %v8706_v40, %v2123_v31 }
 0x3e0   :  { %v2126_v9 = vpop.xlane.xlu1 %2125  ;;  %v2415_v38 = vmul.f32 %v8708_v61, %v2117_v60  ;;  %8719 = vrcp.f32 %v11763_v62  ;;  %v11768_v41 = vpop.eup %8709  ;;  %v2051_v31 = vmul.f32 1.442695, %v15093_v36  ;;  %v2576_v60 = vmul.f32 %v8700_v18, %v2496_v25  ;;  %v15099_v18 = vld [vmem:[#allocation199_spill] sm:$0xff] }
 0x3e1   :  { %15092 = vst [vmem:[#allocation148_spill] sm:$0xff] %v11768_v41  ;;  %v2497_v11 = vsub.f32 2.0, %v2417_v2  ;;  %8721 = vrcp.f32 %v2126_v9  ;;  %v11777_v52 = vpop.eup %8711 }
 0x3e2   :  { %2260 = vadd.xlane.f32.xlu0 %v2259_v51  ;;  %8723 = vpow2.f32 %v1993_v43  ;;  %v2495_v53 = vsub.f32 2.0, %v2415_v38  ;;  %15095 = vst [vmem:[#allocation169_spill] sm:$0xff] %v11777_v52  ;;  %v2268_v43 = vsel %vm1604_vm1, %v11768_v41, 0.0  ;;  %v15104_v41 = vld [vmem:[#allocation194_spill] sm:$0xff] }
 0x3e3   :  { %2182 = vadd.xlane.f32.xlu1 %v2181_v29  ;;  %v2135_v15 = vpop.xlane.xlu0 %2134  ;;  %v2577_v2 = vmul.f32 %v8706_v40, %v2497_v11  ;;  %v15097_v29 = vld [vmem:[#allocation186_spill] sm:$0xff] }
 0x3e4   :  { %8725 = vrcp.f32 %v2135_v15  ;;  %v11775_v57 = vpop.xlane.xlu1 %4585  ;;  %v2575_v10 = vmul.f32 %v8708_v61, %v2495_v53  ;;  %v4644_v50 = vsel %vm1604_vm1, %v15097_v29, -inf  ;;  %v15100_v11 = vld [vmem:[#allocation126_spill] sm:$0xff]  ;;  %v2265_v29 = vsel %vm1604_vm1, %v11777_v52, 0.0  ;;  %v15113_v52 = vld [vmem:[#allocation217_spill] sm:$0xff] }
 0x3e5   :  { %15094 = vst [vmem:[#allocation173_spill] sm:$0xff] %v11775_v57  ;;  %8727 = vpow2.f32 %v2051_v31  ;;  %v15101_v61 = vld [vmem:[#allocation166_spill] sm:$0xff]  ;;  %v2656_v57 = vmul.f32 %v15104_v41, %v2576_v60 }
 0x3e6   :  { %v8714_v38 = vpop.eup %8713  ;;  %2269 = vadd.xlane.f32.xlu0 %v2268_v43  ;;  %v2655_v25 = vmul.f32 %v15099_v18, %v2575_v10  ;;  %v15102_v40 = vsub.f32 %v15100_v11, %v15101_v61  ;;  %v15105_v43 = vld [vmem:[#allocation156_spill] sm:$0xff]  ;;  %v15106_v10 = vld [vmem:[#allocation198_spill] sm:$0xff] }
 0x3e7   :  { %4645 = vmax.xlane.f32.xlu1 %v4644_v50  ;;  %v11785_v47 = vpop.xlane.xlu0 %2197  ;;  %v8716_v36 = vpop.eup %8715  ;;  %v2419_v19 = vmul.f32 %v8714_v38, %v2129_v6  ;;  %v2657_v18 = vmul.f32 %v15106_v10, %v2577_v2  ;;  %v15108_v6 = vld [vmem:[#allocation187_spill] sm:$0xff] }
 0x3e8   :  { %15098 = vst [vmem:[#allocation121_spill] sm:$0xff] %v11785_v47  ;;  %v2049_v53 = vmul.f32 1.442695, %v15102_v40  ;;  %v11791_v14 = vpop.xlane.xlu1 %4582  ;;  %7920 = vmatprep.mubr.msk.f32.mxu0 %vm1604_vm1, %v2655_v25  ;;  %v11800_v31 = vpop.eup %8717  ;;  %v4641_v11 = vsel %vm1604_vm1, %v15108_v6, -inf  ;;  %v2420_v41 = vmul.f32 %v8716_v36, %v11727_v20  ;;  %v4728_v6 = vsel %vm1604_vm1, %v15113_v52, -inf }
 0x3e9   :  { %15103 = vst [vmem:[#allocation122_spill] sm:$0xff] %v11791_v14  ;;  %15107 = vst [vmem:[#allocation95_spill] sm:$0xff] %v11800_v31  ;;  %7921 = vmatmul.mubr.msk.f32.gmra.mrb[26].mxu0 %vm1604_vm1, %v2656_v57  ;;  %v2499_v40 = vsub.f32 2.0, %v2419_v19 }
 0x3ea   :  { %2266 = vadd.xlane.f32.xlu0 %v2265_v29  ;;  %v8720_v61 = vpop.eup %8719  ;;  %7923 = vmatprep.mubr.msk.f32.mxu0 %vm1604_vm1, %v2657_v18  ;;  %8729 = vpow2.f32 %v2049_v53  ;;  %v2190_v18 = vsel %vm1604_vm1, %v11800_v31, 0.0 }
 0x3eb   :  { %4642 = vmax.xlane.f32.xlu1 %v4641_v11  ;;  %v11807_v60 = vpop.xlane.xlu0 %2194  ;;  %v8722_v25 = vpop.eup %8721  ;;  %v2500_v11 = vsub.f32 2.0, %v2420_v41  ;;  %v2422_v53 = vmul.f32 %v8720_v61, %v11763_v62 }
 0x3ec   :  { %15109 = vst [vmem:[#allocation185_spill] sm:$0xff] %v11807_v60  ;;  %v11809_v2 = vpop.xlane.xlu1 %4591  ;;  %v11811_v10 = vpop.eup %8723  ;;  %v2418_v57 = vmul.f32 %v8722_v25, %v2126_v9  ;;  %v2579_v9 = vmul.f32 %v8714_v38, %v2499_v40  ;;  %v15119_v40 = vld [vmem:[#allocation206_spill] sm:$0xff] }
 0x3ed   :  { %15110 = vst [vmem:[#allocation96_spill] sm:$0xff] %v11809_v2  ;;  %15111 = vst [vmem:[#allocation188_spill] sm:$0xff] %v11811_v10  ;;  %v2187_v62 = vsel %vm1604_vm1, %v11811_v10, 0.0  ;;  %v2502_v41 = vsub.f32 2.0, %v2422_v53  ;;  %v15151_v10 = vld [vmem:[#allocation200_spill] sm:$0xff] }
 0x3ee   :  { %v8726_v20 = vpop.eup %8725  ;;  %4729 = vmax.xlane.f32.xlu0 %v4728_v6  ;;  %v2498_v19 = vsub.f32 2.0, %v2418_v57  ;;  %v15117_v6 = vld [vmem:[#allocation218_spill] sm:$0xff]  ;;  %v15121_v57 = vld [vmem:[#allocation239_spill] sm:$0xff] }
 0x3ef   :  { %v2421_v60 = vmul.f32 %v8726_v20, %v2135_v15  ;;  %2191 = vadd.xlane.f32.xlu1 %v2190_v18  ;;  %v11820_v47 = vpop.xlane.xlu0 %2203  ;;  %v4725_v14 = vsel %vm1604_vm1, %v15117_v6, -inf  ;;  %v11828_v31 = vpop.eup %8727  ;;  %v2580_v15 = vmul.f32 %v8716_v36, %v2500_v11  ;;  %v15123_v6 = vld [vmem:[#allocation203_spill] sm:$0xff] }
 0x3f0   :  { %15114 = vst [vmem:[#allocation138_spill] sm:$0xff] %v11820_v47  ;;  %v11822_v51 = vpop.xlane.xlu1 %4588  ;;  %v2578_v50 = vmul.f32 %v8722_v25, %v2498_v19  ;;  %15118 = vst [vmem:[#allocation124_spill] sm:$0xff] %v11828_v31  ;;  %v2274_v36 = vsel %vm1604_vm1, %v11828_v31, 0.0  ;;  %v15142_v31 = vld [vmem:[#allocation164_spill] sm:$0xff] }
 0x3f1   :  { %15115 = vst [vmem:[#allocation184_spill] sm:$0xff] %v11822_v51  ;;  %v2501_v2 = vsub.f32 2.0, %v2421_v60  ;;  %v15120_v60 = vld [vmem:[#allocation127_spill] sm:$0xff]  ;;  %v2659_v51 = vmul.f32 %v15123_v6, %v2579_v9  ;;  %v15127_v9 = vld [vmem:[#allocation201_spill] sm:$0xff] }
 0x3f2   :  { %4726 = vmax.xlane.f32.xlu0 %v4725_v14  ;;  %v2658_v25 = vmul.f32 %v15119_v40, %v2578_v50  ;;  %v15122_v18 = vsub.f32 %v15120_v60, %v15121_v57  ;;  %v15124_v14 = vld [vmem:[#allocation162_spill] sm:$0xff]  ;;  %v15126_v50 = vld [vmem:[#allocation189_spill] sm:$0xff]  ;;  %v2660_v6 = vmul.f32 %v15127_v9, %v2580_v15 }
 0x3f3   :  { %2188 = vadd.xlane.f32.xlu1 %v2187_v62  ;;  %v11832_v38 = vpop.xlane.xlu0 %2200  ;;  %v2581_v29 = vmul.f32 %v8726_v20, %v2501_v2  ;;  %v4650_v2 = vsel %vm1604_vm1, %v15126_v50, -inf  ;;  %v2582_v20 = vmul.f32 %v8720_v61, %v2502_v41  ;;  %v15128_v62 = vld [vmem:[#allocation128_spill] sm:$0xff]  ;;  %v15129_v40 = vld [vmem:[#allocation69_spill] sm:$0xff]  ;;  %v15133_v15 = vld [vmem:[#allocation190_spill] sm:$0xff] }
 0x3f4   :  { %v2055_v19 = vmul.f32 1.442695, %v15122_v18  ;;  %v11838_v47 = vpop.xlane.xlu1 %4597  ;;  %7924 = vmatmul.mubr.msk.f32.gmra.mrb[28].mxu0 %vm1604_vm1, %v2658_v25  ;;  %v11846_v11 = vpop.eup %8729  ;;  %v15130_v25 = vsub.f32 %v15128_v62, %v15129_v40  ;;  %v15131_v18 = vld [vmem:[#allocation208_spill] sm:$0xff]  ;;  %v4647_v41 = vsel %vm1604_vm1, %v15133_v15, -inf  ;;  %v15135_v62 = vld [vmem:[#allocation158_spill] sm:$0xff] }
 0x3f5   :  { %15125 = vst [vmem:[#allocation231_spill] sm:$0xff] %v11846_v11  ;;  %7926 = vmatprep.mubr.msk.f32.mxu0 %vm1604_vm1, %v2659_v51  ;;  %v2661_v52 = vmul.f32 %v15131_v18, %v2581_v29  ;;  %v15132_v51 = vld [vmem:[#allocation163_spill] sm:$0xff]  ;;  %v2271_v61 = vsel %vm1604_vm1, %v11846_v11, 0.0  ;;  %v15136_v40 = vld [vmem:[#allocation192_spill] sm:$0xff] }
 0x3f6   :  { %2275 = vadd.xlane.f32.xlu0 %v2274_v36  ;;  %8731 = vpow2.f32 %v2055_v19  ;;  %v2053_v60 = vmul.f32 1.442695, %v15130_v25 }
 0x3f7   :  { %4651 = vmax.xlane.f32.xlu1 %v4650_v2  ;;  %v11851_v53 = vpop.xlane.xlu0 %2209  ;;  %v15134_v2 = vld [vmem:[#allocation205_spill] sm:$0xff] }
 0x3f8   :  { %v11857_v57 = vpop.xlane.xlu1 %4594  ;;  %7927 = vmatmul.mubr.msk.f32.gmra.mrb[30].mxu0 %vm1604_vm1, %v2660_v6  ;;  %v2662_v9 = vmul.f32 %v15134_v2, %v2582_v20  ;;  %8733 = vpow2.f32 %v2053_v60  ;;  %v4734_v6 = vsel %vm1604_vm1, %v15135_v62, -inf }
 0x3f9   :  { %7929 = vmatprep.mubr.msk.f32.mxu0 %vm1604_vm1, %v2661_v52  ;;  %v4656_v52 = vsel %vm1604_vm1, %v15136_v40, -inf }
 0x3fa   :  { %2272 = vadd.xlane.f32.xlu0 %v2271_v61  ;;  %v15137_v61 = vld [vmem:[#allocation219_spill] sm:$0xff] }
 0x3fb   :  { %4648 = vmax.xlane.f32.xlu1 %v4647_v41  ;;  %v11868_v19 = vpop.xlane.xlu0 %2206  ;;  %v4731_v20 = vsel %vm1604_vm1, %v15137_v61, -inf  ;;  %v15139_v41 = vld [vmem:[#allocation193_spill] sm:$0xff] }
 0x3fc   :  { %v2144_v29 = vpop.xlane.xlu1 %2143  ;;  %7930 = vmatmul.mubr.msk.f32.gmra.mrb[32].mxu0 %vm1604_vm1, %v2662_v9  ;;  %v4653_v2 = vsel %vm1604_vm1, %v15139_v41, -inf }
 0x3fd   :  { %8735 = vrcp.f32 %v2144_v29 }
 0x3fe   :  { %4735 = vmax.xlane.f32.xlu0 %v4734_v6  ;;  %v15141_v6 = vsub.f32 %v15004_v16, %v11489_v54  ;;  %v15146_v54 = vsub.f32 %v15010_v22, %v11507_v30 }
 0x3ff   :  { %4657 = vmax.xlane.f32.xlu1 %v4656_v52  ;;  %v11876_v25 = vpop.xlane.xlu0 %2215 }
 0x400   :  { %v2141_v18 = vpop.xlane.xlu1 %2140  ;;  %v11880_v60 = vpop.eup %8731  ;;  %v2059_v52 = vmul.f32 1.442695, %v15141_v6  ;;  %v2057_v16 = vmul.f32 1.442695, %v15146_v54  ;;  %v15150_v54 = vld [vmem:[#allocation221_spill] sm:$0xff] }
 0x401   :  { %8737 = vrcp.f32 %v2141_v18  ;;  %15138 = vst [vmem:[#allocation181_spill] sm:$0xff] %v11880_v60  ;;  %v2280_v61 = vsel %vm1604_vm1, %v11880_v60, 0.0  ;;  %v15147_v60 = vld [vmem:[#allocation165_spill] sm:$0xff] }
 0x402   :  { %4732 = vmax.xlane.f32.xlu0 %v4731_v20  ;;  %v11895_v62 = vpop.eup %8733  ;;  %v15144_v20 = vld [vmem:[#allocation196_spill] sm:$0xff]  ;;  %8739 = vpow2.f32 %v2059_v52 }
 0x403   :  { %4654 = vmax.xlane.f32.xlu1 %v4653_v2  ;;  %v11884_v9 = vpop.xlane.xlu0 %2212  ;;  %15143 = vst [vmem:[#allocation191_spill] sm:$0xff] %v11895_v62  ;;  %v4662_v2 = vsel %vm1604_vm1, %v15144_v20, -inf  ;;  %v15148_v20 = vld [vmem:[#allocation197_spill] sm:$0xff]  ;;  %8741 = vpow2.f32 %v2057_v16 }
 0x404   :  { %15140 = vst [vmem:[#allocation97_spill] sm:$0xff] %v11884_v9  ;;  %v11889_v36 = vpop.xlane.xlu1 %4603 }
 0x406   :  { %2281 = vadd.xlane.f32.xlu0 %v2280_v61  ;;  %v2277_v61 = vsel %vm1604_vm1, %v11895_v62, 0.0 }
 0x407   :  { %4663 = vmax.xlane.f32.xlu1 %v4662_v2  ;;  %v11899_v40 = vpop.xlane.xlu0 %2221  ;;  %v8736_v50 = vpop.eup %8735  ;;  %v4659_v2 = vsel %vm1604_vm1, %v15148_v20, -inf }
 0x408   :  { %15145 = vst [vmem:[#allocation98_spill] sm:$0xff] %v11899_v40  ;;  %v11904_v6 = vpop.xlane.xlu1 %4600  ;;  %v2424_v11 = vmul.f32 %v8736_v50, %v2144_v29  ;;  %v4740_v29 = vsel %vm1604_vm1, %v15150_v54, -inf }
 0x40a   :  { %2278 = vadd.xlane.f32.xlu0 %v2277_v61  ;;  %v2504_v15 = vsub.f32 2.0, %v2424_v11  ;;  %v4668_v61 = vsel %vm1604_vm1, %v15151_v10, -inf  ;;  %v15153_v11 = vsub.f32 %v15013_v3, %v11520_v4  ;;  %v15160_v3 = vld [vmem:[#allocation216_spill] sm:$0xff] }
 0x40b   :  { %v8738_v41 = vpop.eup %8737  ;;  %4660 = vmax.xlane.f32.xlu1 %v4659_v2  ;;  %v11912_v52 = vpop.xlane.xlu0 %2218 }
 0x40c   :  { %15149 = vst [vmem:[#allocation195_spill] sm:$0xff] %v11912_v52  ;;  %v2423_v30 = vmul.f32 %v8738_v41, %v2141_v18  ;;  %v2150_v22 = vpop.xlane.xlu1 %2149  ;;  %v2584_v62 = vmul.f32 %v8736_v50, %v2504_v15  ;;  %v2063_v2 = vmul.f32 1.442695, %v15153_v11  ;;  %v11927_v54 = vpop.eup %8739  ;;  %v15157_v50 = vld [vmem:[#allocation99_spill] sm:$0xff]  ;;  %v15177_v18 = vld [vmem:[#allocation112_spill] sm:$0xff] }
 0x40d   :  { %8743 = vrcp.f32 %v2150_v22  ;;  %15156 = vst [vmem:[#allocation126_spill] sm:$0xff] %v11927_v54  ;;  %v4665_v15 = vsel %vm1604_vm1, %v15157_v50, -inf }
 0x40e   :  { %v2503_v40 = vsub.f32 2.0, %v2423_v30  ;;  %4741 = vmax.xlane.f32.xlu0 %v4740_v29  ;;  %v15155_v30 = vld [vmem:[#allocation109_spill] sm:$0xff] }
 0x40f   :  { %4669 = vmax.xlane.f32.xlu1 %v4668_v61  ;;  %v11918_v20 = vpop.xlane.xlu0 %4681  ;;  %v4737_v29 = vsel %vm1604_vm1, %v15155_v30, -inf  ;;  %v15158_v61 = vld [vmem:[#allocation90_spill] sm:$0xff]  ;;  %v15167_v30 = vld [vmem:[#allocation168_spill] sm:$0xff] }
 0x410   :  { %15152 = vst [vmem:[#allocation199_spill] sm:$0xff] %v11918_v20  ;;  %v2583_v16 = vmul.f32 %v8738_v41, %v2503_v40  ;;  %v2147_v9 = vpop.xlane.xlu1 %2146  ;;  %v2664_v40 = vmul.f32 %v15160_v3, %v2584_v62  ;;  %v15161_v41 = vsub.f32 %v15018_v33, %v11535_v23  ;;  %v2286_v62 = vsel %vm1604_vm1, %v11927_v54, 0.0  ;;  %v15165_v33 = vld [vmem:[#allocation202_spill] sm:$0xff]  ;;  %v15168_v54 = vld [vmem:[#allocation100_spill] sm:$0xff] }
 0x411   :  { %8745 = vrcp.f32 %v2147_v9  ;;  %v4674_v23 = vsel %vm1604_vm1, %v15165_v33, -inf }
 0x412   :  { %4738 = vmax.xlane.f32.xlu0 %v4737_v29  ;;  %v2663_v10 = vmul.f32 %v15158_v61, %v2583_v16  ;;  %8747 = vpow2.f32 %v2063_v2  ;;  %v2061_v11 = vmul.f32 1.442695, %v15161_v41  ;;  %v15163_v29 = vld [vmem:[#allocation167_spill] sm:$0xff]  ;;  %v11948_v2 = vpop.eup %8741  ;;  %v15171_v16 = vld [vmem:[#allocation110_spill] sm:$0xff] }
 0x413   :  { %4666 = vmax.xlane.f32.xlu1 %v4665_v15  ;;  %v11932_v4 = vpop.xlane.xlu0 %4678  ;;  %15164 = vst [vmem:[#allocation194_spill] sm:$0xff] %v11948_v2 }
 0x414   :  { %15159 = vst [vmem:[#allocation166_spill] sm:$0xff] %v11932_v4  ;;  %v11940_v20 = vpop.xlane.xlu1 %4609  ;;  %7932 = vmatprep.mubr.msk.f32.mxu0 %vm1604_vm1, %v2663_v10  ;;  %8749 = vpow2.f32 %v2061_v11  ;;  %v15166_v10 = vsub.f32 %v15023_v17, %v11558_v58  ;;  %v15170_v58 = vsub.f32 %v15029_v21, %v11575_v5  ;;  %v4743_v4 = vsel %vm1604_vm1, %v15171_v16, -inf }
 0x415   :  { %7933 = vmatmul.mubr.msk.f32.gmra.mrb[34].mxu0 %vm1604_vm1, %v2664_v40  ;;  %v15174_v21 = vsub.f32 %v10830_v26, %v11585_v48  ;;  %v15181_v48 = vld [vmem:[#allocation228_spill] sm:$0xff] }
 0x416   :  { %2287 = vadd.xlane.f32.xlu0 %v2286_v62  ;;  %v2067_v3 = vmul.f32 1.442695, %v15166_v10  ;;  %v2283_v62 = vsel %vm1604_vm1, %v11948_v2, 0.0  ;;  %v2065_v17 = vmul.f32 1.442695, %v15170_v58  ;;  %v15175_v58 = vld [vmem:[#allocation102_spill] sm:$0xff] }
 0x417   :  { %4675 = vmax.xlane.f32.xlu1 %v4674_v23  ;;  %v11952_v15 = vpop.xlane.xlu0 %2227  ;;  %v8744_v61 = vpop.eup %8743  ;;  %v4671_v23 = vsel %vm1604_vm1, %v15168_v54, -inf  ;;  %v15173_v54 = vld [vmem:[#allocation105_spill] sm:$0xff]  ;;  %v2071_v5 = vmul.f32 1.442695, %v15174_v21 }
 0x418   :  { %v11957_v41 = vpop.xlane.xlu1 %4606  ;;  %v2426_v40 = vmul.f32 %v8744_v61, %v2150_v22  ;;  %8751 = vpow2.f32 %v2067_v3 }
 0x41a   :  { %2284 = vadd.xlane.f32.xlu0 %v2283_v62  ;;  %v2506_v50 = vsub.f32 2.0, %v2426_v40  ;;  %v4704_v40 = vsel %vm1604_vm1, %v15173_v54, -inf }
 0x41b   :  { %v8746_v33 = vpop.eup %8745  ;;  %4672 = vmax.xlane.f32.xlu1 %v4671_v23  ;;  %v11965_v11 = vpop.xlane.xlu0 %2224 }
 0x41c   :  { %15169 = vst [vmem:[#allocation156_spill] sm:$0xff] %v11965_v11  ;;  %v2425_v22 = vmul.f32 %v8746_v33, %v2147_v9  ;;  %v2156_v10 = vpop.xlane.xlu1 %2155  ;;  %v11972_v2 = vpop.eup %8747  ;;  %v2586_v23 = vmul.f32 %v8744_v61, %v2506_v50 }
 0x41d   :  { %15172 = vst [vmem:[#allocation198_spill] sm:$0xff] %v11972_v2  ;;  %8753 = vrcp.f32 %v2156_v10  ;;  %v2292_v50 = vsel %vm1604_vm1, %v11972_v2, 0.0 }
 0x41e   :  { %v2505_v62 = vsub.f32 2.0, %v2425_v22  ;;  %4744 = vmax.xlane.f32.xlu0 %v4743_v4  ;;  %8755 = vpow2.f32 %v2065_v17  ;;  %v15176_v22 = vld [vmem:[#allocation140_spill] sm:$0xff]  ;;  %v11988_v61 = vpop.eup %8749  ;;  %v15180_v17 = vld [vmem:[#allocation106_spill] sm:$0xff] }
 0x41f   :  { %4705 = vmax.xlane.f32.xlu1 %v4704_v40  ;;  %v11976_v3 = vpop.xlane.xlu0 %4687  ;;  %v15178_v4 = vsub.f32 %v15176_v22, %v15177_v18  ;;  %15179 = vst [vmem:[#allocation206_spill] sm:$0xff] %v11988_v61  ;;  %v4707_v26 = vsel %vm1604_vm1, %v15180_v17, -inf  ;;  %v15182_v40 = vld [vmem:[#allocation225_spill] sm:$0xff]  ;;  %v15183_v18 = vsub.f32 %v10833_v56, %v11598_v35  ;;  %v15188_v17 = vld [vmem:[#allocation171_spill] sm:$0xff]  ;;  %v2289_v56 = vsel %vm1604_vm1, %v11988_v61, 0.0 }
 0x420   :  { %v2585_v9 = vmul.f32 %v8746_v33, %v2505_v62  ;;  %v2153_v52 = vpop.xlane.xlu1 %2152  ;;  %v2666_v21 = vmul.f32 %v15182_v40, %v2586_v23 }
 0x421   :  { %v4867_v11 = vmul.f32 1.442695, %v15178_v4  ;;  %8757 = vrcp.f32 %v2153_v52  ;;  %v2069_v22 = vmul.f32 1.442695, %v15183_v18  ;;  %v15184_v4 = vld [vmem:[#allocation207_spill] sm:$0xff] }
 0x422   :  { %2293 = vadd.xlane.f32.xlu0 %v2292_v50  ;;  %v2665_v33 = vmul.f32 %v15181_v48, %v2585_v9  ;;  %8759 = vpow2.f32 %v2071_v5  ;;  %v15185_v50 = vld [vmem:[#allocation141_spill] sm:$0xff]  ;;  %v12012_v35 = vpop.eup %8751  ;;  %v15190_v5 = vld [vmem:[#allocation212_spill] sm:$0xff] }
 0x423   :  { %4708 = vmax.xlane.f32.xlu1 %v4707_v26  ;;  %v11993_v62 = vpop.xlane.xlu0 %4684  ;;  %8761 = vpow2.f32 %v4867_v11  ;;  %v15186_v9 = vld [vmem:[#allocation125_spill] sm:$0xff]  ;;  %15189 = vst [vmem:[#allocation127_spill] sm:$0xff] %v12012_v35  ;;  %v4716_v40 = vsel %vm1604_vm1, %v15190_v5, -inf  ;;  %v15192_v11 = vld [vmem:[#allocation139_spill] sm:$0xff]  ;;  %v2298_v61 = vsel %vm1604_vm1, %v12012_v35, 0.0 }
 0x424   :  { %v12001_v2 = vpop.xlane.xlu1 %4615  ;;  %7935 = vmatprep.mubr.msk.f32.mxu0 %vm1604_vm1, %v2665_v33  ;;  %v15187_v26 = vsub.f32 %v15185_v50, %v15186_v9  ;;  %v15191_v33 = vld [vmem:[#allocation142_spill] sm:$0xff]  ;;  %8763 = vpow2.f32 %v2069_v22 }
 0x425   :  { %7936 = vmatmul.mubr.msk.f32.gmra.mrb[36].mxu0 %vm1604_vm1, %v2666_v21  ;;  %v15193_v18 = vsub.f32 %v15191_v33, %v15192_v11  ;;  %v15194_v21 = vsub.f32 %v10837_v46, %v11617_v37  ;;  %v15196_v33 = vld [vmem:[#allocation172_spill] sm:$0xff]  ;;  %v15197_v11 = vld [vmem:[#allocation214_spill] sm:$0xff]  ;;  %v15198_v46 = vsub.f32 %v15007_v45, %v11494_v13 }
 0x426   :  { %v4865_v48 = vmul.f32 1.442695, %v15187_v26  ;;  %2290 = vadd.xlane.f32.xlu0 %v2289_v56  ;;  %v4722_v22 = vsel %vm1604_vm1, %v15197_v11, -inf  ;;  %v15201_v13 = vld [vmem:[#allocation108_spill] sm:$0xff] }
 0x427   :  { %v4871_v16 = vmul.f32 1.442695, %v15193_v18  ;;  %4717 = vmax.xlane.f32.xlu1 %v4716_v40  ;;  %v12019_v50 = vpop.xlane.xlu0 %2233  ;;  %v8754_v9 = vpop.eup %8753  ;;  %v2075_v26 = vmul.f32 1.442695, %v15194_v21  ;;  %v4869_v37 = vmul.f32 1.442695, %v15198_v46  ;;  %v15199_v21 = vsub.f32 %v10839_v28, %v11639_v0 }
 0x428   :  { %v12024_v23 = vpop.xlane.xlu1 %4612  ;;  %8765 = vpow2.f32 %v4865_v48  ;;  %v2428_v56 = vmul.f32 %v8754_v9, %v2156_v10  ;;  %v12028_v5 = vpop.eup %8755  ;;  %v4719_v45 = vsel %vm1604_vm1, %v15201_v13, -inf  ;;  %v15203_v0 = vsub.f32 %v10843_v12, %v11649_v42  ;;  %v15206_v42 = vld [vmem:[#allocation92_spill] sm:$0xff]  ;;  %v15253_v13 = vld [vmem:[#allocation173_spill] sm:$0xff] }
 0x429   :  { %15195 = vst [vmem:[#allocation239_spill] sm:$0xff] %v12028_v5  ;;  %8767 = vpow2.f32 %v4871_v16  ;;  %v2073_v35 = vmul.f32 1.442695, %v15199_v21  ;;  %v2295_v11 = vsel %vm1604_vm1, %v12028_v5, 0.0  ;;  %v15204_v46 = vsub.f32 %v15020_v32, %v11543_v59 }
 0x42a   :  { %2299 = vadd.xlane.f32.xlu0 %v2298_v61  ;;  %v2508_v48 = vsub.f32 2.0, %v2428_v56  ;;  %8769 = vpow2.f32 %v2075_v26  ;;  %v15209_v32 = vsub.f32 %v10846_v8, %v11663_v39 }
 0x42b   :  { %v8758_v18 = vpop.eup %8757  ;;  %4723 = vmax.xlane.f32.xlu1 %v4722_v22  ;;  %v12037_v10 = vpop.xlane.xlu0 %2230  ;;  %v4875_v21 = vmul.f32 1.442695, %v15204_v46 }
 0x42c   :  { %v2427_v40 = vmul.f32 %v8758_v18, %v2153_v52  ;;  %v2162_v61 = vpop.xlane.xlu1 %2161  ;;  %v12044_v16 = vpop.eup %8759  ;;  %v2588_v26 = vmul.f32 %v8754_v9, %v2508_v48  ;;  %v2079_v52 = vmul.f32 1.442695, %v15203_v0  ;;  %v15208_v48 = vld [vmem:[#allocation234_spill] sm:$0xff] }
 0x42d   :  { %8771 = vrcp.f32 %v2162_v61  ;;  %15200 = vst [vmem:[#allocation203_spill] sm:$0xff] %v12044_v16  ;;  %v12048_v56 = vpop.eup %8761  ;;  %v2304_v9 = vsel %vm1604_vm1, %v12044_v16, 0.0 }
 0x42e   :  { %v2507_v54 = vsub.f32 2.0, %v2427_v40  ;;  %2296 = vadd.xlane.f32.xlu0 %v2295_v11  ;;  %15202 = vst [vmem:[#allocation162_spill] sm:$0xff] %v12048_v56  ;;  %8773 = vpow2.f32 %v4869_v37  ;;  %v12062_v37 = vpop.eup %8763  ;;  %v5028_v12 = vsel %vm1604_vm1, %v12048_v56, 0.0  ;;  %v2668_v59 = vmul.f32 %v15208_v48, %v2588_v26 }
 0x42f   :  { %4720 = vmax.xlane.f32.xlu1 %v4719_v45  ;;  %v12050_v28 = vpop.xlane.xlu0 %4693  ;;  %8775 = vpow2.f32 %v2073_v35  ;;  %15205 = vst [vmem:[#allocation201_spill] sm:$0xff] %v12062_v37  ;;  %v2077_v45 = vmul.f32 1.442695, %v15209_v32  ;;  %v2301_v8 = vsel %vm1604_vm1, %v12062_v37, 0.0 }
 0x430   :  { %v2587_v22 = vmul.f32 %v8758_v18, %v2507_v54  ;;  %v2159_v11 = vpop.xlane.xlu1 %2158 }
 0x431   :  { %8777 = vrcp.f32 %v2159_v11 }
 0x432   :  { %2305 = vadd.xlane.f32.xlu0 %v2304_v9  ;;  %v2667_v54 = vmul.f32 %v15206_v42, %v2587_v22  ;;  %v12067_v35 = vpop.eup %8765  ;;  %8779 = vpow2.f32 %v2079_v52  ;;  %v15211_v9 = vld [vmem:[#allocation145_spill] sm:$0xff] }
 0x433   :  { %15207 = vst [vmem:[#allocation128_spill] sm:$0xff] %v12067_v35  ;;  %5029 = vadd.xlane.f32.xlu1 %v5028_v12  ;;  %v12069_v18 = vpop.xlane.xlu0 %4690  ;;  %v12080_v22 = vpop.eup %8767  ;;  %8781 = vpow2.f32 %v4875_v21  ;;  %v15212_v12 = vld [vmem:[#allocation170_spill] sm:$0xff]  ;;  %v5025_v26 = vsel %vm1604_vm1, %v12067_v35, 0.0  ;;  %v15215_v21 = vsub.f32 %v10850_v1, %v11682_v24 }
 0x434   :  { %v12077_v46 = vpop.xlane.xlu1 %4621  ;;  %7938 = vmatprep.mubr.msk.f32.mxu0 %vm1604_vm1, %v2667_v54  ;;  %15210 = vst [vmem:[#allocation69_spill] sm:$0xff] %v12080_v22  ;;  %v15213_v42 = vsub.f32 %v15211_v9, %v15212_v12  ;;  %v12088_v39 = vpop.eup %8769  ;;  %8783 = vpow2.f32 %v2077_v45  ;;  %v15217_v12 = vld [vmem:[#allocation65_spill] sm:$0xff]  ;;  %v5034_v1 = vsel %vm1604_vm1, %v12080_v22, 0.0 }
 0x435   :  { %7939 = vmatmul.mubr.msk.f32.gmra.mrb[38].mxu0 %vm1604_vm1, %v2668_v59  ;;  %15214 = vst [vmem:[#allocation208_spill] sm:$0xff] %v12088_v39  ;;  %v2083_v48 = vmul.f32 1.442695, %v15215_v21 }
 0x436   :  { %v4873_v40 = vmul.f32 1.442695, %v15213_v42  ;;  %2302 = vadd.xlane.f32.xlu0 %v2301_v8  ;;  %v15218_v42 = vsub.f32 %v15036_v63, %v15217_v12  ;;  %v15221_v63 = vsub.f32 %v15067_v49, %v11706_v55 }
 0x437   :  { %v8772_v52 = vpop.eup %8771  ;;  %5026 = vadd.xlane.f32.xlu1 %v5025_v26  ;;  %v12092_v54 = vpop.xlane.xlu0 %2239  ;;  %v2310_v26 = vsel %vm1604_vm1, %v12088_v39, 0.0 }
 0x438   :  { %v2430_v32 = vmul.f32 %v8772_v52, %v2162_v61  ;;  %v12097_v59 = vpop.xlane.xlu1 %4618  ;;  %v12099_v9 = vpop.eup %8773  ;;  %8785 = vpow2.f32 %v4873_v40  ;;  %v4879_v8 = vmul.f32 1.442695, %v15218_v42  ;;  %v15220_v61 = vsub.f32 %v15044_v27, %v11623_v44 }
 0x439   :  { %15216 = vst [vmem:[#allocation163_spill] sm:$0xff] %v12099_v9  ;;  %v12106_v0 = vpop.eup %8775  ;;  %8787 = vpow2.f32 %v2083_v48  ;;  %v2081_v12 = vmul.f32 1.442695, %v15221_v63  ;;  %v5031_v27 = vsel %vm1604_vm1, %v12099_v9, 0.0 }
 0x43a   :  { %15219 = vst [vmem:[#allocation205_spill] sm:$0xff] %v12106_v0  ;;  %2311 = vadd.xlane.f32.xlu0 %v2310_v26  ;;  %v4877_v45 = vmul.f32 1.442695, %v15220_v61  ;;  %v2510_v21 = vsub.f32 2.0, %v2430_v32  ;;  %8789 = vpow2.f32 %v4879_v8  ;;  %v2307_v26 = vsel %vm1604_vm1, %v12106_v0, 0.0  ;;  %v15226_v61 = vld [vmem:[#allocation132_spill] sm:$0xff] }
 0x43b   :  { %v8778_v24 = vpop.eup %8777  ;;  %5035 = vadd.xlane.f32.xlu1 %v5034_v1  ;;  %v12113_v40 = vpop.xlane.xlu0 %2236  ;;  %v15225_v1 = vld [vmem:[#allocation150_spill] sm:$0xff]  ;;  %v15235_v32 = vld [vmem:[#allocation144_spill] sm:$0xff] }
 0x43c   :  { %v2429_v42 = vmul.f32 %v8778_v24, %v2159_v11  ;;  %v2168_v56 = vpop.xlane.xlu1 %2167  ;;  %v12120_v22 = vpop.eup %8779  ;;  %v2590_v48 = vmul.f32 %v8772_v52, %v2510_v21  ;;  %v15224_v11 = vld [vmem:[#allocation104_spill] sm:$0xff]  ;;  %v15227_v63 = vsub.f32 %v15225_v1, %v15226_v61  ;;  %v15255_v1 = vld [vmem:[#allocation223_spill] sm:$0xff] }
 0x43d   :  { %15222 = vst [vmem:[#allocation164_spill] sm:$0xff] %v12120_v22  ;;  %8791 = vrcp.f32 %v2168_v56  ;;  %v12124_v44 = vpop.eup %8781 }
 0x43e   :  { %v2509_v35 = vsub.f32 2.0, %v2429_v42  ;;  %2308 = vadd.xlane.f32.xlu0 %v2307_v26  ;;  %15223 = vst [vmem:[#allocation165_spill] sm:$0xff] %v12124_v44  ;;  %8793 = vpow2.f32 %v4877_v45  ;;  %v4883_v42 = vmul.f32 1.442695, %v15227_v63  ;;  %v2316_v26 = vsel %vm1604_vm1, %v12120_v22, 0.0  ;;  %v12135_v9 = vpop.eup %8783  ;;  %v15229_v45 = vld [vmem:[#allocation114_spill] sm:$0xff] }
 0x43f   :  { %5032 = vadd.xlane.f32.xlu1 %v5031_v27  ;;  %v12126_v49 = vpop.xlane.xlu0 %4699  ;;  %8795 = vpow2.f32 %v2081_v12  ;;  %15228 = vst [vmem:[#allocation90_spill] sm:$0xff] %v12135_v9  ;;  %v5040_v52 = vsel %vm1604_vm1, %v12124_v44, 0.0  ;;  %v15232_v12 = vld [vmem:[#allocation137_spill] sm:$0xff] }
 0x440   :  { %v2589_v55 = vmul.f32 %v8778_v24, %v2509_v35  ;;  %v2165_v8 = vpop.xlane.xlu1 %2164  ;;  %v2670_v27 = vmul.f32 %v15232_v12, %v2590_v48  ;;  %v15239_v12 = vld [vmem:[#allocation152_spill] sm:$0xff] }
 0x441   :  { %8797 = vrcp.f32 %v2165_v8 }
 0x442   :  { %2317 = vadd.xlane.f32.xlu0 %v2316_v26  ;;  %v2669_v35 = vmul.f32 %v15229_v45, %v2589_v55  ;;  %v12140_v24 = vpop.eup %8785  ;;  %8799 = vpow2.f32 %v4883_v42  ;;  %v15234_v26 = vld [vmem:[#allocation151_spill] sm:$0xff]  ;;  %v2313_v55 = vsel %vm1604_vm1, %v12135_v9, 0.0 }
 0x443   :  { %15230 = vst [vmem:[#allocation216_spill] sm:$0xff] %v12140_v24  ;;  %5041 = vadd.xlane.f32.xlu1 %v5040_v52  ;;  %v12142_v21 = vpop.xlane.xlu0 %4696  ;;  %v15236_v44 = vsub.f32 %v15234_v26, %v15235_v32  ;;  %v12156_v52 = vpop.eup %8787  ;;  %v5037_v48 = vsel %vm1604_vm1, %v12140_v24, 0.0  ;;  %v15240_v32 = vld [vmem:[#allocation118_spill] sm:$0xff] }
 0x444   :  { %15231 = vst [vmem:[#allocation167_spill] sm:$0xff] %v12142_v21  ;;  %v12147_v63 = vpop.xlane.xlu1 %4627  ;;  %7941 = vmatprep.mubr.msk.f32.mxu0 %vm1604_vm1, %v2669_v35  ;;  %15237 = vst [vmem:[#allocation168_spill] sm:$0xff] %v12156_v52  ;;  %v12160_v45 = vpop.eup %8789 }
 0x445   :  { %v4881_v22 = vmul.f32 1.442695, %v15236_v44  ;;  %7942 = vmatmul.mubr.msk.f32.gmra.mrb[40].mxu0 %vm1604_vm1, %v2670_v27  ;;  %15238 = vst [vmem:[#allocation102_spill] sm:$0xff] %v12160_v45  ;;  %v15241_v44 = vsub.f32 %v15239_v12, %v15240_v32  ;;  %v15244_v32 = vld [vmem:[#allocation153_spill] sm:$0xff] }
 0x446   :  { %2314 = vadd.xlane.f32.xlu0 %v2313_v55  ;;  %v2322_v55 = vsel %vm1604_vm1, %v12156_v52, 0.0 }
 0x447   :  { %5038 = vadd.xlane.f32.xlu1 %v5037_v48  ;;  %v12162_v35 = vpop.xlane.xlu0 %2245  ;;  %v8792_v42 = vpop.eup %8791  ;;  %v4887_v26 = vmul.f32 1.442695, %v15241_v44  ;;  %8801 = vpow2.f32 %v4881_v22  ;;  %v5046_v48 = vsel %vm1604_vm1, %v12160_v45, 0.0  ;;  %v15245_v44 = vld [vmem:[#allocation147_spill] sm:$0xff] }
 0x448   :  { %v12167_v27 = vpop.xlane.xlu1 %4624  ;;  %v12169_v61 = vpop.eup %8793  ;;  %v2432_v9 = vmul.f32 %v8792_v42, %v2168_v56  ;;  %v15246_v16 = vsub.f32 %v15244_v32, %v15245_v44 }
 0x449   :  { %15242 = vst [vmem:[#allocation140_spill] sm:$0xff] %v12169_v61  ;;  %v12173_v24 = vpop.eup %8795  ;;  %8803 = vpow2.f32 %v4887_v26  ;;  %v5043_v45 = vsel %vm1604_vm1, %v12169_v61, 0.0 }
 0x44a   :  { %15243 = vst [vmem:[#allocation112_spill] sm:$0xff] %v12173_v24  ;;  %2323 = vadd.xlane.f32.xlu0 %v2322_v55  ;;  %v2512_v0 = vsub.f32 2.0, %v2432_v9  ;;  %v4885_v22 = vmul.f32 1.442695, %v15246_v16  ;;  %v2319_v52 = vsel %vm1604_vm1, %v12173_v24, 0.0  ;;  %v15249_v16 = vld [vmem:[#allocation122_spill] sm:$0xff] }
 0x44b   :  { %v8798_v39 = vpop.eup %8797  ;;  %5047 = vadd.xlane.f32.xlu1 %v5046_v48  ;;  %v12177_v12 = vpop.xlane.xlu0 %2242 }
 0x44c   :  { %v2431_v56 = vmul.f32 %v8798_v39, %v2165_v8  ;;  %v2174_v37 = vpop.xlane.xlu1 %2173  ;;  %v12186_v9 = vpop.eup %8799  ;;  %v2592_v48 = vmul.f32 %v8792_v42, %v2512_v0  ;;  %v15250_v8 = vsub.f32 %v15105_v43, %v15249_v16  ;;  %v4746_v0 = vsel %vm1604_vm1, %v15255_v1, -inf  ;;  %v15256_v42 = vld [vmem:[#allocation143_spill] sm:$0xff] }
 0x44d   :  { %8805 = vrcp.f32 %v2174_v37  ;;  %15247 = vst [vmem:[#allocation228_spill] sm:$0xff] %v12186_v9 }
 0x44e   :  { %v2511_v55 = vsub.f32 2.0, %v2431_v56  ;;  %2320 = vadd.xlane.f32.xlu0 %v2319_v52  ;;  %8807 = vpow2.f32 %v4885_v22  ;;  %v4889_v32 = vmul.f32 1.442695, %v15250_v8  ;;  %v15252_v52 = vld [vmem:[#allocation155_spill] sm:$0xff] }
 0x44f   :  { %5044 = vadd.xlane.f32.xlu1 %v5043_v45  ;;  %v12188_v26 = vpop.xlane.xlu0 %4702  ;;  %v15254_v21 = vsub.f32 %v15252_v52, %v15253_v13  ;;  %v5052_v45 = vsel %vm1604_vm1, %v12186_v9, 0.0  ;;  %v15259_v13 = vld [vmem:[#allocation159_spill] sm:$0xff] }
 0x450   :  { %15248 = vst [vmem:[#allocation225_spill] sm:$0xff] %v12188_v26  ;;  %v2591_v44 = vmul.f32 %v8798_v39, %v2511_v55  ;;  %v2171_v56 = vpop.xlane.xlu1 %2170  ;;  %v15258_v55 = vld [vmem:[#allocation129_spill] sm:$0xff] }
 0x451   :  { %v4891_v61 = vmul.f32 1.442695, %v15254_v21  ;;  %8809 = vrcp.f32 %v2171_v56  ;;  %v12203_v22 = vpop.eup %8801  ;;  %v2672_v16 = vmul.f32 %v15258_v55, %v2592_v48  ;;  %v15260_v21 = vld [vmem:[#allocation96_spill] sm:$0xff] }
 0x452   :  { %4747 = vmax.xlane.f32.xlu0 %v4746_v0  ;;  %v2671_v43 = vmul.f32 %v15256_v42, %v2591_v44  ;;  %15257 = vst [vmem:[#allocation207_spill] sm:$0xff] %v12203_v22  ;;  %8811 = vpow2.f32 %v4889_v32  ;;  %v15261_v8 = vsub.f32 %v15259_v13, %v15260_v21  ;;  %v15262_v44 = vsub.f32 %v15142_v31, %v11889_v36 }
 0x453   :  { %5053 = vadd.xlane.f32.xlu1 %v5052_v45  ;;  %v12205_v39 = vpop.xlane.xlu0 %2251  ;;  %8813 = vpow2.f32 %v4891_v61  ;;  %v15263_v45 = vld [vmem:[#allocation227_spill] sm:$0xff]  ;;  %v12220_v48 = vpop.eup %8803  ;;  %v5049_v32 = vsel %vm1604_vm1, %v12203_v22, 0.0  ;;  %v15265_v61 = vld [vmem:[#allocation160_spill] sm:$0xff] }
 0x454   :  { %v4895_v52 = vmul.f32 1.442695, %v15261_v8  ;;  %v12211_v24 = vpop.xlane.xlu1 %4633  ;;  %7944 = vmatprep.mubr.msk.f32.mxu0 %vm1604_vm1, %v2671_v43  ;;  %v4903_v0 = vmul.f32 1.442695, %v15262_v44  ;;  %v4749_v42 = vsel %vm1604_vm1, %v15263_v45, -inf  ;;  %15264 = vst [vmem:[#allocation141_spill] sm:$0xff] %v12220_v48  ;;  %v15268_v8 = vsub.f32 %v15147_v60, %v11904_v6 }
 0x455   :  { %7945 = vmatmul.mubr.msk.f32.gmra.mrb[42].mxu0 %vm1604_vm1, %v2672_v16  ;;  %v15266_v43 = vld [vmem:[#allocation184_spill] sm:$0xff]  ;;  %v15273_v60 = vsub.f32 %v15124_v14, %v11838_v47 }
 0x456   :  { %4750 = vmax.xlane.f32.xlu0 %v4749_v42  ;;  %8815 = vpow2.f32 %v4895_v52  ;;  %v15267_v31 = vsub.f32 %v15265_v61, %v15266_v43  ;;  %v4901_v44 = vmul.f32 1.442695, %v15268_v8  ;;  %v15269_v42 = vld [vmem:[#allocation226_spill] sm:$0xff]  ;;  %v5058_v52 = vsel %vm1604_vm1, %v12220_v48, 0.0  ;;  %v15271_v61 = vld [vmem:[#allocation121_spill] sm:$0xff]  ;;  %v15276_v45 = vld [vmem:[#allocation120_spill] sm:$0xff] }
 0x457   :  { %v8806_v55 = vpop.eup %8805  ;;  %5050 = vadd.xlane.f32.xlu1 %v5049_v32  ;;  %v12224_v13 = vpop.xlane.xlu0 %2248  ;;  %8817 = vpow2.f32 %v4903_v0  ;;  %v4752_v9 = vsel %vm1604_vm1, %v15269_v42, -inf  ;;  %v4899_v6 = vmul.f32 1.442695, %v15273_v60  ;;  %v15275_v48 = vsub.f32 %v15163_v29, %v11940_v20 }
 0x458   :  { %v4893_v36 = vmul.f32 1.442695, %v15267_v31  ;;  %v2434_v21 = vmul.f32 %v8806_v55, %v2174_v37  ;;  %v12229_v16 = vpop.xlane.xlu1 %4630  ;;  %v12236_v22 = vpop.eup %8807  ;;  %8819 = vrcp.f32 %v15271_v61  ;;  %v15312_v31 = vld [vmem:[#allocation111_spill] sm:$0xff] }
 0x459   :  { %15270 = vst [vmem:[#allocation125_spill] sm:$0xff] %v12236_v22  ;;  %v4907_v42 = vmul.f32 1.442695, %v15275_v48  ;;  %v5055_v47 = vsel %vm1604_vm1, %v12236_v22, 0.0 }
 0x45a   :  { %4753 = vmax.xlane.f32.xlu0 %v4752_v9  ;;  %v2514_v37 = vsub.f32 2.0, %v2434_v21  ;;  %8821 = vpow2.f32 %v4893_v36  ;;  %v4755_v21 = vsel %vm1604_vm1, %v15276_v45, -inf }
 0x45b   :  { %v8810_v32 = vpop.eup %8809  ;;  %5059 = vadd.xlane.f32.xlu1 %v5058_v52  ;;  %v12241_v43 = vpop.xlane.xlu0 %4711  ;;  %8823 = vpow2.f32 %v4901_v44  ;;  %v15280_v44 = vsub.f32 %v15132_v51, %v11857_v57  ;;  %v15284_v51 = vld [vmem:[#allocation149_spill] sm:$0xff] }
 0x45c   :  { %15272 = vst [vmem:[#allocation171_spill] sm:$0xff] %v12241_v43  ;;  %v2433_v0 = vmul.f32 %v8810_v32, %v2171_v56  ;;  %v2180_v9 = vpop.xlane.xlu1 %2179  ;;  %v12253_v52 = vpop.eup %8811  ;;  %v15279_v56 = vld [vmem:[#allocation185_spill] sm:$0xff]  ;;  %v2594_v29 = vmul.f32 %v8806_v55, %v2514_v37 }
 0x45d   :  { %15277 = vst [vmem:[#allocation142_spill] sm:$0xff] %v12253_v52  ;;  %8825 = vrcp.f32 %v2180_v9  ;;  %v12257_v14 = vpop.eup %8813  ;;  %v4897_v20 = vmul.f32 1.442695, %v15280_v44  ;;  %v5061_v22 = vsel %vm1604_vm1, %v12253_v52, 0.0 }
 0x45e   :  { %v2513_v36 = vsub.f32 2.0, %v2433_v0  ;;  %4756 = vmax.xlane.f32.xlu0 %v4755_v21  ;;  %15278 = vst [vmem:[#allocation139_spill] sm:$0xff] %v12257_v14  ;;  %8827 = vrcp.f32 %v15279_v56  ;;  %v15282_v21 = vsub.f32 %v15167_v30, %v11957_v41  ;;  %v5064_v57 = vsel %vm1604_vm1, %v12257_v14, 0.0  ;;  %v15287_v30 = vld [vmem:[#allocation131_spill] sm:$0xff] }
 0x45f   :  { %5056 = vadd.xlane.f32.xlu1 %v5055_v47  ;;  %v12263_v48 = vpop.xlane.xlu0 %2257  ;;  %8829 = vpow2.f32 %v4899_v6  ;;  %v2674_v41 = vmul.f32 %v15287_v30, %v2594_v29 }
 0x460   :  { %15281 = vst [vmem:[#allocation172_spill] sm:$0xff] %v12263_v48  ;;  %v2593_v60 = vmul.f32 %v8810_v32, %v2513_v36  ;;  %v2177_v0 = vpop.xlane.xlu1 %2176  ;;  %8831 = vpow2.f32 %v4907_v42  ;;  %v4905_v8 = vmul.f32 1.442695, %v15282_v21  ;;  %v12270_v45 = vpop.eup %8815  ;;  %v15288_v32 = vld [vmem:[#allocation138_spill] sm:$0xff]  ;;  %v15289_v36 = vsub.f32 %v15188_v17, %v12001_v2 }
 0x461   :  { %15283 = vst [vmem:[#allocation92_spill] sm:$0xff] %v12270_v45  ;;  %8833 = vrcp.f32 %v2177_v0  ;;  %v12275_v37 = vpop.eup %8817  ;;  %v5070_v44 = vsel %vm1604_vm1, %v12270_v45, 0.0  ;;  %v15293_v17 = vld [vmem:[#allocation174_spill] sm:$0xff] }
 0x462   :  { %5062 = vadd.xlane.f32.xlu0 %v5061_v22  ;;  %v2673_v55 = vmul.f32 %v15284_v51, %v2593_v60  ;;  %15285 = vst [vmem:[#allocation234_spill] sm:$0xff] %v12275_v37  ;;  %8835 = vpow2.f32 %v4897_v20  ;;  %v12284_v22 = vpop.eup %8819  ;;  %v4911_v47 = vmul.f32 1.442695, %v15289_v36  ;;  %v5082_v29 = vsel %vm1604_vm1, %v12275_v37, 0.0 }
 0x463   :  { %5065 = vadd.xlane.f32.xlu1 %v5064_v57  ;;  %v12277_v42 = vpop.xlane.xlu0 %2254  ;;  %8837 = vrcp.f32 %v15288_v32  ;;  %v4810_v21 = vsub.f32 %v15293_v17, %v12077_v46 }
 0x464   :  { %15286 = vst [vmem:[#allocation145_spill] sm:$0xff] %v12277_v42  ;;  %v12281_v6 = vpop.xlane.xlu1 %4639  ;;  %7947 = vmatprep.mubr.msk.f32.mxu0 %vm1604_vm1, %v2673_v55  ;;  %8839 = vpow2.f32 %v4905_v8  ;;  %v12292_v20 = vpop.eup %8821  ;;  %v15294_v55 = vsub.f32 %v15196_v33, %v12024_v23  ;;  %v15327_v42 = vld [vmem:[#allocation103_spill] sm:$0xff] }
 0x465   :  { %7948 = vmatmul.mubr.msk.f32.gmra.mrb[44].mxu0 %vm1604_vm1, %v2674_v41  ;;  %15290 = vst [vmem:[#allocation170_spill] sm:$0xff] %v12292_v20  ;;  %v12296_v60 = vpop.eup %8823  ;;  %8841 = vrcp.f32 %v11832_v38  ;;  %v5067_v36 = vsel %vm1604_vm1, %v12292_v20, 0.0  ;;  %v4915_v23 = vmul.f32 1.442695, %v4810_v21  ;;  %v2442_v21 = vmul.f32 %v12284_v22, %v15271_v61 }
 0x466   :  { %5071 = vadd.xlane.f32.xlu0 %v5070_v44  ;;  %15291 = vst [vmem:[#allocation65_spill] sm:$0xff] %v12296_v60  ;;  %8843 = vrcp.f32 %v11851_v53  ;;  %v4909_v30 = vmul.f32 1.442695, %v15294_v55  ;;  %v5079_v46 = vsel %vm1604_vm1, %v12296_v60, 0.0 }
 0x467   :  { %5083 = vadd.xlane.f32.xlu1 %v5082_v29  ;;  %v12299_v8 = vpop.xlane.xlu0 %4714  ;;  %v8826_v2 = vpop.eup %8825  ;;  %8845 = vpow2.f32 %v4911_v47 }
 0x468   :  { %15292 = vst [vmem:[#allocation104_spill] sm:$0xff] %v12299_v8  ;;  %v12304_v57 = vpop.xlane.xlu1 %4636  ;;  %v12306_v51 = vpop.eup %8827  ;;  %v2436_v41 = vmul.f32 %v8826_v2, %v2180_v9  ;;  %8847 = vrcp.f32 %v11868_v19 }
 0x469   :  { %v12313_v44 = vpop.eup %8829  ;;  %8849 = vpow2.f32 %v4909_v30 }
 0x46a   :  { %15295 = vst [vmem:[#allocation150_spill] sm:$0xff] %v12313_v44  ;;  %5068 = vadd.xlane.f32.xlu0 %v5067_v36  ;;  %v12318_v29 = vpop.eup %8831  ;;  %v2516_v33 = vsub.f32 2.0, %v2436_v41  ;;  %v15300_v36 = vld [vmem:[#allocation175_spill] sm:$0xff]  ;;  %8851 = vrcp.f32 %v11876_v25 }
 0x46b   :  { %15296 = vst [vmem:[#allocation132_spill] sm:$0xff] %v12318_v29  ;;  %5080 = vadd.xlane.f32.xlu1 %v5079_v46  ;;  %v12320_v47 = vpop.xlane.xlu0 %2263  ;;  %v8834_v17 = vpop.eup %8833  ;;  %v4809_v45 = vsub.f32 %v15300_v36, %v12097_v59  ;;  %v5076_v46 = vsel %vm1604_vm1, %v12313_v44, 0.0  ;;  %v5088_v30 = vsel %vm1604_vm1, %v12318_v29, 0.0  ;;  %v2441_v36 = vmul.f32 %v12306_v51, %v15279_v56 }
 0x46c   :  { %15297 = vst [vmem:[#allocation114_spill] sm:$0xff] %v12320_v47  ;;  %v12322_v9 = vpop.f32.mrb[16].mxu0  ;;  %v12324_v55 = vpop.xlane.xlu1 %2185  ;;  %v2435_v20 = vmul.f32 %v8834_v17, %v2177_v0  ;;  %v2596_v44 = vmul.f32 %v8826_v2, %v2516_v33  ;;  %v15305_v2 = vld [vmem:[#allocation97_spill] sm:$0xff]  ;;  %v15313_v47 = vld [vmem:[#allocation230_spill] sm:$0xff] }
 0x46d   :  { %15298 = vst [vmem:[#allocation137_spill] sm:$0xff] %v12322_v9  ;;  %v12326_v37 = vpop.eup %8835  ;;  %v12330_v60 = vpop.f32.mrb[17].mxu0  ;;  %8853 = vrcp.f32 %v12324_v55  ;;  %v4913_v29 = vmul.f32 1.442695, %v4809_v45  ;;  %v2522_v9 = vsub.f32 2.0, %v2442_v21  ;;  %v15307_v45 = vld [vmem:[#allocation98_spill] sm:$0xff] }
 0x46e   :  { %15299 = vst [vmem:[#allocation151_spill] sm:$0xff] %v12326_v37  ;;  %15301 = vst [vmem:[#allocation144_spill] sm:$0xff] %v12330_v60  ;;  %v12334_v14 = vpop.eup %8837  ;;  %5077 = vadd.xlane.f32.xlu0 %v5076_v46  ;;  %v2515_v59 = vsub.f32 2.0, %v2435_v20  ;;  %8855 = vpow2.f32 %v4915_v23  ;;  %v5073_v46 = vsel %vm1604_vm1, %v12326_v37, 0.0  ;;  %v15304_v20 = vld [vmem:[#allocation176_spill] sm:$0xff]  ;;  %v4764_v8 = vsel %vm1604_vm1, %v15313_v47, -inf }
 0x46f   :  { %v12341_v41 = vpop.eup %8839  ;;  %5089 = vadd.xlane.f32.xlu1 %v5088_v30  ;;  %v12344_v0 = vpop.xlane.xlu0 %2260  ;;  %v4812_v1 = vsub.f32 %v15304_v20, %v12147_v63  ;;  %v2444_v56 = vmul.f32 %v12334_v14, %v15288_v32  ;;  %v15310_v20 = vld [vmem:[#allocation229_spill] sm:$0xff] }
 0x470   :  { %15302 = vst [vmem:[#allocation152_spill] sm:$0xff] %v12341_v41  ;;  %15303 = vst [vmem:[#allocation118_spill] sm:$0xff] %v12344_v0  ;;  %v12348_v61 = vpop.xlane.xlu1 %2182  ;;  %v12352_v52 = vpop.eup %8841  ;;  %v2595_v60 = vmul.f32 %v8834_v17, %v2515_v59  ;;  %v5085_v23 = vsel %vm1604_vm1, %v12341_v41, 0.0  ;;  %v15309_v17 = vld [vmem:[#allocation135_spill] sm:$0xff]  ;;  %v4758_v21 = vsel %vm1604_vm1, %v15310_v20, -inf  ;;  %v4761_v41 = vsel %vm1604_vm1, %v15312_v31, -inf }
 0x471   :  { %8857 = vrcp.f32 %v12348_v61  ;;  %v12357_v30 = vpop.eup %8843  ;;  %v15315_v20 = vld [vmem:[#allocation177_spill] sm:$0xff] }
 0x472   :  { %8859 = vrcp.f32 %v15305_v2  ;;  %5074 = vadd.xlane.f32.xlu0 %v5073_v46  ;;  %v12364_v33 = vpop.eup %8845  ;;  %v2675_v59 = vmul.f32 %v15309_v17, %v2595_v60  ;;  %v15311_v46 = vld [vmem:[#allocation94_spill] sm:$0xff]  ;;  %v2521_v60 = vsub.f32 2.0, %v2441_v36  ;;  %v4919_v17 = vmul.f32 1.442695, %v4812_v1  ;;  %v15316_v31 = vld [vmem:[#allocation233_spill] sm:$0xff] }
 0x473   :  { %15306 = vst [vmem:[#allocation153_spill] sm:$0xff] %v12364_v33  ;;  %8861 = vrcp.f32 %v15307_v45  ;;  %5086 = vadd.xlane.f32.xlu1 %v5085_v23  ;;  %v12367_v63 = vpop.xlane.xlu0 %2269  ;;  %v12372_v37 = vpop.eup %8847  ;;  %v2676_v43 = vmul.f32 %v15311_v46, %v2596_v44  ;;  %v15314_v23 = vld [vmem:[#allocation232_spill] sm:$0xff]  ;;  %v4811_v0 = vsub.f32 %v15315_v20, %v12167_v27  ;;  %v2602_v44 = vmul.f32 %v12284_v22, %v2522_v9 }
 0x474   :  { %15308 = vst [vmem:[#allocation147_spill] sm:$0xff] %v12367_v63  ;;  %v12374_v32 = vpop.xlane.xlu1 %4645  ;;  %v12383_v63 = vsel %vm1604_vm1, %v15314_v23, -inf  ;;  %8863 = vpow2.f32 %v4913_v29  ;;  %7950 = vmatprep.mubr.msk.f32.mxu0 %vm1604_vm1, %v2675_v59  ;;  %v2524_v46 = vsub.f32 2.0, %v2444_v56  ;;  %v5094_v47 = vsel %vm1604_vm1, %v12364_v33, 0.0  ;;  %v12396_v29 = vpop.eup %8849  ;;  %v15320_v56 = vld [vmem:[#allocation179_spill] sm:$0xff] }
 0x475   :  { %7951 = vmatmul.mubr.msk.f32.gmra.mrb[46].mxu0 %vm1604_vm1, %v2676_v43  ;;  %v12394_v23 = vsel %vm1604_vm1, %v15316_v31, -inf  ;;  %15317 = vst [vmem:[#allocation122_spill] sm:$0xff] %v12396_v29  ;;  %v2443_v1 = vmul.f32 %v12352_v52, %v11832_v38  ;;  %v2446_v27 = vmul.f32 %v12357_v30, %v11851_v53  ;;  %v2445_v22 = vmul.f32 %v12372_v37, %v11868_v19  ;;  %v15318_v43 = vld [vmem:[#allocation195_spill] sm:$0xff]  ;;  %v12407_v36 = vpop.eup %8851  ;;  %v15322_v53 = vld [vmem:[#allocation93_spill] sm:$0xff]  ;;  %v15323_v19 = vld [vmem:[#allocation238_spill] sm:$0xff] }
 0x476   :  { %4759 = vmax.xlane.f32.xlu0 %v4758_v21  ;;  %8865 = vrcp.f32 %v15318_v43  ;;  %v4814_v59 = vsub.f32 %v15320_v56, %v12211_v24  ;;  %v15321_v21 = vld [vmem:[#allocation236_spill] sm:$0xff]  ;;  %v12419_v33 = vsel %vm1604_vm1, %v15322_v53, -inf  ;;  %v4917_v26 = vmul.f32 1.442695, %v4811_v0  ;;  %v15324_v24 = vld [vmem:[#allocation237_spill] sm:$0xff] }
 0x477   :  { %5095 = vadd.xlane.f32.xlu1 %v5094_v47  ;;  %v12405_v9 = vpop.xlane.xlu0 %2266  ;;  %v12415_v38 = vsel %vm1604_vm1, %v15321_v21, -inf  ;;  %v12423_v47 = vsel %vm1604_vm1, %v15323_v19, -inf  ;;  %v8854_v31 = vpop.eup %8853  ;;  %8867 = vpow2.f32 %v4919_v17  ;;  %v12428_v56 = vsel %vm1604_vm1, %v15324_v24, -inf }
 0x478   :  { %15319 = vst [vmem:[#allocation155_spill] sm:$0xff] %v12405_v9  ;;  %v12411_v20 = vpop.xlane.xlu1 %4642  ;;  %v2601_v9 = vmul.f32 %v12306_v51, %v2521_v60  ;;  %15325 = vst [vmem:[#allocation173_spill] sm:$0xff] %v12428_v56  ;;  %v12430_v5 = vpop.eup %8855  ;;  %v2604_v21 = vmul.f32 %v12334_v14, %v2524_v46  ;;  %v2438_v53 = vmul.f32 %v8854_v31, %v12324_v55  ;;  %v5091_v19 = vsel %vm1604_vm1, %v12396_v29, 0.0  ;;  %v15330_v14 = vld [vmem:[#allocation156_spill] sm:$0xff] }
 0x479   :  { %15326 = vst [vmem:[#allocation143_spill] sm:$0xff] %v12430_v5  ;;  %v12437_v48 = vmul.f32 %v15327_v42, %v2602_v44  ;;  %v2523_v60 = vsub.f32 2.0, %v2443_v1  ;;  %v2526_v0 = vsub.f32 2.0, %v2446_v27  ;;  %v2525_v17 = vsub.f32 2.0, %v2445_v22  ;;  %v15332_v27 = vld [vmem:[#allocation180_spill] sm:$0xff] }
 0x47a   :  { %4762 = vmax.xlane.f32.xlu0 %v4761_v41  ;;  %8869 = vrcp.f32 %v11952_v15  ;;  %v4923_v55 = vmul.f32 1.442695, %v4814_v59  ;;  %v2518_v41 = vsub.f32 2.0, %v2438_v53  ;;  %v2448_v1 = vmul.f32 %v12407_v36, %v11876_v25 }
 0x47b   :  { %15328 = vst [vmem:[#allocation129_spill] sm:$0xff] %v12437_v48  ;;  %v8858_v51 = vpop.eup %8857  ;;  %5092 = vadd.xlane.f32.xlu1 %v5091_v19  ;;  %v12440_v24 = vpop.xlane.xlu0 %4729  ;;  %8871 = vrcp.f32 %v15330_v14  ;;  %v4813_v22 = vsub.f32 %v15332_v27, %v12229_v16  ;;  %v2606_v16 = vmul.f32 %v12357_v30, %v2526_v0  ;;  %v15338_v0 = vld [vmem:[#allocation199_spill] sm:$0xff] }
 0x47c   :  { %15329 = vst [vmem:[#allocation159_spill] sm:$0xff] %v12440_v24  ;;  %v12442_v56 = vpop.eup %8859  ;;  %v2437_v46 = vmul.f32 %v8858_v51, %v12348_v61  ;;  %v12446_v29 = vpop.f32.mrb[18].mxu0  ;;  %8873 = vpow2.f32 %v4917_v26  ;;  %v15333_v24 = vld [vmem:[#allocation210_spill] sm:$0xff]  ;;  %v5100_v61 = vsel %vm1604_vm1, %v12430_v5, 0.0  ;;  %v2603_v26 = vmul.f32 %v12352_v52, %v2523_v60 }
 0x47d   :  { %15331 = vst [vmem:[#allocation96_spill] sm:$0xff] %v12446_v29  ;;  %v12448_v42 = vpop.xlane.xlu1 %2191  ;;  %v12450_v44 = vpop.eup %8861  ;;  %v12459_v59 = vmul.f32 %v15333_v24, %v2601_v9  ;;  %v15334_v29 = vld [vmem:[#allocation88_spill] sm:$0xff]  ;;  %v2447_v9 = vmul.f32 %v12442_v56, %v15305_v2  ;;  %v2598_v24 = vmul.f32 %v8854_v31, %v2518_v41  ;;  %v2528_v52 = vsub.f32 2.0, %v2448_v1  ;;  %v15336_v60 = vld [vmem:[#allocation182_spill] sm:$0xff] }
 0x47e   :  { %v12456_v19 = vpop.f32.mrb[19].mxu0  ;;  %v2517_v53 = vsub.f32 2.0, %v2437_v46  ;;  %8875 = vrcp.f32 %v12448_v42  ;;  %4765 = vmax.xlane.f32.xlu0 %v4764_v8  ;;  %v12465_v48 = vmul.f32 %v15334_v29, %v2604_v21  ;;  %v12467_v25 = vpop.eup %8863  ;;  %v2605_v8 = vmul.f32 %v12372_v37, %v2525_v17  ;;  %v15337_v31 = vld [vmem:[#allocation204_spill] sm:$0xff] }
 0x47f   :  { %15335 = vst [vmem:[#allocation160_spill] sm:$0xff] %v12467_v25  ;;  %5101 = vadd.xlane.f32.xlu1 %v5100_v61  ;;  %v12473_v46 = vpop.xlane.xlu0 %4726  ;;  %v2450_v27 = vmul.f32 %v12450_v44, %v15307_v45  ;;  %8877 = vpow2.f32 %v4923_v55  ;;  %v4921_v30 = vmul.f32 1.442695, %v4813_v22  ;;  %v4816_v2 = vsub.f32 %v15336_v60, %v12281_v6  ;;  %v15342_v22 = vld [vmem:[#allocation101_spill] sm:$0xff]  ;;  %v15343_v6 = vld [vmem:[#allocation166_spill] sm:$0xff] }
 0x480   :  { %v2597_v29 = vmul.f32 %v8858_v51, %v2517_v53  ;;  %v12480_v5 = vpop.eup %8865  ;;  %v15339_v41 = vsub.f32 %v15337_v31, %v15338_v0  ;;  %v5097_v45 = vsel %vm1604_vm1, %v12467_v25, 0.0  ;;  %v15340_v51 = vld [vmem:[#allocation119_spill] sm:$0xff]  ;;  %v2527_v1 = vsub.f32 2.0, %v2447_v9  ;;  %v15345_v31 = vld [vmem:[#allocation157_spill] sm:$0xff] }
 0x481   :  { %v12478_v21 = vpop.xlane.xlu1 %2188  ;;  %v12493_v55 = vpop.eup %8867  ;;  %v15344_v53 = vsub.f32 %v15342_v22, %v15343_v6  ;;  %v2678_v0 = vmul.f32 %v15345_v31, %v2598_v24  ;;  %v15347_v24 = vld [vmem:[#allocation183_spill] sm:$0xff] }
 0x482   :  { %8879 = vrcp.f32 %v12478_v21  ;;  %v4955_v37 = vmul.f32 1.442695, %v15339_v41  ;;  %4768 = vmax.xlane.f32.xlu0 %v12394_v23  ;;  %v2677_v17 = vmul.f32 %v15340_v51, %v2597_v29  ;;  %15341 = vst [vmem:[#allocation184_spill] sm:$0xff] %v12493_v55  ;;  %v2530_v23 = vsub.f32 2.0, %v2450_v27  ;;  %v15409_v25 = vld [vmem:[#allocation147_spill] sm:$0xff] }
 0x483   :  { %8881 = vrcp.f32 %v12019_v50  ;;  %v4953_v61 = vmul.f32 1.442695, %v15344_v53  ;;  %5098 = vadd.xlane.f32.xlu1 %v5097_v45  ;;  %v12499_v60 = vpop.xlane.xlu0 %2275  ;;  %v2449_v41 = vmul.f32 %v12480_v5, %v15318_v43  ;;  %v15346_v29 = vsub.f32 %v15175_v58, %v11976_v3  ;;  %v15348_v43 = vld [vmem:[#allocation211_spill] sm:$0xff] }
 0x484   :  { %8883 = vrcp.f32 %v12037_v10  ;;  %7953 = vmatprep.mubr.msk.f32.mxu0 %vm1604_vm1, %v2677_v17  ;;  %v12511_v22 = vpop.eup %8869  ;;  %v4927_v45 = vmul.f32 1.442695, %v4816_v2  ;;  %v4815_v27 = vsub.f32 %v15347_v24, %v12304_v57  ;;  %v12517_v6 = vmul.f32 %v15348_v43, %v2603_v26 }
 0x485   :  { %v4959_v51 = vmul.f32 1.442695, %v15346_v29  ;;  %8885 = vrcp.f32 %v12092_v54  ;;  %v12508_v9 = vpop.xlane.xlu1 %4651  ;;  %7954 = vmatmul.mubr.msk.f32.gmra.mrb[48].mxu0 %vm1604_vm1, %v2678_v0  ;;  %v12519_v3 = vpop.eup %8871  ;;  %v2608_v58 = vmul.f32 %v12407_v36, %v2528_v52  ;;  %v5106_v17 = vsel %vm1604_vm1, %v12493_v55, 0.0  ;;  %v15352_v52 = vld [vmem:[#allocation215_spill] sm:$0xff] }
 0x486   :  { %8887 = vpow2.f32 %v4921_v30  ;;  %4771 = vmax.xlane.f32.xlu0 %v12383_v63  ;;  %v15349_v30 = vld [vmem:[#allocation213_spill] sm:$0xff]  ;;  %v12528_v53 = vpop.eup %8873  ;;  %v2607_v57 = vmul.f32 %v12442_v56, %v2527_v1  ;;  %v15351_v26 = vsub.f32 %v15184_v4, %v11993_v62  ;;  %v12537_v63 = vmul.f32 %v15352_v52, %v2605_v8  ;;  %v15354_v4 = vld [vmem:[#allocation186_spill] sm:$0xff]  ;;  %v15360_v52 = vld [vmem:[#allocation187_spill] sm:$0xff] }
 0x487   :  { %8889 = vpow2.f32 %v4955_v37  ;;  %v12526_v2 = vmul.f32 %v15349_v30, %v2606_v16  ;;  %15350 = vst [vmem:[#allocation121_spill] sm:$0xff] %v12528_v53  ;;  %5107 = vadd.xlane.f32.xlu1 %v5106_v17  ;;  %v12534_v36 = vpop.xlane.xlu0 %2272  ;;  %v2610_v0 = vmul.f32 %v12450_v44, %v2530_v23  ;;  %v2529_v16 = vsub.f32 2.0, %v2449_v41  ;;  %v15359_v17 = vld [vmem:[#allocation222_spill] sm:$0xff]  ;;  %v15407_v55 = vld [vmem:[#allocation171_spill] sm:$0xff] }
 0x488   :  { %8891 = vpow2.f32 %v4953_v61  ;;  %v4957_v31 = vmul.f32 1.442695, %v15351_v26  ;;  %v8876_v37 = vpop.eup %8875  ;;  %v15353_v29 = vsub.f32 %v11197_v7, %v12050_v28  ;;  %v4925_v62 = vmul.f32 1.442695, %v4815_v27  ;;  %v15357_v28 = vld [vmem:[#allocation91_spill] sm:$0xff] }
 0x489   :  { %8893 = vpow2.f32 %v4959_v51  ;;  %v12543_v1 = vpop.xlane.xlu1 %4648  ;;  %v4818_v61 = vsub.f32 %v15354_v4, %v12374_v32  ;;  %v2440_v24 = vmul.f32 %v8876_v37, %v12448_v42  ;;  %v12548_v8 = vpop.eup %8877  ;;  %v15356_v44 = vsub.f32 %v11199_v34, %v12069_v18 }
 0x48a   :  { %v4963_v56 = vmul.f32 1.442695, %v15353_v29  ;;  %8895 = vpow2.f32 %v4927_v45  ;;  %15355 = vst [vmem:[#allocation185_spill] sm:$0xff] %v12548_v8  ;;  %4774 = vmax.xlane.f32.xlu0 %v12415_v38  ;;  %v5103_v7 = vsel %vm1604_vm1, %v12528_v53, 0.0  ;;  %v12558_v41 = vmul.f32 %v15357_v28, %v2608_v58  ;;  %v15358_v58 = vld [vmem:[#allocation220_spill] sm:$0xff] }
 0x48b   :  { %v4961_v23 = vmul.f32 1.442695, %v15356_v44  ;;  %8897 = vrcp.f32 %v12113_v40  ;;  %v2452_v32 = vmul.f32 %v12511_v22, %v11952_v15  ;;  %v12564_v42 = vmul.f32 %v12519_v3, %v15330_v14  ;;  %5104 = vadd.xlane.f32.xlu1 %v5103_v7  ;;  %v12566_v18 = vpop.xlane.xlu0 %4735 }
 0x48c   :  { %v8880_v51 = vpop.eup %8879  ;;  %8899 = vpow2.f32 %v4957_v31  ;;  %v2520_v34 = vsub.f32 2.0, %v2440_v24  ;;  %v12571_v27 = vpop.f32.mrb[20].mxu0  ;;  %v12576_v15 = vmul.f32 %v15358_v58, %v2607_v57  ;;  %v12579_v14 = vmul.f32 %v15359_v17, %v2610_v0 }
 0x48d   :  { %v12568_v38 = vpop.eup %8881  ;;  %8901 = vpow2.f32 %v4963_v56  ;;  %v2439_v45 = vmul.f32 %v8880_v51, %v12478_v21  ;;  %v12573_v43 = vpop.xlane.xlu1 %4657  ;;  %v2609_v26 = vmul.f32 %v12480_v5, %v2529_v16  ;;  %v4931_v31 = vmul.f32 1.442695, %v4818_v61 }
 0x48e   :  { %v12581_v30 = vpop.eup %8883  ;;  %8903 = vpow2.f32 %v4925_v62  ;;  %v4817_v29 = vsub.f32 %v15360_v52, %v12411_v20  ;;  %v12586_v21 = vpop.f32.mrb[21].mxu0  ;;  %v15361_v57 = vsub.f32 %v15224_v11, %v12126_v49  ;;  %4777 = vmax.xlane.f32.xlu0 %v12419_v33  ;;  %v5112_v5 = vsel %vm1604_vm1, %v12548_v8, 0.0  ;;  %v15371_v52 = vld [vmem:[#allocation167_spill] sm:$0xff]  ;;  %v15402_v8 = vld [vmem:[#allocation114_spill] sm:$0xff] }
 0x48f   :  { %v12588_v56 = vpop.eup %8885  ;;  %8905 = vpow2.f32 %v4961_v23  ;;  %v2519_v0 = vsub.f32 2.0, %v2439_v45  ;;  %v2532_v62 = vsub.f32 2.0, %v2452_v32  ;;  %v2531_v20 = vsub.f32 2.0, %v12564_v42  ;;  %5113 = vadd.xlane.f32.xlu1 %v5112_v5  ;;  %v12600_v24 = vpop.xlane.xlu0 %4732  ;;  %v15366_v42 = vld [vmem:[#allocation193_spill] sm:$0xff] }
 0x490   :  { %v4967_v4 = vmul.f32 1.442695, %v15361_v57  ;;  %v12596_v16 = vpop.eup %8887  ;;  %8907 = vrcp.f32 %v12162_v35  ;;  %v2600_v61 = vmul.f32 %v8876_v37, %v2520_v34  ;;  %v2454_v49 = vmul.f32 %v12568_v38, %v12019_v50  ;;  %v15365_v37 = vld [vmem:[#allocation190_spill] sm:$0xff] }
 0x491   :  { %15362 = vst [vmem:[#allocation149_spill] sm:$0xff] %v12596_v16  ;;  %v12602_v44 = vpop.eup %8889  ;;  %v2453_v11 = vmul.f32 %v12581_v30, %v12037_v10  ;;  %8909 = vrcp.f32 %v12177_v12  ;;  %v2599_v33 = vmul.f32 %v8880_v51, %v2519_v0  ;;  %v4655_v23 = vpop.xlane.xlu1 %4654  ;;  %v4929_v28 = vmul.f32 1.442695, %v4817_v29  ;;  %v15368_v51 = vld [vmem:[#allocation188_spill] sm:$0xff] }
 0x492   :  { %15363 = vst [vmem:[#allocation131_spill] sm:$0xff] %v12602_v44  ;;  %v12609_v7 = vpop.eup %8891  ;;  %8911 = vpow2.f32 %v4931_v31  ;;  %v4819_v32 = vsub.f32 %v15365_v37, %v12543_v1  ;;  %v4821_v34 = vsub.f32 %v15366_v42, %v4655_v23  ;;  %v2456_v50 = vmul.f32 %v12588_v56, %v12092_v54  ;;  %4780 = vmax.xlane.f32.xlu0 %v12423_v47  ;;  %v15370_v31 = vld [vmem:[#allocation209_spill] sm:$0xff]  ;;  %v15373_v54 = vld [vmem:[#allocation95_spill] sm:$0xff] }
 0x493   :  { %15364 = vst [vmem:[#allocation138_spill] sm:$0xff] %v12609_v7  ;;  %v12614_v45 = vpop.eup %8893  ;;  %8913 = vpow2.f32 %v4967_v4  ;;  %v5109_v10 = vsel %vm1604_vm1, %v12596_v16, 0.0  ;;  %v2679_v58 = vmul.f32 %v15368_v51, %v2599_v33  ;;  %v15372_v1 = vsub.f32 %v15370_v31, %v15371_v52  ;;  %v12628_v0 = vpop.xlane.xlu0 %2281  ;;  %v15374_v33 = vld [vmem:[#allocation189_spill] sm:$0xff]  ;;  %v15381_v52 = vld [vmem:[#allocation172_spill] sm:$0xff] }
 0x494   :  { %15367 = vst [vmem:[#allocation174_spill] sm:$0xff] %v12614_v45  ;;  %v12622_v17 = vpop.eup %8895  ;;  %8915 = vrcp.f32 %v12205_v39  ;;  %v4937_v57 = vmul.f32 1.442695, %v4821_v34  ;;  %5110 = vadd.xlane.f32.xlu1 %v5109_v10  ;;  %v2680_v4 = vmul.f32 %v15373_v54, %v2600_v61  ;;  %v2612_v5 = vmul.f32 %v12511_v22, %v2532_v62  ;;  %v15376_v61 = vld [vmem:[#allocation224_spill] sm:$0xff] }
 0x495   :  { %15369 = vst [vmem:[#allocation175_spill] sm:$0xff] %v12622_v17  ;;  %v4965_v29 = vmul.f32 1.442695, %v15372_v1  ;;  %v12631_v47 = vpop.eup %8897  ;;  %v2534_v23 = vsub.f32 2.0, %v2454_v49  ;;  %8917 = vrcp.f32 %v12224_v13  ;;  %v4820_v37 = vsub.f32 %v15374_v33, %v12508_v9  ;;  %v12637_v42 = vpop.xlane.xlu1 %4663  ;;  %7956 = vmatprep.mubr.msk.f32.mxu0 %vm1604_vm1, %v2679_v58  ;;  %v15378_v9 = vld [vmem:[#allocation173_spill] sm:$0xff] }
 0x496   :  { %v12640_v34 = vpop.eup %8899  ;;  %v2533_v10 = vsub.f32 2.0, %v2453_v11  ;;  %8919 = vpow2.f32 %v4929_v28  ;;  %v4933_v51 = vmul.f32 1.442695, %v4819_v32  ;;  %7957 = vmatmul.mubr.msk.f32.gmra.mrb[50].mxu0 %vm1604_vm1, %v2680_v4  ;;  %v12644_v31 = vmul.f32 %v15376_v61, %v2609_v26  ;;  %4783 = vmax.xlane.f32.xlu0 %v15378_v9  ;;  %v15383_v4 = vld [vmem:[#allocation192_spill] sm:$0xff]  ;;  %v15384_v61 = vld [vmem:[#allocation197_spill] sm:$0xff] }
 0x497   :  { %15375 = vst [vmem:[#allocation176_spill] sm:$0xff] %v12640_v34  ;;  %v12646_v22 = vpop.eup %8901  ;;  %v2611_v62 = vmul.f32 %v12519_v3, %v2531_v20  ;;  %8921 = vpow2.f32 %v4937_v57  ;;  %7959 = vmatprep.mubr.msk.f32.mxu0 %vm1604_vm1, %v12459_v59  ;;  %v5118_v49 = vsel %vm1604_vm1, %v12622_v17, 0.0  ;;  %v12656_v11 = vsel %vm1604_vm1, %v12602_v44, 0.0  ;;  %v12662_v3 = vpop.xlane.xlu0 %2278  ;;  %v15401_v17 = vld [vmem:[#allocation107_spill] sm:$0xff] }
 0x498   :  { %15377 = vst [vmem:[#allocation97_spill] sm:$0xff] %v12646_v22  ;;  %v12658_v28 = vpop.eup %8903  ;;  %v2536_v26 = vsub.f32 2.0, %v2456_v50  ;;  %v2455_v32 = vmul.f32 %v12631_v47, %v12113_v40  ;;  %8923 = vpow2.f32 %v4965_v29  ;;  %5119 = vadd.xlane.f32.xlu1 %v5118_v49  ;;  %v12666_v59 = vsel %vm1604_vm1, %v12609_v7, 0.0  ;;  %v15382_v50 = vld [vmem:[#allocation123_spill] sm:$0xff]  ;;  %v15385_v49 = vld [vmem:[#allocation129_spill] sm:$0xff] }
 0x499   :  { %15379 = vst [vmem:[#allocation98_spill] sm:$0xff] %v12658_v28  ;;  %v12668_v20 = vpop.eup %8905  ;;  %v2614_v58 = vmul.f32 %v12568_v38, %v2534_v23  ;;  %8925 = vrcp.f32 %v15381_v52  ;;  %v4935_v1 = vmul.f32 1.442695, %v4820_v37  ;;  %v4661_v57 = vpop.xlane.xlu1 %4660  ;;  %v12673_v54 = vmul.f32 %v15382_v50, %v2612_v5  ;;  %v15386_v23 = vld [vmem:[#allocation145_spill] sm:$0xff] }
 0x49a   :  { %15380 = vst [vmem:[#allocation135_spill] sm:$0xff] %v12668_v20  ;;  %v12675_v40 = vpop.eup %8907  ;;  %v2613_v29 = vmul.f32 %v12581_v30, %v2533_v10  ;;  %8927 = vpow2.f32 %v4933_v51  ;;  %v4822_v33 = vsub.f32 %v15383_v4, %v12573_v43  ;;  %v4823_v9 = vsub.f32 %v15384_v61, %v4661_v57  ;;  %7960 = vmatmul.mubr.msk.f32.gmra.mrb[52].mxu0 %vm1604_vm1, %v15385_v49  ;;  %v15387_v30 = vld [vmem:[#allocation235_spill] sm:$0xff]  ;;  %v15389_v50 = vld [vmem:[#allocation89_spill] sm:$0xff] }
 0x49b   :  { %v12683_v38 = vpop.eup %8909  ;;  %8929 = vrcp.f32 %v15386_v23  ;;  %7962 = vmatprep.mubr.msk.f32.mxu0 %vm1604_vm1, %v12517_v6  ;;  %v5115_v5 = vsel %vm1604_vm1, %v12658_v28, 0.0  ;;  %v12691_v37 = vmul.f32 %v15387_v30, %v2611_v62  ;;  %v12695_v43 = vsel %vm1604_vm1, %v12614_v45, 0.0  ;;  %v15390_v4 = vld [vmem:[#allocation225_spill] sm:$0xff]  ;;  %v12703_v44 = vpop.xlane.xlu0 %4741  ;;  %v15393_v30 = vld [vmem:[#allocation196_spill] sm:$0xff] }
 0x49c   :  { %v12697_v10 = vpop.eup %8911  ;;  %v2616_v51 = vmul.f32 %v12588_v56, %v2536_v26  ;;  %v2535_v57 = vsub.f32 2.0, %v2455_v32  ;;  %v15391_v61 = vsub.f32 %v15389_v50, %v15390_v4  ;;  %v4941_v6 = vmul.f32 1.442695, %v4823_v9  ;;  %5116 = vadd.xlane.f32.xlu1 %v5115_v5  ;;  %v12713_v56 = vpop.f32.mrb[22].mxu0 }
 0x49d   :  { %15388 = vst [vmem:[#allocation94_spill] sm:$0xff] %v12697_v10  ;;  %v12705_v7 = vpop.eup %8913  ;;  %v12709_v62 = vmul.f32 %v12675_v40, %v12162_v35  ;;  %8931 = vpow2.f32 %v4935_v1  ;;  %v4824_v45 = vsub.f32 %v15393_v30, %v12637_v42  ;;  %v4670_v26 = vpop.xlane.xlu1 %4669  ;;  %v12717_v32 = vsel %vm1604_vm1, %v12640_v34, 0.0  ;;  %v15394_v35 = vld [vmem:[#allocation134_spill] sm:$0xff]  ;;  %v15395_v42 = vld [vmem:[#allocation113_spill] sm:$0xff] }
 0x49e   :  { %v4969_v49 = vmul.f32 1.442695, %v15391_v61  ;;  %15392 = vst [vmem:[#allocation177_spill] sm:$0xff] %v12705_v7  ;;  %v12719_v9 = vpop.eup %8915  ;;  %v4939_v5 = vmul.f32 1.442695, %v4822_v33  ;;  %8933 = vpow2.f32 %v4941_v6  ;;  %v12721_v50 = vpop.f32.mrb[23].mxu0  ;;  %7963 = vmatmul.mubr.msk.f32.gmra.mrb[54].mxu0 %vm1604_vm1, %v12465_v48  ;;  %v12726_v1 = vmul.f32 %v15394_v35, %v2613_v29 }
 0x49f   :  { %v12729_v4 = vmul.f32 %v15395_v42, %v2614_v58  ;;  %v12731_v61 = vpop.eup %8917  ;;  %v2457_v30 = vmul.f32 %v12683_v38, %v12177_v12  ;;  %v15396_v34 = vld [vmem:[#allocation118_spill] sm:$0xff]  ;;  %7965 = vmatprep.mubr.msk.f32.mxu0 %vm1604_vm1, %v12537_v63  ;;  %v5124_v33 = vsel %vm1604_vm1, %v12697_v10, 0.0  ;;  %v12742_v48 = vsel %vm1604_vm1, %v12646_v22, 0.0  ;;  %v12747_v6 = vpop.xlane.xlu0 %4738  ;;  %v15398_v12 = vld [vmem:[#allocation67_spill] sm:$0xff]  ;;  %v15400_v10 = vld [vmem:[#allocation104_spill] sm:$0xff] }
 0x4a0   :  { %8935 = vrcp.f32 %v15396_v34  ;;  %v12744_v29 = vpop.eup %8919  ;;  %v2615_v58 = vmul.f32 %v12631_v47, %v2535_v57  ;;  %5125 = vadd.xlane.f32.xlu1 %v5124_v33  ;;  %v12750_v35 = vmul.f32 %v15398_v12, %v2616_v51  ;;  %v12754_v63 = vsel %vm1604_vm1, %v12668_v20, 0.0  ;;  %v15404_v51 = vld [vmem:[#allocation200_spill] sm:$0xff]  ;;  %v15405_v12 = vld [vmem:[#allocation99_spill] sm:$0xff] }
 0x4a1   :  { %15397 = vst [vmem:[#allocation195_spill] sm:$0xff] %v12744_v29  ;;  %8937 = vpow2.f32 %v4969_v49  ;;  %v12756_v42 = vpop.eup %8921  ;;  %v2538_v22 = vsub.f32 2.0, %v12709_v62  ;;  %v4841_v28 = vsub.f32 %v15401_v17, %v15400_v10  ;;  %v4943_v47 = vmul.f32 1.442695, %v4824_v45  ;;  %v4667_v57 = vpop.xlane.xlu1 %4666  ;;  %v15406_v10 = vld [vmem:[#allocation154_spill] sm:$0xff] }
 0x4a2   :  { %15399 = vst [vmem:[#allocation179_spill] sm:$0xff] %v12756_v42  ;;  %8939 = vrcp.f32 %v15402_v8  ;;  %v12762_v49 = vpop.eup %8923  ;;  %v4826_v33 = vsub.f32 %v15404_v51, %v4670_v26  ;;  %v4825_v16 = vsub.f32 %v15405_v12, %v4667_v57  ;;  %7966 = vmatmul.mubr.msk.f32.gmra.mrb[56].mxu0 %vm1604_vm1, %v12526_v2  ;;  %v5133_v62 = vsel %vm1604_vm1, %v12756_v42, 0.0  ;;  %v15411_v57 = vld [vmem:[#allocation155_spill] sm:$0xff] }
 0x4a3   :  { %15403 = vst [vmem:[#allocation103_spill] sm:$0xff] %v12762_v49  ;;  %8941 = vpow2.f32 %v4939_v5  ;;  %v12770_v20 = vpop.eup %8925  ;;  %v2537_v17 = vsub.f32 2.0, %v2457_v30  ;;  %v15408_v45 = vsub.f32 %v15406_v10, %v15407_v55  ;;  %5134 = vadd.xlane.f32.xlu0 %v5133_v62  ;;  %7968 = vmatprep.mubr.msk.f32.mxu0 %vm1604_vm1, %v12576_v15  ;;  %v5121_v26 = vsel %vm1604_vm1, %v12744_v29, 0.0  ;;  %v12787_v51 = vpop.xlane.xlu0 %2287  ;;  %v15412_v10 = vld [vmem:[#allocation133_spill] sm:$0xff] }
 0x4a4   :  { %8943 = vrcp.f32 %v15409_v25  ;;  %v12780_v2 = vpop.eup %8927  ;;  %v2460_v5 = vmul.f32 %v12719_v9, %v12205_v39  ;;  %v2459_v30 = vmul.f32 %v12731_v61, %v12224_v13  ;;  %v4945_v55 = vmul.f32 1.442695, %v4825_v16  ;;  %5122 = vadd.xlane.f32.xlu1 %v5121_v26  ;;  %v15413_v16 = vld [vmem:[#allocation202_spill] sm:$0xff] }
 0x4a5   :  { %v4975_v53 = vmul.f32 1.442695, %v15408_v45  ;;  %15410 = vst [vmem:[#allocation156_spill] sm:$0xff] %v12780_v2  ;;  %8945 = vrcp.f32 %v15411_v57  ;;  %v12789_v12 = vpop.eup %8929  ;;  %v4977_v15 = vmul.f32 1.442695, %v4841_v28  ;;  %v4676_v62 = vpop.xlane.xlu1 %4675  ;;  %v12792_v45 = vmul.f32 %v15412_v10, %v2615_v58 }
 0x4a6   :  { %8947 = vpow2.f32 %v4943_v47  ;;  %v12796_v39 = vsel %vm1604_vm1, %v12705_v7, 0.0  ;;  %v2462_v13 = vmul.f32 %v12770_v20, %v15381_v52  ;;  %v4947_v42 = vmul.f32 1.442695, %v4826_v33  ;;  %7969 = vmatmul.mubr.msk.f32.gmra.mrb[58].mxu0 %vm1604_vm1, %v12558_v41 }
 0x4a7   :  { %8949 = vpow2.f32 %v4945_v55  ;;  %v4828_v26 = vsub.f32 %v15413_v16, %v4676_v62  ;;  %v12803_v28 = vpop.eup %8931  ;;  %v2618_v47 = vmul.f32 %v12675_v40, %v2538_v22  ;;  %v2617_v58 = vmul.f32 %v12683_v38, %v2537_v17  ;;  %7971 = vmatprep.mubr.msk.f32.mxu0 %vm1604_vm1, %v12644_v31  ;;  %v12819_v40 = vpop.xlane.xlu0 %2284  ;;  %v15416_v31 = vld [vmem:[#allocation6_spill] sm:$0xff]  ;;  %v15417_v17 = vld [vmem:[#allocation137_spill] sm:$0xff] }
 0x4a8   :  { %15414 = vst [vmem:[#allocation180_spill] sm:$0xff] %v12803_v28  ;;  %v5127_v10 = vsel %vm1604_vm1, %v12780_v2, 0.0  ;;  %v12813_v52 = vsel %vm1604_vm1, %v12762_v49, 0.0  ;;  %v12815_v33 = vpop.eup %8933  ;;  %v2540_v55 = vsub.f32 2.0, %v2460_v5  ;;  %v2539_v41 = vsub.f32 2.0, %v2459_v30  ;;  %v15419_v30 = vld [vmem:[#allocation144_spill] sm:$0xff] }
 0x4a9   :  { %15415 = vst [vmem:[#allocation210_spill] sm:$0xff] %v12815_v33  ;;  %8951 = vpow2.f32 %v4975_v53  ;;  %v2461_v22 = vmul.f32 %v12789_v12, %v15386_v23  ;;  %5128 = vadd.xlane.f32.xlu1 %v5127_v10  ;;  %v3465_v62 = vmul.f32 %v15417_v17, %v15416_v31  ;;  %v4951_v16 = vmul.f32 1.442695, %v4828_v26  ;;  %v4673_v7 = vpop.xlane.xlu1 %4672  ;;  %v15420_v2 = vld [vmem:[#allocation5_spill] sm:$0xff]  ;;  %v15421_v10 = vld [vmem:[#allocation100_spill] sm:$0xff]  ;;  %v15422_v26 = vld [vmem:[#allocation115_spill] sm:$0xff] }
 0x4aa   :  { %v12821_v38 = vpop.eup %8935  ;;  %8953 = vpow2.f32 %v4977_v15  ;;  %v5139_v49 = vsel %vm1604_vm1, %v12815_v33, 0.0  ;;  %v2542_v53 = vsub.f32 2.0, %v2462_v13  ;;  %v3464_v23 = vmul.f32 %v15420_v2, %v15419_v30  ;;  %7972 = vmatmul.mubr.msk.f32.gmra.mrb[60].mxu0 %vm1604_vm1, %v12579_v14 }
 0x4ab   :  { %v12827_v5 = vpop.eup %8937  ;;  %8955 = vpow2.f32 %v4947_v42  ;;  %v4827_v29 = vsub.f32 %v15421_v10, %v4673_v7  ;;  %5140 = vadd.xlane.f32.xlu0 %v5139_v49  ;;  %7974 = vmatprep.mubr.msk.f32.mxu0 %vm1604_vm1, %v12691_v37  ;;  %v5130_v13 = vsel %vm1604_vm1, %v12803_v28, 0.0  ;;  %v12842_v17 = vmul.f32 %v15422_v26, %v2617_v58  ;;  %v15423_v42 = vld [vmem:[#allocation130_spill] sm:$0xff]  ;;  %v12852_v37 = vpop.xlane.xlu0 %4744 }
 0x4ac   :  { %15418 = vst [vmem:[#allocation88_spill] sm:$0xff] %v12827_v5  ;;  %v12834_v15 = vpop.eup %8939  ;;  %8957 = vrcp.f32 %v12499_v60  ;;  %v12845_v30 = vmul.f32 %v15423_v42, %v2618_v47  ;;  %v2541_v14 = vsub.f32 2.0, %v2461_v22  ;;  %v2463_v49 = vmul.f32 %v12821_v38, %v15396_v34  ;;  %15425 = vst [vmem:[#allocation204_spill] sm:$0xff] %v12852_v37  ;;  %v7919_v42 = vpop.f32.mrb[24].mxu0 }
 0x4ad   :  { %v12847_v7 = vpop.eup %8941  ;;  %8959 = vrcp.f32 %v12534_v36  ;;  %v4949_v10 = vmul.f32 1.442695, %v4827_v29  ;;  %5131 = vadd.xlane.f32.xlu1 %v5130_v13  ;;  %v2620_v58 = vmul.f32 %v12719_v9, %v2540_v55  ;;  %v2619_v26 = vmul.f32 %v12731_v61, %v2539_v41  ;;  %v12859_v22 = vpop.xlane.xlu1 %4705  ;;  %v15426_v13 = vld [vmem:[#allocation14_spill] sm:$0xff]  ;;  %v15428_v55 = vld [vmem:[#allocation159_spill] sm:$0xff]  ;;  %v15429_v41 = vld [vmem:[#allocation217_spill] sm:$0xff] }
 0x4ae   :  { %15424 = vst [vmem:[#allocation182_spill] sm:$0xff] %v12847_v7  ;;  %v12854_v2 = vpop.eup %8943  ;;  %v3563_v47 = vsel %vm76_vm0, %v3465_v62, 0.0  ;;  %8961 = vpow2.f32 %v4951_v16  ;;  %v2622_v34 = vmul.f32 %v12770_v20, %v2542_v53  ;;  %v3544_v29 = vsel %vm76_vm0, %v3464_v23, 0.0  ;;  %v3105_v28 = vpop.f32.mrb[25].mxu0  ;;  %7975 = vmatmul.mubr.msk.f32.gmra.mrb[62].mxu0 %vm1604_vm1, %v12673_v54  ;;  %v15430_v16 = vld [vmem:[#allocation13_spill] sm:$0xff] }
 0x4af   :  { %v12861_v31 = vpop.eup %8945  ;;  %8963 = vpow2.f32 %v4949_v10  ;;  %v3473_v33 = vmul.f32 %v7919_v42, %v15426_v13  ;;  %v2464_v61 = vmul.f32 %v12834_v15, %v15402_v8  ;;  %v4846_v62 = vsub.f32 %v15429_v41, %v15428_v55  ;;  %7977 = vmatprep.mubr.msk.f32.mxu0 %vm1604_vm1, %v12726_v1  ;;  %v12885_v42 = vpop.xlane.xlu0 %2293 }
 0x4b0   :  { %v12868_v9 = vpop.eup %8947  ;;  %v3472_v37 = vmul.f32 %v15430_v16, %v3105_v28  ;;  %v5136_v20 = vsel %vm1604_vm1, %v12847_v7, 0.0  ;;  %v2621_v54 = vmul.f32 %v12789_v12, %v2541_v14  ;;  %v2543_v23 = vsub.f32 2.0, %v2463_v49 }
 0x4b1   :  { %15427 = vst [vmem:[#allocation199_spill] sm:$0xff] %v12868_v9  ;;  %v12879_v53 = vpop.eup %8949  ;;  %v2466_v10 = vmul.f32 %v12854_v2, %v15409_v25  ;;  %v3564_v8 = vsel %vm76_vm0, %v3473_v33, 0.0  ;;  %5137 = vadd.xlane.f32.xlu1 %v5136_v20  ;;  %8965 = vrcp.f32 %v12628_v0  ;;  %v12891_v55 = vpop.xlane.xlu1 %4708  ;;  %v2465_v25 = vmul.f32 %v12861_v31, %v15411_v57  ;;  %v15433_v20 = vld [vmem:[#allocation8_spill] sm:$0xff] }
 0x4b2   :  { %15431 = vst [vmem:[#allocation119_spill] sm:$0xff] %v12879_v53  ;;  %v12888_v28 = vadd.f32 %v3564_v8, %v3563_v47  ;;  %v3545_v1 = vsel %vm76_vm0, %v3472_v37, 0.0  ;;  %v5145_v12 = vsel %vm1604_vm1, %v12879_v53, 0.0  ;;  %8967 = vrcp.f32 %v12662_v3  ;;  %7978 = vmatmul.mubr.msk.f32.gmra.mrb[64].mxu0 %vm1604_vm1, %v12729_v4  ;;  %v15434_v8 = vld [vmem:[#allocation96_spill] sm:$0xff] }
 0x4b3   :  { %v12895_v14 = vpop.eup %8951  ;;  %v12900_v33 = vadd.f32 %v3545_v1, %v3544_v29  ;;  %5146 = vadd.xlane.f32.xlu0 %v5145_v12  ;;  %v12906_v49 = vsel %vm1604_vm1, %v12827_v5, 0.0  ;;  %v2544_v47 = vsub.f32 2.0, %v2464_v61  ;;  %v4987_v41 = vmul.f32 1.442695, %v4846_v62  ;;  %7980 = vmatprep.mubr.msk.f32.mxu0 %vm1604_vm1, %v12792_v45  ;;  %v15435_v1 = vld [vmem:[#allocation218_spill] sm:$0xff]  ;;  %v12921_v13 = vpop.xlane.xlu0 %2290  ;;  %v15436_v61 = vld [vmem:[#allocation116_spill] sm:$0xff] }
 0x4b4   :  { %v12908_v37 = vpop.eup %8953  ;;  %v3467_v16 = vmul.f32 %v15434_v8, %v15433_v20  ;;  %v5142_v57 = vsel %vm1604_vm1, %v12868_v9, 0.0  ;;  %v2623_v4 = vmul.f32 %v12821_v38, %v2543_v23  ;;  %v4845_v12 = vsub.f32 %v15435_v1, %v12473_v46  ;;  %v15437_v5 = vld [vmem:[#allocation146_spill] sm:$0xff]  ;;  %v15438_v9 = vld [vmem:[#allocation136_spill] sm:$0xff]  ;;  %v15443_v1 = vld [vmem:[#allocation105_spill] sm:$0xff] }
 0x4b5   :  { %15432 = vst [vmem:[#allocation101_spill] sm:$0xff] %v12900_v33  ;;  %v12916_v29 = vpop.eup %8955  ;;  %5143 = vadd.xlane.f32.xlu1 %v5142_v57  ;;  %v2699_v62 = vmul.f32 %v15436_v61, %v2619_v26  ;;  %v2700_v8 = vmul.f32 %v15437_v5, %v2620_v58  ;;  %v2546_v45 = vsub.f32 2.0, %v2466_v10  ;;  %v12927_v53 = vpop.xlane.xlu1 %4717  ;;  %v12930_v7 = vmul.f32 %v15438_v9, %v2621_v54  ;;  %v15439_v33 = vld [vmem:[#allocation117_spill] sm:$0xff]  ;;  %v15440_v5 = vld [vmem:[#allocation7_spill] sm:$0xff] }
 0x4b6   :  { %v12925_v20 = vpop.eup %8957  ;;  %v12933_v38 = vmul.f32 %v15439_v33, %v2622_v34  ;;  %v12937_v46 = vsel %vm1604_vm1, %v12895_v14, 0.0  ;;  %v2545_v26 = vsub.f32 2.0, %v2465_v25  ;;  %v3466_v58 = vmul.f32 %v15440_v5, %v12456_v19  ;;  %7981 = vmatmul.mubr.msk.f32.gmra.mrb[66].mxu0 %vm1604_vm1, %v12750_v35  ;;  %v15441_v33 = vld [vmem:[#allocation158_spill] sm:$0xff] }
 0x4b7   :  { %v12939_v23 = vpop.eup %8959  ;;  %8969 = vrcp.f32 %v12819_v40  ;;  %v12948_v9 = vsel %vm1604_vm1, %v12908_v37, 0.0  ;;  %v2624_v54 = vmul.f32 %v12834_v15, %v2544_v47  ;;  %v12954_v10 = vsel %vm76_vm0, %v3467_v16, 0.0  ;;  %7983 = vmatprep.mubr.msk.f32.mxu0 %vm1604_vm1, %v12842_v17  ;;  %v12965_v15 = vpop.xlane.xlu0 %2299  ;;  %v15442_v47 = vld [vmem:[#allocation178_spill] sm:$0xff] }
 0x4b8   :  { %v12950_v34 = vpop.eup %8961  ;;  %8971 = vpow2.f32 %v4987_v41  ;;  %v5148_v19 = vsel %vm1604_vm1, %v12916_v29, 0.0  ;;  %v4985_v35 = vmul.f32 1.442695, %v4845_v12  ;;  %v4848_v57 = vsub.f32 %v15441_v33, %v12566_v18 }
 0x4b9   :  { %v12960_v25 = vpop.eup %8963  ;;  %8973 = vrcp.f32 %v12787_v51  ;;  %5149 = vadd.xlane.f32.xlu1 %v5148_v19  ;;  %v12968_v16 = vmul.f32 %v15442_v47, %v2623_v4  ;;  %v2626_v41 = vmul.f32 %v12854_v2, %v2546_v45  ;;  %v2468_v17 = vmul.f32 %v12925_v20, %v12499_v60  ;;  %v12975_v12 = vpop.xlane.xlu1 %4723  ;;  %v15444_v2 = vld [vmem:[#allocation10_spill] sm:$0xff] }
 0x4ba   :  { %v4838_v61 = vsub.f32 %v15443_v1, %v12859_v22  ;;  %v5151_v18 = vsel %vm1604_vm1, %v12960_v25, 0.0  ;;  %v2625_v19 = vmul.f32 %v12861_v31, %v2545_v26  ;;  %v12981_v33 = vsel %vm76_vm0, %v3466_v58, 0.0  ;;  %7984 = vmatmul.mubr.msk.f32.gmra.mrb[68].mxu0 %vm1604_vm1, %v12845_v30  ;;  %v15445_v22 = vld [vmem:[#allocation106_spill] sm:$0xff]  ;;  %v15447_v58 = vld [vmem:[#allocation9_spill] sm:$0xff] }
 0x4bb   :  { %v2467_v4 = vmul.f32 %v12939_v23, %v12534_v36  ;;  %v3469_v45 = vmul.f32 %v12571_v27, %v15444_v2  ;;  %5152 = vadd.xlane.f32.xlu0 %v5151_v18  ;;  %v12989_v60 = vpop.eup %8965  ;;  %v4839_v47 = vsub.f32 %v15445_v22, %v12891_v55  ;;  %8975 = vrcp.f32 %v12921_v13  ;;  %7986 = vmatprep.mubr.msk.f32.mxu0 %vm1604_vm1, %v2699_v62  ;;  %v15446_v36 = vld [vmem:[#allocation161_spill] sm:$0xff]  ;;  %v15448_v18 = vld [vmem:[#allocation219_spill] sm:$0xff]  ;;  %v13006_v22 = vpop.xlane.xlu0 %2296 }
 0x4bc   :  { %v5154_v31 = vsel %vm1604_vm1, %v12950_v34, 0.0  ;;  %v12998_v26 = vmul.f32 %v15446_v36, %v2624_v54  ;;  %v13000_v27 = vpop.eup %8967  ;;  %8977 = vpow2.f32 %v4985_v35  ;;  %v4991_v30 = vmul.f32 1.442695, %v4848_v57  ;;  %v15449_v54 = vld [vmem:[#allocation148_spill] sm:$0xff] }
 0x4bd   :  { %v3468_v1 = vmul.f32 %v15447_v58, %v12586_v21  ;;  %v4847_v55 = vsub.f32 %v15448_v18, %v12600_v24  ;;  %5155 = vadd.xlane.f32.xlu1 %v5154_v31  ;;  %v2548_v62 = vsub.f32 2.0, %v2468_v17  ;;  %v4971_v2 = vmul.f32 1.442695, %v4838_v61  ;;  %v13009_v5 = vpop.xlane.xlu1 %4720  ;;  %v7922_v24 = vpop.f32.mrb[26].mxu0  ;;  %v15450_v17 = vld [vmem:[#allocation169_spill] sm:$0xff] }
 0x4be   :  { %8979 = vrcp.f32 %v12885_v42  ;;  %v13012_v36 = vmul.f32 %v15449_v54, %v2626_v41  ;;  %v2547_v35 = vsub.f32 2.0, %v2467_v4  ;;  %v13015_v57 = vsel %vm76_vm0, %v3469_v45, 0.0  ;;  %7987 = vmatmul.mubr.msk.f32.gmra.mrb[70].mxu0 %vm1604_vm1, %v2700_v8  ;;  %v15451_v41 = vld [vmem:[#allocation16_spill] sm:$0xff]  ;;  %v3115_v45 = vpop.f32.mrb[27].mxu0 }
 0x4bf   :  { %v2470_v21 = vmul.f32 %v12989_v60, %v12628_v0  ;;  %5158 = vadd.xlane.f32.xlu0 %v12666_v59  ;;  %v2705_v61 = vmul.f32 %v15450_v17, %v2625_v19  ;;  %v2469_v31 = vmul.f32 %v13000_v27, %v12662_v3  ;;  %v4973_v18 = vmul.f32 1.442695, %v4839_v47  ;;  %7989 = vmatprep.mubr.msk.f32.mxu0 %vm1604_vm1, %v12930_v7  ;;  %v15452_v19 = vld [vmem:[#allocation15_spill] sm:$0xff]  ;;  %v13035_v3 = vpop.xlane.xlu0 %2305  ;;  %v15453_v7 = vld [vmem:[#allocation212_spill] sm:$0xff] }
 0x4c0   :  { %8981 = vrcp.f32 %v13006_v22  ;;  %v3475_v4 = vmul.f32 %v7922_v24, %v15451_v41  ;;  %v13031_v8 = vsel %vm76_vm0, %v3468_v1, 0.0  ;;  %v4989_v59 = vmul.f32 1.442695, %v4847_v55 }
 0x4c1   :  { %v13028_v0 = vpop.eup %8969  ;;  %8983 = vpow2.f32 %v4991_v30  ;;  %v3474_v54 = vmul.f32 %v15452_v19, %v3115_v45  ;;  %5161 = vadd.xlane.f32.xlu1 %v12656_v11  ;;  %v2628_v24 = vmul.f32 %v12925_v20, %v2548_v62  ;;  %v4842_v17 = vsub.f32 %v15453_v7, %v12927_v53  ;;  %v13043_v58 = vpop.xlane.xlu1 %5029  ;;  %v15460_v7 = vld [vmem:[#allocation124_spill] sm:$0xff] }
 0x4c2   :  { %v13037_v47 = vpop.eup %8971  ;;  %8985 = vpow2.f32 %v4971_v2  ;;  %v3602_v30 = vsel %vm76_vm0, %v3475_v4, 0.0  ;;  %v2627_v55 = vmul.f32 %v12939_v23, %v2547_v35  ;;  %v2550_v45 = vsub.f32 2.0, %v2470_v21  ;;  %7990 = vmatmul.mubr.msk.f32.gmra.mrb[72].mxu0 %vm1604_vm1, %v12933_v38  ;;  %v15454_v23 = vld [vmem:[#allocation221_spill] sm:$0xff]  ;;  %v15456_v38 = vld [vmem:[#allocation108_spill] sm:$0xff] }
 0x4c3   :  { %v13045_v1 = vpop.eup %8973  ;;  %8987 = vrcp.f32 %v12965_v15  ;;  %v13050_v11 = vadd.f32 %v3602_v30, %v12954_v10  ;;  %5164 = vadd.xlane.f32.xlu0 %v12717_v32  ;;  %v2549_v53 = vsub.f32 2.0, %v2469_v31  ;;  %v2471_v20 = vmul.f32 %v13028_v0, %v12819_v40  ;;  %7992 = vmatprep.mubr.msk.f32.mxu0 %vm1604_vm1, %v12968_v16  ;;  %v15455_v10 = vld [vmem:[#allocation12_spill] sm:$0xff]  ;;  %v13070_v40 = vpop.xlane.xlu0 %2302  ;;  %v15457_v16 = vld [vmem:[#allocation11_spill] sm:$0xff] }
 0x4c4   :  { %8989 = vpow2.f32 %v4973_v18  ;;  %v3583_v2 = vsel %vm76_vm0, %v3474_v54, 0.0  ;;  %v4850_v62 = vsub.f32 %v15454_v23, %v12703_v44  ;;  %v3471_v35 = vmul.f32 %v12713_v56, %v15455_v10 }
 0x4c5   :  { %v4843_v21 = vsub.f32 %v15456_v38, %v13009_v5  ;;  %v13067_v32 = vadd.f32 %v3583_v2, %v12981_v33  ;;  %5167 = vadd.xlane.f32.xlu1 %v12695_v43  ;;  %v13072_v31 = vpop.eup %8975  ;;  %v3470_v18 = vmul.f32 %v15457_v16, %v12721_v50  ;;  %v2472_v44 = vmul.f32 %v13045_v1, %v12787_v51  ;;  %v13079_v56 = vpop.xlane.xlu1 %5026  ;;  %v15458_v43 = vld [vmem:[#allocation214_spill] sm:$0xff]  ;;  %v15459_v50 = vld [vmem:[#allocation231_spill] sm:$0xff] }
 0x4c6   :  { %v4979_v4 = vmul.f32 1.442695, %v4842_v17  ;;  %8991 = vrcp.f32 %v13070_v40  ;;  %v13081_v5 = vpop.eup %8977  ;;  %v4844_v33 = vsub.f32 %v15458_v43, %v12975_v12  ;;  %7993 = vmatmul.mubr.msk.f32.gmra.mrb[74].mxu0 %vm1604_vm1, %v12998_v26  ;;  %v2707_v54 = vmul.f32 %v15459_v50, %v2627_v55 }
 0x4c7   :  { %8993 = vpow2.f32 %v4989_v59  ;;  %5170 = vadd.xlane.f32.xlu0 %v12754_v63  ;;  %v2708_v51 = vmul.f32 %v15460_v7, %v2628_v24  ;;  %v2630_v30 = vmul.f32 %v12989_v60, %v2550_v45  ;;  %v2629_v2 = vmul.f32 %v13000_v27, %v2549_v53  ;;  %7995 = vmatprep.mubr.msk.f32.mxu0 %vm1604_vm1, %v2705_v61  ;;  %v13104_v24 = vpop.xlane.xlu0 %2311  ;;  %v15461_v61 = vld [vmem:[#allocation109_spill] sm:$0xff]  ;;  %v7925_v53 = vpop.f32.mrb[28].mxu0 }
 0x4c8   :  { %v13090_v17 = vpop.eup %8979  ;;  %v2551_v23 = vsub.f32 2.0, %v2471_v20  ;;  %8995 = vrcp.f32 %v13035_v3  ;;  %v13096_v12 = vmul.f32 1.442695, %v4850_v62  ;;  %v13099_v26 = vsel %vm76_vm0, %v3471_v35, 0.0  ;;  %v15462_v35 = vld [vmem:[#allocation18_spill] sm:$0xff] }
 0x4c9   :  { %v2473_v63 = vmul.f32 %v13072_v31, %v12921_v13  ;;  %v4981_v59 = vmul.f32 1.442695, %v4843_v21  ;;  %5173 = vadd.xlane.f32.xlu1 %v12742_v48  ;;  %v13109_v27 = vsel %vm76_vm0, %v3470_v18, 0.0  ;;  %v4849_v55 = vsub.f32 %v15461_v61, %v12747_v6  ;;  %v13113_v20 = vpop.xlane.xlu1 %5035  ;;  %v3125_v21 = vpop.f32.mrb[29].mxu0 }
 0x4ca   :  { %v13106_v60 = vpop.eup %8981  ;;  %v2552_v45 = vsub.f32 2.0, %v2472_v44  ;;  %8997 = vpow2.f32 %v4979_v4  ;;  %v2474_v48 = vmul.f32 %v13090_v17, %v12885_v42  ;;  %v4983_v13 = vmul.f32 1.442695, %v4844_v33  ;;  %7996 = vmatmul.mubr.msk.f32.gmra.mrb[76].mxu0 %vm1604_vm1, %v13012_v36  ;;  %v15463_v44 = vld [vmem:[#allocation17_spill] sm:$0xff]  ;;  %v15464_v42 = vld [vmem:[#allocation191_spill] sm:$0xff] }
 0x4cb   :  { %v13115_v62 = vpop.eup %8983  ;;  %v3477_v38 = vmul.f32 %v7925_v53, %v15462_v35  ;;  %8999 = vrcp.f32 %v13104_v24  ;;  %5176 = vadd.xlane.f32.xlu0 %v12813_v52  ;;  %v2631_v18 = vmul.f32 %v13028_v0, %v2551_v23  ;;  %v3476_v4 = vmul.f32 %v15463_v44, %v3125_v21  ;;  %7998 = vmatprep.mubr.msk.f32.mxu0 %vm1604_vm1, %v2707_v54  ;;  %v15465_v33 = vld [vmem:[#allocation181_spill] sm:$0xff]  ;;  %v13137_v0 = vpop.xlane.xlu0 %2308  ;;  %v15466_v54 = vld [vmem:[#allocation204_spill] sm:$0xff]  ;;  %v15467_v53 = vld [vmem:[#allocation110_spill] sm:$0xff] }
 0x4cc   :  { %v13124_v6 = vpop.eup %8985  ;;  %v2709_v43 = vmul.f32 %v15464_v42, %v2629_v2  ;;  %v2710_v50 = vmul.f32 %v15465_v33, %v2630_v30  ;;  %v2553_v61 = vsub.f32 2.0, %v2473_v63  ;;  %v2475_v36 = vmul.f32 %v13106_v60, %v13006_v22  ;;  %v7928_v21 = vpop.f32.mrb[30].mxu0  ;;  %v15468_v33 = vld [vmem:[#allocation20_spill] sm:$0xff]  ;;  %v15489_v44 = vld [vmem:[#allocation23_spill] sm:$0xff] }
 0x4cd   :  { %v13131_v7 = vpop.eup %8987  ;;  %9001 = vpow2.f32 %v4981_v59  ;;  %v3640_v52 = vsel %vm76_vm0, %v3477_v38, 0.0  ;;  %5179 = vadd.xlane.f32.xlu1 %v12796_v39  ;;  %v4851_v2 = vsub.f32 %v15467_v53, %v15466_v54  ;;  %v3621_v63 = vsel %vm76_vm0, %v3476_v4, 0.0  ;;  %v13148_v22 = vpop.xlane.xlu1 %5032  ;;  %v15469_v54 = vld [vmem:[#allocation19_spill] sm:$0xff] }
 0x4ce   :  { %v13139_v23 = vpop.eup %8989  ;;  %v13144_v30 = vadd.f32 %v3640_v52, %v13015_v57  ;;  %9003 = vrcp.f32 %v13137_v0  ;;  %v2632_v59 = vmul.f32 %v13045_v1, %v2552_v45  ;;  %v2554_v39 = vsub.f32 2.0, %v2474_v48  ;;  %v3135_v42 = vpop.f32.mrb[31].mxu0  ;;  %7999 = vmatmul.mubr.msk.f32.gmra.mrb[78].mxu0 %vm1604_vm1, %v2708_v51  ;;  %v15470_v48 = vld [vmem:[#allocation194_spill] sm:$0xff] }
 0x4cf   :  { %9005 = vpow2.f32 %v4983_v13  ;;  %v13152_v38 = vadd.f32 %v3621_v63, %v13031_v8  ;;  %5182 = vadd.xlane.f32.xlu0 %v12906_v49  ;;  %v2476_v4 = vmul.f32 %v13131_v7, %v12965_v15  ;;  %v3479_v52 = vmul.f32 %v7928_v21, %v15468_v33  ;;  %8001 = vmatprep.mubr.msk.f32.mxu0 %vm1604_vm1, %v2709_v43  ;;  %v13168_v51 = vpop.xlane.xlu0 %2317 }
 0x4d0   :  { %v13156_v57 = vpop.eup %8991  ;;  %v3478_v53 = vmul.f32 %v15469_v54, %v3135_v42  ;;  %v5184_v8 = vsel %vm1604_vm1, %v13124_v6, 0.0  ;;  %v2633_v49 = vmul.f32 %v13072_v31, %v2553_v61  ;;  %v2555_v45 = vsub.f32 2.0, %v2475_v36  ;;  %v7931_v54 = vpop.f32.mrb[32].mxu0 }
 0x4d1   :  { %v13165_v1 = vpop.eup %8993  ;;  %5185 = vadd.xlane.f32.xlu1 %v5184_v8  ;;  %v5187_v15 = vsel %vm1604_vm1, %v13139_v23, 0.0  ;;  %v2711_v13 = vmul.f32 %v15470_v48, %v2631_v18  ;;  %v2477_v43 = vmul.f32 %v13156_v57, %v13070_v40  ;;  %v3678_v21 = vsel %vm76_vm0, %v3479_v52, 0.0  ;;  %v13180_v31 = vpop.xlane.xlu1 %5041  ;;  %v15471_v40 = vld [vmem:[#allocation126_spill] sm:$0xff] }
 0x4d2   :  { %v13173_v63 = vpop.eup %8995  ;;  %v3659_v42 = vsel %vm76_vm0, %v3478_v53, 0.0  ;;  %9007 = vrcp.f32 %v13168_v51  ;;  %v4993_v61 = vmul.f32 1.442695, %v4849_v55  ;;  %v2634_v36 = vmul.f32 %v13090_v17, %v2554_v39  ;;  %v3145_v18 = vpop.f32.mrb[33].mxu0  ;;  %8002 = vmatmul.mubr.msk.f32.gmra.mrb[80].mxu0 %vm1604_vm1, %v2710_v50  ;;  %v15472_v55 = vld [vmem:[#allocation22_spill] sm:$0xff]  ;;  %v15473_v50 = vld [vmem:[#allocation21_spill] sm:$0xff] }
 0x4d3   :  { %v13184_v8 = vadd.f32 %v3678_v21, %v13099_v26  ;;  %5188 = vadd.xlane.f32.xlu0 %v5187_v15  ;;  %v2712_v48 = vmul.f32 %v15471_v40, %v2632_v59  ;;  %v2556_v53 = vsub.f32 2.0, %v2476_v4  ;;  %9009 = vrcp.f32 %v13043_v58  ;;  %8004 = vmatprep.mubr.msk.f32.mxu0 %vm1604_vm1, %v2711_v13  ;;  %v13203_v39 = vpop.xlane.xlu0 %2314  ;;  %v15474_v4 = vld [vmem:[#allocation206_spill] sm:$0xff] }
 0x4d4   :  { %v13188_v52 = vpop.eup %8997  ;;  %v13192_v33 = vadd.f32 %v3659_v42, %v13109_v27  ;;  %v3481_v16 = vmul.f32 %v7931_v54, %v15472_v55  ;;  %v2478_v26 = vmul.f32 %v13173_v63, %v13035_v3  ;;  %9011 = vrcp.f32 %v13079_v56 }
 0x4d5   :  { %v13196_v17 = vpop.eup %8999  ;;  %v3480_v59 = vmul.f32 %v15473_v50, %v3145_v18  ;;  %5191 = vadd.xlane.f32.xlu1 %v12937_v46  ;;  %v2713_v27 = vmul.f32 %v15474_v4, %v2633_v49  ;;  %v2635_v15 = vmul.f32 %v13106_v60, %v2555_v45  ;;  %v2557_v54 = vsub.f32 2.0, %v2477_v43  ;;  %v13209_v21 = vpop.xlane.xlu1 %5038  ;;  %v15475_v49 = vld [vmem:[#allocation101_spill] sm:$0xff] }
 0x4d6   :  { %v3566_v13 = vsel %vm76_vm0, %v3481_v16, 0.0  ;;  %9013 = vrcp.f32 %v13203_v39  ;;  %v4997_v42 = vmul.f32 1.442695, %v4851_v2  ;;  %8005 = vmatmul.mubr.msk.f32.gmra.mrb[82].mxu0 %vm1604_vm1, %v2712_v48  ;;  %v2480_v16 = vmul.f32 %v13196_v17, %v13104_v24 }
 0x4d7   :  { %v13211_v3 = vpop.eup %9001  ;;  %9015 = vpow2.f32 %v4993_v61  ;;  %v13214_v18 = vadd.f32 %v3566_v13, %v12888_v28  ;;  %v3547_v46 = vsel %vm76_vm0, %v3480_v59, 0.0  ;;  %5194 = vadd.xlane.f32.xlu0 %v12948_v9  ;;  %8007 = vmatprep.mubr.msk.f32.mxu0 %vm1604_vm1, %v2713_v27  ;;  %v5196_v2 = vsel %vm1604_vm1, %v13188_v52, 0.0  ;;  %v15476_v28 = vld [vmem:[#allocation198_spill] sm:$0xff]  ;;  %v2324_v24 = vpop.xlane.xlu0 %2323  ;;  %v15477_v59 = vld [vmem:[#allocation239_spill] sm:$0xff] }
 0x4d8   :  { %v9004_v60 = vpop.eup %9003  ;;  %v13222_v45 = vadd.f32 %v3547_v46, %v15475_v49  ;;  %v2714_v43 = vmul.f32 %v15476_v28, %v2634_v36  ;;  %v2636_v9 = vmul.f32 %v13131_v7, %v2556_v53  ;;  %v2558_v40 = vsub.f32 2.0, %v2478_v26 }
 0x4d9   :  { %v13228_v61 = vpop.eup %9005  ;;  %9017 = vrcp.f32 %v13113_v20  ;;  %v2479_v48 = vmul.f32 %v9004_v60, %v13137_v0  ;;  %5197 = vadd.xlane.f32.xlu1 %v5196_v2  ;;  %v2715_v4 = vmul.f32 %v15477_v59, %v2635_v15  ;;  %v2637_v27 = vmul.f32 %v13156_v57, %v2557_v54  ;;  %v13235_v13 = vpop.xlane.xlu1 %5047  ;;  %v15478_v54 = vld [vmem:[#allocation127_spill] sm:$0xff] }
 0x4da   :  { %9019 = vrcp.f32 %v2324_v24  ;;  %v5199_v36 = vsel %vm1604_vm1, %v13211_v3, 0.0  ;;  %8008 = vmatmul.mubr.msk.f32.gmra.mrb[84].mxu0 %vm1604_vm1, %v2714_v43  ;;  %v2560_v0 = vsub.f32 2.0, %v2480_v16  ;;  %v5202_v57 = vsel %vm1604_vm1, %v13228_v61, 0.0  ;;  %v15479_v16 = vld [vmem:[#allocation201_spill] sm:$0xff] }
 0x4db   :  { %9021 = vpow2.f32 %v13096_v12  ;;  %v2559_v7 = vsub.f32 2.0, %v2479_v48  ;;  %5200 = vadd.xlane.f32.xlu0 %v5199_v36  ;;  %8010 = vmatprep.mubr.msk.f32.mxu0 %vm1604_vm1, %v2715_v4  ;;  %v2638_v26 = vmul.f32 %v13173_v63, %v2558_v40  ;;  %v13247_v12 = vpop.xlane.xlu0 %2320  ;;  %v2716_v46 = vmul.f32 %v15478_v54, %v2636_v9  ;;  %v15480_v48 = vld [vmem:[#allocation203_spill] sm:$0xff] }
 0x4dc   :  { %v9008_v53 = vpop.eup %9007  ;;  %9023 = vrcp.f32 %v13148_v22  ;;  %v2717_v2 = vmul.f32 %v15479_v16, %v2637_v27  ;;  %v2640_v9 = vmul.f32 %v13196_v17, %v2560_v0  ;;  %v15481_v0 = vld [vmem:[#allocation205_spill] sm:$0xff]  ;;  %v15482_v54 = vld [vmem:[#allocation223_spill] sm:$0xff] }
 0x4dd   :  { %9025 = vpow2.f32 %v4997_v42  ;;  %v2482_v15 = vmul.f32 %v9008_v53, %v13168_v51  ;;  %5203 = vadd.xlane.f32.xlu1 %v5202_v57  ;;  %v13250_v49 = vpop.eup %9009  ;;  %v2639_v28 = vmul.f32 %v9004_v60, %v2559_v7  ;;  %v13254_v43 = vpop.xlane.xlu1 %5044  ;;  %v5205_v42 = vsel %vm1604_vm1, %v13081_v5, 0.0 }
 0x4de   :  { %9027 = vrcp.f32 %v13247_v12  ;;  %v13258_v63 = vpop.eup %9011  ;;  %8011 = vmatmul.mubr.msk.f32.gmra.mrb[86].mxu0 %vm1604_vm1, %v2716_v46  ;;  %v5208_v60 = vsel %vm1604_vm1, %v13037_v47, 0.0  ;;  %v2718_v59 = vmul.f32 %v15480_v48, %v2638_v26  ;;  %v5211_v7 = vsel %vm1604_vm1, %v13165_v1, 0.0 }
 0x4df   :  { %9029 = vrcp.f32 %v13180_v31  ;;  %5206 = vadd.xlane.f32.xlu0 %v5205_v42  ;;  %8013 = vmatprep.mubr.msk.f32.mxu0 %vm1604_vm1, %v2717_v2  ;;  %v2562_v4 = vsub.f32 2.0, %v2482_v15  ;;  %v4748_v36 = vpop.xlane.xlu0 %4747  ;;  %v5346_v17 = vmul.f32 %v13250_v49, %v13043_v58  ;;  %v2719_v57 = vmul.f32 %v15481_v0, %v2639_v28  ;;  %v15483_v42 = vld [vmem:[#allocation208_spill] sm:$0xff] }
 0x4e0   :  { %v9014_v51 = vpop.eup %9013  ;;  %9031 = vrcp.f32 %v13209_v21  ;;  %v4852_v46 = vsub.f32 %v15482_v54, %v4748_v36  ;;  %v2720_v58 = vmul.f32 %v15483_v42, %v2640_v9  ;;  %v5214_v28 = vsel %vm1604_vm1, %v13115_v62, 0.0  ;;  %v15484_v9 = vld [vmem:[#allocation227_spill] sm:$0xff] }
 0x4e1   :  { %v13267_v40 = vpop.eup %9015  ;;  %v2481_v27 = vmul.f32 %v9014_v51, %v13203_v39  ;;  %5209 = vadd.xlane.f32.xlu1 %v5208_v60  ;;  %9033 = vrcp.f32 %v13254_v43  ;;  %v13278_v16 = vpop.xlane.xlu1 %5053  ;;  %v5345_v39 = vmul.f32 %v13258_v63, %v13079_v56  ;;  %v2642_v36 = vmul.f32 %v9008_v53, %v2562_v4 }
 0x4e2   :  { %8014 = vmatmul.mubr.msk.f32.gmra.mrb[88].mxu0 %vm1604_vm1, %v2718_v59  ;;  %v4999_v60 = vmul.f32 1.442695, %v4852_v46  ;;  %9035 = vrcp.f32 %v13235_v13  ;;  %v5426_v59 = vsub.f32 2.0, %v5346_v17 }
 0x4e3   :  { %v13280_v26 = vpop.eup %9017  ;;  %v2561_v15 = vsub.f32 2.0, %v2481_v27  ;;  %5212 = vadd.xlane.f32.xlu0 %v5211_v7  ;;  %8016 = vmatprep.mubr.msk.f32.mxu0 %vm1604_vm1, %v2719_v57  ;;  %v4751_v56 = vpop.xlane.xlu0 %4750  ;;  %v5217_v57 = vsel %vm1604_vm1, %v13267_v40, 0.0  ;;  %v5425_v53 = vsub.f32 2.0, %v5345_v39 }
 0x4e4   :  { %v9020_v2 = vpop.eup %9019  ;;  %9037 = vpow2.f32 %v4999_v60  ;;  %v4853_v7 = vsub.f32 %v15484_v9, %v4751_v56 }
 0x4e5   :  { %v13289_v48 = vpop.eup %9021  ;;  %v2641_v0 = vmul.f32 %v9014_v51, %v2561_v15  ;;  %v2484_v54 = vmul.f32 %v9020_v2, %v2324_v24  ;;  %5215 = vadd.xlane.f32.xlu1 %v5214_v28  ;;  %v13295_v46 = vpop.xlane.xlu1 %5050  ;;  %v13303_v24 = vmul.f32 %v13280_v26, %v13113_v20  ;;  %v15485_v51 = vld [vmem:[#allocation90_spill] sm:$0xff]  ;;  %v15486_v20 = vld [vmem:[#allocation164_spill] sm:$0xff] }
 0x4e6   :  { %v13292_v27 = vpop.eup %9023  ;;  %9039 = vrcp.f32 %v13295_v46  ;;  %8017 = vmatmul.mubr.msk.f32.gmra.mrb[90].mxu0 %vm1604_vm1, %v2720_v58  ;;  %v5001_v60 = vmul.f32 1.442695, %v4853_v7  ;;  %v5220_v28 = vsel %vm1604_vm1, %v13289_v48, 0.0  ;;  %v2722_v9 = vmul.f32 %v15486_v20, %v2642_v36  ;;  %v15487_v7 = vld [vmem:[#allocation226_spill] sm:$0xff] }
 0x4e7   :  { %v13299_v42 = vpop.eup %9025  ;;  %v2721_v4 = vmul.f32 %v15485_v51, %v2641_v0  ;;  %5218 = vadd.xlane.f32.xlu0 %v5217_v57  ;;  %v2564_v15 = vsub.f32 2.0, %v2484_v54  ;;  %v5347_v39 = vmul.f32 %v13292_v27, %v13148_v22  ;;  %9041 = vrcp.f32 %v13278_v16  ;;  %v4754_v58 = vpop.xlane.xlu0 %4753 }
 0x4e8   :  { %v9028_v17 = vpop.eup %9027  ;;  %9043 = vpow2.f32 %v5001_v60  ;;  %v4854_v57 = vsub.f32 %v15487_v7, %v4754_v58  ;;  %v7934_v50 = vpop.f32.mrb[34].mxu0  ;;  %v5223_v22 = vsel %vm1604_vm1, %v13299_v42, 0.0  ;;  %v5506_v36 = vmul.f32 %v13250_v49, %v5426_v59  ;;  %v15488_v7 = vld [vmem:[#allocation24_spill] sm:$0xff] }
 0x4e9   :  { %v13310_v56 = vpop.eup %9029  ;;  %v2483_v0 = vmul.f32 %v9028_v17, %v13247_v12  ;;  %5221 = vadd.xlane.f32.xlu1 %v5220_v28  ;;  %8019 = vmatprep.mubr.msk.f32.mxu0 %vm1604_vm1, %v2721_v4  ;;  %v13319_v51 = vpop.xlane.xlu1 %5059  ;;  %v5505_v12 = vmul.f32 %v13258_v63, %v5425_v53  ;;  %v5428_v20 = vsub.f32 2.0, %v13303_v24  ;;  %v2644_v60 = vmul.f32 %v9020_v2, %v2564_v15 }
 0x4ea   :  { %v9032_v54 = vpop.eup %9031  ;;  %v3155_v55 = vpop.f32.mrb[35].mxu0  ;;  %8020 = vmatmul.mubr.msk.f32.gmra.mrb[92].mxu0 %vm1604_vm1, %v2722_v9  ;;  %v5003_v58 = vmul.f32 1.442695, %v4854_v57  ;;  %v3483_v10 = vmul.f32 %v7934_v50, %v15488_v7  ;;  %v5427_v19 = vsub.f32 2.0, %v5347_v39  ;;  %v5350_v49 = vmul.f32 %v13310_v56, %v13180_v31  ;;  %v15491_v57 = vld [vmem:[#allocation112_spill] sm:$0xff] }
 0x4eb   :  { %v2563_v28 = vsub.f32 2.0, %v2483_v0  ;;  %5224 = vadd.xlane.f32.xlu0 %v5223_v22  ;;  %v9034_v4 = vpop.eup %9033  ;;  %v3482_v35 = vmul.f32 %v15489_v44, %v3155_v55  ;;  %v5349_v63 = vmul.f32 %v9032_v54, %v13209_v21  ;;  %v4757_v53 = vpop.xlane.xlu0 %4756  ;;  %v15490_v0 = vld [vmem:[#allocation120_spill] sm:$0xff] }
 0x4ec   :  { %9045 = vpow2.f32 %v5003_v58  ;;  %v3604_v24 = vsel %vm76_vm0, %v3483_v10, 0.0  ;;  %v4855_v2 = vsub.f32 %v15490_v0, %v4757_v53  ;;  %v9036_v50 = vpop.eup %9035  ;;  %v5351_v39 = vmul.f32 %v9034_v4, %v13254_v43  ;;  %v15493_v53 = vld [vmem:[#allocation128_spill] sm:$0xff]  ;;  %v15494_v0 = vld [vmem:[#allocation162_spill] sm:$0xff] }
 0x4ed   :  { %v2643_v59 = vmul.f32 %v9028_v17, %v2563_v28  ;;  %v3585_v9 = vsel %vm76_vm0, %v3482_v35, 0.0  ;;  %v13335_v15 = vpop.xlane.xlu1 %5056  ;;  %9047 = vrcp.f32 %v13319_v51  ;;  %v13341_v31 = vadd.f32 %v3604_v24, %v13050_v11  ;;  %v15492_v17 = vld [vmem:[#allocation168_spill] sm:$0xff] }
 0x4ee   :  { %v13343_v21 = vpop.eup %9037  ;;  %v2724_v10 = vmul.f32 %v15492_v17, %v2644_v60  ;;  %v13347_v35 = vadd.f32 %v3585_v9, %v13067_v32  ;;  %v5005_v22 = vmul.f32 1.442695, %v4855_v2  ;;  %9049 = vrcp.f32 %v13335_v15 }
 0x4ef   :  { %v2723_v55 = vmul.f32 %v15491_v57, %v2643_v59  ;;  %v5507_v58 = vmul.f32 %v13292_v27, %v5427_v19  ;;  %v5429_v59 = vsub.f32 2.0, %v5349_v63  ;;  %v13352_v43 = vpop.xlane.xlu0 %5062  ;;  %v5226_v11 = vsel %vm1604_vm1, %v13343_v21, 0.0 }
 0x4f0   :  { %v9040_v28 = vpop.eup %9039  ;;  %v5585_v24 = vmul.f32 %v15493_v53, %v5505_v12  ;;  %v5430_v60 = vsub.f32 2.0, %v5350_v49  ;;  %v5352_v32 = vmul.f32 %v9036_v50, %v13235_v13  ;;  %9051 = vpow2.f32 %v5005_v22  ;;  %5227 = vadd.xlane.f32.xlu1 %v5226_v11 }
 0x4f1   :  { %8022 = vmatprep.mubr.msk.f32.mxu0 %vm1604_vm1, %v2723_v55  ;;  %v13358_v9 = vpop.xlane.xlu1 %5065  ;;  %v13361_v19 = vpop.eup %9041  ;;  %v5431_v27 = vsub.f32 2.0, %v5351_v39  ;;  %9053 = vrcp.f32 %v13352_v43  ;;  %v5586_v12 = vmul.f32 %v15494_v0, %v5506_v36  ;;  %v5508_v49 = vmul.f32 %v13280_v26, %v5428_v20  ;;  %v15495_v39 = vld [vmem:[#allocation163_spill] sm:$0xff]  ;;  %v15497_v20 = vld [vmem:[#allocation69_spill] sm:$0xff] }
 0x4f2   :  { %8023 = vmatmul.mubr.msk.f32.gmra.mrb[94].mxu0 %vm1604_vm1, %v2724_v10  ;;  %v13365_v63 = vpop.eup %9043  ;;  %v5353_v13 = vmul.f32 %v9040_v28, %v13295_v46  ;;  %9055 = vrcp.f32 %v13358_v9  ;;  %v5509_v2 = vmul.f32 %v9032_v54, %v5429_v59  ;;  %v5587_v17 = vmul.f32 %v15495_v39, %v5507_v58  ;;  %v15498_v59 = vld [vmem:[#allocation216_spill] sm:$0xff]  ;;  %v15501_v39 = vld [vmem:[#allocation26_spill] sm:$0xff] }
 0x4f3   :  { %8177 = vmatprep.mubr.msk.f32.mxu0 %vm1604_vm1, %v5585_v24  ;;  %v13371_v57 = vpop.xlane.xlu0 %5071  ;;  %v5229_v55 = vsel %vm1604_vm1, %v13365_v63, 0.0  ;;  %v5510_v10 = vmul.f32 %v13310_v56, %v5430_v60  ;;  %v5432_v22 = vsub.f32 2.0, %v5352_v32  ;;  %v5511_v26 = vmul.f32 %v9034_v4, %v5431_v27  ;;  %v15499_v32 = vld [vmem:[#allocation165_spill] sm:$0xff] }
 0x4f4   :  { %5230 = vadd.xlane.f32.xlu0 %v5229_v55  ;;  %v5354_v46 = vmul.f32 %v13361_v19, %v13278_v16  ;;  %9057 = vrcp.f32 %v13371_v57  ;;  %v5433_v36 = vsub.f32 2.0, %v5353_v13  ;;  %v5588_v58 = vmul.f32 %v15497_v20, %v5508_v49  ;;  %v15500_v13 = vld [vmem:[#allocation140_spill] sm:$0xff] }
 0x4f5   :  { %v13377_v11 = vpop.xlane.xlu1 %5083  ;;  %v5589_v53 = vmul.f32 %v15498_v59, %v5509_v2  ;;  %v5590_v27 = vmul.f32 %v15499_v32, %v5510_v10  ;;  %v5512_v16 = vmul.f32 %v9036_v50, %v5432_v22  ;;  %v5591_v49 = vmul.f32 %v15500_v13, %v5511_v26  ;;  %v15503_v22 = vld [vmem:[#allocation25_spill] sm:$0xff] }
 0x4f6   :  { %8178 = vmatmul.mubr.msk.f32.vlgmr.msra.gmra.mrb[96].mxu0 %vm1604_vm1, %v5586_v12  ;;  %v13384_v54 = vpop.eup %9045  ;;  %v5434_v55 = vsub.f32 2.0, %v5354_v46  ;;  %v5513_v50 = vmul.f32 %v9040_v28, %v5433_v36 }
 0x4f7   :  { %8180 = vmatprep.mubr.msk.f32.mxu0 %vm1604_vm1, %v5587_v17  ;;  %15496 = vst [vmem:[#allocation166_spill] sm:$0xff] %v13384_v54  ;;  %v9048_v56 = vpop.eup %9047  ;;  %v5069_v24 = vpop.xlane.xlu0 %5068  ;;  %v5232_v60 = vsel %vm1604_vm1, %v13384_v54, 0.0 }
 0x4f8   :  { %v9050_v4 = vpop.eup %9049  ;;  %9059 = vrcp.f32 %v5069_v24  ;;  %v7937_v12 = vpop.f32.mrb[36].mxu0  ;;  %5233 = vadd.xlane.f32.xlu1 %v5232_v60  ;;  %v5356_v10 = vmul.f32 %v9048_v56, %v13319_v51 }
 0x4f9   :  { %v13391_v0 = vpop.xlane.xlu1 %5080  ;;  %v5355_v2 = vmul.f32 %v9050_v4, %v13335_v15  ;;  %v3485_v17 = vmul.f32 %v7937_v12, %v15501_v39  ;;  %v3165_v20 = vpop.f32.mrb[37].mxu0 }
 0x4fa   :  { %8181 = vmatmul.mubr.msk.f32.gmra.mrb[98].mxu0 %vm1604_vm1, %v5588_v58  ;;  %v13398_v59 = vpop.eup %9051  ;;  %9061 = vrcp.f32 %v13391_v0  ;;  %v3484_v58 = vmul.f32 %v15503_v22, %v3165_v20  ;;  %v5436_v20 = vsub.f32 2.0, %v5356_v10 }
 0x4fb   :  { %8183 = vmatprep.mubr.msk.f32.mxu0 %vm1604_vm1, %v5589_v53  ;;  %15502 = vst [vmem:[#allocation157_spill] sm:$0xff] %v13398_v59  ;;  %v9054_v60 = vpop.eup %9053  ;;  %v5435_v32 = vsub.f32 2.0, %v5355_v2  ;;  %9063 = vrcp.f32 %v13377_v11  ;;  %v3642_v15 = vsel %vm76_vm0, %v3485_v17, 0.0  ;;  %v5078_v26 = vpop.xlane.xlu0 %5077  ;;  %v5235_v46 = vsel %vm1604_vm1, %v13398_v59, 0.0  ;;  %v15504_v17 = vld [vmem:[#allocation102_spill] sm:$0xff] }
 0x4fc   :  { %v9056_v53 = vpop.eup %9055  ;;  %v5357_v12 = vmul.f32 %v9054_v60, %v13352_v43  ;;  %v13409_v28 = vadd.f32 %v3642_v15, %v13144_v30  ;;  %v3623_v51 = vsel %vm76_vm0, %v3484_v58, 0.0  ;;  %9065 = vrcp.f32 %v5078_v26  ;;  %5236 = vadd.xlane.f32.xlu0 %v5235_v46  ;;  %v15505_v58 = vld [vmem:[#allocation207_spill] sm:$0xff] }
 0x4fd   :  { %v13412_v36 = vpop.xlane.xlu1 %5089  ;;  %v5358_v13 = vmul.f32 %v9056_v53, %v13358_v9  ;;  %v13417_v2 = vadd.f32 %v3623_v51, %v13152_v38  ;;  %v5592_v43 = vmul.f32 %v15504_v17, %v5512_v16  ;;  %v5514_v30 = vmul.f32 %v13361_v19, %v5434_v55  ;;  %v15508_v17 = vld [vmem:[#allocation229_spill] sm:$0xff] }
 0x4fe   :  { %8184 = vmatmul.mubr.msk.f32.gmra.mrb[100].mxu0 %vm1604_vm1, %v5590_v27  ;;  %v9058_v15 = vpop.eup %9057  ;;  %v5593_v22 = vmul.f32 %v15505_v58, %v5513_v50  ;;  %v5515_v39 = vmul.f32 %v9050_v4, %v5435_v32  ;;  %v5437_v44 = vsub.f32 2.0, %v5357_v12  ;;  %9067 = vrcp.f32 %v13412_v36  ;;  %v15507_v50 = vld [vmem:[#allocation125_spill] sm:$0xff] }
 0x4ff   :  { %8186 = vmatprep.mubr.msk.f32.mxu0 %vm1604_vm1, %v5591_v49  ;;  %v5075_v27 = vpop.xlane.xlu0 %5074  ;;  %v5438_v38 = vsub.f32 2.0, %v5358_v13  ;;  %v15506_v49 = vld [vmem:[#allocation228_spill] sm:$0xff]  ;;  %v5516_v55 = vmul.f32 %v9048_v56, %v5436_v20  ;;  %v5360_v10 = vmul.f32 %v9058_v15, %v13371_v57  ;;  %v15509_v56 = vld [vmem:[#allocation141_spill] sm:$0xff] }
 0x500   :  { %9069 = vrcp.f32 %v5075_v27  ;;  %v5594_v19 = vmul.f32 %v15506_v49, %v5514_v30  ;;  %v5595_v4 = vmul.f32 %v15507_v50, %v5515_v39  ;;  %v5517_v32 = vmul.f32 %v9054_v60, %v5437_v44  ;;  %v15510_v60 = vld [vmem:[#allocation142_spill] sm:$0xff] }
 0x501   :  { %v5087_v9 = vpop.xlane.xlu1 %5086  ;;  %v5596_v39 = vmul.f32 %v15509_v56, %v5516_v55  ;;  %v5440_v44 = vsub.f32 2.0, %v5360_v10  ;;  %v15512_v55 = vld [vmem:[#allocation139_spill] sm:$0xff] }
 0x502   :  { %8187 = vmatmul.mubr.msk.f32.gmra.mrb[102].mxu0 %vm1604_vm1, %v5592_v43  ;;  %9071 = vrcp.f32 %v5087_v9  ;;  %v9060_v16 = vpop.eup %9059  ;;  %v5597_v30 = vmul.f32 %v15510_v60, %v5517_v32  ;;  %v15514_v56 = vld [vmem:[#allocation27_spill] sm:$0xff] }
 0x503   :  { %8189 = vmatprep.mubr.msk.f32.mxu0 %vm1604_vm1, %v5593_v22  ;;  %v5359_v46 = vmul.f32 %v9060_v16, %v5069_v24  ;;  %v4760_v12 = vpop.xlane.xlu0 %4759  ;;  %v5518_v22 = vmul.f32 %v9056_v53, %v5438_v38  ;;  %v15511_v53 = vld [vmem:[#allocation111_spill] sm:$0xff] }
 0x504   :  { %v9062_v51 = vpop.eup %9061  ;;  %v4856_v58 = vsub.f32 %v15508_v17, %v4760_v12 }
 0x505   :  { %v13430_v7 = vpop.xlane.xlu1 %5095  ;;  %v9064_v13 = vpop.eup %9063  ;;  %v5439_v43 = vsub.f32 2.0, %v5359_v46  ;;  %v5363_v49 = vmul.f32 %v9062_v51, %v13391_v0  ;;  %v5598_v10 = vmul.f32 %v15512_v55, %v5518_v22 }
 0x506   :  { %8190 = vmatmul.mubr.msk.f32.gmra.mrb[104].mxu0 %vm1604_vm1, %v5594_v19  ;;  %9073 = vrcp.f32 %v13430_v7  ;;  %v9066_v57 = vpop.eup %9065  ;;  %v5007_v24 = vmul.f32 1.442695, %v4856_v58  ;;  %v5364_v19 = vmul.f32 %v9064_v13, %v13377_v11  ;;  %v15513_v58 = vld [vmem:[#allocation28_spill] sm:$0xff] }
 0x507   :  { %8192 = vmatprep.mubr.msk.f32.mxu0 %vm1604_vm1, %v5595_v4  ;;  %v5519_v20 = vmul.f32 %v9060_v16, %v5439_v43  ;;  %v5362_v50 = vmul.f32 %v9066_v57, %v5078_v26  ;;  %v4763_v12 = vpop.xlane.xlu0 %4762  ;;  %v5520_v26 = vmul.f32 %v9058_v15, %v5440_v44  ;;  %v5443_v41 = vsub.f32 2.0, %v5363_v49 }
 0x508   :  { %9075 = vpow2.f32 %v5007_v24  ;;  %v4857_v38 = vsub.f32 %v15511_v53, %v4763_v12  ;;  %v7940_v17 = vpop.f32.mrb[38].mxu0  ;;  %v9068_v4 = vpop.eup %9067  ;;  %v15515_v12 = vld [vmem:[#allocation170_spill] sm:$0xff]  ;;  %v5444_v55 = vsub.f32 2.0, %v5364_v19 }
 0x509   :  { %v5093_v46 = vpop.xlane.xlu1 %5092  ;;  %v3487_v32 = vmul.f32 %v7940_v17, %v15513_v58  ;;  %v3175_v16 = vpop.f32.mrb[39].mxu0  ;;  %v5442_v43 = vsub.f32 2.0, %v5362_v50  ;;  %v5599_v53 = vmul.f32 %v15515_v12, %v5519_v20  ;;  %v5366_v15 = vmul.f32 %v9068_v4, %v13412_v36  ;;  %v15516_v20 = vld [vmem:[#allocation230_spill] sm:$0xff] }
 0x50a   :  { %8193 = vmatmul.mubr.msk.f32.gmra.mrb[106].mxu0 %vm1604_vm1, %v5596_v39  ;;  %9077 = vrcp.f32 %v5093_v46  ;;  %v9070_v0 = vpop.eup %9069  ;;  %v5009_v11 = vmul.f32 1.442695, %v4857_v38  ;;  %v3486_v24 = vmul.f32 %v15514_v56, %v3175_v16 }
 0x50b   :  { %8195 = vmatprep.mubr.msk.f32.mxu0 %vm1604_vm1, %v5597_v30  ;;  %v5361_v39 = vmul.f32 %v9070_v0, %v5075_v27  ;;  %v3680_v59 = vsel %vm76_vm0, %v3487_v32, 0.0  ;;  %v4766_v22 = vpop.xlane.xlu0 %4765  ;;  %v15517_v27 = vld [vmem:[#allocation92_spill] sm:$0xff]  ;;  %v5522_v19 = vmul.f32 %v9066_v57, %v5442_v43  ;;  %v15520_v43 = vld [vmem:[#allocation150_spill] sm:$0xff] }
 0x50c   :  { %v9072_v60 = vpop.eup %9071  ;;  %9079 = vpow2.f32 %v5009_v11  ;;  %v13448_v17 = vadd.f32 %v3680_v59, %v13184_v8  ;;  %v3661_v50 = vsel %vm76_vm0, %v3486_v24, 0.0  ;;  %v4858_v49 = vsub.f32 %v15516_v20, %v4766_v22  ;;  %v15518_v11 = vld [vmem:[#allocation233_spill] sm:$0xff]  ;;  %v15522_v20 = vld [vmem:[#allocation232_spill] sm:$0xff] }
 0x50d   :  { %v5365_v54 = vmul.f32 %v9072_v60, %v5087_v9  ;;  %v5102_v30 = vpop.xlane.xlu1 %5101  ;;  %v5441_v44 = vsub.f32 2.0, %v5361_v39  ;;  %v5600_v38 = vmul.f32 %v15517_v27, %v5520_v26  ;;  %v13457_v9 = vadd.f32 %v3661_v50, %v13192_v33  ;;  %v15519_v26 = vld [vmem:[#allocation151_spill] sm:$0xff] }
 0x50e   :  { %8196 = vmatmul.mubr.msk.f32.gmra.mrb[108].mxu0 %vm1604_vm1, %v5598_v10  ;;  %9081 = vrcp.f32 %v5102_v30  ;;  %v5523_v59 = vmul.f32 %v9062_v51, %v5443_v41  ;;  %v5011_v16 = vmul.f32 1.442695, %v4858_v49  ;;  %v5446_v39 = vsub.f32 2.0, %v5366_v15 }
 0x50f   :  { %8198 = vmatprep.mubr.msk.f32.mxu0 %vm1604_vm1, %v5599_v53  ;;  %v5521_v32 = vmul.f32 %v9070_v0, %v5441_v44  ;;  %v5445_v10 = vsub.f32 2.0, %v5365_v54  ;;  %v4769_v36 = vpop.xlane.xlu0 %4768  ;;  %v5524_v53 = vmul.f32 %v9064_v13, %v5444_v55  ;;  %v5602_v22 = vmul.f32 %v15520_v43, %v5522_v19  ;;  %v15521_v0 = vld [vmem:[#allocation65_spill] sm:$0xff] }
 0x510   :  { %v9074_v8 = vpop.eup %9073  ;;  %v4859_v12 = vsub.f32 %v15518_v11, %v4769_v36  ;;  %9083 = vpow2.f32 %v5011_v16  ;;  %v5603_v44 = vmul.f32 %v15521_v0, %v5523_v59  ;;  %v15524_v16 = vld [vmem:[#allocation152_spill] sm:$0xff] }
 0x511   :  { %v13460_v24 = vpop.xlane.xlu1 %5098  ;;  %v5601_v57 = vmul.f32 %v15519_v26, %v5521_v32  ;;  %v5368_v41 = vmul.f32 %v9074_v8, %v13430_v7  ;;  %v5525_v50 = vmul.f32 %v9072_v60, %v5445_v10  ;;  %v5526_v7 = vmul.f32 %v9068_v4, %v5446_v39  ;;  %v15523_v60 = vld [vmem:[#allocation234_spill] sm:$0xff]  ;;  %v15525_v4 = vld [vmem:[#allocation236_spill] sm:$0xff] }
 0x512   :  { %8199 = vmatmul.mubr.msk.f32.gmra.mrb[110].mxu0 %vm1604_vm1, %v5600_v38  ;;  %v13464_v33 = vpop.eup %9075  ;;  %v5013_v54 = vmul.f32 1.442695, %v4859_v12  ;;  %9085 = vrcp.f32 %v13460_v24  ;;  %v5604_v19 = vmul.f32 %v15523_v60, %v5524_v53  ;;  %v15526_v53 = vld [vmem:[#allocation132_spill] sm:$0xff] }
 0x513   :  { %8201 = vmatprep.mubr.msk.f32.mxu0 %vm1604_vm1, %v5601_v57  ;;  %v4772_v13 = vpop.xlane.xlu0 %4771  ;;  %v5238_v55 = vsel %vm1604_vm1, %v13464_v33, 0.0  ;;  %v5448_v59 = vsub.f32 2.0, %v5368_v41 }
 0x514   :  { %v9078_v51 = vpop.eup %9077  ;;  %9087 = vpow2.f32 %v5013_v54  ;;  %v4860_v49 = vsub.f32 %v15522_v20, %v4772_v13  ;;  %5239 = vadd.xlane.f32.xlu1 %v5238_v55  ;;  %v15527_v54 = vld [vmem:[#allocation30_spill] sm:$0xff] }
 0x515   :  { %v5367_v15 = vmul.f32 %v9078_v51, %v5093_v46  ;;  %v5108_v27 = vpop.xlane.xlu1 %5107  ;;  %v5605_v46 = vmul.f32 %v15524_v16, %v5525_v50  ;;  %v5528_v50 = vmul.f32 %v9074_v8, %v5448_v59  ;;  %v15528_v13 = vld [vmem:[#allocation122_spill] sm:$0xff]  ;;  %v15530_v16 = vld [vmem:[#allocation93_spill] sm:$0xff] }
 0x516   :  { %8202 = vmatmul.mubr.msk.f32.gmra.mrb[112].mxu0 %vm1604_vm1, %v5602_v22  ;;  %9089 = vrcp.f32 %v5108_v27  ;;  %v13476_v38 = vpop.eup %9079  ;;  %v5015_v10 = vmul.f32 1.442695, %v4860_v49  ;;  %v5606_v22 = vmul.f32 %v15526_v53, %v5526_v7 }
 0x517   :  { %8204 = vmatprep.mubr.msk.f32.mxu0 %vm1604_vm1, %v5603_v44  ;;  %v5447_v32 = vsub.f32 2.0, %v5367_v15  ;;  %v4775_v36 = vpop.xlane.xlu0 %4774  ;;  %v5241_v11 = vsel %vm1604_vm1, %v13476_v38, 0.0  ;;  %v15529_v15 = vld [vmem:[#allocation29_spill] sm:$0xff] }
 0x518   :  { %v9082_v12 = vpop.eup %9081  ;;  %9091 = vpow2.f32 %v5015_v10  ;;  %v4861_v39 = vsub.f32 %v15525_v4, %v4775_v36  ;;  %v7943_v43 = vpop.f32.mrb[40].mxu0  ;;  %5242 = vadd.xlane.f32.xlu0 %v5241_v11 }
 0x519   :  { %v5527_v26 = vmul.f32 %v9078_v51, %v5447_v32  ;;  %v5105_v57 = vpop.xlane.xlu1 %5104  ;;  %v5370_v41 = vmul.f32 %v9082_v12, %v5102_v30  ;;  %v3489_v0 = vmul.f32 %v7943_v43, %v15527_v54  ;;  %v3185_v44 = vpop.f32.mrb[41].mxu0  ;;  %v15546_v54 = vld [vmem:[#allocation175_spill] sm:$0xff] }
 0x51a   :  { %8205 = vmatmul.mubr.msk.f32.gmra.mrb[114].mxu0 %vm1604_vm1, %v5604_v19  ;;  %9093 = vrcp.f32 %v5105_v57  ;;  %v5017_v55 = vmul.f32 1.442695, %v4861_v39  ;;  %v3488_v20 = vmul.f32 %v15529_v15, %v3185_v44  ;;  %v13489_v49 = vpop.eup %9083 }
 0x51b   :  { %8207 = vmatprep.mubr.msk.f32.mxu0 %vm1604_vm1, %v5605_v46  ;;  %v5607_v51 = vmul.f32 %v15528_v13, %v5527_v26  ;;  %v5450_v60 = vsub.f32 2.0, %v5370_v41  ;;  %v3568_v19 = vsel %vm76_vm0, %v3489_v0, 0.0  ;;  %v4778_v32 = vpop.xlane.xlu0 %4777  ;;  %v15531_v26 = vld [vmem:[#allocation153_spill] sm:$0xff]  ;;  %v5244_v39 = vsel %vm1604_vm1, %v13489_v49, 0.0  ;;  %v15532_v0 = vld [vmem:[#allocation238_spill] sm:$0xff] }
 0x51c   :  { %v9086_v7 = vpop.eup %9085  ;;  %9095 = vpow2.f32 %v5017_v55  ;;  %v13493_v30 = vadd.f32 %v3568_v19, %v13214_v18  ;;  %v3549_v10 = vsel %vm76_vm0, %v3488_v20, 0.0  ;;  %v4862_v8 = vsub.f32 %v15530_v16, %v4778_v32  ;;  %5245 = vadd.xlane.f32.xlu1 %v5244_v39  ;;  %v15533_v19 = vld [vmem:[#allocation160_spill] sm:$0xff] }
 0x51d   :  { %v5114_v59 = vpop.xlane.xlu1 %5113  ;;  %v5369_v46 = vmul.f32 %v9086_v7, %v13460_v24  ;;  %v13500_v36 = vadd.f32 %v3549_v10, %v13222_v45  ;;  %v5608_v18 = vmul.f32 %v15531_v26, %v5528_v50  ;;  %v5530_v45 = vmul.f32 %v9082_v12, %v5450_v60  ;;  %v15534_v12 = vld [vmem:[#allocation143_spill] sm:$0xff] }
 0x51e   :  { %8208 = vmatmul.mubr.msk.f32.gmra.mrb[116].mxu0 %vm1604_vm1, %v5606_v22  ;;  %9097 = vrcp.f32 %v5114_v59  ;;  %v13503_v11 = vpop.eup %9087  ;;  %v5019_v4 = vmul.f32 1.442695, %v4862_v8 }
 0x51f   :  { %8210 = vmatprep.mubr.msk.f32.mxu0 %vm1604_vm1, %v5607_v51  ;;  %v5449_v53 = vsub.f32 2.0, %v5369_v46  ;;  %v4781_v22 = vpop.xlane.xlu0 %4780  ;;  %v5247_v24 = vsel %vm1604_vm1, %v13503_v11, 0.0  ;;  %v5610_v60 = vmul.f32 %v15534_v12, %v5530_v45  ;;  %v15535_v46 = vld [vmem:[#allocation237_spill] sm:$0xff] }
 0x520   :  { %v9090_v43 = vpop.eup %9089  ;;  %9099 = vpow2.f32 %v5019_v4  ;;  %v4863_v44 = vsub.f32 %v15532_v0, %v4781_v22  ;;  %5248 = vadd.xlane.f32.xlu0 %v5247_v24 }
 0x521   :  { %v5372_v41 = vmul.f32 %v9090_v43, %v5108_v27  ;;  %v5111_v13 = vpop.xlane.xlu1 %5110  ;;  %v5529_v50 = vmul.f32 %v9086_v7, %v5449_v53 }
 0x522   :  { %8211 = vmatmul.mubr.msk.f32.gmra.mrb[118].mxu0 %vm1604_vm1, %v5608_v18  ;;  %9101 = vrcp.f32 %v5111_v13  ;;  %v13512_v51 = vpop.eup %9091  ;;  %v5021_v55 = vmul.f32 1.442695, %v4863_v44  ;;  %v15536_v44 = vld [vmem:[#allocation32_spill] sm:$0xff] }
 0x523   :  { %v5609_v32 = vmul.f32 %v15533_v19, %v5529_v50  ;;  %v5452_v10 = vsub.f32 2.0, %v5372_v41  ;;  %v4784_v16 = vpop.xlane.xlu0 %4783  ;;  %v5250_v27 = vsel %vm1604_vm1, %v13512_v51, 0.0 }
 0x524   :  { %v9094_v20 = vpop.eup %9093  ;;  %9103 = vpow2.f32 %v5021_v55  ;;  %v4864_v26 = vsub.f32 %v15535_v46, %v4784_v16  ;;  %5251 = vadd.xlane.f32.xlu1 %v5250_v27  ;;  %v15538_v27 = vld [vmem:[#allocation31_spill] sm:$0xff] }
 0x525   :  { %v5371_v8 = vmul.f32 %v9094_v20, %v5105_v57  ;;  %v5120_v18 = vpop.xlane.xlu1 %5119  ;;  %8213 = vmatprep.mubr.msk.f32.mxu0 %vm1604_vm1, %v5609_v32  ;;  %v5532_v22 = vmul.f32 %v9090_v43, %v5452_v10  ;;  %v15537_v32 = vld [vmem:[#allocation121_spill] sm:$0xff]  ;;  %v15539_v10 = vld [vmem:[#allocation184_spill] sm:$0xff] }
 0x526   :  { %9105 = vrcp.f32 %v5120_v18  ;;  %v13520_v7 = vpop.eup %9095  ;;  %v5023_v39 = vmul.f32 1.442695, %v4864_v26  ;;  %8214 = vmatmul.mubr.msk.f32.gmra.mrb[120].mxu0 %vm1604_vm1, %v5610_v60 }
 0x527   :  { %v5451_v4 = vsub.f32 2.0, %v5371_v8  ;;  %v5253_v24 = vsel %vm1604_vm1, %v13520_v7, 0.0  ;;  %v5612_v60 = vmul.f32 %v15539_v10, %v5532_v22 }
 0x528   :  { %v9098_v53 = vpop.eup %9097  ;;  %9107 = vpow2.f32 %v5023_v39  ;;  %v7946_v0 = vpop.f32.mrb[42].mxu0  ;;  %5254 = vadd.xlane.f32.xlu0 %v5253_v24 }
 0x529   :  { %v5531_v57 = vmul.f32 %v9094_v20, %v5451_v4  ;;  %v5374_v45 = vmul.f32 %v9098_v53, %v5114_v59  ;;  %v5117_v41 = vpop.xlane.xlu1 %5116  ;;  %v3491_v50 = vmul.f32 %v7946_v0, %v15536_v44  ;;  %v3195_v55 = vpop.f32.mrb[43].mxu0 }
 0x52a   :  { %9109 = vrcp.f32 %v5117_v41  ;;  %v13526_v19 = vpop.eup %9099  ;;  %v3490_v12 = vmul.f32 %v15538_v27, %v3195_v55  ;;  %v15544_v27 = vld [vmem:[#allocation98_spill] sm:$0xff] }
 0x52b   :  { %v5611_v16 = vmul.f32 %v15537_v32, %v5531_v57  ;;  %v5454_v8 = vsub.f32 2.0, %v5374_v45  ;;  %v3606_v59 = vsel %vm76_vm0, %v3491_v50, 0.0  ;;  %v5256_v20 = vsel %vm1604_vm1, %v13526_v19, 0.0 }
 0x52c   :  { %v9102_v43 = vpop.eup %9101  ;;  %v13535_v26 = vadd.f32 %v3606_v59, %v13341_v31  ;;  %v3587_v4 = vsel %vm76_vm0, %v3490_v12, 0.0  ;;  %5257 = vadd.xlane.f32.xlu1 %v5256_v20 }
 0x52d   :  { %v5373_v46 = vmul.f32 %v9102_v43, %v5111_v13  ;;  %v5126_v39 = vpop.xlane.xlu1 %5125  ;;  %8216 = vmatprep.mubr.msk.f32.mxu0 %vm1604_vm1, %v5611_v16  ;;  %v13540_v24 = vadd.f32 %v3587_v4, %v13347_v35  ;;  %v5534_v13 = vmul.f32 %v9098_v53, %v5454_v8  ;;  %v15541_v35 = vld [vmem:[#allocation149_spill] sm:$0xff] }
 0x52e   :  { %9111 = vrcp.f32 %v5126_v39  ;;  %8217 = vmatmul.mubr.msk.f32.gmra.mrb[122].mxu0 %vm1604_vm1, %v5612_v60  ;;  %v13543_v22 = vpop.eup %9103  ;;  %v15542_v60 = vld [vmem:[#allocation185_spill] sm:$0xff] }
 0x52f   :  { %v5453_v57 = vsub.f32 2.0, %v5373_v46  ;;  %v5259_v31 = vsel %vm1604_vm1, %v13543_v22, 0.0  ;;  %v5614_v59 = vmul.f32 %v15542_v60, %v5534_v13 }
 0x530   :  { %v9106_v45 = vpop.eup %9105  ;;  %v5135_v0 = vpop.xlane.xlu0 %5134  ;;  %5260 = vadd.xlane.f32.xlu0 %v5259_v31 }
 0x531   :  { %v5533_v50 = vmul.f32 %v9102_v43, %v5453_v57  ;;  %v5376_v55 = vmul.f32 %v9106_v45, %v5120_v18  ;;  %v5123_v32 = vpop.xlane.xlu1 %5122 }
 0x532   :  { %9113 = vrcp.f32 %v5123_v32  ;;  %v13547_v16 = vpop.eup %9107 }
 0x533   :  { %15540 = vst [vmem:[#allocation183_spill] sm:$0xff] %v13547_v16  ;;  %v5613_v12 = vmul.f32 %v15541_v35, %v5533_v50  ;;  %9115 = vrcp.f32 %v5135_v0  ;;  %v5456_v20 = vsub.f32 2.0, %v5376_v55  ;;  %v5262_v53 = vsel %vm1604_vm1, %v13547_v16, 0.0  ;;  %v15543_v35 = vld [vmem:[#allocation34_spill] sm:$0xff] }
 0x534   :  { %v9110_v10 = vpop.eup %9109  ;;  %5263 = vadd.xlane.f32.xlu1 %v5262_v53 }
 0x535   :  { %v5375_v8 = vmul.f32 %v9110_v10, %v5117_v41  ;;  %8219 = vmatprep.mubr.msk.f32.mxu0 %vm1604_vm1, %v5613_v12  ;;  %v5536_v57 = vmul.f32 %v9106_v45, %v5456_v20  ;;  %v15545_v12 = vld [vmem:[#allocation33_spill] sm:$0xff] }
 0x536   :  { %v5129_v46 = vpop.xlane.xlu1 %5128  ;;  %8220 = vmatmul.mubr.msk.f32.gmra.mrb[124].mxu0 %vm1604_vm1, %v5614_v59 }
 0x537   :  { %9117 = vrcp.f32 %v5129_v46  ;;  %v5455_v18 = vsub.f32 2.0, %v5375_v8  ;;  %v5616_v59 = vmul.f32 %v15546_v54, %v5536_v57 }
 0x538   :  { %v5141_v43 = vpop.xlane.xlu0 %5140  ;;  %v9112_v4 = vpop.eup %9111 }
 0x539   :  { %9119 = vrcp.f32 %v5141_v43  ;;  %v5535_v31 = vmul.f32 %v9110_v10, %v5455_v18  ;;  %v5378_v50 = vmul.f32 %v9112_v4, %v5126_v39  ;;  %v7949_v55 = vpop.f32.mrb[44].mxu0 }
 0x53a   :  { %v5132_v13 = vpop.xlane.xlu1 %5131  ;;  %v3493_v60 = vmul.f32 %v7949_v55, %v15543_v35  ;;  %v3205_v41 = vpop.f32.mrb[45].mxu0 }
 0x53b   :  { %9121 = vrcp.f32 %v5132_v13  ;;  %v5615_v44 = vmul.f32 %v15544_v27, %v5535_v31  ;;  %v3492_v53 = vmul.f32 %v15545_v12, %v3205_v41  ;;  %v5458_v8 = vsub.f32 2.0, %v5378_v50  ;;  %v15547_v41 = vld [vmem:[#allocation195_spill] sm:$0xff] }
 0x53c   :  { %v9114_v15 = vpop.eup %9113  ;;  %v3644_v56 = vsel %vm76_vm0, %v3493_v60, 0.0 }
 0x53d   :  { %v9116_v45 = vpop.eup %9115  ;;  %v5377_v20 = vmul.f32 %v9114_v15, %v5123_v32  ;;  %v13561_v39 = vadd.f32 %v3644_v56, %v13409_v28  ;;  %v3625_v10 = vsel %vm76_vm0, %v3492_v53, 0.0  ;;  %8222 = vmatprep.mubr.msk.f32.mxu0 %vm1604_vm1, %v5615_v44  ;;  %v5538_v50 = vmul.f32 %v9112_v4, %v5458_v8 }
 0x53e   :  { %v5138_v18 = vpop.xlane.xlu1 %5137  ;;  %v13566_v27 = vadd.f32 %v3625_v10, %v13417_v2  ;;  %8223 = vmatmul.mubr.msk.f32.gmra.mrb[126].mxu0 %vm1604_vm1, %v5616_v59  ;;  %v5381_v55 = vmul.f32 %v9116_v45, %v5135_v0  ;;  %v15548_v2 = vld [vmem:[#allocation94_spill] sm:$0xff] }
 0x53f   :  { %9123 = vrcp.f32 %v5138_v18  ;;  %v5457_v54 = vsub.f32 2.0, %v5377_v20  ;;  %v5618_v10 = vmul.f32 %v15548_v2, %v5538_v50  ;;  %v15551_v2 = vld [vmem:[#allocation36_spill] sm:$0xff] }
 0x540   :  { %v5147_v57 = vpop.xlane.xlu0 %5146  ;;  %v5461_v35 = vsub.f32 2.0, %v5381_v55 }
 0x541   :  { %v9118_v31 = vpop.eup %9117  ;;  %9125 = vrcp.f32 %v5147_v57  ;;  %v5537_v32 = vmul.f32 %v9114_v15, %v5457_v54  ;;  %v15549_v15 = vld [vmem:[#allocation156_spill] sm:$0xff] }
 0x542   :  { %v5379_v28 = vmul.f32 %v9118_v31, %v5129_v46  ;;  %v5144_v56 = vpop.xlane.xlu1 %5143  ;;  %v5541_v54 = vmul.f32 %v9116_v45, %v5461_v35 }
 0x543   :  { %v9120_v60 = vpop.eup %9119  ;;  %9127 = vrcp.f32 %v5144_v56  ;;  %v5617_v53 = vmul.f32 %v15547_v41, %v5537_v32 }
 0x544   :  { %v5459_v44 = vsub.f32 2.0, %v5379_v28  ;;  %v5383_v58 = vmul.f32 %v9120_v60, %v5141_v43 }
 0x545   :  { %v9122_v12 = vpop.eup %9121  ;;  %8225 = vmatprep.mubr.msk.f32.mxu0 %vm1604_vm1, %v5617_v53 }
 0x546   :  { %v5539_v59 = vmul.f32 %v9118_v31, %v5459_v44  ;;  %v5380_v20 = vmul.f32 %v9122_v12, %v5132_v13  ;;  %v5150_v16 = vpop.xlane.xlu1 %5149  ;;  %8226 = vmatmul.mubr.msk.f32.gmra.mrb[128].mxu0 %vm1604_vm1, %v5618_v10  ;;  %v5463_v32 = vsub.f32 2.0, %v5383_v58  ;;  %v15550_v31 = vld [vmem:[#allocation180_spill] sm:$0xff] }
 0x547   :  { %9129 = vrcp.f32 %v5150_v16 }
 0x548   :  { %v5619_v0 = vmul.f32 %v15549_v15, %v5539_v59  ;;  %v5460_v46 = vsub.f32 2.0, %v5380_v20  ;;  %v5153_v4 = vpop.xlane.xlu0 %5152  ;;  %v7952_v13 = vpop.f32.mrb[46].mxu0  ;;  %v15553_v20 = vld [vmem:[#allocation35_spill] sm:$0xff] }
 0x549   :  { %v9124_v8 = vpop.eup %9123  ;;  %9131 = vrcp.f32 %v5153_v4  ;;  %v3495_v10 = vmul.f32 %v7952_v13, %v15551_v2  ;;  %v3215_v59 = vpop.f32.mrb[47].mxu0 }
 0x54a   :  { %v5540_v28 = vmul.f32 %v9122_v12, %v5460_v46  ;;  %v5382_v50 = vmul.f32 %v9124_v8, %v5138_v18  ;;  %v13574_v55 = vpop.xlane.xlu1 %5155  ;;  %8228 = vmatprep.mubr.msk.f32.mxu0 %vm1604_vm1, %v5619_v0  ;;  %v15552_v12 = vld [vmem:[#allocation179_spill] sm:$0xff]  ;;  %v5543_v18 = vmul.f32 %v9120_v60, %v5463_v32  ;;  %v3494_v15 = vmul.f32 %v15553_v20, %v3215_v59  ;;  %v6635_v0 = vld [vmem:[%s14110_s4] sm:$0xff]  ;;  %v15554_v59 = vld [vmem:[#allocation182_spill] sm:$0xff] }
 0x54b   :  { %v9126_v43 = vpop.eup %9125  ;;  %9133 = vrcp.f32 %v13574_v55  ;;  %v5621_v45 = vmul.f32 %v15552_v12, %v5541_v54  ;;  %v3682_v13 = vsel %vm76_vm0, %v3495_v10, 0.0 }
 0x54c   :  { %v5620_v41 = vmul.f32 %v15550_v31, %v5540_v28  ;;  %v5462_v53 = vsub.f32 2.0, %v5382_v50  ;;  %v5385_v44 = vmul.f32 %v9126_v43, %v5147_v57  ;;  %v13580_v35 = vpop.xlane.xlu0 %5158  ;;  %v6636_v57 = vld [vmem:[%s14110_s4 + $0x8] sm:$0xff]  ;;  %v13594_v60 = vadd.f32 %v3682_v13, %v13448_v17  ;;  %v6637_v17 = vld [vmem:[%s14110_s4 + $0x10] sm:$0xff] }
 0x54d   :  { %v9128_v58 = vpop.eup %9127  ;;  %9135 = vrcp.f32 %v13580_v35  ;;  %v3663_v54 = vsel %vm76_vm0, %v3494_v15, 0.0  ;;  %v8423_v32 = vpack.c.bf16 %v6636_v57, %v6635_v0  ;;  %v15556_v57 = vld [vmem:[#allocation199_spill] sm:$0xff] }
 0x54e   :  { %v5542_v46 = vmul.f32 %v9124_v8, %v5462_v53  ;;  %v5465_v28 = vsub.f32 2.0, %v5385_v44  ;;  %v5384_v50 = vmul.f32 %v9128_v58, %v5144_v56  ;;  %v5162_v31 = vpop.xlane.xlu1 %5161  ;;  %8229 = vmatmul.mubr.msk.f32.gmra.mrb[130].mxu0 %vm1604_vm1, %v5620_v41  ;;  %v13600_v8 = vadd.f32 %v3663_v54, %v13457_v9  ;;  %v15555_v44 = vld [vmem:[#allocation210_spill] sm:$0xff] }
 0x54f   :  { %9137 = vrcp.f32 %v5162_v31  ;;  %8231 = vmatprep.mubr.msk.f32.mxu0 %vm1604_vm1, %v5621_v45  ;;  %v5623_v41 = vmul.f32 %v15555_v44, %v5543_v18  ;;  %8431 = vmatprep.subr.bf16.mxu1 %v8423_v32  ;;  %v6638_v45 = vld [vmem:[%s14110_s4 + $0x18] sm:$0xff] }
 0x550   :  { %v5622_v12 = vmul.f32 %v15554_v59, %v5542_v46  ;;  %v5464_v20 = vsub.f32 2.0, %v5384_v50  ;;  %v13602_v56 = vpop.xlane.xlu0 %5164  ;;  %v5545_v10 = vmul.f32 %v9126_v43, %v5465_v28  ;;  %8424 = vmatprep.subr.bf16.mxu0 %v8423_v32  ;;  %8434 = vmatpush3.bf16.msra.mxu1 %v8423_v32  ;;  %v8427_v18 = vpack.c.bf16 %v6638_v45, %v6637_v17 }
 0x551   :  { %v9130_v53 = vpop.eup %9129  ;;  %9139 = vrcp.f32 %v13602_v56  ;;  %8426 = vmatpush3.bf16.msra.mxu0 %v8423_v32 }
 0x552   :  { %v5544_v9 = vmul.f32 %v9128_v58, %v5464_v20  ;;  %v5386_v15 = vmul.f32 %v9130_v53, %v5150_v16  ;;  %v13612_v0 = vpop.xlane.xlu1 %5167  ;;  %8232 = vmatmul.mubr.msk.f32.gmra.mrb[132].mxu0 %vm1604_vm1, %v5622_v12  ;;  %v15557_v58 = vld [vmem:[#allocation119_spill] sm:$0xff]  ;;  %8432 = vmatprep.subr.bf16.mxu1 %v8427_v18  ;;  %v6639_v20 = vld [vmem:[%s14110_s4 + $0x20] sm:$0xff] }
 0x553   :  { %v9132_v43 = vpop.eup %9131  ;;  %9141 = vrcp.f32 %v13612_v0  ;;  %8234 = vmatprep.mubr.msk.f32.mxu0 %vm1604_vm1, %v5623_v41  ;;  %v5625_v16 = vmul.f32 %v15557_v58, %v5545_v10  ;;  %8428 = vmatprep.subr.bf16.mxu0 %v8427_v18 }
 0x554   :  { %v5624_v46 = vmul.f32 %v15556_v57, %v5544_v9  ;;  %v5466_v28 = vsub.f32 2.0, %v5386_v15  ;;  %v5387_v50 = vmul.f32 %v9132_v43, %v5153_v4  ;;  %v5171_v13 = vpop.xlane.xlu0 %5170  ;;  %8435 = vmatpush3.bf16.msra.mxu1 %v8427_v18 }
 0x555   :  { %v9134_v54 = vpop.eup %9133  ;;  %9143 = vrcp.f32 %v5171_v13  ;;  %8433 = vmatprep.subr.mxu1 %v6639_v20  ;;  %8430 = vmatpush3.bf16.msra.mxu0 %v8427_v18 }
 0x556   :  { %v5546_v59 = vmul.f32 %v9130_v53, %v5466_v28  ;;  %v5467_v12 = vsub.f32 2.0, %v5387_v50  ;;  %v5388_v44 = vmul.f32 %v9134_v54, %v13574_v55  ;;  %v5174_v32 = vpop.xlane.xlu1 %5173  ;;  %8235 = vmatmul.mubr.msk.f32.gmra.mrb[134].mxu0 %vm1604_vm1, %v5624_v46  ;;  %8305 = vmatprep.subr.mxu0 %v6639_v20 }
 0x557   :  { %v9136_v4 = vpop.eup %9135  ;;  %9145 = vrcp.f32 %v5174_v32  ;;  %8237 = vmatprep.mubr.msk.f32.mxu0 %vm1604_vm1, %v5625_v16 }
 0x558   :  { %v5626_v41 = vmul.f32 %v12916_v29, %v5546_v59  ;;  %v5547_v10 = vmul.f32 %v9132_v43, %v5467_v12  ;;  %v5468_v17 = vsub.f32 2.0, %v5388_v44  ;;  %v5389_v45 = vmul.f32 %v9136_v4, %v13580_v35  ;;  %v5177_v9 = vpop.xlane.xlu0 %5176  ;;  %v7955_v28 = vpop.f32.mrb[48].mxu0  ;;  %8436 = vmatpush3.msra.mxu1 %v6639_v20  ;;  %v15558_v43 = vld [vmem:[#allocation38_spill] sm:$0xff]  ;;  %v15559_v44 = vld [vmem:[#allocation37_spill] sm:$0xff] }
 0x559   :  { %v9138_v53 = vpop.eup %9137  ;;  %9147 = vrcp.f32 %v5177_v9  ;;  %v3497_v58 = vmul.f32 %v7955_v28, %v15558_v43  ;;  %v3225_v35 = vpop.f32.mrb[49].mxu0  ;;  %8306 = vmatpush3.msra.mxu0 %v6639_v20 }
 0x55a   :  { %v5627_v55 = vmul.f32 %v12960_v25, %v5547_v10  ;;  %v5548_v15 = vmul.f32 %v9134_v54, %v5468_v17  ;;  %v5469_v57 = vsub.f32 2.0, %v5389_v45  ;;  %v5390_v46 = vmul.f32 %v9138_v53, %v5162_v31  ;;  %v5180_v50 = vpop.xlane.xlu1 %5179  ;;  %8238 = vmatmul.mubr.msk.f32.gmra.mrb[136].mxu0 %vm1604_vm1, %v5626_v41  ;;  %v15560_v10 = vld [vmem:[#allocation138_spill] sm:$0xff] }
 0x55b   :  { %v9140_v29 = vpop.eup %9139  ;;  %9149 = vrcp.f32 %v5180_v50  ;;  %v3570_v54 = vsel %vm76_vm0, %v3497_v58, 0.0  ;;  %v3496_v41 = vmul.f32 %v15559_v44, %v3225_v35 }
 0x55c   :  { %v5628_v18 = vmul.f32 %v12950_v34, %v5548_v15  ;;  %v5549_v16 = vmul.f32 %v9136_v4, %v5469_v57  ;;  %v5470_v59 = vsub.f32 2.0, %v5390_v46  ;;  %v5391_v12 = vmul.f32 %v9140_v29, %v13602_v56  ;;  %8240 = vmatprep.mubr.msk.f32.mxu0 %vm1604_vm1, %v5627_v55  ;;  %v5183_v25 = vpop.xlane.xlu0 %5182  ;;  %v15561_v15 = vld [vmem:[#allocation131_spill] sm:$0xff] }
 0x55d   :  { %v9142_v31 = vpop.eup %9141  ;;  %9151 = vrcp.f32 %v5183_v25  ;;  %v13639_v55 = vadd.f32 %v3570_v54, %v13493_v30  ;;  %v3551_v20 = vsel %vm76_vm0, %v3496_v41, 0.0 }
 0x55e   :  { %v5629_v17 = vmul.f32 %v15560_v10, %v5549_v16  ;;  %v5550_v45 = vmul.f32 %v9138_v53, %v5470_v59  ;;  %v5471_v28 = vsub.f32 2.0, %v5391_v12  ;;  %v5392_v34 = vmul.f32 %v9142_v31, %v13612_v0  ;;  %v5186_v4 = vpop.xlane.xlu1 %5185  ;;  %8241 = vmatmul.mubr.msk.f32.gmra.mrb[138].mxu0 %vm1604_vm1, %v5628_v18  ;;  %v15562_v18 = vld [vmem:[#allocation176_spill] sm:$0xff] }
 0x55f   :  { %v9144_v56 = vpop.eup %9143  ;;  %9153 = vrcp.f32 %v5186_v4  ;;  %v13645_v0 = vadd.f32 %v3551_v20, %v13500_v36  ;;  %v15564_v20 = vld [vmem:[#allocation135_spill] sm:$0xff] }
 0x560   :  { %v5630_v57 = vmul.f32 %v15561_v15, %v5550_v45  ;;  %v5551_v46 = vmul.f32 %v9140_v29, %v5471_v28  ;;  %v5472_v58 = vsub.f32 2.0, %v5392_v34  ;;  %v5393_v35 = vmul.f32 %v9144_v56, %v5171_v13  ;;  %8243 = vmatprep.mubr.msk.f32.mxu0 %vm1604_vm1, %v5629_v17  ;;  %v5189_v53 = vpop.xlane.xlu0 %5188  ;;  %v15563_v29 = vld [vmem:[#allocation174_spill] sm:$0xff] }
 0x561   :  { %v9146_v16 = vpop.eup %9145  ;;  %9155 = vrcp.f32 %v5189_v53 }
 0x562   :  { %v5631_v59 = vmul.f32 %v15562_v18, %v5551_v46  ;;  %v5552_v30 = vmul.f32 %v9142_v31, %v5472_v58  ;;  %v5473_v12 = vsub.f32 2.0, %v5393_v35  ;;  %v5394_v54 = vmul.f32 %v9146_v16, %v5174_v32  ;;  %v5192_v41 = vpop.xlane.xlu1 %5191  ;;  %8244 = vmatmul.mubr.msk.f32.gmra.mrb[140].mxu0 %vm1604_vm1, %v5630_v57  ;;  %v15565_v35 = vld [vmem:[#allocation97_spill] sm:$0xff] }
 0x563   :  { %v9148_v10 = vpop.eup %9147  ;;  %9157 = vrcp.f32 %v5192_v41 }
 0x564   :  { %v5632_v13 = vmul.f32 %v15563_v29, %v5552_v30  ;;  %v5553_v45 = vmul.f32 %v9144_v56, %v5473_v12  ;;  %v5474_v17 = vsub.f32 2.0, %v5394_v54  ;;  %v5395_v28 = vmul.f32 %v9148_v10, %v5177_v9  ;;  %8246 = vmatprep.mubr.msk.f32.mxu0 %vm1604_vm1, %v5631_v59  ;;  %v5195_v36 = vpop.xlane.xlu0 %5194 }
 0x565   :  { %v9150_v34 = vpop.eup %9149  ;;  %9159 = vrcp.f32 %v5195_v36 }
 0x566   :  { %v5633_v15 = vmul.f32 %v15564_v20, %v5553_v45  ;;  %v5554_v31 = vmul.f32 %v9146_v16, %v5474_v17  ;;  %v5475_v46 = vsub.f32 2.0, %v5395_v28  ;;  %v5396_v32 = vmul.f32 %v9150_v34, %v5180_v50  ;;  %v5198_v58 = vpop.xlane.xlu1 %5197  ;;  %8247 = vmatmul.mubr.msk.f32.gmra.mrb[142].mxu0 %vm1604_vm1, %v5632_v13  ;;  %v15566_v16 = vld [vmem:[#allocation103_spill] sm:$0xff]  ;;  %v15567_v28 = vld [vmem:[#allocation40_spill] sm:$0xff] }
 0x567   :  { %v9152_v57 = vpop.eup %9151  ;;  %9161 = vrcp.f32 %v5198_v58 }
 0x568   :  { %v5634_v18 = vmul.f32 %v15565_v35, %v5554_v31  ;;  %v5555_v56 = vmul.f32 %v9148_v10, %v5475_v46  ;;  %v5476_v30 = vsub.f32 2.0, %v5396_v32  ;;  %v5397_v9 = vmul.f32 %v9152_v57, %v5183_v25  ;;  %8249 = vmatprep.mubr.msk.f32.mxu0 %vm1604_vm1, %v5633_v15  ;;  %v13655_v59 = vpop.xlane.xlu0 %5200  ;;  %v15568_v15 = vld [vmem:[#allocation177_spill] sm:$0xff] }
 0x569   :  { %v9154_v12 = vpop.eup %9153  ;;  %9163 = vrcp.f32 %v13655_v59  ;;  %v7958_v13 = vpop.f32.mrb[50].mxu0 }
 0x56a   :  { %v5635_v54 = vmul.f32 %v15566_v16, %v5555_v56  ;;  %v5556_v50 = vmul.f32 %v9150_v34, %v5476_v30  ;;  %v5477_v29 = vsub.f32 2.0, %v5397_v9  ;;  %v5398_v45 = vmul.f32 %v9154_v12, %v5186_v4  ;;  %v13659_v17 = vpop.xlane.xlu1 %5203  ;;  %8250 = vmatmul.mubr.msk.f32.gmra.mrb[144].mxu0 %vm1604_vm1, %v5634_v18  ;;  %v3235_v20 = vpop.f32.mrb[51].mxu0  ;;  %v15569_v30 = vld [vmem:[#allocation39_spill] sm:$0xff]  ;;  %v15570_v9 = vld [vmem:[#allocation88_spill] sm:$0xff] }
 0x56b   :  { %v9156_v10 = vpop.eup %9155  ;;  %v3499_v25 = vmul.f32 %v7958_v13, %v15567_v28  ;;  %9165 = vrcp.f32 %v13659_v17  ;;  %v3498_v18 = vmul.f32 %v15569_v30, %v3235_v20 }
 0x56c   :  { %v5636_v31 = vmul.f32 %v15568_v15, %v5556_v50  ;;  %v5557_v46 = vmul.f32 %v9152_v57, %v5477_v29  ;;  %v5478_v32 = vsub.f32 2.0, %v5398_v45  ;;  %v5399_v35 = vmul.f32 %v9156_v10, %v5189_v53  ;;  %8252 = vmatprep.mubr.msk.f32.mxu0 %vm1604_vm1, %v5635_v54  ;;  %v13666_v34 = vpop.xlane.xlu0 %5206  ;;  %v15571_v45 = vld [vmem:[#allocation42_spill] sm:$0xff] }
 0x56d   :  { %v9158_v4 = vpop.eup %9157  ;;  %v3608_v56 = vsel %vm76_vm0, %v3499_v25, 0.0  ;;  %9167 = vrcp.f32 %v13666_v34  ;;  %v7961_v50 = vpop.f32.mrb[52].mxu0  ;;  %v3589_v29 = vsel %vm76_vm0, %v3498_v18, 0.0 }
 0x56e   :  { %v5637_v16 = vmul.f32 %v15570_v9, %v5557_v46  ;;  %v5558_v13 = vmul.f32 %v9154_v12, %v5478_v32  ;;  %v5479_v28 = vsub.f32 2.0, %v5399_v35  ;;  %v5400_v44 = vmul.f32 %v9158_v4, %v5192_v41  ;;  %v13672_v57 = vpop.xlane.xlu1 %5209  ;;  %8253 = vmatmul.mubr.msk.f32.gmra.mrb[146].mxu0 %vm1604_vm1, %v5636_v31  ;;  %v3245_v20 = vpop.f32.mrb[53].mxu0 }
 0x56f   :  { %v9160_v53 = vpop.eup %9159  ;;  %v13676_v54 = vadd.f32 %v3608_v56, %v13535_v26  ;;  %v3501_v25 = vmul.f32 %v7961_v50, %v15571_v45  ;;  %9169 = vrcp.f32 %v13672_v57  ;;  %v13686_v26 = vadd.f32 %v3589_v29, %v13540_v24  ;;  %v15572_v56 = vld [vmem:[#allocation41_spill] sm:$0xff]  ;;  %v15573_v50 = vld [vmem:[#allocation44_spill] sm:$0xff] }
 0x570   :  { %v5638_v12 = vmul.f32 %v13124_v6, %v5558_v13  ;;  %v5559_v15 = vmul.f32 %v9156_v10, %v5479_v28  ;;  %v5480_v41 = vsub.f32 2.0, %v5400_v44  ;;  %v5401_v46 = vmul.f32 %v9160_v53, %v5195_v36  ;;  %8255 = vmatprep.mubr.msk.f32.mxu0 %vm1604_vm1, %v5637_v16  ;;  %v13683_v32 = vpop.xlane.xlu0 %5212 }
 0x571   :  { %v9162_v31 = vpop.eup %9161  ;;  %v3646_v35 = vsel %vm76_vm0, %v3501_v25, 0.0  ;;  %v3500_v18 = vmul.f32 %v15572_v56, %v3245_v20  ;;  %9171 = vrcp.f32 %v13683_v32  ;;  %v7964_v36 = vpop.f32.mrb[54].mxu0 }
 0x572   :  { %v5639_v9 = vmul.f32 %v13139_v23, %v5559_v15  ;;  %v5560_v6 = vmul.f32 %v9158_v4, %v5480_v41  ;;  %v5481_v10 = vsub.f32 2.0, %v5401_v46  ;;  %v5402_v44 = vmul.f32 %v9162_v31, %v5198_v58  ;;  %v13692_v28 = vpop.xlane.xlu1 %5215  ;;  %8256 = vmatmul.mubr.msk.f32.gmra.mrb[148].mxu0 %vm1604_vm1, %v5638_v12  ;;  %v3255_v25 = vpop.f32.mrb[55].mxu0  ;;  %v15574_v46 = vld [vmem:[#allocation43_spill] sm:$0xff] }
 0x573   :  { %v9164_v16 = vpop.eup %9163  ;;  %v13696_v24 = vadd.f32 %v3646_v35, %v13561_v39  ;;  %v3627_v13 = vsel %vm76_vm0, %v3500_v18, 0.0  ;;  %v3503_v29 = vmul.f32 %v7964_v36, %v15573_v50  ;;  %9173 = vrcp.f32 %v13692_v28  ;;  %v15575_v36 = vld [vmem:[#allocation46_spill] sm:$0xff] }
 0x574   :  { %v5640_v23 = vmul.f32 %v12895_v14, %v5560_v6  ;;  %v5561_v4 = vmul.f32 %v9160_v53, %v5481_v10  ;;  %v5482_v58 = vsub.f32 2.0, %v5402_v44  ;;  %v5403_v20 = vmul.f32 %v9164_v16, %v13655_v59  ;;  %8258 = vmatprep.mubr.msk.f32.mxu0 %vm1604_vm1, %v5639_v9  ;;  %v13704_v12 = vpop.xlane.xlu0 %5218 }
 0x575   :  { %v9166_v15 = vpop.eup %9165  ;;  %v13707_v39 = vadd.f32 %v3627_v13, %v13566_v27  ;;  %v3684_v41 = vsel %vm76_vm0, %v3503_v29, 0.0  ;;  %v3502_v35 = vmul.f32 %v15574_v46, %v3255_v25  ;;  %9175 = vrcp.f32 %v13704_v12  ;;  %v7967_v6 = vpop.f32.mrb[56].mxu0 }
 0x576   :  { %v5641_v14 = vmul.f32 %v12908_v37, %v5561_v4  ;;  %v5562_v53 = vmul.f32 %v9162_v31, %v5482_v58  ;;  %v5483_v18 = vsub.f32 2.0, %v5403_v20  ;;  %v5404_v59 = vmul.f32 %v9166_v15, %v13659_v17  ;;  %v13714_v9 = vpop.xlane.xlu1 %5221  ;;  %8259 = vmatmul.mubr.msk.f32.gmra.mrb[150].mxu0 %vm1604_vm1, %v5640_v23  ;;  %v3265_v37 = vpop.f32.mrb[57].mxu0  ;;  %v15576_v20 = vld [vmem:[#allocation45_spill] sm:$0xff] }
 0x577   :  { %v9168_v10 = vpop.eup %9167  ;;  %v13718_v27 = vadd.f32 %v3684_v41, %v13594_v60  ;;  %v3665_v44 = vsel %vm76_vm0, %v3502_v35, 0.0  ;;  %v3505_v13 = vmul.f32 %v7967_v6, %v15575_v36  ;;  %9177 = vrcp.f32 %v13714_v9 }
 0x578   :  { %v5642_v31 = vmul.f32 %v13188_v52, %v5562_v53  ;;  %v5563_v29 = vmul.f32 %v9164_v16, %v5483_v18  ;;  %v5484_v17 = vsub.f32 2.0, %v5404_v59  ;;  %v5405_v25 = vmul.f32 %v9168_v10, %v13666_v34  ;;  %8261 = vmatprep.mubr.msk.f32.mxu0 %vm1604_vm1, %v5641_v14  ;;  %v13726_v23 = vpop.xlane.xlu0 %5224  ;;  %v15577_v59 = vld [vmem:[#allocation48_spill] sm:$0xff] }
 0x579   :  { %v9170_v4 = vpop.eup %9169  ;;  %v13729_v60 = vadd.f32 %v3665_v44, %v13600_v8  ;;  %v3572_v58 = vsel %vm76_vm0, %v3505_v13, 0.0  ;;  %v3504_v41 = vmul.f32 %v15576_v20, %v3265_v37  ;;  %9179 = vrcp.f32 %v13726_v23  ;;  %v7970_v53 = vpop.f32.mrb[58].mxu0 }
 0x57a   :  { %v5643_v52 = vmul.f32 %v13211_v3, %v5563_v29  ;;  %v5564_v16 = vmul.f32 %v9166_v15, %v5484_v17  ;;  %v5485_v35 = vsub.f32 2.0, %v5405_v25  ;;  %v5406_v34 = vmul.f32 %v9170_v4, %v13672_v57  ;;  %8262 = vmatmul.mubr.msk.f32.gmra.mrb[152].mxu0 %vm1604_vm1, %v5642_v31  ;;  %v3275_v44 = vpop.f32.mrb[59].mxu0  ;;  %v15578_v29 = vld [vmem:[#allocation47_spill] sm:$0xff] }
 0x57b   :  { %v9172_v14 = vpop.eup %9171  ;;  %v13738_v18 = vadd.f32 %v3572_v58, %v13639_v55  ;;  %v3553_v8 = vsel %vm76_vm0, %v3504_v41, 0.0  ;;  %v3507_v6 = vmul.f32 %v7970_v53, %v15577_v59  ;;  %v3506_v17 = vmul.f32 %v15578_v29, %v3275_v44 }
 0x57c   :  { %v5644_v13 = vmul.f32 %v13228_v61, %v5564_v16  ;;  %v5565_v37 = vmul.f32 %v9168_v10, %v5485_v35  ;;  %v5486_v3 = vsub.f32 2.0, %v5406_v34  ;;  %v5407_v15 = vmul.f32 %v9172_v14, %v13683_v32  ;;  %8264 = vmatprep.mubr.msk.f32.mxu0 %vm1604_vm1, %v5643_v52  ;;  %v15579_v16 = vld [vmem:[#allocation50_spill] sm:$0xff] }
 0x57d   :  { %v9174_v57 = vpop.eup %9173  ;;  %v13746_v31 = vadd.f32 %v3553_v8, %v13645_v0  ;;  %v3610_v55 = vsel %vm76_vm0, %v3507_v6, 0.0  ;;  %v7973_v10 = vpop.f32.mrb[60].mxu0  ;;  %v3591_v0 = vsel %vm76_vm0, %v3506_v17, 0.0 }
 0x57e   :  { %v5645_v25 = vmul.f32 %v13081_v5, %v5565_v37  ;;  %v5566_v58 = vmul.f32 %v9170_v4, %v5486_v3  ;;  %v5487_v41 = vsub.f32 2.0, %v5407_v15  ;;  %v5408_v61 = vmul.f32 %v9174_v57, %v13692_v28  ;;  %8265 = vmatmul.mubr.msk.f32.gmra.mrb[154].mxu0 %vm1604_vm1, %v5644_v13  ;;  %v3285_v34 = vpop.f32.mrb[61].mxu0  ;;  %v5228_v53 = vpop.xlane.xlu1 %5227  ;;  %v15580_v13 = vld [vmem:[#allocation49_spill] sm:$0xff] }
 0x57f   :  { %v9176_v32 = vpop.eup %9175  ;;  %v13754_v52 = vadd.f32 %v3610_v55, %v13676_v54  ;;  %v3509_v35 = vmul.f32 %v7973_v10, %v15579_v16  ;;  %v3592_v44 = vadd.f32 %v3591_v0, %v13686_v26  ;;  %v3508_v37 = vmul.f32 %v15580_v13, %v3285_v34  ;;  %v15581_v26 = vld [vmem:[#allocation52_spill] sm:$0xff]  ;;  %v15582_v34 = vld [vmem:[#allocation51_spill] sm:$0xff] }
 0x580   :  { %v5646_v8 = vmul.f32 %v13037_v47, %v5566_v58  ;;  %v5567_v5 = vmul.f32 %v9172_v14, %v5487_v41  ;;  %v5488_v4 = vsub.f32 2.0, %v5408_v61  ;;  %v5409_v6 = vmul.f32 %v9176_v32, %v13704_v12  ;;  %8267 = vmatprep.mubr.msk.f32.mxu0 %vm1604_vm1, %v5645_v25 }
 0x581   :  { %v9178_v28 = vpop.eup %9177  ;;  %v3648_v54 = vsel %vm76_vm0, %v3509_v35, 0.0  ;;  %9181 = vrcp.f32 %v5228_v53  ;;  %v7976_v14 = vpop.f32.mrb[62].mxu0  ;;  %v3629_v25 = vsel %vm76_vm0, %v3508_v37, 0.0 }
 0x582   :  { %v5647_v3 = vmul.f32 %v13165_v1, %v5567_v5  ;;  %v5568_v15 = vmul.f32 %v9174_v57, %v5488_v4  ;;  %v5489_v55 = vsub.f32 2.0, %v5409_v6  ;;  %v5410_v47 = vmul.f32 %v9178_v28, %v13714_v9  ;;  %8268 = vmatmul.mubr.msk.f32.gmra.mrb[156].mxu0 %vm1604_vm1, %v5646_v8  ;;  %v3295_v41 = vpop.f32.mrb[63].mxu0  ;;  %v5231_v61 = vpop.xlane.xlu0 %5230 }
 0x583   :  { %v9180_v12 = vpop.eup %9179  ;;  %v3649_v17 = vadd.f32 %v3648_v54, %v13696_v24  ;;  %v3511_v58 = vmul.f32 %v7976_v14, %v15581_v26  ;;  %v3630_v9 = vadd.f32 %v3629_v25, %v13707_v39  ;;  %v3510_v24 = vmul.f32 %v15582_v34, %v3295_v41 }
 0x584   :  { %v5648_v10 = vmul.f32 %v13115_v62, %v5568_v15  ;;  %v5569_v0 = vmul.f32 %v9176_v32, %v5489_v55  ;;  %v5490_v1 = vsub.f32 2.0, %v5410_v47  ;;  %v5411_v57 = vmul.f32 %v9180_v12, %v13726_v23  ;;  %8270 = vmatprep.mubr.msk.f32.mxu0 %vm1604_vm1, %v5647_v3  ;;  %v15583_v32 = vld [vmem:[#allocation54_spill] sm:$0xff]  ;;  %v15584_v47 = vld [vmem:[#allocation53_spill] sm:$0xff] }
 0x585   :  { %v3686_v35 = vsel %vm76_vm0, %v3511_v58, 0.0  ;;  %9183 = vrcp.f32 %v5231_v61  ;;  %v7979_v62 = vpop.f32.mrb[64].mxu0  ;;  %v3667_v23 = vsel %vm76_vm0, %v3510_v24, 0.0  ;;  %v5234_v39 = vpop.xlane.xlu1 %5233 }
 0x586   :  { %v5649_v8 = vmul.f32 %v13267_v40, %v5569_v0  ;;  %v5570_v5 = vmul.f32 %v9178_v28, %v5490_v1  ;;  %v5491_v4 = vsub.f32 2.0, %v5411_v57  ;;  %v3687_v6 = vadd.f32 %v3686_v35, %v13718_v27  ;;  %8271 = vmatmul.mubr.msk.f32.gmra.mrb[158].mxu0 %vm1604_vm1, %v5648_v10  ;;  %v3305_v37 = vpop.f32.mrb[65].mxu0  ;;  %v15586_v57 = vld [vmem:[#allocation55_spill] sm:$0xff] }
 0x587   :  { %v3513_v54 = vmul.f32 %v7979_v62, %v15583_v32  ;;  %v3668_v55 = vadd.f32 %v3667_v23, %v13729_v60  ;;  %v3512_v40 = vmul.f32 %v15584_v47, %v3305_v37  ;;  %9185 = vrcp.f32 %v5234_v39  ;;  %v15585_v60 = vld [vmem:[#allocation56_spill] sm:$0xff]  ;;  %v15587_v62 = vld [vmem:[#allocation58_spill] sm:$0xff] }
 0x588   :  { %v5650_v3 = vmul.f32 %v13289_v48, %v5570_v5  ;;  %v5571_v15 = vmul.f32 %v9180_v12, %v5491_v4  ;;  %8273 = vmatprep.mubr.msk.f32.mxu0 %vm1604_vm1, %v5649_v8 }
 0x589   :  { %v3574_v27 = vsel %vm76_vm0, %v3513_v54, 0.0  ;;  %v3555_v25 = vsel %vm76_vm0, %v3512_v40, 0.0  ;;  %v7982_v58 = vpop.f32.mrb[66].mxu0  ;;  %v5237_v0 = vpop.xlane.xlu0 %5236 }
 0x58a   :  { %v5651_v28 = vmul.f32 %v13299_v42, %v5571_v15  ;;  %v3575_v14 = vadd.f32 %v3574_v27, %v13738_v18  ;;  %8274 = vmatmul.mubr.msk.f32.gmra.mrb[160].mxu0 %vm1604_vm1, %v5650_v3  ;;  %v3556_v12 = vadd.f32 %v3555_v25, %v13746_v31  ;;  %v3515_v41 = vmul.f32 %v7982_v58, %v15585_v60  ;;  %v3315_v10 = vpop.f32.mrb[67].mxu0  ;;  %v15588_v3 = vld [vmem:[#allocation57_spill] sm:$0xff] }
 0x58b   :  { %v9182_v48 = vpop.eup %9181  ;;  %v3514_v35 = vmul.f32 %v15586_v57, %v3315_v10  ;;  %9187 = vrcp.f32 %v5237_v0 }
 0x58c   :  { %v5412_v1 = vmul.f32 %v9182_v48, %v5228_v53  ;;  %8276 = vmatprep.mubr.msk.f32.mxu0 %vm1604_vm1, %v5651_v28  ;;  %v3612_v42 = vsel %vm76_vm0, %v3515_v41, 0.0 }
 0x58d   :  { %v3613_v24 = vadd.f32 %v3612_v42, %v13754_v52  ;;  %v3593_v8 = vsel %vm76_vm0, %v3514_v35, 0.0  ;;  %v7985_v5 = vpop.f32.mrb[68].mxu0 }
 0x58e   :  { %v5492_v18 = vsub.f32 2.0, %v5412_v1  ;;  %v3594_v31 = vadd.f32 %v3593_v8, %v3592_v44  ;;  %v3517_v23 = vmul.f32 %v7985_v5, %v15587_v62  ;;  %v3325_v54 = vpop.f32.mrb[69].mxu0  ;;  %v15589_v1 = vld [vmem:[#allocation60_spill] sm:$0xff] }
 0x58f   :  { %v9184_v4 = vpop.eup %9183  ;;  %v3516_v15 = vmul.f32 %v15588_v3, %v3325_v54 }
 0x590   :  { %v5572_v37 = vmul.f32 %v9182_v48, %v5492_v18  ;;  %v5413_v53 = vmul.f32 %v9184_v4, %v5231_v61  ;;  %v3650_v40 = vsel %vm76_vm0, %v3517_v23, 0.0  ;;  %v15590_v48 = vld [vmem:[#allocation59_spill] sm:$0xff] }
 0x591   :  { %v3651_v25 = vadd.f32 %v3650_v40, %v3649_v17  ;;  %v3631_v52 = vsel %vm76_vm0, %v3516_v15, 0.0  ;;  %v7988_v58 = vpop.f32.mrb[70].mxu0  ;;  %v9186_v41 = vpop.eup %9185  ;;  %v15591_v15 = vld [vmem:[#allocation62_spill] sm:$0xff] }
 0x592   :  { %v5652_v27 = vmul.f32 %v13343_v21, %v5572_v37  ;;  %v5493_v28 = vsub.f32 2.0, %v5413_v53  ;;  %v3632_v10 = vadd.f32 %v3631_v52, %v3630_v9  ;;  %v3519_v44 = vmul.f32 %v7988_v58, %v15589_v1  ;;  %v3335_v35 = vpop.f32.mrb[71].mxu0 }
 0x593   :  { %v5414_v8 = vmul.f32 %v9186_v41, %v5234_v39  ;;  %v3518_v61 = vmul.f32 %v15590_v48, %v3335_v35 }
 0x594   :  { %v5573_v42 = vmul.f32 %v9184_v4, %v5493_v28  ;;  %8277 = vmatmul.mubr.msk.f32.gmra.mrb[162].mxu0 %vm1604_vm1, %v5652_v27  ;;  %v3688_v18 = vsel %vm76_vm0, %v3519_v44, 0.0  ;;  %v15592_v28 = vld [vmem:[#allocation61_spill] sm:$0xff]  ;;  %v15593_v44 = vld [vmem:[#allocation166_spill] sm:$0xff] }
 0x595   :  { %v9188_v5 = vpop.eup %9187  ;;  %v5494_v17 = vsub.f32 2.0, %v5414_v8  ;;  %v3689_v23 = vadd.f32 %v3688_v18, %v3687_v6  ;;  %v3669_v54 = vsel %vm76_vm0, %v3518_v61, 0.0  ;;  %v7991_v37 = vpop.f32.mrb[72].mxu0 }
 0x596   :  { %v5653_v21 = vmul.f32 %v13365_v63, %v5573_v42  ;;  %v5415_v9 = vmul.f32 %v9188_v5, %v5237_v0  ;;  %v3670_v53 = vadd.f32 %v3669_v54, %v3668_v55  ;;  %v3521_v40 = vmul.f32 %v7991_v37, %v15591_v15  ;;  %v3345_v4 = vpop.f32.mrb[73].mxu0  ;;  %v15594_v55 = vld [vmem:[#allocation64_spill] sm:$0xff]  ;;  %v15595_v54 = vld [vmem:[#allocation63_spill] sm:$0xff] }
 0x597   :  { %v5574_v39 = vmul.f32 %v9186_v41, %v5494_v17  ;;  %v3520_v52 = vmul.f32 %v15592_v28, %v3345_v4  ;;  %v15596_v17 = vld [vmem:[#allocation157_spill] sm:$0xff] }
 0x598   :  { %8279 = vmatprep.mubr.msk.f32.mxu0 %vm1604_vm1, %v5653_v21  ;;  %v5495_v27 = vsub.f32 2.0, %v5415_v9  ;;  %v3576_v58 = vsel %vm76_vm0, %v3521_v40, 0.0 }
 0x599   :  { %v5654_v63 = vmul.f32 %v15593_v44, %v5574_v39  ;;  %v3577_v35 = vadd.f32 %v3576_v58, %v3575_v14  ;;  %v3557_v6 = vsel %vm76_vm0, %v3520_v52, 0.0  ;;  %v7994_v42 = vpop.f32.mrb[74].mxu0  ;;  %v15597_v39 = vld [vmem:[#allocation68_spill] sm:$0xff] }
 0x59a   :  { %v5575_v8 = vmul.f32 %v9188_v5, %v5495_v27  ;;  %v3558_v0 = vadd.f32 %v3557_v6, %v3556_v12  ;;  %v3523_v61 = vmul.f32 %v7994_v42, %v15594_v55  ;;  %v3355_v18 = vpop.f32.mrb[75].mxu0  ;;  %v15598_v12 = vld [vmem:[#allocation66_spill] sm:$0xff] }
 0x59b   :  { %v3522_v41 = vmul.f32 %v15595_v54, %v3355_v18  ;;  %8280 = vmatmul.mubr.msk.f32.gmra.mrb[164].mxu0 %vm1604_vm1, %v5654_v63 }
 0x59c   :  { %v5655_v21 = vmul.f32 %v15596_v17, %v5575_v8  ;;  %v3614_v37 = vsel %vm76_vm0, %v3523_v61, 0.0  ;;  %v15599_v8 = vld [vmem:[#allocation71_spill] sm:$0xff] }
 0x59d   :  { %v3615_v9 = vadd.f32 %v3614_v37, %v3613_v24  ;;  %v3595_v40 = vsel %vm76_vm0, %v3522_v41, 0.0  ;;  %v7997_v14 = vpop.f32.mrb[76].mxu0  ;;  %v15600_v41 = vld [vmem:[#allocation70_spill] sm:$0xff] }
 0x59e   :  { %v3596_v4 = vadd.f32 %v3595_v40, %v3594_v31  ;;  %v3525_v52 = vmul.f32 %v7997_v14, %v15597_v39  ;;  %v3365_v5 = vpop.f32.mrb[77].mxu0  ;;  %8282 = vmatprep.mubr.msk.f32.mxu0 %vm1604_vm1, %v5655_v21 }
 0x59f   :  { %v3524_v27 = vmul.f32 %v15598_v12, %v3365_v5 }
 0x5a0   :  { %v3652_v58 = vsel %vm76_vm0, %v3525_v52, 0.0  ;;  %v15601_v52 = vld [vmem:[#allocation73_spill] sm:$0xff] }
 0x5a1   :  { %v3653_v44 = vadd.f32 %v3652_v58, %v3651_v25  ;;  %v3633_v63 = vsel %vm76_vm0, %v3524_v27, 0.0  ;;  %v8000_v6 = vpop.f32.mrb[78].mxu0  ;;  %v5240_v18 = vpop.xlane.xlu1 %5239  ;;  %v15602_v58 = vld [vmem:[#allocation72_spill] sm:$0xff] }
 0x5a2   :  { %v3634_v42 = vadd.f32 %v3633_v63, %v3632_v10  ;;  %v3527_v24 = vmul.f32 %v8000_v6, %v15599_v8  ;;  %v3375_v61 = vpop.f32.mrb[79].mxu0  ;;  %9189 = vrcp.f32 %v5240_v18 }
 0x5a3   :  { %v3526_v31 = vmul.f32 %v15600_v41, %v3375_v61 }
 0x5a4   :  { %v3690_v17 = vsel %vm76_vm0, %v3527_v24, 0.0  ;;  %v15603_v24 = vld [vmem:[#allocation75_spill] sm:$0xff] }
 0x5a5   :  { %v3691_v37 = vadd.f32 %v3690_v17, %v3689_v23  ;;  %v3671_v21 = vsel %vm76_vm0, %v3526_v31, 0.0  ;;  %v8003_v40 = vpop.f32.mrb[80].mxu0  ;;  %v5243_v27 = vpop.xlane.xlu0 %5242  ;;  %v15604_v31 = vld [vmem:[#allocation74_spill] sm:$0xff] }
 0x5a6   :  { %v3672_v14 = vadd.f32 %v3671_v21, %v3670_v53  ;;  %v3529_v25 = vmul.f32 %v8003_v40, %v15601_v52  ;;  %v3385_v5 = vpop.f32.mrb[81].mxu0  ;;  %9191 = vrcp.f32 %v5243_v27 }
 0x5a7   :  { %v3528_v10 = vmul.f32 %v15602_v58, %v3385_v5 }
 0x5a8   :  { %v3578_v63 = vsel %vm76_vm0, %v3529_v25, 0.0 }
 0x5a9   :  { %v3579_v6 = vadd.f32 %v3578_v63, %v3577_v35  ;;  %v3559_v61 = vsel %vm76_vm0, %v3528_v10, 0.0  ;;  %v8006_v41 = vpop.f32.mrb[82].mxu0  ;;  %v5246_v5 = vpop.xlane.xlu1 %5245  ;;  %v15605_v35 = vld [vmem:[#allocation77_spill] sm:$0xff] }
 0x5aa   :  { %v3560_v8 = vadd.f32 %v3559_v61, %v3558_v0  ;;  %v3531_v23 = vmul.f32 %v8006_v41, %v15603_v24  ;;  %v3395_v17 = vpop.f32.mrb[83].mxu0  ;;  %9193 = vrcp.f32 %v5246_v5  ;;  %v15606_v61 = vld [vmem:[#allocation76_spill] sm:$0xff] }
 0x5ab   :  { %v3530_v12 = vmul.f32 %v15604_v31, %v3395_v17 }
 0x5ac   :  { %v3616_v53 = vsel %vm76_vm0, %v3531_v23, 0.0  ;;  %v9190_v21 = vpop.eup %9189 }
 0x5ad   :  { %v3617_v40 = vadd.f32 %v3616_v53, %v3615_v9  ;;  %v3597_v52 = vsel %vm76_vm0, %v3530_v12, 0.0  ;;  %v8009_v58 = vpop.f32.mrb[84].mxu0  ;;  %v5416_v39 = vmul.f32 %v9190_v21, %v5240_v18  ;;  %v5249_v0 = vpop.xlane.xlu0 %5248 }
 0x5ae   :  { %v3598_v25 = vadd.f32 %v3597_v52, %v3596_v4  ;;  %v3533_v10 = vmul.f32 %v8009_v58, %v15605_v35  ;;  %v3405_v63 = vpop.f32.mrb[85].mxu0  ;;  %9195 = vrcp.f32 %v5249_v0  ;;  %v15607_v4 = vld [vmem:[#allocation79_spill] sm:$0xff]  ;;  %v15608_v35 = vld [vmem:[#allocation78_spill] sm:$0xff] }
 0x5af   :  { %v3532_v41 = vmul.f32 %v15606_v61, %v3405_v63  ;;  %v5496_v24 = vsub.f32 2.0, %v5416_v39 }
 0x5b0   :  { %v3654_v17 = vsel %vm76_vm0, %v3533_v10, 0.0  ;;  %v9192_v23 = vpop.eup %9191 }
 0x5b1   :  { %v3655_v31 = vadd.f32 %v3654_v17, %v3653_v44  ;;  %v3635_v9 = vsel %vm76_vm0, %v3532_v41, 0.0  ;;  %v8012_v12 = vpop.f32.mrb[86].mxu0  ;;  %v5576_v53 = vmul.f32 %v9190_v21, %v5496_v24  ;;  %v5417_v54 = vmul.f32 %v9192_v23, %v5243_v27  ;;  %v5252_v58 = vpop.xlane.xlu1 %5251 }
 0x5b2   :  { %v3636_v18 = vadd.f32 %v3635_v9, %v3634_v42  ;;  %v3535_v52 = vmul.f32 %v8012_v12, %v15607_v4  ;;  %v3415_v55 = vpop.f32.mrb[87].mxu0  ;;  %9197 = vrcp.f32 %v5252_v58  ;;  %v15609_v42 = vld [vmem:[#allocation81_spill] sm:$0xff]  ;;  %v15610_v9 = vld [vmem:[#allocation80_spill] sm:$0xff] }
 0x5b3   :  { %v3534_v28 = vmul.f32 %v15608_v35, %v3415_v55  ;;  %v5656_v63 = vmul.f32 %v13464_v33, %v5576_v53  ;;  %v5497_v39 = vsub.f32 2.0, %v5417_v54 }
 0x5b4   :  { %v3692_v10 = vsel %vm76_vm0, %v3535_v52, 0.0  ;;  %v9194_v33 = vpop.eup %9193 }
 0x5b5   :  { %v13845_v61 = vadd.f32 %v3692_v10, %v3691_v37  ;;  %v3673_v44 = vsel %vm76_vm0, %v3534_v28, 0.0  ;;  %v8015_v41 = vpop.f32.mrb[88].mxu0  ;;  %v5577_v24 = vmul.f32 %v9192_v23, %v5497_v39  ;;  %8283 = vmatmul.mubr.msk.f32.gmra.mrb[166].mxu0 %vm1604_vm1, %v5656_v63  ;;  %v5255_v55 = vpop.xlane.xlu0 %5254  ;;  %v5418_v28 = vmul.f32 %v9194_v33, %v5246_v5  ;;  %v15611_v63 = vld [vmem:[#allocation83_spill] sm:$0xff] }
 0x5b6   :  { %v13848_v27 = vadd.f32 %v3673_v44, %v3672_v14  ;;  %v3537_v21 = vmul.f32 %v8015_v41, %v15609_v42  ;;  %v3425_v17 = vpop.f32.mrb[89].mxu0  ;;  %9199 = vrcp.f32 %v5255_v55  ;;  %v15613_v42 = vld [vmem:[#allocation85_spill] sm:$0xff] }
 0x5b7   :  { %v3536_v12 = vmul.f32 %v15610_v9, %v3425_v17  ;;  %v5657_v54 = vmul.f32 %v13476_v38, %v5577_v24  ;;  %v5498_v9 = vsub.f32 2.0, %v5418_v28  ;;  %v15612_v38 = vld [vmem:[#allocation82_spill] sm:$0xff] }
 0x5b8   :  { %v3580_v37 = vsel %vm76_vm0, %v3537_v21, 0.0  ;;  %v9196_v53 = vpop.eup %9195 }
 0x5b9   :  { %v13855_v52 = vadd.f32 %v3580_v37, %v3579_v6  ;;  %v3561_v14 = vsel %vm76_vm0, %v3536_v12, 0.0  ;;  %v8018_v23 = vpop.f32.mrb[90].mxu0  ;;  %v5419_v39 = vmul.f32 %v9196_v53, %v5249_v0  ;;  %v5258_v17 = vpop.xlane.xlu1 %5257  ;;  %8285 = vmatprep.mubr.msk.f32.mxu0 %vm1604_vm1, %v5657_v54  ;;  %v5578_v37 = vmul.f32 %v9194_v33, %v5498_v9 }
 0x5ba   :  { %v13858_v10 = vadd.f32 %v3561_v14, %v3560_v8  ;;  %v3539_v44 = vmul.f32 %v8018_v23, %v15611_v63  ;;  %v3435_v41 = vpop.f32.mrb[91].mxu0  ;;  %9201 = vrcp.f32 %v5258_v17 }
 0x5bb   :  { %v3538_v24 = vmul.f32 %v15612_v38, %v3435_v41  ;;  %v5499_v21 = vsub.f32 2.0, %v5419_v39  ;;  %v5658_v41 = vmul.f32 %v13489_v49, %v5578_v37  ;;  %v15614_v39 = vld [vmem:[#allocation84_spill] sm:$0xff] }
 0x5bc   :  { %v3618_v6 = vsel %vm76_vm0, %v3539_v44, 0.0  ;;  %v9198_v5 = vpop.eup %9197 }
 0x5bd   :  { %v13864_v12 = vadd.f32 %v3618_v6, %v3617_v40  ;;  %v3599_v8 = vsel %vm76_vm0, %v3538_v24, 0.0  ;;  %v8021_v0 = vpop.f32.mrb[92].mxu0  ;;  %v5579_v14 = vmul.f32 %v9196_v53, %v5499_v21  ;;  %v5420_v23 = vmul.f32 %v9198_v5, %v5252_v58  ;;  %v5261_v35 = vpop.xlane.xlu0 %5260  ;;  %8286 = vmatmul.mubr.msk.f32.gmra.mrb[168].mxu0 %vm1604_vm1, %v5658_v41 }
 0x5be   :  { %v13867_v63 = vadd.f32 %v3599_v8, %v3598_v25  ;;  %v3541_v54 = vmul.f32 %v8021_v0, %v15613_v42  ;;  %v3445_v28 = vpop.f32.mrb[93].mxu0  ;;  %9203 = vrcp.f32 %v5261_v35  ;;  %v15615_v0 = vld [vmem:[#allocation87_spill] sm:$0xff] }
 0x5bf   :  { %v3540_v38 = vmul.f32 %v15614_v39, %v3445_v28  ;;  %v5659_v9 = vmul.f32 %v13503_v11, %v5579_v14  ;;  %v5500_v40 = vsub.f32 2.0, %v5420_v23 }
 0x5c0   :  { %v3656_v33 = vsel %vm76_vm0, %v3541_v54, 0.0  ;;  %v9200_v44 = vpop.eup %9199 }
 0x5c1   :  { %v3657_v24 = vadd.f32 %v3656_v33, %v3655_v31  ;;  %v3637_v58 = vsel %vm76_vm0, %v3540_v38, 0.0  ;;  %v5580_v25 = vmul.f32 %v9198_v5, %v5500_v40  ;;  %v5421_v53 = vmul.f32 %v9200_v44, %v5255_v55  ;;  %v5264_v6 = vpop.xlane.xlu1 %5263  ;;  %8288 = vmatprep.mubr.msk.f32.mxu0 %vm1604_vm1, %v5659_v9  ;;  %v15616_v55 = vld [vmem:[#allocation86_spill] sm:$0xff] }
 0x5c2   :  { %v3638_v21 = vadd.f32 %v3637_v58, %v3636_v18  ;;  %9205 = vrcp.f32 %v5264_v6 }
 0x5c3   :  { %v5660_v49 = vmul.f32 %v13512_v51, %v5580_v25  ;;  %v5501_v37 = vsub.f32 2.0, %v5421_v53 }
 0x5c4   :  { %8313 = vmatprep.mubr.msk.f32.mxu1 %vm76_vm0, %v3638_v21  ;;  %v9202_v8 = vpop.eup %9201 }
 0x5c5   :  { %v8024_v11 = vpop.f32.mrb[94].mxu0  ;;  %8314 = vmatmul.mubr.msk.f32.vlgmr.msra.gmra.mrb[160].mxu1 %vm76_vm0, %v3657_v24  ;;  %v5581_v38 = vmul.f32 %v9200_v44, %v5501_v37  ;;  %v5422_v5 = vmul.f32 %v9202_v8, %v5258_v17  ;;  %8289 = vmatmul.mubr.msk.f32.gmra.mrb[170].mxu0 %vm1604_vm1, %v5660_v49 }
 0x5c6   :  { %v3543_v31 = vmul.f32 %v8024_v11, %v15615_v0  ;;  %v3455_v14 = vpop.f32.mrb[95].mxu0 }
 0x5c7   :  { %v3542_v18 = vmul.f32 %v15616_v55, %v3455_v14  ;;  %v5661_v51 = vmul.f32 %v13520_v7, %v5581_v38  ;;  %v5502_v54 = vsub.f32 2.0, %v5422_v5  ;;  %v15618_v5 = vld [vmem:[#allocation6_spill] sm:$0xff] }
 0x5c8   :  { %v3694_v23 = vsel %vm76_vm0, %v3543_v31, 0.0  ;;  %v9204_v40 = vpop.eup %9203  ;;  %v15617_v31 = vld [vmem:[#allocation183_spill] sm:$0xff] }
 0x5c9   :  { %v3695_v28 = vadd.f32 %v3694_v23, %v13845_v61  ;;  %v3675_v41 = vsel %vm76_vm0, %v3542_v18, 0.0  ;;  %v8179_v9 = vpop.f32.mrb[96].mxu0  ;;  %v5582_v44 = vmul.f32 %v9202_v8, %v5502_v54  ;;  %v5423_v17 = vmul.f32 %v9204_v40, %v5261_v35  ;;  %8291 = vmatprep.mubr.msk.f32.mxu0 %vm1604_vm1, %v5661_v51  ;;  %v15620_v51 = vld [vmem:[#allocation14_spill] sm:$0xff] }
 0x5ca   :  { %v3676_v33 = vadd.f32 %v3675_v41, %v13848_v27  ;;  %v6004_v24 = vpop.f32.mrb[97].mxu0  ;;  %v6404_v18 = vmul.f32 %v8179_v9, %v15618_v5  ;;  %v15621_v41 = vld [vmem:[#allocation13_spill] sm:$0xff] }
 0x5cb   :  { %v5662_v58 = vmul.f32 %v13526_v19, %v5582_v44  ;;  %v5503_v25 = vsub.f32 2.0, %v5423_v17  ;;  %v15622_v44 = vld [vmem:[#allocation8_spill] sm:$0xff] }
 0x5cc   :  { %8316 = vmatprep.mubr.msk.f32.mxu1 %vm76_vm0, %v3676_v33  ;;  %v9206_v61 = vpop.eup %9205  ;;  %v6502_v33 = vsel %vm76_vm0, %v6404_v18, 0.0  ;;  %v15627_v18 = vld [vmem:[#allocation9_spill] sm:$0xff] }
 0x5cd   :  { %v8182_v7 = vpop.f32.mrb[98].mxu0  ;;  %8317 = vmatmul.mubr.msk.f32.gmra.mrb[162].mxu1 %vm76_vm0, %v3695_v28  ;;  %v5583_v21 = vmul.f32 %v9204_v40, %v5503_v25  ;;  %v5424_v49 = vmul.f32 %v9206_v61, %v5264_v6  ;;  %8292 = vmatmul.mubr.msk.f32.gmra.mrb[172].mxu0 %vm1604_vm1, %v5662_v58  ;;  %v15619_v6 = vld [vmem:[#allocation5_spill] sm:$0xff] }
 0x5ce   :  { %v6014_v53 = vpop.f32.mrb[99].mxu0  ;;  %v6403_v23 = vmul.f32 %v15619_v6, %v6004_v24  ;;  %v6406_v17 = vmul.f32 %v8182_v7, %v15622_v44  ;;  %v15623_v24 = vld [vmem:[#allocation7_spill] sm:$0xff] }
 0x5cf   :  { %v5663_v27 = vmul.f32 %v13543_v22, %v5583_v21  ;;  %v5504_v37 = vsub.f32 2.0, %v5424_v49  ;;  %v6405_v58 = vmul.f32 %v15623_v24, %v6014_v53  ;;  %v15631_v24 = vld [vmem:[#allocation11_spill] sm:$0xff] }
 0x5d0   :  { %v6540_v7 = vsel %vm76_vm0, %v6406_v17, 0.0  ;;  %v15630_v17 = vld [vmem:[#allocation12_spill] sm:$0xff] }
 0x5d1   :  { %v8185_v35 = vpop.f32.mrb[100].mxu0  ;;  %v5584_v8 = vmul.f32 %v9206_v61, %v5504_v37  ;;  %8294 = vmatprep.mubr.msk.f32.mxu0 %vm1604_vm1, %v5663_v27  ;;  %v15624_v27 = vld [vmem:[#allocation16_spill] sm:$0xff]  ;;  %v6521_v53 = vsel %vm76_vm0, %v6405_v58, 0.0 }
 0x5d2   :  { %v6024_v11 = vpop.f32.mrb[101].mxu0 }
 0x5d3   :  { %v5664_v19 = vmul.f32 %v15617_v31, %v5584_v8  ;;  %v15625_v8 = vld [vmem:[#allocation15_spill] sm:$0xff]  ;;  %v6407_v6 = vmul.f32 %v15627_v18, %v6024_v11 }
 0x5d5   :  { %v8188_v14 = vpop.f32.mrb[102].mxu0  ;;  %8295 = vmatmul.mubr.msk.f32.gmra.mrb[174].mxu0 %vm1604_vm1, %v5664_v19 }
 0x5d6   :  { %v6034_v38 = vpop.f32.mrb[103].mxu0  ;;  %8307 = vmatprep.mubr.msk.f32.mxu0 %vm76_vm0, %v13858_v10  ;;  %v6483_v10 = vsel %vm76_vm0, %v6403_v23, 0.0 }
 0x5d7   :  { %v6409_v11 = vmul.f32 %v15631_v24, %v6034_v38  ;;  %v15637_v24 = vld [vmem:[#allocation23_spill] sm:$0xff] }
 0x5d9   :  { %v8191_v22 = vpop.f32.mrb[104].mxu0  ;;  %8308 = vmatmul.mubr.msk.f32.vlgmr.msra.gmra.mrb[176].mxu0 %vm76_vm0, %v13855_v52 }
 0x5da   :  { %v6412_v54 = vmul.f32 %v8191_v22, %v15620_v51  ;;  %v6044_v28 = vpop.f32.mrb[105].mxu0  ;;  %8310 = vmatprep.mubr.msk.f32.mxu0 %vm76_vm0, %v13867_v63  ;;  %v15626_v63 = vld [vmem:[#allocation10_spill] sm:$0xff] }
 0x5db   :  { %v6411_v40 = vmul.f32 %v15621_v41, %v6044_v28  ;;  %v6408_v19 = vmul.f32 %v8185_v35, %v15626_v63  ;;  %v15628_v28 = vld [vmem:[#allocation18_spill] sm:$0xff]  ;;  %v6410_v35 = vmul.f32 %v8188_v14, %v15630_v17 }
 0x5dc   :  { %v6503_v9 = vsel %vm76_vm0, %v6412_v54, 0.0 }
 0x5dd   :  { %v6504_v25 = vadd.f32 %v6503_v9, %v6502_v33  ;;  %v6484_v61 = vsel %vm76_vm0, %v6411_v40, 0.0  ;;  %v8194_v21 = vpop.f32.mrb[106].mxu0  ;;  %8311 = vmatmul.mubr.msk.f32.gmra.mrb[178].mxu0 %vm76_vm0, %v13864_v12  ;;  %v15629_v33 = vld [vmem:[#allocation17_spill] sm:$0xff]  ;;  %v6578_v44 = vsel %vm76_vm0, %v6408_v19, 0.0  ;;  %v6616_v63 = vsel %vm76_vm0, %v6410_v35, 0.0  ;;  %v15636_v35 = vld [vmem:[#allocation24_spill] sm:$0xff] }
 0x5de   :  { %v6485_v49 = vadd.f32 %v6484_v61, %v6483_v10  ;;  %v6414_v52 = vmul.f32 %v8194_v21, %v15624_v27  ;;  %v6054_v37 = vpop.f32.mrb[107].mxu0  ;;  %v6559_v10 = vsel %vm76_vm0, %v6407_v6, 0.0  ;;  %v6597_v19 = vsel %vm76_vm0, %v6409_v11, 0.0  ;;  %v15634_v6 = vld [vmem:[#allocation22_spill] sm:$0xff] }
 0x5df   :  { %v6413_v31 = vmul.f32 %v15625_v8, %v6054_v37 }
 0x5e0   :  { %v6541_v5 = vsel %vm76_vm0, %v6414_v52, 0.0  ;;  %v15632_v52 = vld [vmem:[#allocation20_spill] sm:$0xff] }
 0x5e1   :  { %v6542_v23 = vadd.f32 %v6541_v5, %v6540_v7  ;;  %v6522_v22 = vsel %vm76_vm0, %v6413_v31, 0.0  ;;  %v8197_v51 = vpop.f32.mrb[108].mxu0  ;;  %v15633_v31 = vld [vmem:[#allocation19_spill] sm:$0xff] }
 0x5e2   :  { %v6523_v54 = vadd.f32 %v6522_v22, %v6521_v53  ;;  %v6416_v41 = vmul.f32 %v8197_v51, %v15628_v28  ;;  %v6064_v40 = vpop.f32.mrb[109].mxu0  ;;  %v15635_v28 = vld [vmem:[#allocation21_spill] sm:$0xff] }
 0x5e3   :  { %v6415_v12 = vmul.f32 %v15629_v33, %v6064_v40 }
 0x5e4   :  { %v6579_v9 = vsel %vm76_vm0, %v6416_v41, 0.0 }
 0x5e5   :  { %v6580_v58 = vadd.f32 %v6579_v9, %v6578_v44  ;;  %v6560_v61 = vsel %vm76_vm0, %v6415_v12, 0.0  ;;  %v8200_v21 = vpop.f32.mrb[110].mxu0 }
 0x5e6   :  { %v6561_v27 = vadd.f32 %v6560_v61, %v6559_v10  ;;  %v6418_v37 = vmul.f32 %v8200_v21, %v15632_v52  ;;  %v6074_v8 = vpop.f32.mrb[111].mxu0 }
 0x5e7   :  { %v6417_v7 = vmul.f32 %v15633_v31, %v6074_v8  ;;  %v15638_v31 = vld [vmem:[#allocation26_spill] sm:$0xff] }
 0x5e8   :  { %v6617_v14 = vsel %vm76_vm0, %v6418_v37, 0.0 }
 0x5e9   :  { %v6618_v5 = vadd.f32 %v6617_v14, %v6616_v63  ;;  %v6598_v53 = vsel %vm76_vm0, %v6417_v7, 0.0  ;;  %v8203_v38 = vpop.f32.mrb[112].mxu0 }
 0x5ea   :  { %v6599_v18 = vadd.f32 %v6598_v53, %v6597_v19  ;;  %v6420_v22 = vmul.f32 %v8203_v38, %v15634_v6  ;;  %v6084_v51 = vpop.f32.mrb[113].mxu0 }
 0x5eb   :  { %v6419_v41 = vmul.f32 %v15635_v28, %v6084_v51 }
 0x5ec   :  { %v6505_v40 = vsel %vm76_vm0, %v6420_v22, 0.0  ;;  %v15640_v22 = vld [vmem:[#allocation28_spill] sm:$0xff] }
 0x5ed   :  { %v6506_v33 = vadd.f32 %v6505_v40, %v6504_v25  ;;  %v6486_v12 = vsel %vm76_vm0, %v6419_v41, 0.0  ;;  %v8206_v44 = vpop.f32.mrb[114].mxu0  ;;  %v15639_v25 = vld [vmem:[#allocation25_spill] sm:$0xff] }
 0x5ee   :  { %v6487_v17 = vadd.f32 %v6486_v12, %v6485_v49  ;;  %v6422_v9 = vmul.f32 %v8206_v44, %v15636_v35  ;;  %v6094_v10 = vpop.f32.mrb[115].mxu0 }
 0x5ef   :  { %v6421_v11 = vmul.f32 %v15637_v24, %v6094_v10 }
 0x5f0   :  { %v6543_v61 = vsel %vm76_vm0, %v6422_v9, 0.0  ;;  %v15642_v9 = vld [vmem:[#allocation30_spill] sm:$0xff] }
 0x5f1   :  { %v6544_v21 = vadd.f32 %v6543_v61, %v6542_v23  ;;  %v6524_v52 = vsel %vm76_vm0, %v6421_v11, 0.0  ;;  %v8209_v37 = vpop.f32.mrb[116].mxu0  ;;  %v15641_v23 = vld [vmem:[#allocation27_spill] sm:$0xff] }
 0x5f2   :  { %v6525_v8 = vadd.f32 %v6524_v52, %v6523_v54  ;;  %v6424_v7 = vmul.f32 %v8209_v37, %v15638_v31  ;;  %v6104_v63 = vpop.f32.mrb[117].mxu0 }
 0x5f3   :  { %v6423_v14 = vmul.f32 %v15639_v25, %v6104_v63 }
 0x5f4   :  { %v6581_v19 = vsel %vm76_vm0, %v6424_v7, 0.0  ;;  %v15644_v7 = vld [vmem:[#allocation32_spill] sm:$0xff] }
 0x5f5   :  { %v6582_v49 = vadd.f32 %v6581_v19, %v6580_v58  ;;  %v6562_v53 = vsel %vm76_vm0, %v6423_v14, 0.0  ;;  %v8212_v38 = vpop.f32.mrb[118].mxu0  ;;  %v15643_v58 = vld [vmem:[#allocation29_spill] sm:$0xff] }
 0x5f6   :  { %v6563_v6 = vadd.f32 %v6562_v53, %v6561_v27  ;;  %v6426_v51 = vmul.f32 %v8212_v38, %v15640_v22  ;;  %v6114_v28 = vpop.f32.mrb[119].mxu0 }
 0x5f7   :  { %v6425_v41 = vmul.f32 %v15641_v23, %v6114_v28 }
 0x5f8   :  { %v6619_v40 = vsel %vm76_vm0, %v6426_v51, 0.0  ;;  %v15646_v51 = vld [vmem:[#allocation34_spill] sm:$0xff] }
 0x5f9   :  { %v6620_v54 = vadd.f32 %v6619_v40, %v6618_v5  ;;  %v6600_v12 = vsel %vm76_vm0, %v6425_v41, 0.0  ;;  %v8215_v35 = vpop.f32.mrb[120].mxu0  ;;  %v15645_v5 = vld [vmem:[#allocation31_spill] sm:$0xff] }
 0x5fa   :  { %v6601_v44 = vadd.f32 %v6600_v12, %v6599_v18  ;;  %v6428_v10 = vmul.f32 %v8215_v35, %v15642_v9  ;;  %v6124_v24 = vpop.f32.mrb[121].mxu0 }
 0x5fb   :  { %v6427_v11 = vmul.f32 %v15643_v58, %v6124_v24 }
 0x5fc   :  { %v6507_v61 = vsel %vm76_vm0, %v6428_v10, 0.0 }
 0x5fd   :  { %v6508_v27 = vadd.f32 %v6507_v61, %v6506_v33  ;;  %v6488_v52 = vsel %vm76_vm0, %v6427_v11, 0.0  ;;  %v15647_v33 = vld [vmem:[#allocation33_spill] sm:$0xff] }
 0x5fe   :  { %v6489_v37 = vadd.f32 %v6488_v52, %v6487_v17 }
 0x601   :  { %v8218_v31 = vpop.f32.mrb[122].mxu0 }
 0x602   :  { %v6430_v63 = vmul.f32 %v8218_v31, %v15644_v7  ;;  %v6134_v25 = vpop.f32.mrb[123].mxu0 }
 0x603   :  { %v6429_v14 = vmul.f32 %v15645_v5, %v6134_v25 }
 0x604   :  { %v6545_v18 = vsel %vm76_vm0, %v6430_v63, 0.0 }
 0x605   :  { %v6546_v19 = vadd.f32 %v6545_v18, %v6544_v21  ;;  %v6526_v53 = vsel %vm76_vm0, %v6429_v14, 0.0  ;;  %v15648_v21 = vld [vmem:[#allocation35_spill] sm:$0xff] }
 0x606   :  { %v6527_v38 = vadd.f32 %v6526_v53, %v6525_v8  ;;  %v15650_v53 = vld [vmem:[#allocation40_spill] sm:$0xff] }
 0x609   :  { %v8221_v22 = vpop.f32.mrb[124].mxu0 }
 0x60a   :  { %v6432_v28 = vmul.f32 %v8221_v22, %v15646_v51  ;;  %v6144_v23 = vpop.f32.mrb[125].mxu0 }
 0x60b   :  { %v6431_v41 = vmul.f32 %v15647_v33, %v6144_v23 }
 0x60c   :  { %v6583_v17 = vsel %vm76_vm0, %v6432_v28, 0.0 }
 0x60d   :  { %v6584_v40 = vadd.f32 %v6583_v17, %v6582_v49  ;;  %v6564_v12 = vsel %vm76_vm0, %v6431_v41, 0.0  ;;  %v15649_v49 = vld [vmem:[#allocation37_spill] sm:$0xff] }
 0x60e   :  { %v6565_v35 = vadd.f32 %v6564_v12, %v6563_v6 }
 0x611   :  { %v8224_v9 = vpop.f32.mrb[126].mxu0 }
 0x612   :  { %v6434_v10 = vmul.f32 %v8224_v9, %v15551_v2  ;;  %v6154_v24 = vpop.f32.mrb[127].mxu0 }
 0x613   :  { %v6433_v58 = vmul.f32 %v15648_v21, %v6154_v24 }
 0x614   :  { %v6621_v8 = vsel %vm76_vm0, %v6434_v10, 0.0 }
 0x615   :  { %v6622_v11 = vadd.f32 %v6621_v8, %v6620_v54  ;;  %v6602_v61 = vsel %vm76_vm0, %v6433_v58, 0.0 }
 0x616   :  { %v6603_v52 = vadd.f32 %v6602_v61, %v6601_v44 }
 0x619   :  { %v8227_v31 = vpop.f32.mrb[128].mxu0 }
 0x61a   :  { %v6436_v7 = vmul.f32 %v8227_v31, %v15558_v43  ;;  %v6164_v63 = vpop.f32.mrb[129].mxu0 }
 0x61b   :  { %v6435_v25 = vmul.f32 %v15649_v49, %v6164_v63 }
 0x61c   :  { %v6509_v6 = vsel %vm76_vm0, %v6436_v7, 0.0 }
 0x61d   :  { %v6510_v5 = vadd.f32 %v6509_v6, %v6508_v27  ;;  %v6490_v2 = vsel %vm76_vm0, %v6435_v25, 0.0 }
 0x61e   :  { %v6491_v14 = vadd.f32 %v6490_v2, %v6489_v37 }
 0x621   :  { %v8230_v18 = vpop.f32.mrb[130].mxu0 }
 0x622   :  { %v6438_v22 = vmul.f32 %v8230_v18, %v15650_v53  ;;  %v6174_v51 = vpop.f32.mrb[131].mxu0 }
 0x623   :  { %v6437_v54 = vmul.f32 %v15569_v30, %v6174_v51 }
 0x624   :  { %v6547_v44 = vsel %vm76_vm0, %v6438_v22, 0.0 }
 0x625   :  { %v6548_v28 = vadd.f32 %v6547_v44, %v6546_v19  ;;  %v6528_v43 = vsel %vm76_vm0, %v6437_v54, 0.0  ;;  %v8233_v23 = vpop.f32.mrb[132].mxu0 }
 0x626   :  { %v6529_v33 = vadd.f32 %v6528_v43, %v6527_v38  ;;  %v6440_v41 = vmul.f32 %v8233_v23, %v15571_v45  ;;  %v6184_v17 = vpop.f32.mrb[133].mxu0 }
 0x627   :  { %v6439_v27 = vmul.f32 %v15572_v56, %v6184_v17 }
 0x628   :  { %v6585_v37 = vsel %vm76_vm0, %v6440_v41, 0.0 }
 0x629   :  { %v6586_v12 = vadd.f32 %v6585_v37, %v6584_v40  ;;  %v6566_v9 = vsel %vm76_vm0, %v6439_v27, 0.0  ;;  %v8236_v10 = vpop.f32.mrb[134].mxu0 }
 0x62a   :  { %v6567_v24 = vadd.f32 %v6566_v9, %v6565_v35  ;;  %v6442_v30 = vmul.f32 %v8236_v10, %v15573_v50  ;;  %v6194_v21 = vpop.f32.mrb[135].mxu0 }
 0x62b   :  { %v6441_v19 = vmul.f32 %v15574_v46, %v6194_v21 }
 0x62c   :  { %v6623_v58 = vsel %vm76_vm0, %v6442_v30, 0.0 }
 0x62d   :  { %v6624_v38 = vadd.f32 %v6623_v58, %v6622_v11  ;;  %v6604_v45 = vsel %vm76_vm0, %v6441_v19, 0.0  ;;  %v8239_v8 = vpop.f32.mrb[136].mxu0 }
 0x62e   :  { %v6605_v61 = vadd.f32 %v6604_v45, %v6603_v52  ;;  %v6444_v56 = vmul.f32 %v8239_v8, %v15575_v36  ;;  %v6204_v31 = vpop.f32.mrb[137].mxu0 }
 0x62f   :  { %v6443_v40 = vmul.f32 %v15576_v20, %v6204_v31 }
 0x630   :  { %v6511_v7 = vsel %vm76_vm0, %v6444_v56, 0.0 }
 0x631   :  { %v6512_v35 = vadd.f32 %v6511_v7, %v6510_v5  ;;  %v6492_v50 = vsel %vm76_vm0, %v6443_v40, 0.0  ;;  %v8242_v63 = vpop.f32.mrb[138].mxu0 }
 0x632   :  { %v6493_v49 = vadd.f32 %v6492_v50, %v6491_v14  ;;  %v6446_v46 = vmul.f32 %v8242_v63, %v15577_v59  ;;  %v6214_v25 = vpop.f32.mrb[139].mxu0 }
 0x633   :  { %v6445_v11 = vmul.f32 %v15578_v29, %v6214_v25 }
 0x634   :  { %v6549_v6 = vsel %vm76_vm0, %v6446_v46, 0.0 }
 0x635   :  { %v6550_v52 = vadd.f32 %v6549_v6, %v6548_v28  ;;  %v6530_v36 = vsel %vm76_vm0, %v6445_v11, 0.0  ;;  %v8245_v2 = vpop.f32.mrb[140].mxu0  ;;  %v15651_v11 = vld [vmem:[#allocation61_spill] sm:$0xff] }
 0x636   :  { %v6531_v18 = vadd.f32 %v6530_v36, %v6529_v33  ;;  %v6448_v20 = vmul.f32 %v8245_v2, %v15579_v16  ;;  %v6224_v53 = vpop.f32.mrb[141].mxu0 }
 0x637   :  { %v6447_v5 = vmul.f32 %v15580_v13, %v6224_v53 }
 0x638   :  { %v6587_v22 = vsel %vm76_vm0, %v6448_v20, 0.0 }
 0x639   :  { %v6588_v14 = vadd.f32 %v6587_v22, %v6586_v12  ;;  %v6568_v59 = vsel %vm76_vm0, %v6447_v5, 0.0  ;;  %v8248_v51 = vpop.f32.mrb[142].mxu0  ;;  %v15653_v5 = vld [vmem:[#allocation63_spill] sm:$0xff] }
 0x63a   :  { %v6569_v54 = vadd.f32 %v6568_v59, %v6567_v24  ;;  %v6450_v29 = vmul.f32 %v8248_v51, %v15581_v26  ;;  %v6234_v44 = vpop.f32.mrb[143].mxu0 }
 0x63b   :  { %v6449_v28 = vmul.f32 %v15582_v34, %v6234_v44 }
 0x63c   :  { %v6625_v43 = vsel %vm76_vm0, %v6450_v29, 0.0  ;;  %v15654_v29 = vld [vmem:[#allocation68_spill] sm:$0xff] }
 0x63d   :  { %v6626_v23 = vadd.f32 %v6625_v43, %v6624_v38  ;;  %v6606_v16 = vsel %vm76_vm0, %v6449_v28, 0.0  ;;  %v8251_v33 = vpop.f32.mrb[144].mxu0  ;;  %v15655_v43 = vld [vmem:[#allocation66_spill] sm:$0xff] }
 0x63e   :  { %v6607_v41 = vadd.f32 %v6606_v16, %v6605_v61  ;;  %v6452_v13 = vmul.f32 %v8251_v33, %v15583_v32  ;;  %v6244_v17 = vpop.f32.mrb[145].mxu0 }
 0x63f   :  { %v6451_v27 = vmul.f32 %v15584_v47, %v6244_v17 }
 0x640   :  { %v6513_v37 = vsel %vm76_vm0, %v6452_v13, 0.0 }
 0x641   :  { %v6514_v12 = vadd.f32 %v6513_v37, %v6512_v35  ;;  %v6494_v26 = vsel %vm76_vm0, %v6451_v27, 0.0  ;;  %v8254_v9 = vpop.f32.mrb[146].mxu0  ;;  %v15656_v27 = vld [vmem:[#allocation71_spill] sm:$0xff] }
 0x642   :  { %v6495_v10 = vadd.f32 %v6494_v26, %v6493_v49  ;;  %v6454_v34 = vmul.f32 %v8254_v9, %v15585_v60  ;;  %v6254_v24 = vpop.f32.mrb[147].mxu0  ;;  %v15657_v26 = vld [vmem:[#allocation70_spill] sm:$0xff] }
 0x643   :  { %v6453_v30 = vmul.f32 %v15586_v57, %v6254_v24 }
 0x644   :  { %v6551_v21 = vsel %vm76_vm0, %v6454_v34, 0.0 }
 0x645   :  { %v6552_v19 = vadd.f32 %v6551_v21, %v6550_v52  ;;  %v6532_v32 = vsel %vm76_vm0, %v6453_v30, 0.0  ;;  %v8257_v58 = vpop.f32.mrb[148].mxu0 }
 0x646   :  { %v6533_v38 = vadd.f32 %v6532_v32, %v6531_v18  ;;  %v6456_v47 = vmul.f32 %v8257_v58, %v15587_v62  ;;  %v6264_v45 = vpop.f32.mrb[149].mxu0 }
 0x647   :  { %v6455_v8 = vmul.f32 %v15588_v3, %v6264_v45 }
 0x648   :  { %v6589_v61 = vsel %vm76_vm0, %v6456_v47, 0.0 }
 0x649   :  { %v6590_v56 = vadd.f32 %v6589_v61, %v6588_v14  ;;  %v6570_v60 = vsel %vm76_vm0, %v6455_v8, 0.0  ;;  %v8260_v31 = vpop.f32.mrb[150].mxu0 }
 0x64a   :  { %v6571_v40 = vadd.f32 %v6570_v60, %v6569_v54  ;;  %v6458_v57 = vmul.f32 %v8260_v31, %v15589_v1  ;;  %v6274_v7 = vpop.f32.mrb[151].mxu0  ;;  %v15660_v31 = vld [vmem:[#allocation75_spill] sm:$0xff] }
 0x64b   :  { %v6457_v35 = vmul.f32 %v15590_v48, %v6274_v7  ;;  %v15652_v48 = vld [vmem:[#allocation64_spill] sm:$0xff]  ;;  %v15661_v7 = vld [vmem:[#allocation74_spill] sm:$0xff] }
 0x64c   :  { %v6627_v50 = vsel %vm76_vm0, %v6458_v57, 0.0 }
 0x64d   :  { %v6628_v63 = vadd.f32 %v6627_v50, %v6626_v23  ;;  %v6608_v62 = vsel %vm76_vm0, %v6457_v35, 0.0  ;;  %v8263_v49 = vpop.f32.mrb[152].mxu0 }
 0x64e   :  { %v6609_v46 = vadd.f32 %v6608_v62, %v6607_v41  ;;  %v6460_v3 = vmul.f32 %v8263_v49, %v15591_v15  ;;  %v6284_v25 = vpop.f32.mrb[153].mxu0 }
 0x64f   :  { %v6459_v6 = vmul.f32 %v15651_v11, %v6284_v25 }
 0x650   :  { %v6515_v52 = vsel %vm76_vm0, %v6460_v3, 0.0  ;;  %v15662_v3 = vld [vmem:[#allocation77_spill] sm:$0xff] }
 0x651   :  { %v6516_v36 = vadd.f32 %v6515_v52, %v6514_v12  ;;  %v6496_v1 = vsel %vm76_vm0, %v6459_v6, 0.0  ;;  %v8266_v2 = vpop.f32.mrb[154].mxu0  ;;  %v15663_v6 = vld [vmem:[#allocation76_spill] sm:$0xff] }
 0x652   :  { %v6497_v18 = vadd.f32 %v6496_v1, %v6495_v10  ;;  %v6462_v20 = vmul.f32 %v8266_v2, %v15652_v48  ;;  %v6294_v53 = vpop.f32.mrb[155].mxu0 }
 0x653   :  { %v6461_v22 = vmul.f32 %v15653_v5, %v6294_v53  ;;  %v15664_v5 = vld [vmem:[#allocation78_spill] sm:$0xff] }
 0x654   :  { %v6553_v14 = vsel %vm76_vm0, %v6462_v20, 0.0 }
 0x655   :  { %v6554_v59 = vadd.f32 %v6553_v14, %v6552_v19  ;;  %v6534_v15 = vsel %vm76_vm0, %v6461_v22, 0.0  ;;  %v8269_v51 = vpop.f32.mrb[156].mxu0  ;;  %v15658_v19 = vld [vmem:[#allocation73_spill] sm:$0xff] }
 0x656   :  { %v6535_v54 = vadd.f32 %v6534_v15, %v6533_v38  ;;  %v6464_v44 = vmul.f32 %v8269_v51, %v15654_v29  ;;  %v6304_v28 = vpop.f32.mrb[157].mxu0  ;;  %v15659_v38 = vld [vmem:[#allocation72_spill] sm:$0xff]  ;;  %v15665_v29 = vld [vmem:[#allocation81_spill] sm:$0xff] }
 0x657   :  { %v6463_v23 = vmul.f32 %v15655_v43, %v6304_v28  ;;  %v15666_v43 = vld [vmem:[#allocation80_spill] sm:$0xff] }
 0x658   :  { %v6591_v16 = vsel %vm76_vm0, %v6464_v44, 0.0 }
 0x659   :  { %v6592_v33 = vadd.f32 %v6591_v16, %v6590_v56  ;;  %v6572_v41 = vsel %vm76_vm0, %v6463_v23, 0.0  ;;  %v8272_v13 = vpop.f32.mrb[158].mxu0  ;;  %v14054_v16 = vld [vmem:[%s14111_s5] ss:$0 sm:$0xff]  ;;  %s9239_s5 = smov [#allocation2]  }
 0x65a   :  { %v6573_v17 = vadd.f32 %v6572_v41, %v6571_v40  ;;  %v6466_v37 = vmul.f32 %v8272_v13, %v15656_v27  ;;  %v6314_v12 = vpop.f32.mrb[159].mxu0  ;;  %s6861_s2 = sshll.u32 %s9239_s5, 4  ;;  %s6862_s2 = int_to_ptr.vmem [resolvable:$true] %s6861_s2 }
 0x65b   :  { %v6465_v9 = vmul.f32 %v15657_v26, %v6314_v12  ;;  %v15667_v26 = vld [vmem:[#allocation83_spill] sm:$0xff]  ;;  %s9207_s19 = scalar_lea.vmem %s6862_s2, 2048  ;;  %p9212_p1 = scmp.lt.s32.totalorder %s6862_s2, %s6862_s2 }
 0x65c   :  { %v6629_v10 = vsel %vm76_vm0, %v6466_v37, 0.0  ;;  %p9208_p0 = scmp.ne.s32.totalorder %s6862_s2, %s9207_s19  ;;  %p9213_p2 = scmp.lt.s32.totalorder %s9207_s19, %s9207_s19 }
 0x65d   :  { %v6630_v34 = vadd.f32 %v6629_v10, %v6628_v63  ;;  %v6610_v24 = vsel %vm76_vm0, %v6465_v9, 0.0  ;;  %v8275_v30 = vpop.f32.mrb[160].mxu0 }
 0x65e   :  { %v6611_v21 = vadd.f32 %v6610_v24, %v6609_v46  ;;  %v6468_v32 = vmul.f32 %v8275_v30, %v15658_v19  ;;  %v6324_v58 = vpop.f32.mrb[161].mxu0  ;;  %v15668_v24 = vld [vmem:[#allocation82_spill] sm:$0xff]  ;;  %p9214_p3 = por %p9213_p2, %p9212_p1 }
 0x65f   :  { %v6467_v47 = vmul.f32 %v15659_v38, %v6324_v58 }
 0x660   :  { %v6517_v45 = vsel %vm76_vm0, %v6468_v32, 0.0  ;;  %p9215_p4 = pnand %p9214_p3, %p9208_p0 }
 0x661   :  { %v6518_v8 = vadd.f32 %v6517_v45, %v6516_v36  ;;  %v6498_v61 = vsel %vm76_vm0, %v6467_v47, 0.0 }
 0x662   :  { %v6499_v56 = vadd.f32 %v6498_v61, %v6497_v18 }
 0x667   :  { %v8278_v60 = vpop.f32.mrb[162].mxu0 }
 0x668   :  { %v6470_v40 = vmul.f32 %v8278_v60, %v15660_v31  ;;  %v6334_v57 = vpop.f32.mrb[163].mxu0 }
 0x669   :  { %v6469_v35 = vmul.f32 %v15661_v7, %v6334_v57 }
 0x66a   :  { %v6555_v50 = vsel %vm76_vm0, %v6470_v40, 0.0 }
 0x66b   :  { %v6556_v63 = vadd.f32 %v6555_v50, %v6554_v59  ;;  %v6536_v62 = vsel %vm76_vm0, %v6469_v35, 0.0 }
 0x66c   :  { %v6537_v49 = vadd.f32 %v6536_v62, %v6535_v54 }
 0x66e   :  { %v8281_v46 = vpop.f32.mrb[164].mxu0 }
 0x66f   :  { %v6472_v25 = vmul.f32 %v8281_v46, %v15662_v3  ;;  %v6344_v11 = vpop.f32.mrb[165].mxu0 }
 0x670   :  { %v6471_v52 = vmul.f32 %v15663_v6, %v6344_v11 }
 0x671   :  { %v6593_v36 = vsel %vm76_vm0, %v6472_v25, 0.0 }
 0x672   :  { %v6594_v1 = vadd.f32 %v6593_v36, %v6592_v33  ;;  %v6574_v2 = vsel %vm76_vm0, %v6471_v52, 0.0 }
 0x673   :  { %v6575_v18 = vadd.f32 %v6574_v2, %v6573_v17 }
 0x688   :  { %v8284_v48 = vpop.f32.mrb[166].mxu0 }
 0x689   :  { %v6474_v20 = vmul.f32 %v8284_v48, %v15607_v4  ;;  %v6354_v53 = vpop.f32.mrb[167].mxu0 }
 0x68a   :  { %v6473_v22 = vmul.f32 %v15664_v5, %v6354_v53 }
 0x68b   :  { %v6631_v14 = vsel %vm76_vm0, %v6474_v20, 0.0 }
 0x68c   :  { %v6632_v59 = vadd.f32 %v6631_v14, %v6630_v34  ;;  %v6612_v15 = vsel %vm76_vm0, %v6473_v22, 0.0 }
 0x68d   :  { %v6613_v51 = vadd.f32 %v6612_v15, %v6611_v21 }
 0x690   :  { %v8287_v54 = vpop.f32.mrb[168].mxu0 }
 0x691   :  { %v6476_v44 = vmul.f32 %v8287_v54, %v15665_v29  ;;  %v6364_v28 = vpop.f32.mrb[169].mxu0 }
 0x692   :  { %v6475_v23 = vmul.f32 %v15666_v43, %v6364_v28 }
 0x693   :  { %v6519_v4 = vsel %vm76_vm0, %v6476_v44, 0.0 }
 0x694   :  { %v6520_v33 = vadd.f32 %v6519_v4, %v6518_v8  ;;  %v6500_v41 = vsel %vm76_vm0, %v6475_v23, 0.0 }
 0x695   :  { %v6501_v17 = vadd.f32 %v6500_v41, %v6499_v56 }
 0x697   :  { %8319 = vmatprep.mubr.msk.f32.mxu1 %vm76_vm0, %v6501_v17 }
 0x698   :  { %v8315_v13 = vpop.f32.mrb[160].mxu1  ;;  %v8290_v37 = vpop.f32.mrb[170].mxu0  ;;  %8320 = vmatmul.mubr.msk.f32.gmra.mrb[164].mxu1 %vm76_vm0, %v6520_v33 }
 0x699   :  { %v6787_v27 = vadd.f32 %v8315_v13, %v14054_v16  ;;  %v6781_v12 = vpop.f32.mrb[161].mxu1  ;;  %v6478_v9 = vmul.f32 %v8290_v37, %v15667_v26  ;;  %v6374_v34 = vpop.f32.mrb[171].mxu0 }
 0x69a   :  { %v6782_v10 = vadd.f32 %v14054_v16, %v6781_v12  ;;  %v6477_v30 = vmul.f32 %v15668_v24, %v6374_v34 }
 0x69b   :  { %6845 = vst [vmem:[#allocation2 + $0x28] sm:$0xff] %v6787_v27  ;;  %v6557_v21 = vsel %vm76_vm0, %v6478_v9, 0.0 }
 0x69c   :  { %6844 = vst [vmem:[#allocation2 + $0x20] sm:$0xff] %v6782_v10  ;;  %v6558_v19 = vadd.f32 %v6557_v21, %v6556_v63  ;;  %v6538_v32 = vsel %vm76_vm0, %v6477_v30, 0.0 }
 0x69d   :  { %v6539_v58 = vadd.f32 %v6538_v32, %v6537_v49 }
 0x69f   :  { %8322 = vmatprep.mubr.msk.f32.mxu1 %vm76_vm0, %v6539_v58 }
 0x6a0   :  { %v8318_v38 = vpop.f32.mrb[162].mxu1  ;;  %v8293_v61 = vpop.f32.mrb[172].mxu0  ;;  %8323 = vmatmul.mubr.msk.f32.gmra.mrb[166].mxu1 %vm76_vm0, %v6558_v19 }
 0x6a1   :  { %v6797_v47 = vadd.f32 %v8318_v38, %v14054_v16  ;;  %v6791_v45 = vpop.f32.mrb[163].mxu1  ;;  %v6480_v56 = vmul.f32 %v8293_v61, %v15613_v42  ;;  %v6384_v60 = vpop.f32.mrb[173].mxu0 }
 0x6a2   :  { %v6792_v8 = vadd.f32 %v14054_v16, %v6791_v45  ;;  %v6479_v31 = vmul.f32 %v15614_v39, %v6384_v60 }
 0x6a3   :  { %6847 = vst [vmem:[#allocation2 + $0x38] sm:$0xff] %v6797_v47  ;;  %v6595_v40 = vsel %vm76_vm0, %v6480_v56, 0.0 }
 0x6a4   :  { %6846 = vst [vmem:[#allocation2 + $0x30] sm:$0xff] %v6792_v8  ;;  %v6596_v57 = vadd.f32 %v6595_v40, %v6594_v1  ;;  %v6576_v7 = vsel %vm76_vm0, %v6479_v31, 0.0 }
 0x6a5   :  { %v6577_v35 = vadd.f32 %v6576_v7, %v6575_v18 }
 0x6a7   :  { %8325 = vmatprep.mubr.msk.f32.mxu1 %vm76_vm0, %v6577_v35 }
 0x6a8   :  { %v8296_v50 = vpop.f32.mrb[174].mxu0  ;;  %8326 = vmatmul.mubr.msk.f32.gmra.mrb[168].mxu1 %vm76_vm0, %v6596_v57 }
 0x6a9   :  { %v6482_v63 = vmul.f32 %v8296_v50, %v15615_v0  ;;  %v6394_v62 = vpop.f32.mrb[175].mxu0 }
 0x6aa   :  { %v6481_v42 = vmul.f32 %v15616_v55, %v6394_v62 }
 0x6ab   :  { %v6633_v49 = vsel %vm76_vm0, %v6482_v63, 0.0 }
 0x6ac   :  { %v6634_v46 = vadd.f32 %v6633_v49, %v6632_v59  ;;  %v6614_v39 = vsel %vm76_vm0, %v6481_v42, 0.0  ;;  %v8309_v3 = vpop.f32.mrb[176].mxu0 }
 0x6ad   :  { %v6615_v25 = vadd.f32 %v6614_v39, %v6613_v51  ;;  %v6767_v11 = vadd.f32 %v8309_v3, %v14054_v16  ;;  %v6761_v6 = vpop.f32.mrb[177].mxu0 }
 0x6ae   :  { %v6762_v52 = vadd.f32 %v14054_v16, %v6761_v6 }
 0x6af   :  { %6841 = vst [vmem:[#allocation2 + $0x8] sm:$0xff] %v6767_v11  ;;  %8328 = vmatprep.mubr.msk.f32.mxu1 %vm76_vm0, %v6615_v25 }
 0x6b0   :  { %6840 = vst [vmem:[#allocation2] sm:$0xff] %v6762_v52  ;;  %v8312_v0 = vpop.f32.mrb[178].mxu0  ;;  %8329 = vmatmul.mubr.msk.f32.gmra.mrb[170].mxu1 %vm76_vm0, %v6634_v46 }
 0x6b1   :  { %v6777_v55 = vadd.f32 %v8312_v0, %v14054_v16  ;;  %v6771_v36 = vpop.f32.mrb[179].mxu0 }
 0x6b2   :  { %v6772_v1 = vadd.f32 %v14054_v16, %v6771_v36 }
 0x6b3   :  { %6843 = vst [vmem:[#allocation2 + $0x18] sm:$0xff] %v6777_v55 }
 0x6b4   :  { %6842 = vst [vmem:[#allocation2 + $0x10] sm:$0xff] %v6772_v1 }
 0x76b   :  { %v8321_v2 = vpop.f32.mrb[164].mxu1 }
 0x76c   :  { %v6807_v18 = vadd.f32 %v8321_v2, %v14054_v16  ;;  %v6801_v48 = vpop.f32.mrb[165].mxu1 }
 0x76d   :  { %v6802_v20 = vadd.f32 %v14054_v16, %v6801_v48 }
 0x76e   :  { %6849 = vst [vmem:[#allocation2 + $0x48] sm:$0xff] %v6807_v18 }
 0x76f   :  { %6848 = vst [vmem:[#allocation2 + $0x40] sm:$0xff] %v6802_v20 }
 0x773   :  { %v8324_v53 = vpop.f32.mrb[166].mxu1 }
 0x774   :  { %v6817_v5 = vadd.f32 %v8324_v53, %v14054_v16  ;;  %v6811_v22 = vpop.f32.mrb[167].mxu1 }
 0x775   :  { %v6812_v14 = vadd.f32 %v14054_v16, %v6811_v22 }
 0x776   :  { %6851 = vst [vmem:[#allocation2 + $0x58] sm:$0xff] %v6817_v5 }
 0x777   :  { %6850 = vst [vmem:[#allocation2 + $0x50] sm:$0xff] %v6812_v14 }
 0x77b   :  { %v8327_v59 = vpop.f32.mrb[168].mxu1 }
 0x77c   :  { %v6827_v15 = vadd.f32 %v8327_v59, %v14054_v16  ;;  %v6821_v51 = vpop.f32.mrb[169].mxu1 }
 0x77d   :  { %v6822_v54 = vadd.f32 %v14054_v16, %v6821_v51 }
 0x77e   :  { %6853 = vst [vmem:[#allocation2 + $0x68] sm:$0xff] %v6827_v15 }
 0x77f   :  { %6852 = vst [vmem:[#allocation2 + $0x60] sm:$0xff] %v6822_v54 }
 0x783   :  { %v8330_v29 = vpop.f32.mrb[170].mxu1 }
 0x784   :  { %v6837_v44 = vadd.f32 %v8330_v29, %v14054_v16  ;;  %v6831_v28 = vpop.f32.mrb[171].mxu1 }
 0x785   :  { %v6832_v43 = vadd.f32 %v14054_v16, %v6831_v28 }
 0x786   :  { %6855 = vst [vmem:[#allocation2 + $0x78] sm:$0xff] %v6837_v44 }
 0x787   :  { %6854 = vst [vmem:[#allocation2 + $0x70] sm:$0xff] %v6832_v43 }
 0x788   :  { %9218 = shalt.err (!%p9215_p4)
}
 0x789   :  { %s9219_s21 = scalar_lea.hbm %s14112_s6, 2048 }
 0x78a   :  { %p9220_p5 = scmp.ne.s32.totalorder %s14112_s6, %s9219_s21  ;;  %p9223_p6 = scmp.lt.u32.totalorder %s9219_s21, %s14112_s6 }
 0x78c   :  { %p9225_p7 = pnand %p9223_p6, %p9220_p5 }
 0x78e   :  { %9228 = shalt.err (!%p9225_p7)
}
 0x78f   :  { %s9240_s26 = smov 128   ;;  %s9241_s27 = smov 8  }
 0x790   :  { %6867 = dma.vmem_to_hbm [thread:$0]  %s6862_s2, 2048, %s14112_s6, [#allocation3], %s9240_s26, %s9240_s26, %s9241_s27  }
 0x791   :  { %9229 = dma.done.wait [#allocation3], 2048  }
 0x792   :  { %9230 = vsyncadd [#allocation3], 4294965248 }
 0x793   :  { %6871 = vsyncpa [#allocation3], 1 }

</bundles_post_ra>
